<compile_context>
chip_gen: v5e
topology: v5e:2x2
jax: 0.10.0
libtpu: 0.0.40
codegen_flags: <defaults>
</compile_context>

<pallas_src>
import functools

import jax
import jax.numpy as jnp
from jax.experimental import pallas as pl
from jax.experimental.pallas import tpu as pltpu


def _round_up(x, m):
    return ((x + m - 1) // m) * m


# ---------------------------------------------------------------------------
# Pallas kernel: tiled (im2col @ W) + folded-BatchNorm affine + LeakyReLU
# ---------------------------------------------------------------------------
def _fused_matmul_kernel(a_ref, w_ref, s_ref, b_ref, o_ref, acc_ref, *,
                         neg_slope, apply_act):
    @pl.when(pl.program_id(2) == 0)
    def _():
        acc_ref[...] = jnp.zeros_like(acc_ref)

    acc_ref[...] += jnp.dot(a_ref[...], w_ref[...],
                            preferred_element_type=jnp.float32)

    @pl.when(pl.program_id(2) == pl.num_programs(2) - 1)
    def _():
        y = acc_ref[...] * s_ref[...] + b_ref[...]
        if apply_act:
            y = jnp.where(y >= 0, y, y * neg_slope)
        o_ref[...] = y.astype(o_ref.dtype)


def fused_matmul_bn_act(a, w, scale, bias, *, apply_act=True, neg_slope=0.01,
                        out_dtype=jnp.bfloat16):
    """y = LeakyReLU((a @ w) * scale + bias).  a:(M,K), w:(K,Cout) -> (M,Cout)."""
    M, K = a.shape
    K2, Cout = w.shape
    assert K == K2

    # Tiles: lane dims padded to multiples of 128 (lane-dense, unmasked stores),
    # sublane dims to multiples of 8.
    TM = min(256, _round_up(M, 8))
    TN = min(256, _round_up(Cout, 128))
    TK = min(512, _round_up(K, 128))
    Mp, Np, Kp = _round_up(M, TM), _round_up(Cout, TN), _round_up(K, TK)

    a_p = jnp.pad(a.astype(jnp.bfloat16), ((0, Mp - M), (0, Kp - K)))
    w_p = jnp.pad(w.astype(jnp.bfloat16), ((0, Kp - K), (0, Np - Cout)))
    s_p = jnp.pad(scale.astype(jnp.float32).reshape(1, Cout), ((0, 0), (0, Np - Cout)))
    b_p = jnp.pad(bias.astype(jnp.float32).reshape(1, Cout), ((0, 0), (0, Np - Cout)))

    grid = (Mp // TM, Np // TN, Kp // TK)
    kernel = functools.partial(_fused_matmul_kernel, neg_slope=neg_slope,
                               apply_act=apply_act)
    out_bytes = Mp * Np * jnp.dtype(out_dtype).itemsize
    cost = pl.CostEstimate(
        flops=2 * Mp * Kp * Np,
        transcendentals=0,
        bytes_accessed=int(a_p.size * 2 + w_p.size * 2 + s_p.size * 8 + out_bytes),
    )

    out = pl.pallas_call(
        kernel,
        out_shape=jax.ShapeDtypeStruct((Mp, Np), out_dtype),
        grid_spec=pltpu.PrefetchScalarGridSpec(
            num_scalar_prefetch=0,
            grid=grid,
            in_specs=[
                pl.BlockSpec((TM, TK), lambda i, j, k: (i, k)),
                pl.BlockSpec((TK, TN), lambda i, j, k: (k, j)),
                pl.BlockSpec((1, TN), lambda i, j, k: (0, j)),
                pl.BlockSpec((1, TN), lambda i, j, k: (0, j)),
            ],
            out_specs=pl.BlockSpec((TM, TN), lambda i, j, k: (i, j)),
            scratch_shapes=[pltpu.VMEM((TM, TN), jnp.float32)],
        ),
        compiler_params=pltpu.CompilerParams(
            dimension_semantics=("parallel", "parallel", "arbitrary"),
            vmem_limit_bytes=32 * 1024 * 1024,
        ),
        cost_estimate=cost,
    )(a_p, w_p, s_p, b_p)
    return out[:M, :Cout]


# ---------------------------------------------------------------------------
# Glue: im2col patch extraction (valid conv, NHWC), transposed-conv input dilation
# ---------------------------------------------------------------------------
def _im2col(x, k, stride):
    # x: (N, H, W, C) -> (N, OH, OW, k*k*C), feature index = (i*k + j)*C + c
    N, H, W, C = x.shape
    OH = (H - k) // stride + 1
    OW = (W - k) // stride + 1
    cols = []
    for i in range(k):
        for j in range(k):
            sl = jax.lax.slice(
                x,
                (0, i, j, 0),
                (N, i + stride * (OH - 1) + 1, j + stride * (OW - 1) + 1, C),
                (1, stride, stride, 1),
            )
            cols.append(sl)
    return jnp.concatenate(cols, axis=-1)


def apply_conv_block(x, p):
    """One Conv/ConvTranspose + BatchNorm(+LeakyReLU) block. x is NHWC bf16."""
    k, s = p["k"], p["stride"]
    if p["transpose"]:
        # ConvTranspose2d(stride=s, padding=0) == dilate input by s, pad k-1 each side,
        # then VALID conv (stride 1) with flipped/transposed kernel (folded into wmat).
        x = jax.lax.pad(
            x,
            jnp.array(0.0, x.dtype),
            [(0, 0, 0), (k - 1, k - 1, s - 1), (k - 1, k - 1, s - 1), (0, 0, 0)],
        )
        s = 1
    patches = _im2col(x, k, s)
    N, OH, OW, KC = patches.shape
    y = fused_matmul_bn_act(
        patches.reshape(N * OH * OW, KC), p["wmat"], p["scale"], p["bias"],
        apply_act=p["act"], out_dtype=jnp.bfloat16,
    )
    return y.reshape(N, OH, OW, -1)


def apply_seq(x, plist):
    for p in plist:
        x = apply_conv_block(x, p)
    return x


# ---------------------------------------------------------------------------
# Deterministic parameter construction (synthetic; matches PyTorch shapes)
# ---------------------------------------------------------------------------
def make_conv_params(key, cin, cout, k=3, stride=1, transpose=False, act=True):
    k1, k2, k3, k4, k5, k6 = jax.random.split(key, 6)
    fan_in = cin * k * k
    if transpose:
        # PyTorch ConvTranspose2d weight: (Cin, Cout, KH, KW) -> equivalent valid-conv weight
        w_t = jax.random.normal(k1, (cin, cout, k, k), jnp.float32) / jnp.sqrt(fan_in)
        w_conv = jnp.flip(jnp.transpose(w_t, (1, 0, 2, 3)), axis=(2, 3))  # (Cout,Cin,KH,KW)
    else:
        # PyTorch Conv2d weight: (Cout, Cin, KH, KW)
        w_conv = jax.random.normal(k1, (cout, cin, k, k), jnp.float32) / jnp.sqrt(fan_in)
    b_conv = 0.01 * jax.random.normal(k2, (cout,), jnp.float32)
    gamma = 1.0 + 0.1 * jax.random.normal(k3, (cout,), jnp.float32)
    beta = 0.1 * jax.random.normal(k4, (cout,), jnp.float32)
    rmean = 0.05 * jax.random.normal(k5, (cout,), jnp.float32)
    rvar = 1.0 + 0.1 * jnp.abs(jax.random.normal(k6, (cout,), jnp.float32))
    bn_scale = gamma / jnp.sqrt(rvar + 1e-5)
    fused_scale = bn_scale
    fused_bias = (b_conv - rmean) * bn_scale + beta
    # im2col weight matrix: (KH, KW, Cin, Cout) -> (KH*KW*Cin, Cout), stored bf16 for the MXU.
    wmat = jnp.transpose(w_conv, (2, 3, 1, 0)).reshape(k * k * cin, cout).astype(jnp.bfloat16)
    return dict(wmat=wmat, scale=fused_scale, bias=fused_bias,
                k=k, stride=stride, transpose=transpose, act=act)


def make_convlayer(key, cin, cout):  # convLayer: 2x (Conv k3 s1 + BN + LeakyReLU)
    k1, k2 = jax.random.split(key)
    return [make_conv_params(k1, cin, cout), make_conv_params(k2, cout, cout)]


def make_tconvlayer(key, cin, cout):  # TconvLayer: 2x (ConvT k3 s1 + BN + LeakyReLU)
    k1, k2 = jax.random.split(key)
    return [make_conv_params(k1, cin, cout, transpose=True),
            make_conv_params(k2, cout, cout, transpose=True)]


def init_uattention(key, channels=2, level=3):
    oc = [channels * 4 ** (i + 1) for i in range(level + 1)]
    keys = iter(jax.random.split(key, 4 * level + 4))
    params = dict(c=[], d=[], u=[], ct=[])
    params["c"].append(make_convlayer(next(keys), channels, oc[0]))
    for x in range(level):
        params["d"].append([make_conv_params(next(keys), oc[x], oc[x + 1], stride=2)])
        params["c"].append(make_convlayer(next(keys), oc[x + 1], oc[x + 1]))
    for x in range(level):
        params["u"].append([make_conv_params(next(keys), oc[level - x], oc[level - x - 1],
                                             stride=2, transpose=True)])
        params["ct"].append(make_tconvlayer(next(keys), oc[level - x - 1] * 2, oc[level - x - 1]))
    ko1, ko2 = jax.random.split(next(keys))
    # o: ConvT(oc0,oc0)+BN+LeakyReLU, Conv(oc0,2)+BN (no activation)
    params["o"] = [make_conv_params(ko1, oc[0], oc[0], transpose=True),
                   make_conv_params(ko2, oc[0], 2, act=False)]
    return params


# ---------------------------------------------------------------------------
# Forward
# ---------------------------------------------------------------------------
def unet_forward(x, params, level):
    # x: (B, H, W, 2) NHWC bf16 — B already includes all channel pairs stacked on batch.
    ds = []
    out = x
    for lvl in range(level):
        out = apply_seq(out, params["c"][lvl])
        ds.append(out)
        out = apply_seq(out, params["d"][lvl])
    for i in range(level):
        up = apply_seq(out, params["u"][i])
        out = jnp.concatenate([up, ds[level - i - 1]], axis=-1)  # cat([upsample, skip], channel)
        out = apply_seq(out, params["ct"][i])
    out = apply_seq(out, params["o"])
    return out  # (B, H, W, 2) bf16


def uattention_forward(x_nchw, params, level):
    # layout: input/output NCHW (PyTorch convention); NHWC bf16 internally.
    N, nch, H, W = x_nchw.shape
    pairs = [(i, j) for i in range(nch) for j in range(i + 1, nch)]
    if not pairs:
        return x_nchw
    P = len(pairs)
    pair_idx = jnp.array(pairs, dtype=jnp.int32)              # (P, 2)

    # Stack all channel pairs on the batch axis: the U-Net weights are shared per pair,
    # so one batched forward replaces the nch*(nch-1)/2 serial passes.
    xp = x_nchw[:, pair_idx, :, :]                            # (N, P, 2, H, W)
    xp = jnp.transpose(xp, (1, 0, 3, 4, 2))                   # (P, N, H, W, 2)
    xp = xp.reshape(P * N, H, W, 2).astype(jnp.bfloat16)

    y = unet_forward(xp, params, level)                       # (P*N, H, W, 2)
    y = y.astype(jnp.float32).reshape(P, N, H, W, 2)

    # Scatter-add each pair's two output channels back to its source channels
    # (dense one-hot matmul instead of serialized .at[].add).
    y2 = jnp.transpose(y, (1, 2, 3, 0, 4)).reshape(N, H, W, P * 2)
    scat = jax.nn.one_hot(pair_idx.reshape(-1), nch, dtype=jnp.float32)   # (2P, nch)
    out_nhwc = jnp.einsum("nhwk,kc->nhwc", y2, scat)          # (N, H, W, nch)
    out = jnp.transpose(out_nhwc, (0, 3, 1, 2)) / nch         # (N, nch, H, W)
    return x_nchw + out.astype(x_nchw.dtype)


if __name__ == "__main__":
    CHANNELS, LEVEL = 2, 2          # small U-Net: out_channels = [8, 32, 128]
    BATCH, NCH, S = 1, 4, 19        # spatial size 19 is the smallest valid for level=2
                                    # (valid convs / stride-2 with no padding must round-trip)

    key = jax.random.PRNGKey(0)
    kp, kx = jax.random.split(key)
    params = init_uattention(kp, channels=CHANNELS, level=LEVEL)
    x = jax.random.normal(kx, (BATCH, NCH, S, S), jnp.float32)

    fwd = jax.jit(lambda inp: uattention_forward(inp, params, LEVEL))
    y = fwd(x)
    jax.block_until_ready(y)

    assert y.shape == x.shape and y.dtype == x.dtype
    assert bool(jnp.all(jnp.isfinite(y)))
    print("KERNEL_OK")
</pallas_src>

<mosaic_0001>
module attributes {stable_mosaic.version = 11 : i64} {
  func.func @_fused_matmul_kernel(%arg0: i32, %arg1: i32, %arg2: i32, %arg3: memref<256x128xbf16, #tpu.memory_space<vmem>>, %arg4: memref<128x128xbf16, #tpu.memory_space<vmem>>, %arg5: memref<1x128xf32, #tpu.memory_space<vmem>>, %arg6: memref<1x128xf32, #tpu.memory_space<vmem>>, %arg7: memref<256x128xbf16, #tpu.memory_space<vmem>>, %arg8: memref<256x128xf32, #tpu.memory_space<vmem>>) attributes {dimension_semantics = [#tpu.dimension_semantics<parallel>, #tpu.dimension_semantics<parallel>, #tpu.dimension_semantics<arbitrary>], iteration_bounds = array<i64: 7, 1, 1>, scalar_prefetch = 0 : i64, scratch_operands = 1 : i64, tpu.core_type = #tpu.core_type<tc>, window_params = [{transform_indices = @transform_0, window_bounds = array<i64: 256, 128>}, {transform_indices = @transform_1, window_bounds = array<i64: 128, 128>}, {transform_indices = @transform_2, window_bounds = array<i64: 1, 128>}, {transform_indices = @transform_3, window_bounds = array<i64: 1, 128>}, {transform_indices = @transform_4, window_bounds = array<i64: 256, 128>}]} {
    %c0_i32 = arith.constant 0 : i32
    %0 = arith.cmpi eq, %arg2, %c0_i32 : i32
    %1 = arith.extui %0 : i1 to i32
    %c0_i32_0 = arith.constant 0 : i32
    %2 = arith.cmpi ne, %1, %c0_i32_0 : i32
    scf.if %2 {
      %cst_10 = arith.constant 0.000000e+00 : f32
      %12 = vector.broadcast %cst_10 : f32 to vector<256x128xf32>
      %c0_11 = arith.constant 0 : index
      %c0_12 = arith.constant 0 : index
      %13 = vector.load %arg8[%c0_11, %c0_12] : memref<256x128xf32, #tpu.memory_space<vmem>>, vector<256x128xf32>
      tpu.vector_store %arg8[%c0_11, %c0_12], %12 {strides = array<i32>} : memref<256x128xf32, #tpu.memory_space<vmem>>, vector<256x128xf32>,
    } else {
    }
    %c0 = arith.constant 0 : index
    %c0_1 = arith.constant 0 : index
    %3 = vector.load %arg8[%c0, %c0_1] : memref<256x128xf32, #tpu.memory_space<vmem>>, vector<256x128xf32>
    %c0_2 = arith.constant 0 : index
    %c0_3 = arith.constant 0 : index
    %4 = vector.load %arg3[%c0_2, %c0_3] : memref<256x128xbf16, #tpu.memory_space<vmem>>, vector<256x128xbf16>
    %c0_4 = arith.constant 0 : index
    %c0_5 = arith.constant 0 : index
    %5 = vector.load %arg4[%c0_4, %c0_5] : memref<128x128xbf16, #tpu.memory_space<vmem>>, vector<128x128xbf16>
    %cst = arith.constant dense<0.000000e+00> : vector<256x128xf32>
    %6 = tpu.matmul %4, %5, %cst {dimension_numbers = #tpu.dot_dimension_numbers<[1], [0], [0], [1], [0, 0, 1, 1], [], []>} : vector<256x128xbf16>, vector<128x128xbf16>, vector<256x128xf32> -> vector<256x128xf32>
    %7 = arith.addf %3, %6 : vector<256x128xf32>
    %c0_6 = arith.constant 0 : index
    %c0_7 = arith.constant 0 : index
    %8 = vector.load %arg8[%c0_6, %c0_7] : memref<256x128xf32, #tpu.memory_space<vmem>>, vector<256x128xf32>
    tpu.vector_store %arg8[%c0_6, %c0_7], %7 {strides = array<i32>} : memref<256x128xf32, #tpu.memory_space<vmem>>, vector<256x128xf32>,
    %c0_i32_8 = arith.constant 0 : i32
    %9 = arith.cmpi eq, %arg2, %c0_i32_8 : i32
    %10 = arith.extui %9 : i1 to i32
    %c0_i32_9 = arith.constant 0 : i32
    %11 = arith.cmpi ne, %10, %c0_i32_9 : i32
    scf.if %11 {
      %c0_10 = arith.constant 0 : index
      %c0_11 = arith.constant 0 : index
      %12 = vector.load %arg8[%c0_10, %c0_11] : memref<256x128xf32, #tpu.memory_space<vmem>>, vector<256x128xf32>
      %c0_12 = arith.constant 0 : index
      %c0_13 = arith.constant 0 : index
      %13 = vector.load %arg5[%c0_12, %c0_13] : memref<1x128xf32, #tpu.memory_space<vmem>>, vector<1x128xf32>
      %14 = vector.broadcast %13 : vector<1x128xf32> to vector<256x128xf32>
      %15 = arith.mulf %12, %14 : vector<256x128xf32>
      %c0_14 = arith.constant 0 : index
      %c0_15 = arith.constant 0 : index
      %16 = vector.load %arg6[%c0_14, %c0_15] : memref<1x128xf32, #tpu.memory_space<vmem>>, vector<1x128xf32>
      %17 = vector.broadcast %16 : vector<1x128xf32> to vector<256x128xf32>
      %18 = arith.addf %15, %17 : vector<256x128xf32>
      %cst_16 = arith.constant 0.000000e+00 : f32
      %19 = vector.broadcast %cst_16 : f32 to vector<256x128xf32>
      %20 = arith.cmpf oge, %18, %19 : vector<256x128xf32>
      %cst_17 = arith.constant 0.00999999977 : f32
      %21 = vector.broadcast %cst_17 : f32 to vector<256x128xf32>
      %22 = arith.mulf %18, %21 : vector<256x128xf32>
      %23 = arith.select %20, %18, %22 : vector<256x128xi1>, vector<256x128xf32>
      %24 = arith.truncf %23 : vector<256x128xf32> to vector<256x128xbf16>
      %c0_18 = arith.constant 0 : index
      %c0_19 = arith.constant 0 : index
      %25 = vector.load %arg7[%c0_18, %c0_19] : memref<256x128xbf16, #tpu.memory_space<vmem>>, vector<256x128xbf16>
      tpu.vector_store %arg7[%c0_18, %c0_19], %24 {strides = array<i32>} : memref<256x128xbf16, #tpu.memory_space<vmem>>, vector<256x128xbf16>,
    } else {
    }
    return
  }
  func.func @transform_0(%arg0: i32, %arg1: i32, %arg2: i32) -> (i32, i32) {
    %c0_i32 = arith.constant 0 : i32
    return %arg0, %arg2 : i32, i32
  }
  func.func @transform_1(%arg0: i32, %arg1: i32, %arg2: i32) -> (i32, i32) {
    %c0_i32 = arith.constant 0 : i32
    return %arg2, %arg1 : i32, i32
  }
  func.func @transform_2(%arg0: i32, %arg1: i32, %arg2: i32) -> (i32, i32) {
    %c0_i32 = arith.constant 0 : i32
    %c0_i32_0 = arith.constant 0 : i32
    return %c0_i32, %arg1 : i32, i32
  }
  func.func @transform_3(%arg0: i32, %arg1: i32, %arg2: i32) -> (i32, i32) {
    %c0_i32 = arith.constant 0 : i32
    %c0_i32_0 = arith.constant 0 : i32
    return %c0_i32, %arg1 : i32, i32
  }
  func.func @transform_4(%arg0: i32, %arg1: i32, %arg2: i32) -> (i32, i32) {
    %c0_i32 = arith.constant 0 : i32
    return %arg0, %arg1 : i32, i32
  }
}

module attributes {stable_mosaic.version = 11 : i64} {
  func.func @_fused_matmul_kernel(%arg0: i32, %arg1: i32, %arg2: i32, %arg3: memref<256x128xbf16, #tpu.memory_space<vmem>>, %arg4: memref<128x128xbf16, #tpu.memory_space<vmem>>, %arg5: memref<1x128xf32, #tpu.memory_space<vmem>>, %arg6: memref<1x128xf32, #tpu.memory_space<vmem>>, %arg7: memref<256x128xbf16, #tpu.memory_space<vmem>>, %arg8: memref<256x128xf32, #tpu.memory_space<vmem>>) attributes {dimension_semantics = [#tpu.dimension_semantics<parallel>, #tpu.dimension_semantics<parallel>, #tpu.dimension_semantics<arbitrary>], iteration_bounds = array<i64: 6, 1, 1>, scalar_prefetch = 0 : i64, scratch_operands = 1 : i64, tpu.core_type = #tpu.core_type<tc>, window_params = [{transform_indices = @transform_0, window_bounds = array<i64: 256, 128>}, {transform_indices = @transform_1, window_bounds = array<i64: 128, 128>}, {transform_indices = @transform_2, window_bounds = array<i64: 1, 128>}, {transform_indices = @transform_3, window_bounds = array<i64: 1, 128>}, {transform_indices = @transform_4, window_bounds = array<i64: 256, 128>}]} {
    %c0_i32 = arith.constant 0 : i32
    %0 = arith.cmpi eq, %arg2, %c0_i32 : i32
    %1 = arith.extui %0 : i1 to i32
    %c0_i32_0 = arith.constant 0 : i32
    %2 = arith.cmpi ne, %1, %c0_i32_0 : i32
    scf.if %2 {
      %cst_10 = arith.constant 0.000000e+00 : f32
      %12 = vector.broadcast %cst_10 : f32 to vector<256x128xf32>
      %c0_11 = arith.constant 0 : index
      %c0_12 = arith.constant 0 : index
      %13 = vector.load %arg8[%c0_11, %c0_12] : memref<256x128xf32, #tpu.memory_space<vmem>>, vector<256x128xf32>
      tpu.vector_store %arg8[%c0_11, %c0_12], %12 {strides = array<i32>} : memref<256x128xf32, #tpu.memory_space<vmem>>, vector<256x128xf32>,
    } else {
    }
    %c0 = arith.constant 0 : index
    %c0_1 = arith.constant 0 : index
    %3 = vector.load %arg8[%c0, %c0_1] : memref<256x128xf32, #tpu.memory_space<vmem>>, vector<256x128xf32>
    %c0_2 = arith.constant 0 : index
    %c0_3 = arith.constant 0 : index
    %4 = vector.load %arg3[%c0_2, %c0_3] : memref<256x128xbf16, #tpu.memory_space<vmem>>, vector<256x128xbf16>
    %c0_4 = arith.constant 0 : index
    %c0_5 = arith.constant 0 : index
    %5 = vector.load %arg4[%c0_4, %c0_5] : memref<128x128xbf16, #tpu.memory_space<vmem>>, vector<128x128xbf16>
    %cst = arith.constant dense<0.000000e+00> : vector<256x128xf32>
    %6 = tpu.matmul %4, %5, %cst {dimension_numbers = #tpu.dot_dimension_numbers<[1], [0], [0], [1], [0, 0, 1, 1], [], []>} : vector<256x128xbf16>, vector<128x128xbf16>, vector<256x128xf32> -> vector<256x128xf32>
    %7 = arith.addf %3, %6 : vector<256x128xf32>
    %c0_6 = arith.constant 0 : index
    %c0_7 = arith.constant 0 : index
    %8 = vector.load %arg8[%c0_6, %c0_7] : memref<256x128xf32, #tpu.memory_space<vmem>>, vector<256x128xf32>
    tpu.vector_store %arg8[%c0_6, %c0_7], %7 {strides = array<i32>} : memref<256x128xf32, #tpu.memory_space<vmem>>, vector<256x128xf32>,
    %c0_i32_8 = arith.constant 0 : i32
    %9 = arith.cmpi eq, %arg2, %c0_i32_8 : i32
    %10 = arith.extui %9 : i1 to i32
    %c0_i32_9 = arith.constant 0 : i32
    %11 = arith.cmpi ne, %10, %c0_i32_9 : i32
    scf.if %11 {
      %c0_10 = arith.constant 0 : index
      %c0_11 = arith.constant 0 : index
      %12 = vector.load %arg8[%c0_10, %c0_11] : memref<256x128xf32, #tpu.memory_space<vmem>>, vector<256x128xf32>
      %c0_12 = arith.constant 0 : index
      %c0_13 = arith.constant 0 : index
      %13 = vector.load %arg5[%c0_12, %c0_13] : memref<1x128xf32, #tpu.memory_space<vmem>>, vector<1x128xf32>
      %14 = vector.broadcast %13 : vector<1x128xf32> to vector<256x128xf32>
      %15 = arith.mulf %12, %14 : vector<256x128xf32>
      %c0_14 = arith.constant 0 : index
      %c0_15 = arith.constant 0 : index
      %16 = vector.load %arg6[%c0_14, %c0_15] : memref<1x128xf32, #tpu.memory_space<vmem>>, vector<1x128xf32>
      %17 = vector.broadcast %16 : vector<1x128xf32> to vector<256x128xf32>
      %18 = arith.addf %15, %17 : vector<256x128xf32>
      %cst_16 = arith.constant 0.000000e+00 : f32
      %19 = vector.broadcast %cst_16 : f32 to vector<256x128xf32>
      %20 = arith.cmpf oge, %18, %19 : vector<256x128xf32>
      %cst_17 = arith.constant 0.00999999977 : f32
      %21 = vector.broadcast %cst_17 : f32 to vector<256x128xf32>
      %22 = arith.mulf %18, %21 : vector<256x128xf32>
      %23 = arith.select %20, %18, %22 : vector<256x128xi1>, vector<256x128xf32>
      %24 = arith.truncf %23 : vector<256x128xf32> to vector<256x128xbf16>
      %c0_18 = arith.constant 0 : index
      %c0_19 = arith.constant 0 : index
      %25 = vector.load %arg7[%c0_18, %c0_19] : memref<256x128xbf16, #tpu.memory_space<vmem>>, vector<256x128xbf16>
      tpu.vector_store %arg7[%c0_18, %c0_19], %24 {strides = array<i32>} : memref<256x128xbf16, #tpu.memory_space<vmem>>, vector<256x128xbf16>,
    } else {
    }
    return
  }
  func.func @transform_0(%arg0: i32, %arg1: i32, %arg2: i32) -> (i32, i32) {
    %c0_i32 = arith.constant 0 : i32
    return %arg0, %arg2 : i32, i32
  }
  func.func @transform_1(%arg0: i32, %arg1: i32, %arg2: i32) -> (i32, i32) {
    %c0_i32 = arith.constant 0 : i32
    return %arg2, %arg1 : i32, i32
  }
  func.func @transform_2(%arg0: i32, %arg1: i32, %arg2: i32) -> (i32, i32) {
    %c0_i32 = arith.constant 0 : i32
    %c0_i32_0 = arith.constant 0 : i32
    return %c0_i32, %arg1 : i32, i32
  }
  func.func @transform_3(%arg0: i32, %arg1: i32, %arg2: i32) -> (i32, i32) {
    %c0_i32 = arith.constant 0 : i32
    %c0_i32_0 = arith.constant 0 : i32
    return %c0_i32, %arg1 : i32, i32
  }
  func.func @transform_4(%arg0: i32, %arg1: i32, %arg2: i32) -> (i32, i32) {
    %c0_i32 = arith.constant 0 : i32
    return %arg0, %arg1 : i32, i32
  }
}

module attributes {stable_mosaic.version = 11 : i64} {
  func.func @_fused_matmul_kernel(%arg0: i32, %arg1: i32, %arg2: i32, %arg3: memref<256x128xbf16, #tpu.memory_space<vmem>>, %arg4: memref<128x128xbf16, #tpu.memory_space<vmem>>, %arg5: memref<1x128xf32, #tpu.memory_space<vmem>>, %arg6: memref<1x128xf32, #tpu.memory_space<vmem>>, %arg7: memref<256x128xbf16, #tpu.memory_space<vmem>>, %arg8: memref<256x128xf32, #tpu.memory_space<vmem>>) attributes {dimension_semantics = [#tpu.dimension_semantics<parallel>, #tpu.dimension_semantics<parallel>, #tpu.dimension_semantics<arbitrary>], iteration_bounds = array<i64: 2, 1, 1>, scalar_prefetch = 0 : i64, scratch_operands = 1 : i64, tpu.core_type = #tpu.core_type<tc>, window_params = [{transform_indices = @transform_0, window_bounds = array<i64: 256, 128>}, {transform_indices = @transform_1, window_bounds = array<i64: 128, 128>}, {transform_indices = @transform_2, window_bounds = array<i64: 1, 128>}, {transform_indices = @transform_3, window_bounds = array<i64: 1, 128>}, {transform_indices = @transform_4, window_bounds = array<i64: 256, 128>}]} {
    %c0_i32 = arith.constant 0 : i32
    %0 = arith.cmpi eq, %arg2, %c0_i32 : i32
    %1 = arith.extui %0 : i1 to i32
    %c0_i32_0 = arith.constant 0 : i32
    %2 = arith.cmpi ne, %1, %c0_i32_0 : i32
    scf.if %2 {
      %cst_10 = arith.constant 0.000000e+00 : f32
      %12 = vector.broadcast %cst_10 : f32 to vector<256x128xf32>
      %c0_11 = arith.constant 0 : index
      %c0_12 = arith.constant 0 : index
      %13 = vector.load %arg8[%c0_11, %c0_12] : memref<256x128xf32, #tpu.memory_space<vmem>>, vector<256x128xf32>
      tpu.vector_store %arg8[%c0_11, %c0_12], %12 {strides = array<i32>} : memref<256x128xf32, #tpu.memory_space<vmem>>, vector<256x128xf32>,
    } else {
    }
    %c0 = arith.constant 0 : index
    %c0_1 = arith.constant 0 : index
    %3 = vector.load %arg8[%c0, %c0_1] : memref<256x128xf32, #tpu.memory_space<vmem>>, vector<256x128xf32>
    %c0_2 = arith.constant 0 : index
    %c0_3 = arith.constant 0 : index
    %4 = vector.load %arg3[%c0_2, %c0_3] : memref<256x128xbf16, #tpu.memory_space<vmem>>, vector<256x128xbf16>
    %c0_4 = arith.constant 0 : index
    %c0_5 = arith.constant 0 : index
    %5 = vector.load %arg4[%c0_4, %c0_5] : memref<128x128xbf16, #tpu.memory_space<vmem>>, vector<128x128xbf16>
    %cst = arith.constant dense<0.000000e+00> : vector<256x128xf32>
    %6 = tpu.matmul %4, %5, %cst {dimension_numbers = #tpu.dot_dimension_numbers<[1], [0], [0], [1], [0, 0, 1, 1], [], []>} : vector<256x128xbf16>, vector<128x128xbf16>, vector<256x128xf32> -> vector<256x128xf32>
    %7 = arith.addf %3, %6 : vector<256x128xf32>
    %c0_6 = arith.constant 0 : index
    %c0_7 = arith.constant 0 : index
    %8 = vector.load %arg8[%c0_6, %c0_7] : memref<256x128xf32, #tpu.memory_space<vmem>>, vector<256x128xf32>
    tpu.vector_store %arg8[%c0_6, %c0_7], %7 {strides = array<i32>} : memref<256x128xf32, #tpu.memory_space<vmem>>, vector<256x128xf32>,
    %c0_i32_8 = arith.constant 0 : i32
    %9 = arith.cmpi eq, %arg2, %c0_i32_8 : i32
    %10 = arith.extui %9 : i1 to i32
    %c0_i32_9 = arith.constant 0 : i32
    %11 = arith.cmpi ne, %10, %c0_i32_9 : i32
    scf.if %11 {
      %c0_10 = arith.constant 0 : index
      %c0_11 = arith.constant 0 : index
      %12 = vector.load %arg8[%c0_10, %c0_11] : memref<256x128xf32, #tpu.memory_space<vmem>>, vector<256x128xf32>
      %c0_12 = arith.constant 0 : index
      %c0_13 = arith.constant 0 : index
      %13 = vector.load %arg5[%c0_12, %c0_13] : memref<1x128xf32, #tpu.memory_space<vmem>>, vector<1x128xf32>
      %14 = vector.broadcast %13 : vector<1x128xf32> to vector<256x128xf32>
      %15 = arith.mulf %12, %14 : vector<256x128xf32>
      %c0_14 = arith.constant 0 : index
      %c0_15 = arith.constant 0 : index
      %16 = vector.load %arg6[%c0_14, %c0_15] : memref<1x128xf32, #tpu.memory_space<vmem>>, vector<1x128xf32>
      %17 = vector.broadcast %16 : vector<1x128xf32> to vector<256x128xf32>
      %18 = arith.addf %15, %17 : vector<256x128xf32>
      %cst_16 = arith.constant 0.000000e+00 : f32
      %19 = vector.broadcast %cst_16 : f32 to vector<256x128xf32>
      %20 = arith.cmpf oge, %18, %19 : vector<256x128xf32>
      %cst_17 = arith.constant 0.00999999977 : f32
      %21 = vector.broadcast %cst_17 : f32 to vector<256x128xf32>
      %22 = arith.mulf %18, %21 : vector<256x128xf32>
      %23 = arith.select %20, %18, %22 : vector<256x128xi1>, vector<256x128xf32>
      %24 = arith.truncf %23 : vector<256x128xf32> to vector<256x128xbf16>
      %c0_18 = arith.constant 0 : index
      %c0_19 = arith.constant 0 : index
      %25 = vector.load %arg7[%c0_18, %c0_19] : memref<256x128xbf16, #tpu.memory_space<vmem>>, vector<256x128xbf16>
      tpu.vector_store %arg7[%c0_18, %c0_19], %24 {strides = array<i32>} : memref<256x128xbf16, #tpu.memory_space<vmem>>, vector<256x128xbf16>,
    } else {
    }
    return
  }
  func.func @transform_0(%arg0: i32, %arg1: i32, %arg2: i32) -> (i32, i32) {
    %c0_i32 = arith.constant 0 : i32
    return %arg0, %arg2 : i32, i32
  }
  func.func @transform_1(%arg0: i32, %arg1: i32, %arg2: i32) -> (i32, i32) {
    %c0_i32 = arith.constant 0 : i32
    return %arg2, %arg1 : i32, i32
  }
  func.func @transform_2(%arg0: i32, %arg1: i32, %arg2: i32) -> (i32, i32) {
    %c0_i32 = arith.constant 0 : i32
    %c0_i32_0 = arith.constant 0 : i32
    return %c0_i32, %arg1 : i32, i32
  }
  func.func @transform_3(%arg0: i32, %arg1: i32, %arg2: i32) -> (i32, i32) {
    %c0_i32 = arith.constant 0 : i32
    %c0_i32_0 = arith.constant 0 : i32
    return %c0_i32, %arg1 : i32, i32
  }
  func.func @transform_4(%arg0: i32, %arg1: i32, %arg2: i32) -> (i32, i32) {
    %c0_i32 = arith.constant 0 : i32
    return %arg0, %arg1 : i32, i32
  }
}

module attributes {stable_mosaic.version = 11 : i64} {
  func.func @_fused_matmul_kernel(%arg0: i32, %arg1: i32, %arg2: i32, %arg3: memref<152x384xbf16, #tpu.memory_space<vmem>>, %arg4: memref<384x128xbf16, #tpu.memory_space<vmem>>, %arg5: memref<1x128xf32, #tpu.memory_space<vmem>>, %arg6: memref<1x128xf32, #tpu.memory_space<vmem>>, %arg7: memref<152x128xbf16, #tpu.memory_space<vmem>>, %arg8: memref<152x128xf32, #tpu.memory_space<vmem>>) attributes {dimension_semantics = [#tpu.dimension_semantics<parallel>, #tpu.dimension_semantics<parallel>, #tpu.dimension_semantics<arbitrary>], iteration_bounds = array<i64: 1, 1, 1>, scalar_prefetch = 0 : i64, scratch_operands = 1 : i64, tpu.core_type = #tpu.core_type<tc>, window_params = [{transform_indices = @transform_0, window_bounds = array<i64: 152, 384>}, {transform_indices = @transform_1, window_bounds = array<i64: 384, 128>}, {transform_indices = @transform_2, window_bounds = array<i64: 1, 128>}, {transform_indices = @transform_3, window_bounds = array<i64: 1, 128>}, {transform_indices = @transform_4, window_bounds = array<i64: 152, 128>}]} {
    %c0_i32 = arith.constant 0 : i32
    %0 = arith.cmpi eq, %arg2, %c0_i32 : i32
    %1 = arith.extui %0 : i1 to i32
    %c0_i32_0 = arith.constant 0 : i32
    %2 = arith.cmpi ne, %1, %c0_i32_0 : i32
    scf.if %2 {
      %cst_10 = arith.constant 0.000000e+00 : f32
      %12 = vector.broadcast %cst_10 : f32 to vector<152x128xf32>
      %c0_11 = arith.constant 0 : index
      %c0_12 = arith.constant 0 : index
      %13 = vector.load %arg8[%c0_11, %c0_12] : memref<152x128xf32, #tpu.memory_space<vmem>>, vector<152x128xf32>
      tpu.vector_store %arg8[%c0_11, %c0_12], %12 {strides = array<i32>} : memref<152x128xf32, #tpu.memory_space<vmem>>, vector<152x128xf32>,
    } else {
    }
    %c0 = arith.constant 0 : index
    %c0_1 = arith.constant 0 : index
    %3 = vector.load %arg8[%c0, %c0_1] : memref<152x128xf32, #tpu.memory_space<vmem>>, vector<152x128xf32>
    %c0_2 = arith.constant 0 : index
    %c0_3 = arith.constant 0 : index
    %4 = vector.load %arg3[%c0_2, %c0_3] : memref<152x384xbf16, #tpu.memory_space<vmem>>, vector<152x384xbf16>
    %c0_4 = arith.constant 0 : index
    %c0_5 = arith.constant 0 : index
    %5 = vector.load %arg4[%c0_4, %c0_5] : memref<384x128xbf16, #tpu.memory_space<vmem>>, vector<384x128xbf16>
    %cst = arith.constant dense<0.000000e+00> : vector<152x128xf32>
    %6 = tpu.matmul %4, %5, %cst {dimension_numbers = #tpu.dot_dimension_numbers<[1], [0], [0], [1], [0, 0, 1, 1], [], []>} : vector<152x384xbf16>, vector<384x128xbf16>, vector<152x128xf32> -> vector<152x128xf32>
    %7 = arith.addf %3, %6 : vector<152x128xf32>
    %c0_6 = arith.constant 0 : index
    %c0_7 = arith.constant 0 : index
    %8 = vector.load %arg8[%c0_6, %c0_7] : memref<152x128xf32, #tpu.memory_space<vmem>>, vector<152x128xf32>
    tpu.vector_store %arg8[%c0_6, %c0_7], %7 {strides = array<i32>} : memref<152x128xf32, #tpu.memory_space<vmem>>, vector<152x128xf32>,
    %c0_i32_8 = arith.constant 0 : i32
    %9 = arith.cmpi eq, %arg2, %c0_i32_8 : i32
    %10 = arith.extui %9 : i1 to i32
    %c0_i32_9 = arith.constant 0 : i32
    %11 = arith.cmpi ne, %10, %c0_i32_9 : i32
    scf.if %11 {
      %c0_10 = arith.constant 0 : index
      %c0_11 = arith.constant 0 : index
      %12 = vector.load %arg8[%c0_10, %c0_11] : memref<152x128xf32, #tpu.memory_space<vmem>>, vector<152x128xf32>
      %c0_12 = arith.constant 0 : index
      %c0_13 = arith.constant 0 : index
      %13 = vector.load %arg5[%c0_12, %c0_13] : memref<1x128xf32, #tpu.memory_space<vmem>>, vector<1x128xf32>
      %14 = vector.broadcast %13 : vector<1x128xf32> to vector<152x128xf32>
      %15 = arith.mulf %12, %14 : vector<152x128xf32>
      %c0_14 = arith.constant 0 : index
      %c0_15 = arith.constant 0 : index
      %16 = vector.load %arg6[%c0_14, %c0_15] : memref<1x128xf32, #tpu.memory_space<vmem>>, vector<1x128xf32>
      %17 = vector.broadcast %16 : vector<1x128xf32> to vector<152x128xf32>
      %18 = arith.addf %15, %17 : vector<152x128xf32>
      %cst_16 = arith.constant 0.000000e+00 : f32
      %19 = vector.broadcast %cst_16 : f32 to vector<152x128xf32>
      %20 = arith.cmpf oge, %18, %19 : vector<152x128xf32>
      %cst_17 = arith.constant 0.00999999977 : f32
      %21 = vector.broadcast %cst_17 : f32 to vector<152x128xf32>
      %22 = arith.mulf %18, %21 : vector<152x128xf32>
      %23 = arith.select %20, %18, %22 : vector<152x128xi1>, vector<152x128xf32>
      %24 = arith.truncf %23 : vector<152x128xf32> to vector<152x128xbf16>
      %c0_18 = arith.constant 0 : index
      %c0_19 = arith.constant 0 : index
      %25 = vector.load %arg7[%c0_18, %c0_19] : memref<152x128xbf16, #tpu.memory_space<vmem>>, vector<152x128xbf16>
      tpu.vector_store %arg7[%c0_18, %c0_19], %24 {strides = array<i32>} : memref<152x128xbf16, #tpu.memory_space<vmem>>, vector<152x128xbf16>,
    } else {
    }
    return
  }
  func.func @transform_0(%arg0: i32, %arg1: i32, %arg2: i32) -> (i32, i32) {
    %c0_i32 = arith.constant 0 : i32
    return %arg0, %arg2 : i32, i32
  }
  func.func @transform_1(%arg0: i32, %arg1: i32, %arg2: i32) -> (i32, i32) {
    %c0_i32 = arith.constant 0 : i32
    return %arg2, %arg1 : i32, i32
  }
  func.func @transform_2(%arg0: i32, %arg1: i32, %arg2: i32) -> (i32, i32) {
    %c0_i32 = arith.constant 0 : i32
    %c0_i32_0 = arith.constant 0 : i32
    return %c0_i32, %arg1 : i32, i32
  }
  func.func @transform_3(%arg0: i32, %arg1: i32, %arg2: i32) -> (i32, i32) {
    %c0_i32 = arith.constant 0 : i32
    %c0_i32_0 = arith.constant 0 : i32
    return %c0_i32, %arg1 : i32, i32
  }
  func.func @transform_4(%arg0: i32, %arg1: i32, %arg2: i32) -> (i32, i32) {
    %c0_i32 = arith.constant 0 : i32
    return %arg0, %arg1 : i32, i32
  }
}

module attributes {stable_mosaic.version = 11 : i64} {
  func.func @_fused_matmul_kernel(%arg0: i32, %arg1: i32, %arg2: i32, %arg3: memref<56x384xbf16, #tpu.memory_space<vmem>>, %arg4: memref<384x128xbf16, #tpu.memory_space<vmem>>, %arg5: memref<1x128xf32, #tpu.memory_space<vmem>>, %arg6: memref<1x128xf32, #tpu.memory_space<vmem>>, %arg7: memref<56x128xbf16, #tpu.memory_space<vmem>>, %arg8: memref<56x128xf32, #tpu.memory_space<vmem>>) attributes {dimension_semantics = [#tpu.dimension_semantics<parallel>, #tpu.dimension_semantics<parallel>, #tpu.dimension_semantics<arbitrary>], iteration_bounds = array<i64: 1, 1, 1>, scalar_prefetch = 0 : i64, scratch_operands = 1 : i64, tpu.core_type = #tpu.core_type<tc>, window_params = [{transform_indices = @transform_0, window_bounds = array<i64: 56, 384>}, {transform_indices = @transform_1, window_bounds = array<i64: 384, 128>}, {transform_indices = @transform_2, window_bounds = array<i64: 1, 128>}, {transform_indices = @transform_3, window_bounds = array<i64: 1, 128>}, {transform_indices = @transform_4, window_bounds = array<i64: 56, 128>}]} {
    %c0_i32 = arith.constant 0 : i32
    %0 = arith.cmpi eq, %arg2, %c0_i32 : i32
    %1 = arith.extui %0 : i1 to i32
    %c0_i32_0 = arith.constant 0 : i32
    %2 = arith.cmpi ne, %1, %c0_i32_0 : i32
    scf.if %2 {
      %cst_10 = arith.constant 0.000000e+00 : f32
      %12 = vector.broadcast %cst_10 : f32 to vector<56x128xf32>
      %c0_11 = arith.constant 0 : index
      %c0_12 = arith.constant 0 : index
      %13 = vector.load %arg8[%c0_11, %c0_12] : memref<56x128xf32, #tpu.memory_space<vmem>>, vector<56x128xf32>
      tpu.vector_store %arg8[%c0_11, %c0_12], %12 {strides = array<i32>} : memref<56x128xf32, #tpu.memory_space<vmem>>, vector<56x128xf32>,
    } else {
    }
    %c0 = arith.constant 0 : index
    %c0_1 = arith.constant 0 : index
    %3 = vector.load %arg8[%c0, %c0_1] : memref<56x128xf32, #tpu.memory_space<vmem>>, vector<56x128xf32>
    %c0_2 = arith.constant 0 : index
    %c0_3 = arith.constant 0 : index
    %4 = vector.load %arg3[%c0_2, %c0_3] : memref<56x384xbf16, #tpu.memory_space<vmem>>, vector<56x384xbf16>
    %c0_4 = arith.constant 0 : index
    %c0_5 = arith.constant 0 : index
    %5 = vector.load %arg4[%c0_4, %c0_5] : memref<384x128xbf16, #tpu.memory_space<vmem>>, vector<384x128xbf16>
    %cst = arith.constant dense<0.000000e+00> : vector<56x128xf32>
    %6 = tpu.matmul %4, %5, %cst {dimension_numbers = #tpu.dot_dimension_numbers<[1], [0], [0], [1], [0, 0, 1, 1], [], []>} : vector<56x384xbf16>, vector<384x128xbf16>, vector<56x128xf32> -> vector<56x128xf32>
    %7 = arith.addf %3, %6 : vector<56x128xf32>
    %c0_6 = arith.constant 0 : index
    %c0_7 = arith.constant 0 : index
    %8 = vector.load %arg8[%c0_6, %c0_7] : memref<56x128xf32, #tpu.memory_space<vmem>>, vector<56x128xf32>
    tpu.vector_store %arg8[%c0_6, %c0_7], %7 {strides = array<i32>} : memref<56x128xf32, #tpu.memory_space<vmem>>, vector<56x128xf32>,
    %c0_i32_8 = arith.constant 0 : i32
    %9 = arith.cmpi eq, %arg2, %c0_i32_8 : i32
    %10 = arith.extui %9 : i1 to i32
    %c0_i32_9 = arith.constant 0 : i32
    %11 = arith.cmpi ne, %10, %c0_i32_9 : i32
    scf.if %11 {
      %c0_10 = arith.constant 0 : index
      %c0_11 = arith.constant 0 : index
      %12 = vector.load %arg8[%c0_10, %c0_11] : memref<56x128xf32, #tpu.memory_space<vmem>>, vector<56x128xf32>
      %c0_12 = arith.constant 0 : index
      %c0_13 = arith.constant 0 : index
      %13 = vector.load %arg5[%c0_12, %c0_13] : memref<1x128xf32, #tpu.memory_space<vmem>>, vector<1x128xf32>
      %14 = vector.broadcast %13 : vector<1x128xf32> to vector<56x128xf32>
      %15 = arith.mulf %12, %14 : vector<56x128xf32>
      %c0_14 = arith.constant 0 : index
      %c0_15 = arith.constant 0 : index
      %16 = vector.load %arg6[%c0_14, %c0_15] : memref<1x128xf32, #tpu.memory_space<vmem>>, vector<1x128xf32>
      %17 = vector.broadcast %16 : vector<1x128xf32> to vector<56x128xf32>
      %18 = arith.addf %15, %17 : vector<56x128xf32>
      %cst_16 = arith.constant 0.000000e+00 : f32
      %19 = vector.broadcast %cst_16 : f32 to vector<56x128xf32>
      %20 = arith.cmpf oge, %18, %19 : vector<56x128xf32>
      %cst_17 = arith.constant 0.00999999977 : f32
      %21 = vector.broadcast %cst_17 : f32 to vector<56x128xf32>
      %22 = arith.mulf %18, %21 : vector<56x128xf32>
      %23 = arith.select %20, %18, %22 : vector<56x128xi1>, vector<56x128xf32>
      %24 = arith.truncf %23 : vector<56x128xf32> to vector<56x128xbf16>
      %c0_18 = arith.constant 0 : index
      %c0_19 = arith.constant 0 : index
      %25 = vector.load %arg7[%c0_18, %c0_19] : memref<56x128xbf16, #tpu.memory_space<vmem>>, vector<56x128xbf16>
      tpu.vector_store %arg7[%c0_18, %c0_19], %24 {strides = array<i32>} : memref<56x128xbf16, #tpu.memory_space<vmem>>, vector<56x128xbf16>,
    } else {
    }
    return
  }
  func.func @transform_0(%arg0: i32, %arg1: i32, %arg2: i32) -> (i32, i32) {
    %c0_i32 = arith.constant 0 : i32
    return %arg0, %arg2 : i32, i32
  }
  func.func @transform_1(%arg0: i32, %arg1: i32, %arg2: i32) -> (i32, i32) {
    %c0_i32 = arith.constant 0 : i32
    return %arg2, %arg1 : i32, i32
  }
  func.func @transform_2(%arg0: i32, %arg1: i32, %arg2: i32) -> (i32, i32) {
    %c0_i32 = arith.constant 0 : i32
    %c0_i32_0 = arith.constant 0 : i32
    return %c0_i32, %arg1 : i32, i32
  }
  func.func @transform_3(%arg0: i32, %arg1: i32, %arg2: i32) -> (i32, i32) {
    %c0_i32 = arith.constant 0 : i32
    %c0_i32_0 = arith.constant 0 : i32
    return %c0_i32, %arg1 : i32, i32
  }
  func.func @transform_4(%arg0: i32, %arg1: i32, %arg2: i32) -> (i32, i32) {
    %c0_i32 = arith.constant 0 : i32
    return %arg0, %arg1 : i32, i32
  }
}

module attributes {stable_mosaic.version = 11 : i64} {
  func.func @_fused_matmul_kernel(%arg0: i32, %arg1: i32, %arg2: i32, %arg3: memref<8x384xbf16, #tpu.memory_space<vmem>>, %arg4: memref<384x128xbf16, #tpu.memory_space<vmem>>, %arg5: memref<1x128xf32, #tpu.memory_space<vmem>>, %arg6: memref<1x128xf32, #tpu.memory_space<vmem>>, %arg7: memref<8x128xbf16, #tpu.memory_space<vmem>>, %arg8: memref<8x128xf32, #tpu.memory_space<vmem>>) attributes {dimension_semantics = [#tpu.dimension_semantics<parallel>, #tpu.dimension_semantics<parallel>, #tpu.dimension_semantics<arbitrary>], iteration_bounds = array<i64: 1, 1, 1>, scalar_prefetch = 0 : i64, scratch_operands = 1 : i64, tpu.core_type = #tpu.core_type<tc>, window_params = [{transform_indices = @transform_0, window_bounds = array<i64: 8, 384>}, {transform_indices = @transform_1, window_bounds = array<i64: 384, 128>}, {transform_indices = @transform_2, window_bounds = array<i64: 1, 128>}, {transform_indices = @transform_3, window_bounds = array<i64: 1, 128>}, {transform_indices = @transform_4, window_bounds = array<i64: 8, 128>}]} {
    %c0_i32 = arith.constant 0 : i32
    %0 = arith.cmpi eq, %arg2, %c0_i32 : i32
    %1 = arith.extui %0 : i1 to i32
    %c0_i32_0 = arith.constant 0 : i32
    %2 = arith.cmpi ne, %1, %c0_i32_0 : i32
    scf.if %2 {
      %cst_10 = arith.constant 0.000000e+00 : f32
      %12 = vector.broadcast %cst_10 : f32 to vector<8x128xf32>
      %c0_11 = arith.constant 0 : index
      %c0_12 = arith.constant 0 : index
      %13 = vector.load %arg8[%c0_11, %c0_12] : memref<8x128xf32, #tpu.memory_space<vmem>>, vector<8x128xf32>
      tpu.vector_store %arg8[%c0_11, %c0_12], %12 {strides = array<i32>} : memref<8x128xf32, #tpu.memory_space<vmem>>, vector<8x128xf32>,
    } else {
    }
    %c0 = arith.constant 0 : index
    %c0_1 = arith.constant 0 : index
    %3 = vector.load %arg8[%c0, %c0_1] : memref<8x128xf32, #tpu.memory_space<vmem>>, vector<8x128xf32>
    %c0_2 = arith.constant 0 : index
    %c0_3 = arith.constant 0 : index
    %4 = vector.load %arg3[%c0_2, %c0_3] : memref<8x384xbf16, #tpu.memory_space<vmem>>, vector<8x384xbf16>
    %c0_4 = arith.constant 0 : index
    %c0_5 = arith.constant 0 : index
    %5 = vector.load %arg4[%c0_4, %c0_5] : memref<384x128xbf16, #tpu.memory_space<vmem>>, vector<384x128xbf16>
    %cst = arith.constant dense<0.000000e+00> : vector<8x128xf32>
    %6 = tpu.matmul %4, %5, %cst {dimension_numbers = #tpu.dot_dimension_numbers<[1], [0], [0], [1], [0, 0, 1, 1], [], []>} : vector<8x384xbf16>, vector<384x128xbf16>, vector<8x128xf32> -> vector<8x128xf32>
    %7 = arith.addf %3, %6 : vector<8x128xf32>
    %c0_6 = arith.constant 0 : index
    %c0_7 = arith.constant 0 : index
    %8 = vector.load %arg8[%c0_6, %c0_7] : memref<8x128xf32, #tpu.memory_space<vmem>>, vector<8x128xf32>
    tpu.vector_store %arg8[%c0_6, %c0_7], %7 {strides = array<i32>} : memref<8x128xf32, #tpu.memory_space<vmem>>, vector<8x128xf32>,
    %c0_i32_8 = arith.constant 0 : i32
    %9 = arith.cmpi eq, %arg2, %c0_i32_8 : i32
    %10 = arith.extui %9 : i1 to i32
    %c0_i32_9 = arith.constant 0 : i32
    %11 = arith.cmpi ne, %10, %c0_i32_9 : i32
    scf.if %11 {
      %c0_10 = arith.constant 0 : index
      %c0_11 = arith.constant 0 : index
      %12 = vector.load %arg8[%c0_10, %c0_11] : memref<8x128xf32, #tpu.memory_space<vmem>>, vector<8x128xf32>
      %c0_12 = arith.constant 0 : index
      %c0_13 = arith.constant 0 : index
      %13 = vector.load %arg5[%c0_12, %c0_13] : memref<1x128xf32, #tpu.memory_space<vmem>>, vector<1x128xf32>
      %14 = vector.broadcast %13 : vector<1x128xf32> to vector<8x128xf32>
      %15 = arith.mulf %12, %14 : vector<8x128xf32>
      %c0_14 = arith.constant 0 : index
      %c0_15 = arith.constant 0 : index
      %16 = vector.load %arg6[%c0_14, %c0_15] : memref<1x128xf32, #tpu.memory_space<vmem>>, vector<1x128xf32>
      %17 = vector.broadcast %16 : vector<1x128xf32> to vector<8x128xf32>
      %18 = arith.addf %15, %17 : vector<8x128xf32>
      %cst_16 = arith.constant 0.000000e+00 : f32
      %19 = vector.broadcast %cst_16 : f32 to vector<8x128xf32>
      %20 = arith.cmpf oge, %18, %19 : vector<8x128xf32>
      %cst_17 = arith.constant 0.00999999977 : f32
      %21 = vector.broadcast %cst_17 : f32 to vector<8x128xf32>
      %22 = arith.mulf %18, %21 : vector<8x128xf32>
      %23 = arith.select %20, %18, %22 : vector<8x128xi1>, vector<8x128xf32>
      %24 = arith.truncf %23 : vector<8x128xf32> to vector<8x128xbf16>
      %c0_18 = arith.constant 0 : index
      %c0_19 = arith.constant 0 : index
      %25 = vector.load %arg7[%c0_18, %c0_19] : memref<8x128xbf16, #tpu.memory_space<vmem>>, vector<8x128xbf16>
      tpu.vector_store %arg7[%c0_18, %c0_19], %24 {strides = array<i32>} : memref<8x128xbf16, #tpu.memory_space<vmem>>, vector<8x128xbf16>,
    } else {
    }
    return
  }
  func.func @transform_0(%arg0: i32, %arg1: i32, %arg2: i32) -> (i32, i32) {
    %c0_i32 = arith.constant 0 : i32
    return %arg0, %arg2 : i32, i32
  }
  func.func @transform_1(%arg0: i32, %arg1: i32, %arg2: i32) -> (i32, i32) {
    %c0_i32 = arith.constant 0 : i32
    return %arg2, %arg1 : i32, i32
  }
  func.func @transform_2(%arg0: i32, %arg1: i32, %arg2: i32) -> (i32, i32) {
    %c0_i32 = arith.constant 0 : i32
    %c0_i32_0 = arith.constant 0 : i32
    return %c0_i32, %arg1 : i32, i32
  }
  func.func @transform_3(%arg0: i32, %arg1: i32, %arg2: i32) -> (i32, i32) {
    %c0_i32 = arith.constant 0 : i32
    %c0_i32_0 = arith.constant 0 : i32
    return %c0_i32, %arg1 : i32, i32
  }
  func.func @transform_4(%arg0: i32, %arg1: i32, %arg2: i32) -> (i32, i32) {
    %c0_i32 = arith.constant 0 : i32
    return %arg0, %arg1 : i32, i32
  }
}

module attributes {stable_mosaic.version = 11 : i64} {
  func.func @_fused_matmul_kernel(%arg0: i32, %arg1: i32, %arg2: i32, %arg3: memref<56x512xbf16, #tpu.memory_space<vmem>>, %arg4: memref<512x128xbf16, #tpu.memory_space<vmem>>, %arg5: memref<1x128xf32, #tpu.memory_space<vmem>>, %arg6: memref<1x128xf32, #tpu.memory_space<vmem>>, %arg7: memref<56x128xbf16, #tpu.memory_space<vmem>>, %arg8: memref<56x128xf32, #tpu.memory_space<vmem>>) attributes {dimension_semantics = [#tpu.dimension_semantics<parallel>, #tpu.dimension_semantics<parallel>, #tpu.dimension_semantics<arbitrary>], iteration_bounds = array<i64: 1, 1, 3>, scalar_prefetch = 0 : i64, scratch_operands = 1 : i64, tpu.core_type = #tpu.core_type<tc>, window_params = [{transform_indices = @transform_0, window_bounds = array<i64: 56, 512>}, {transform_indices = @transform_1, window_bounds = array<i64: 512, 128>}, {transform_indices = @transform_2, window_bounds = array<i64: 1, 128>}, {transform_indices = @transform_3, window_bounds = array<i64: 1, 128>}, {transform_indices = @transform_4, window_bounds = array<i64: 56, 128>}]} {
    %c0_i32 = arith.constant 0 : i32
    %0 = arith.cmpi eq, %arg2, %c0_i32 : i32
    %1 = arith.extui %0 : i1 to i32
    %c0_i32_0 = arith.constant 0 : i32
    %2 = arith.cmpi ne, %1, %c0_i32_0 : i32
    scf.if %2 {
      %cst_9 = arith.constant 0.000000e+00 : f32
      %12 = vector.broadcast %cst_9 : f32 to vector<56x128xf32>
      %c0_10 = arith.constant 0 : index
      %c0_11 = arith.constant 0 : index
      %13 = vector.load %arg8[%c0_10, %c0_11] : memref<56x128xf32, #tpu.memory_space<vmem>>, vector<56x128xf32>
      tpu.vector_store %arg8[%c0_10, %c0_11], %12 {strides = array<i32>} : memref<56x128xf32, #tpu.memory_space<vmem>>, vector<56x128xf32>,
    } else {
    }
    %c0 = arith.constant 0 : index
    %c0_1 = arith.constant 0 : index
    %3 = vector.load %arg8[%c0, %c0_1] : memref<56x128xf32, #tpu.memory_space<vmem>>, vector<56x128xf32>
    %c0_2 = arith.constant 0 : index
    %c0_3 = arith.constant 0 : index
    %4 = vector.load %arg3[%c0_2, %c0_3] : memref<56x512xbf16, #tpu.memory_space<vmem>>, vector<56x512xbf16>
    %c0_4 = arith.constant 0 : index
    %c0_5 = arith.constant 0 : index
    %5 = vector.load %arg4[%c0_4, %c0_5] : memref<512x128xbf16, #tpu.memory_space<vmem>>, vector<512x128xbf16>
    %cst = arith.constant dense<0.000000e+00> : vector<56x128xf32>
    %6 = tpu.matmul %4, %5, %cst {dimension_numbers = #tpu.dot_dimension_numbers<[1], [0], [0], [1], [0, 0, 1, 1], [], []>} : vector<56x512xbf16>, vector<512x128xbf16>, vector<56x128xf32> -> vector<56x128xf32>
    %7 = arith.addf %3, %6 : vector<56x128xf32>
    %c0_6 = arith.constant 0 : index
    %c0_7 = arith.constant 0 : index
    %8 = vector.load %arg8[%c0_6, %c0_7] : memref<56x128xf32, #tpu.memory_space<vmem>>, vector<56x128xf32>
    tpu.vector_store %arg8[%c0_6, %c0_7], %7 {strides = array<i32>} : memref<56x128xf32, #tpu.memory_space<vmem>>, vector<56x128xf32>,
    %c2_i32 = arith.constant 2 : i32
    %9 = arith.cmpi eq, %arg2, %c2_i32 : i32
    %10 = arith.extui %9 : i1 to i32
    %c0_i32_8 = arith.constant 0 : i32
    %11 = arith.cmpi ne, %10, %c0_i32_8 : i32
    scf.if %11 {
      %c0_9 = arith.constant 0 : index
      %c0_10 = arith.constant 0 : index
      %12 = vector.load %arg8[%c0_9, %c0_10] : memref<56x128xf32, #tpu.memory_space<vmem>>, vector<56x128xf32>
      %c0_11 = arith.constant 0 : index
      %c0_12 = arith.constant 0 : index
      %13 = vector.load %arg5[%c0_11, %c0_12] : memref<1x128xf32, #tpu.memory_space<vmem>>, vector<1x128xf32>
      %14 = vector.broadcast %13 : vector<1x128xf32> to vector<56x128xf32>
      %15 = arith.mulf %12, %14 : vector<56x128xf32>
      %c0_13 = arith.constant 0 : index
      %c0_14 = arith.constant 0 : index
      %16 = vector.load %arg6[%c0_13, %c0_14] : memref<1x128xf32, #tpu.memory_space<vmem>>, vector<1x128xf32>
      %17 = vector.broadcast %16 : vector<1x128xf32> to vector<56x128xf32>
      %18 = arith.addf %15, %17 : vector<56x128xf32>
      %cst_15 = arith.constant 0.000000e+00 : f32
      %19 = vector.broadcast %cst_15 : f32 to vector<56x128xf32>
      %20 = arith.cmpf oge, %18, %19 : vector<56x128xf32>
      %cst_16 = arith.constant 0.00999999977 : f32
      %21 = vector.broadcast %cst_16 : f32 to vector<56x128xf32>
      %22 = arith.mulf %18, %21 : vector<56x128xf32>
      %23 = arith.select %20, %18, %22 : vector<56x128xi1>, vector<56x128xf32>
      %24 = arith.truncf %23 : vector<56x128xf32> to vector<56x128xbf16>
      %c0_17 = arith.constant 0 : index
      %c0_18 = arith.constant 0 : index
      %25 = vector.load %arg7[%c0_17, %c0_18] : memref<56x128xbf16, #tpu.memory_space<vmem>>, vector<56x128xbf16>
      tpu.vector_store %arg7[%c0_17, %c0_18], %24 {strides = array<i32>} : memref<56x128xbf16, #tpu.memory_space<vmem>>, vector<56x128xbf16>,
    } else {
    }
    return
  }
  func.func @transform_0(%arg0: i32, %arg1: i32, %arg2: i32) -> (i32, i32) {
    %c0_i32 = arith.constant 0 : i32
    return %arg0, %arg2 : i32, i32
  }
  func.func @transform_1(%arg0: i32, %arg1: i32, %arg2: i32) -> (i32, i32) {
    %c0_i32 = arith.constant 0 : i32
    return %arg2, %arg1 : i32, i32
  }
  func.func @transform_2(%arg0: i32, %arg1: i32, %arg2: i32) -> (i32, i32) {
    %c0_i32 = arith.constant 0 : i32
    %c0_i32_0 = arith.constant 0 : i32
    return %c0_i32, %arg1 : i32, i32
  }
  func.func @transform_3(%arg0: i32, %arg1: i32, %arg2: i32) -> (i32, i32) {
    %c0_i32 = arith.constant 0 : i32
    %c0_i32_0 = arith.constant 0 : i32
    return %c0_i32, %arg1 : i32, i32
  }
  func.func @transform_4(%arg0: i32, %arg1: i32, %arg2: i32) -> (i32, i32) {
    %c0_i32 = arith.constant 0 : i32
    return %arg0, %arg1 : i32, i32
  }
}

module attributes {stable_mosaic.version = 11 : i64} {
  func.func @_fused_matmul_kernel(%arg0: i32, %arg1: i32, %arg2: i32, %arg3: memref<152x512xbf16, #tpu.memory_space<vmem>>, %arg4: memref<512x128xbf16, #tpu.memory_space<vmem>>, %arg5: memref<1x128xf32, #tpu.memory_space<vmem>>, %arg6: memref<1x128xf32, #tpu.memory_space<vmem>>, %arg7: memref<152x128xbf16, #tpu.memory_space<vmem>>, %arg8: memref<152x128xf32, #tpu.memory_space<vmem>>) attributes {dimension_semantics = [#tpu.dimension_semantics<parallel>, #tpu.dimension_semantics<parallel>, #tpu.dimension_semantics<arbitrary>], iteration_bounds = array<i64: 1, 1, 2>, scalar_prefetch = 0 : i64, scratch_operands = 1 : i64, tpu.core_type = #tpu.core_type<tc>, window_params = [{transform_indices = @transform_0, window_bounds = array<i64: 152, 512>}, {transform_indices = @transform_1, window_bounds = array<i64: 512, 128>}, {transform_indices = @transform_2, window_bounds = array<i64: 1, 128>}, {transform_indices = @transform_3, window_bounds = array<i64: 1, 128>}, {transform_indices = @transform_4, window_bounds = array<i64: 152, 128>}]} {
    %c0_i32 = arith.constant 0 : i32
    %0 = arith.cmpi eq, %arg2, %c0_i32 : i32
    %1 = arith.extui %0 : i1 to i32
    %c0_i32_0 = arith.constant 0 : i32
    %2 = arith.cmpi ne, %1, %c0_i32_0 : i32
    scf.if %2 {
      %cst_9 = arith.constant 0.000000e+00 : f32
      %12 = vector.broadcast %cst_9 : f32 to vector<152x128xf32>
      %c0_10 = arith.constant 0 : index
      %c0_11 = arith.constant 0 : index
      %13 = vector.load %arg8[%c0_10, %c0_11] : memref<152x128xf32, #tpu.memory_space<vmem>>, vector<152x128xf32>
      tpu.vector_store %arg8[%c0_10, %c0_11], %12 {strides = array<i32>} : memref<152x128xf32, #tpu.memory_space<vmem>>, vector<152x128xf32>,
    } else {
    }
    %c0 = arith.constant 0 : index
    %c0_1 = arith.constant 0 : index
    %3 = vector.load %arg8[%c0, %c0_1] : memref<152x128xf32, #tpu.memory_space<vmem>>, vector<152x128xf32>
    %c0_2 = arith.constant 0 : index
    %c0_3 = arith.constant 0 : index
    %4 = vector.load %arg3[%c0_2, %c0_3] : memref<152x512xbf16, #tpu.memory_space<vmem>>, vector<152x512xbf16>
    %c0_4 = arith.constant 0 : index
    %c0_5 = arith.constant 0 : index
    %5 = vector.load %arg4[%c0_4, %c0_5] : memref<512x128xbf16, #tpu.memory_space<vmem>>, vector<512x128xbf16>
    %cst = arith.constant dense<0.000000e+00> : vector<152x128xf32>
    %6 = tpu.matmul %4, %5, %cst {dimension_numbers = #tpu.dot_dimension_numbers<[1], [0], [0], [1], [0, 0, 1, 1], [], []>} : vector<152x512xbf16>, vector<512x128xbf16>, vector<152x128xf32> -> vector<152x128xf32>
    %7 = arith.addf %3, %6 : vector<152x128xf32>
    %c0_6 = arith.constant 0 : index
    %c0_7 = arith.constant 0 : index
    %8 = vector.load %arg8[%c0_6, %c0_7] : memref<152x128xf32, #tpu.memory_space<vmem>>, vector<152x128xf32>
    tpu.vector_store %arg8[%c0_6, %c0_7], %7 {strides = array<i32>} : memref<152x128xf32, #tpu.memory_space<vmem>>, vector<152x128xf32>,
    %c1_i32 = arith.constant 1 : i32
    %9 = arith.cmpi eq, %arg2, %c1_i32 : i32
    %10 = arith.extui %9 : i1 to i32
    %c0_i32_8 = arith.constant 0 : i32
    %11 = arith.cmpi ne, %10, %c0_i32_8 : i32
    scf.if %11 {
      %c0_9 = arith.constant 0 : index
      %c0_10 = arith.constant 0 : index
      %12 = vector.load %arg8[%c0_9, %c0_10] : memref<152x128xf32, #tpu.memory_space<vmem>>, vector<152x128xf32>
      %c0_11 = arith.constant 0 : index
      %c0_12 = arith.constant 0 : index
      %13 = vector.load %arg5[%c0_11, %c0_12] : memref<1x128xf32, #tpu.memory_space<vmem>>, vector<1x128xf32>
      %14 = vector.broadcast %13 : vector<1x128xf32> to vector<152x128xf32>
      %15 = arith.mulf %12, %14 : vector<152x128xf32>
      %c0_13 = arith.constant 0 : index
      %c0_14 = arith.constant 0 : index
      %16 = vector.load %arg6[%c0_13, %c0_14] : memref<1x128xf32, #tpu.memory_space<vmem>>, vector<1x128xf32>
      %17 = vector.broadcast %16 : vector<1x128xf32> to vector<152x128xf32>
      %18 = arith.addf %15, %17 : vector<152x128xf32>
      %cst_15 = arith.constant 0.000000e+00 : f32
      %19 = vector.broadcast %cst_15 : f32 to vector<152x128xf32>
      %20 = arith.cmpf oge, %18, %19 : vector<152x128xf32>
      %cst_16 = arith.constant 0.00999999977 : f32
      %21 = vector.broadcast %cst_16 : f32 to vector<152x128xf32>
      %22 = arith.mulf %18, %21 : vector<152x128xf32>
      %23 = arith.select %20, %18, %22 : vector<152x128xi1>, vector<152x128xf32>
      %24 = arith.truncf %23 : vector<152x128xf32> to vector<152x128xbf16>
      %c0_17 = arith.constant 0 : index
      %c0_18 = arith.constant 0 : index
      %25 = vector.load %arg7[%c0_17, %c0_18] : memref<152x128xbf16, #tpu.memory_space<vmem>>, vector<152x128xbf16>
      tpu.vector_store %arg7[%c0_17, %c0_18], %24 {strides = array<i32>} : memref<152x128xbf16, #tpu.memory_space<vmem>>, vector<152x128xbf16>,
    } else {
    }
    return
  }
  func.func @transform_0(%arg0: i32, %arg1: i32, %arg2: i32) -> (i32, i32) {
    %c0_i32 = arith.constant 0 : i32
    return %arg0, %arg2 : i32, i32
  }
  func.func @transform_1(%arg0: i32, %arg1: i32, %arg2: i32) -> (i32, i32) {
    %c0_i32 = arith.constant 0 : i32
    return %arg2, %arg1 : i32, i32
  }
  func.func @transform_2(%arg0: i32, %arg1: i32, %arg2: i32) -> (i32, i32) {
    %c0_i32 = arith.constant 0 : i32
    %c0_i32_0 = arith.constant 0 : i32
    return %c0_i32, %arg1 : i32, i32
  }
  func.func @transform_3(%arg0: i32, %arg1: i32, %arg2: i32) -> (i32, i32) {
    %c0_i32 = arith.constant 0 : i32
    %c0_i32_0 = arith.constant 0 : i32
    return %c0_i32, %arg1 : i32, i32
  }
  func.func @transform_4(%arg0: i32, %arg1: i32, %arg2: i32) -> (i32, i32) {
    %c0_i32 = arith.constant 0 : i32
    return %arg0, %arg1 : i32, i32
  }
}

module attributes {stable_mosaic.version = 11 : i64} {
  func.func @_fused_matmul_kernel(%arg0: i32, %arg1: i32, %arg2: i32, %arg3: memref<256x384xbf16, #tpu.memory_space<vmem>>, %arg4: memref<384x128xbf16, #tpu.memory_space<vmem>>, %arg5: memref<1x128xf32, #tpu.memory_space<vmem>>, %arg6: memref<1x128xf32, #tpu.memory_space<vmem>>, %arg7: memref<256x128xbf16, #tpu.memory_space<vmem>>, %arg8: memref<256x128xf32, #tpu.memory_space<vmem>>) attributes {dimension_semantics = [#tpu.dimension_semantics<parallel>, #tpu.dimension_semantics<parallel>, #tpu.dimension_semantics<arbitrary>], iteration_bounds = array<i64: 2, 1, 1>, scalar_prefetch = 0 : i64, scratch_operands = 1 : i64, tpu.core_type = #tpu.core_type<tc>, window_params = [{transform_indices = @transform_0, window_bounds = array<i64: 256, 384>}, {transform_indices = @transform_1, window_bounds = array<i64: 384, 128>}, {transform_indices = @transform_2, window_bounds = array<i64: 1, 128>}, {transform_indices = @transform_3, window_bounds = array<i64: 1, 128>}, {transform_indices = @transform_4, window_bounds = array<i64: 256, 128>}]} {
    %c0_i32 = arith.constant 0 : i32
    %0 = arith.cmpi eq, %arg2, %c0_i32 : i32
    %1 = arith.extui %0 : i1 to i32
    %c0_i32_0 = arith.constant 0 : i32
    %2 = arith.cmpi ne, %1, %c0_i32_0 : i32
    scf.if %2 {
      %cst_10 = arith.constant 0.000000e+00 : f32
      %12 = vector.broadcast %cst_10 : f32 to vector<256x128xf32>
      %c0_11 = arith.constant 0 : index
      %c0_12 = arith.constant 0 : index
      %13 = vector.load %arg8[%c0_11, %c0_12] : memref<256x128xf32, #tpu.memory_space<vmem>>, vector<256x128xf32>
      tpu.vector_store %arg8[%c0_11, %c0_12], %12 {strides = array<i32>} : memref<256x128xf32, #tpu.memory_space<vmem>>, vector<256x128xf32>,
    } else {
    }
    %c0 = arith.constant 0 : index
    %c0_1 = arith.constant 0 : index
    %3 = vector.load %arg8[%c0, %c0_1] : memref<256x128xf32, #tpu.memory_space<vmem>>, vector<256x128xf32>
    %c0_2 = arith.constant 0 : index
    %c0_3 = arith.constant 0 : index
    %4 = vector.load %arg3[%c0_2, %c0_3] : memref<256x384xbf16, #tpu.memory_space<vmem>>, vector<256x384xbf16>
    %c0_4 = arith.constant 0 : index
    %c0_5 = arith.constant 0 : index
    %5 = vector.load %arg4[%c0_4, %c0_5] : memref<384x128xbf16, #tpu.memory_space<vmem>>, vector<384x128xbf16>
    %cst = arith.constant dense<0.000000e+00> : vector<256x128xf32>
    %6 = tpu.matmul %4, %5, %cst {dimension_numbers = #tpu.dot_dimension_numbers<[1], [0], [0], [1], [0, 0, 1, 1], [], []>} : vector<256x384xbf16>, vector<384x128xbf16>, vector<256x128xf32> -> vector<256x128xf32>
    %7 = arith.addf %3, %6 : vector<256x128xf32>
    %c0_6 = arith.constant 0 : index
    %c0_7 = arith.constant 0 : index
    %8 = vector.load %arg8[%c0_6, %c0_7] : memref<256x128xf32, #tpu.memory_space<vmem>>, vector<256x128xf32>
    tpu.vector_store %arg8[%c0_6, %c0_7], %7 {strides = array<i32>} : memref<256x128xf32, #tpu.memory_space<vmem>>, vector<256x128xf32>,
    %c0_i32_8 = arith.constant 0 : i32
    %9 = arith.cmpi eq, %arg2, %c0_i32_8 : i32
    %10 = arith.extui %9 : i1 to i32
    %c0_i32_9 = arith.constant 0 : i32
    %11 = arith.cmpi ne, %10, %c0_i32_9 : i32
    scf.if %11 {
      %c0_10 = arith.constant 0 : index
      %c0_11 = arith.constant 0 : index
      %12 = vector.load %arg8[%c0_10, %c0_11] : memref<256x128xf32, #tpu.memory_space<vmem>>, vector<256x128xf32>
      %c0_12 = arith.constant 0 : index
      %c0_13 = arith.constant 0 : index
      %13 = vector.load %arg5[%c0_12, %c0_13] : memref<1x128xf32, #tpu.memory_space<vmem>>, vector<1x128xf32>
      %14 = vector.broadcast %13 : vector<1x128xf32> to vector<256x128xf32>
      %15 = arith.mulf %12, %14 : vector<256x128xf32>
      %c0_14 = arith.constant 0 : index
      %c0_15 = arith.constant 0 : index
      %16 = vector.load %arg6[%c0_14, %c0_15] : memref<1x128xf32, #tpu.memory_space<vmem>>, vector<1x128xf32>
      %17 = vector.broadcast %16 : vector<1x128xf32> to vector<256x128xf32>
      %18 = arith.addf %15, %17 : vector<256x128xf32>
      %cst_16 = arith.constant 0.000000e+00 : f32
      %19 = vector.broadcast %cst_16 : f32 to vector<256x128xf32>
      %20 = arith.cmpf oge, %18, %19 : vector<256x128xf32>
      %cst_17 = arith.constant 0.00999999977 : f32
      %21 = vector.broadcast %cst_17 : f32 to vector<256x128xf32>
      %22 = arith.mulf %18, %21 : vector<256x128xf32>
      %23 = arith.select %20, %18, %22 : vector<256x128xi1>, vector<256x128xf32>
      %24 = arith.truncf %23 : vector<256x128xf32> to vector<256x128xbf16>
      %c0_18 = arith.constant 0 : index
      %c0_19 = arith.constant 0 : index
      %25 = vector.load %arg7[%c0_18, %c0_19] : memref<256x128xbf16, #tpu.memory_space<vmem>>, vector<256x128xbf16>
      tpu.vector_store %arg7[%c0_18, %c0_19], %24 {strides = array<i32>} : memref<256x128xbf16, #tpu.memory_space<vmem>>, vector<256x128xbf16>,
    } else {
    }
    return
  }
  func.func @transform_0(%arg0: i32, %arg1: i32, %arg2: i32) -> (i32, i32) {
    %c0_i32 = arith.constant 0 : i32
    return %arg0, %arg2 : i32, i32
  }
  func.func @transform_1(%arg0: i32, %arg1: i32, %arg2: i32) -> (i32, i32) {
    %c0_i32 = arith.constant 0 : i32
    return %arg2, %arg1 : i32, i32
  }
  func.func @transform_2(%arg0: i32, %arg1: i32, %arg2: i32) -> (i32, i32) {
    %c0_i32 = arith.constant 0 : i32
    %c0_i32_0 = arith.constant 0 : i32
    return %c0_i32, %arg1 : i32, i32
  }
  func.func @transform_3(%arg0: i32, %arg1: i32, %arg2: i32) -> (i32, i32) {
    %c0_i32 = arith.constant 0 : i32
    %c0_i32_0 = arith.constant 0 : i32
    return %c0_i32, %arg1 : i32, i32
  }
  func.func @transform_4(%arg0: i32, %arg1: i32, %arg2: i32) -> (i32, i32) {
    %c0_i32 = arith.constant 0 : i32
    return %arg0, %arg1 : i32, i32
  }
}

module attributes {stable_mosaic.version = 11 : i64} {
  func.func @_fused_matmul_kernel(%arg0: i32, %arg1: i32, %arg2: i32, %arg3: memref<256x384xbf16, #tpu.memory_space<vmem>>, %arg4: memref<384x128xbf16, #tpu.memory_space<vmem>>, %arg5: memref<1x128xf32, #tpu.memory_space<vmem>>, %arg6: memref<1x128xf32, #tpu.memory_space<vmem>>, %arg7: memref<256x128xbf16, #tpu.memory_space<vmem>>, %arg8: memref<256x128xf32, #tpu.memory_space<vmem>>) attributes {dimension_semantics = [#tpu.dimension_semantics<parallel>, #tpu.dimension_semantics<parallel>, #tpu.dimension_semantics<arbitrary>], iteration_bounds = array<i64: 6, 1, 1>, scalar_prefetch = 0 : i64, scratch_operands = 1 : i64, tpu.core_type = #tpu.core_type<tc>, window_params = [{transform_indices = @transform_0, window_bounds = array<i64: 256, 384>}, {transform_indices = @transform_1, window_bounds = array<i64: 384, 128>}, {transform_indices = @transform_2, window_bounds = array<i64: 1, 128>}, {transform_indices = @transform_3, window_bounds = array<i64: 1, 128>}, {transform_indices = @transform_4, window_bounds = array<i64: 256, 128>}]} {
    %c0_i32 = arith.constant 0 : i32
    %0 = arith.cmpi eq, %arg2, %c0_i32 : i32
    %1 = arith.extui %0 : i1 to i32
    %c0_i32_0 = arith.constant 0 : i32
    %2 = arith.cmpi ne, %1, %c0_i32_0 : i32
    scf.if %2 {
      %cst_10 = arith.constant 0.000000e+00 : f32
      %12 = vector.broadcast %cst_10 : f32 to vector<256x128xf32>
      %c0_11 = arith.constant 0 : index
      %c0_12 = arith.constant 0 : index
      %13 = vector.load %arg8[%c0_11, %c0_12] : memref<256x128xf32, #tpu.memory_space<vmem>>, vector<256x128xf32>
      tpu.vector_store %arg8[%c0_11, %c0_12], %12 {strides = array<i32>} : memref<256x128xf32, #tpu.memory_space<vmem>>, vector<256x128xf32>,
    } else {
    }
    %c0 = arith.constant 0 : index
    %c0_1 = arith.constant 0 : index
    %3 = vector.load %arg8[%c0, %c0_1] : memref<256x128xf32, #tpu.memory_space<vmem>>, vector<256x128xf32>
    %c0_2 = arith.constant 0 : index
    %c0_3 = arith.constant 0 : index
    %4 = vector.load %arg3[%c0_2, %c0_3] : memref<256x384xbf16, #tpu.memory_space<vmem>>, vector<256x384xbf16>
    %c0_4 = arith.constant 0 : index
    %c0_5 = arith.constant 0 : index
    %5 = vector.load %arg4[%c0_4, %c0_5] : memref<384x128xbf16, #tpu.memory_space<vmem>>, vector<384x128xbf16>
    %cst = arith.constant dense<0.000000e+00> : vector<256x128xf32>
    %6 = tpu.matmul %4, %5, %cst {dimension_numbers = #tpu.dot_dimension_numbers<[1], [0], [0], [1], [0, 0, 1, 1], [], []>} : vector<256x384xbf16>, vector<384x128xbf16>, vector<256x128xf32> -> vector<256x128xf32>
    %7 = arith.addf %3, %6 : vector<256x128xf32>
    %c0_6 = arith.constant 0 : index
    %c0_7 = arith.constant 0 : index
    %8 = vector.load %arg8[%c0_6, %c0_7] : memref<256x128xf32, #tpu.memory_space<vmem>>, vector<256x128xf32>
    tpu.vector_store %arg8[%c0_6, %c0_7], %7 {strides = array<i32>} : memref<256x128xf32, #tpu.memory_space<vmem>>, vector<256x128xf32>,
    %c0_i32_8 = arith.constant 0 : i32
    %9 = arith.cmpi eq, %arg2, %c0_i32_8 : i32
    %10 = arith.extui %9 : i1 to i32
    %c0_i32_9 = arith.constant 0 : i32
    %11 = arith.cmpi ne, %10, %c0_i32_9 : i32
    scf.if %11 {
      %c0_10 = arith.constant 0 : index
      %c0_11 = arith.constant 0 : index
      %12 = vector.load %arg8[%c0_10, %c0_11] : memref<256x128xf32, #tpu.memory_space<vmem>>, vector<256x128xf32>
      %c0_12 = arith.constant 0 : index
      %c0_13 = arith.constant 0 : index
      %13 = vector.load %arg5[%c0_12, %c0_13] : memref<1x128xf32, #tpu.memory_space<vmem>>, vector<1x128xf32>
      %14 = vector.broadcast %13 : vector<1x128xf32> to vector<256x128xf32>
      %15 = arith.mulf %12, %14 : vector<256x128xf32>
      %c0_14 = arith.constant 0 : index
      %c0_15 = arith.constant 0 : index
      %16 = vector.load %arg6[%c0_14, %c0_15] : memref<1x128xf32, #tpu.memory_space<vmem>>, vector<1x128xf32>
      %17 = vector.broadcast %16 : vector<1x128xf32> to vector<256x128xf32>
      %18 = arith.addf %15, %17 : vector<256x128xf32>
      %cst_16 = arith.constant 0.000000e+00 : f32
      %19 = vector.broadcast %cst_16 : f32 to vector<256x128xf32>
      %20 = arith.cmpf oge, %18, %19 : vector<256x128xf32>
      %cst_17 = arith.constant 0.00999999977 : f32
      %21 = vector.broadcast %cst_17 : f32 to vector<256x128xf32>
      %22 = arith.mulf %18, %21 : vector<256x128xf32>
      %23 = arith.select %20, %18, %22 : vector<256x128xi1>, vector<256x128xf32>
      %24 = arith.truncf %23 : vector<256x128xf32> to vector<256x128xbf16>
      %c0_18 = arith.constant 0 : index
      %c0_19 = arith.constant 0 : index
      %25 = vector.load %arg7[%c0_18, %c0_19] : memref<256x128xbf16, #tpu.memory_space<vmem>>, vector<256x128xbf16>
      tpu.vector_store %arg7[%c0_18, %c0_19], %24 {strides = array<i32>} : memref<256x128xbf16, #tpu.memory_space<vmem>>, vector<256x128xbf16>,
    } else {
    }
    return
  }
  func.func @transform_0(%arg0: i32, %arg1: i32, %arg2: i32) -> (i32, i32) {
    %c0_i32 = arith.constant 0 : i32
    return %arg0, %arg2 : i32, i32
  }
  func.func @transform_1(%arg0: i32, %arg1: i32, %arg2: i32) -> (i32, i32) {
    %c0_i32 = arith.constant 0 : i32
    return %arg2, %arg1 : i32, i32
  }
  func.func @transform_2(%arg0: i32, %arg1: i32, %arg2: i32) -> (i32, i32) {
    %c0_i32 = arith.constant 0 : i32
    %c0_i32_0 = arith.constant 0 : i32
    return %c0_i32, %arg1 : i32, i32
  }
  func.func @transform_3(%arg0: i32, %arg1: i32, %arg2: i32) -> (i32, i32) {
    %c0_i32 = arith.constant 0 : i32
    %c0_i32_0 = arith.constant 0 : i32
    return %c0_i32, %arg1 : i32, i32
  }
  func.func @transform_4(%arg0: i32, %arg1: i32, %arg2: i32) -> (i32, i32) {
    %c0_i32 = arith.constant 0 : i32
    return %arg0, %arg1 : i32, i32
  }
}

module attributes {stable_mosaic.version = 11 : i64} {
  func.func @_fused_matmul_kernel(%arg0: i32, %arg1: i32, %arg2: i32, %arg3: memref<256x256xbf16, #tpu.memory_space<vmem>>, %arg4: memref<256x128xbf16, #tpu.memory_space<vmem>>, %arg5: memref<1x128xf32, #tpu.memory_space<vmem>>, %arg6: memref<1x128xf32, #tpu.memory_space<vmem>>, %arg7: memref<256x128xbf16, #tpu.memory_space<vmem>>, %arg8: memref<256x128xf32, #tpu.memory_space<vmem>>) attributes {dimension_semantics = [#tpu.dimension_semantics<parallel>, #tpu.dimension_semantics<parallel>, #tpu.dimension_semantics<arbitrary>], iteration_bounds = array<i64: 7, 1, 1>, scalar_prefetch = 0 : i64, scratch_operands = 1 : i64, tpu.core_type = #tpu.core_type<tc>, window_params = [{transform_indices = @transform_0, window_bounds = array<i64: 256, 256>}, {transform_indices = @transform_1, window_bounds = array<i64: 256, 128>}, {transform_indices = @transform_2, window_bounds = array<i64: 1, 128>}, {transform_indices = @transform_3, window_bounds = array<i64: 1, 128>}, {transform_indices = @transform_4, window_bounds = array<i64: 256, 128>}]} {
    %c0_i32 = arith.constant 0 : i32
    %0 = arith.cmpi eq, %arg2, %c0_i32 : i32
    %1 = arith.extui %0 : i1 to i32
    %c0_i32_0 = arith.constant 0 : i32
    %2 = arith.cmpi ne, %1, %c0_i32_0 : i32
    scf.if %2 {
      %cst_10 = arith.constant 0.000000e+00 : f32
      %12 = vector.broadcast %cst_10 : f32 to vector<256x128xf32>
      %c0_11 = arith.constant 0 : index
      %c0_12 = arith.constant 0 : index
      %13 = vector.load %arg8[%c0_11, %c0_12] : memref<256x128xf32, #tpu.memory_space<vmem>>, vector<256x128xf32>
      tpu.vector_store %arg8[%c0_11, %c0_12], %12 {strides = array<i32>} : memref<256x128xf32, #tpu.memory_space<vmem>>, vector<256x128xf32>,
    } else {
    }
    %c0 = arith.constant 0 : index
    %c0_1 = arith.constant 0 : index
    %3 = vector.load %arg8[%c0, %c0_1] : memref<256x128xf32, #tpu.memory_space<vmem>>, vector<256x128xf32>
    %c0_2 = arith.constant 0 : index
    %c0_3 = arith.constant 0 : index
    %4 = vector.load %arg3[%c0_2, %c0_3] : memref<256x256xbf16, #tpu.memory_space<vmem>>, vector<256x256xbf16>
    %c0_4 = arith.constant 0 : index
    %c0_5 = arith.constant 0 : index
    %5 = vector.load %arg4[%c0_4, %c0_5] : memref<256x128xbf16, #tpu.memory_space<vmem>>, vector<256x128xbf16>
    %cst = arith.constant dense<0.000000e+00> : vector<256x128xf32>
    %6 = tpu.matmul %4, %5, %cst {dimension_numbers = #tpu.dot_dimension_numbers<[1], [0], [0], [1], [0, 0, 1, 1], [], []>} : vector<256x256xbf16>, vector<256x128xbf16>, vector<256x128xf32> -> vector<256x128xf32>
    %7 = arith.addf %3, %6 : vector<256x128xf32>
    %c0_6 = arith.constant 0 : index
    %c0_7 = arith.constant 0 : index
    %8 = vector.load %arg8[%c0_6, %c0_7] : memref<256x128xf32, #tpu.memory_space<vmem>>, vector<256x128xf32>
    tpu.vector_store %arg8[%c0_6, %c0_7], %7 {strides = array<i32>} : memref<256x128xf32, #tpu.memory_space<vmem>>, vector<256x128xf32>,
    %c0_i32_8 = arith.constant 0 : i32
    %9 = arith.cmpi eq, %arg2, %c0_i32_8 : i32
    %10 = arith.extui %9 : i1 to i32
    %c0_i32_9 = arith.constant 0 : i32
    %11 = arith.cmpi ne, %10, %c0_i32_9 : i32
    scf.if %11 {
      %c0_10 = arith.constant 0 : index
      %c0_11 = arith.constant 0 : index
      %12 = vector.load %arg8[%c0_10, %c0_11] : memref<256x128xf32, #tpu.memory_space<vmem>>, vector<256x128xf32>
      %c0_12 = arith.constant 0 : index
      %c0_13 = arith.constant 0 : index
      %13 = vector.load %arg5[%c0_12, %c0_13] : memref<1x128xf32, #tpu.memory_space<vmem>>, vector<1x128xf32>
      %14 = vector.broadcast %13 : vector<1x128xf32> to vector<256x128xf32>
      %15 = arith.mulf %12, %14 : vector<256x128xf32>
      %c0_14 = arith.constant 0 : index
      %c0_15 = arith.constant 0 : index
      %16 = vector.load %arg6[%c0_14, %c0_15] : memref<1x128xf32, #tpu.memory_space<vmem>>, vector<1x128xf32>
      %17 = vector.broadcast %16 : vector<1x128xf32> to vector<256x128xf32>
      %18 = arith.addf %15, %17 : vector<256x128xf32>
      %cst_16 = arith.constant 0.000000e+00 : f32
      %19 = vector.broadcast %cst_16 : f32 to vector<256x128xf32>
      %20 = arith.cmpf oge, %18, %19 : vector<256x128xf32>
      %cst_17 = arith.constant 0.00999999977 : f32
      %21 = vector.broadcast %cst_17 : f32 to vector<256x128xf32>
      %22 = arith.mulf %18, %21 : vector<256x128xf32>
      %23 = arith.select %20, %18, %22 : vector<256x128xi1>, vector<256x128xf32>
      %24 = arith.truncf %23 : vector<256x128xf32> to vector<256x128xbf16>
      %c0_18 = arith.constant 0 : index
      %c0_19 = arith.constant 0 : index
      %25 = vector.load %arg7[%c0_18, %c0_19] : memref<256x128xbf16, #tpu.memory_space<vmem>>, vector<256x128xbf16>
      tpu.vector_store %arg7[%c0_18, %c0_19], %24 {strides = array<i32>} : memref<256x128xbf16, #tpu.memory_space<vmem>>, vector<256x128xbf16>,
    } else {
    }
    return
  }
  func.func @transform_0(%arg0: i32, %arg1: i32, %arg2: i32) -> (i32, i32) {
    %c0_i32 = arith.constant 0 : i32
    return %arg0, %arg2 : i32, i32
  }
  func.func @transform_1(%arg0: i32, %arg1: i32, %arg2: i32) -> (i32, i32) {
    %c0_i32 = arith.constant 0 : i32
    return %arg2, %arg1 : i32, i32
  }
  func.func @transform_2(%arg0: i32, %arg1: i32, %arg2: i32) -> (i32, i32) {
    %c0_i32 = arith.constant 0 : i32
    %c0_i32_0 = arith.constant 0 : i32
    return %c0_i32, %arg1 : i32, i32
  }
  func.func @transform_3(%arg0: i32, %arg1: i32, %arg2: i32) -> (i32, i32) {
    %c0_i32 = arith.constant 0 : i32
    %c0_i32_0 = arith.constant 0 : i32
    return %c0_i32, %arg1 : i32, i32
  }
  func.func @transform_4(%arg0: i32, %arg1: i32, %arg2: i32) -> (i32, i32) {
    %c0_i32 = arith.constant 0 : i32
    return %arg0, %arg1 : i32, i32
  }
}

module attributes {stable_mosaic.version = 11 : i64} {
  func.func @_fused_matmul_kernel(%arg0: i32, %arg1: i32, %arg2: i32, %arg3: memref<256x128xbf16, #tpu.memory_space<vmem>>, %arg4: memref<128x128xbf16, #tpu.memory_space<vmem>>, %arg5: memref<1x128xf32, #tpu.memory_space<vmem>>, %arg6: memref<1x128xf32, #tpu.memory_space<vmem>>, %arg7: memref<256x128xbf16, #tpu.memory_space<vmem>>, %arg8: memref<256x128xf32, #tpu.memory_space<vmem>>) attributes {dimension_semantics = [#tpu.dimension_semantics<parallel>, #tpu.dimension_semantics<parallel>, #tpu.dimension_semantics<arbitrary>], iteration_bounds = array<i64: 9, 1, 1>, scalar_prefetch = 0 : i64, scratch_operands = 1 : i64, tpu.core_type = #tpu.core_type<tc>, window_params = [{transform_indices = @transform_0, window_bounds = array<i64: 256, 128>}, {transform_indices = @transform_1, window_bounds = array<i64: 128, 128>}, {transform_indices = @transform_2, window_bounds = array<i64: 1, 128>}, {transform_indices = @transform_3, window_bounds = array<i64: 1, 128>}, {transform_indices = @transform_4, window_bounds = array<i64: 256, 128>}]} {
    %c0_i32 = arith.constant 0 : i32
    %0 = arith.cmpi eq, %arg2, %c0_i32 : i32
    %1 = arith.extui %0 : i1 to i32
    %c0_i32_0 = arith.constant 0 : i32
    %2 = arith.cmpi ne, %1, %c0_i32_0 : i32
    scf.if %2 {
      %cst_10 = arith.constant 0.000000e+00 : f32
      %12 = vector.broadcast %cst_10 : f32 to vector<256x128xf32>
      %c0_11 = arith.constant 0 : index
      %c0_12 = arith.constant 0 : index
      %13 = vector.load %arg8[%c0_11, %c0_12] : memref<256x128xf32, #tpu.memory_space<vmem>>, vector<256x128xf32>
      tpu.vector_store %arg8[%c0_11, %c0_12], %12 {strides = array<i32>} : memref<256x128xf32, #tpu.memory_space<vmem>>, vector<256x128xf32>,
    } else {
    }
    %c0 = arith.constant 0 : index
    %c0_1 = arith.constant 0 : index
    %3 = vector.load %arg8[%c0, %c0_1] : memref<256x128xf32, #tpu.memory_space<vmem>>, vector<256x128xf32>
    %c0_2 = arith.constant 0 : index
    %c0_3 = arith.constant 0 : index
    %4 = vector.load %arg3[%c0_2, %c0_3] : memref<256x128xbf16, #tpu.memory_space<vmem>>, vector<256x128xbf16>
    %c0_4 = arith.constant 0 : index
    %c0_5 = arith.constant 0 : index
    %5 = vector.load %arg4[%c0_4, %c0_5] : memref<128x128xbf16, #tpu.memory_space<vmem>>, vector<128x128xbf16>
    %cst = arith.constant dense<0.000000e+00> : vector<256x128xf32>
    %6 = tpu.matmul %4, %5, %cst {dimension_numbers = #tpu.dot_dimension_numbers<[1], [0], [0], [1], [0, 0, 1, 1], [], []>} : vector<256x128xbf16>, vector<128x128xbf16>, vector<256x128xf32> -> vector<256x128xf32>
    %7 = arith.addf %3, %6 : vector<256x128xf32>
    %c0_6 = arith.constant 0 : index
    %c0_7 = arith.constant 0 : index
    %8 = vector.load %arg8[%c0_6, %c0_7] : memref<256x128xf32, #tpu.memory_space<vmem>>, vector<256x128xf32>
    tpu.vector_store %arg8[%c0_6, %c0_7], %7 {strides = array<i32>} : memref<256x128xf32, #tpu.memory_space<vmem>>, vector<256x128xf32>,
    %c0_i32_8 = arith.constant 0 : i32
    %9 = arith.cmpi eq, %arg2, %c0_i32_8 : i32
    %10 = arith.extui %9 : i1 to i32
    %c0_i32_9 = arith.constant 0 : i32
    %11 = arith.cmpi ne, %10, %c0_i32_9 : i32
    scf.if %11 {
      %c0_10 = arith.constant 0 : index
      %c0_11 = arith.constant 0 : index
      %12 = vector.load %arg8[%c0_10, %c0_11] : memref<256x128xf32, #tpu.memory_space<vmem>>, vector<256x128xf32>
      %c0_12 = arith.constant 0 : index
      %c0_13 = arith.constant 0 : index
      %13 = vector.load %arg5[%c0_12, %c0_13] : memref<1x128xf32, #tpu.memory_space<vmem>>, vector<1x128xf32>
      %14 = vector.broadcast %13 : vector<1x128xf32> to vector<256x128xf32>
      %15 = arith.mulf %12, %14 : vector<256x128xf32>
      %c0_14 = arith.constant 0 : index
      %c0_15 = arith.constant 0 : index
      %16 = vector.load %arg6[%c0_14, %c0_15] : memref<1x128xf32, #tpu.memory_space<vmem>>, vector<1x128xf32>
      %17 = vector.broadcast %16 : vector<1x128xf32> to vector<256x128xf32>
      %18 = arith.addf %15, %17 : vector<256x128xf32>
      %cst_16 = arith.constant 0.000000e+00 : f32
      %19 = vector.broadcast %cst_16 : f32 to vector<256x128xf32>
      %20 = arith.cmpf oge, %18, %19 : vector<256x128xf32>
      %cst_17 = arith.constant 0.00999999977 : f32
      %21 = vector.broadcast %cst_17 : f32 to vector<256x128xf32>
      %22 = arith.mulf %18, %21 : vector<256x128xf32>
      %23 = arith.select %20, %18, %22 : vector<256x128xi1>, vector<256x128xf32>
      %24 = arith.truncf %23 : vector<256x128xf32> to vector<256x128xbf16>
      %c0_18 = arith.constant 0 : index
      %c0_19 = arith.constant 0 : index
      %25 = vector.load %arg7[%c0_18, %c0_19] : memref<256x128xbf16, #tpu.memory_space<vmem>>, vector<256x128xbf16>
      tpu.vector_store %arg7[%c0_18, %c0_19], %24 {strides = array<i32>} : memref<256x128xbf16, #tpu.memory_space<vmem>>, vector<256x128xbf16>,
    } else {
    }
    return
  }
  func.func @transform_0(%arg0: i32, %arg1: i32, %arg2: i32) -> (i32, i32) {
    %c0_i32 = arith.constant 0 : i32
    return %arg0, %arg2 : i32, i32
  }
  func.func @transform_1(%arg0: i32, %arg1: i32, %arg2: i32) -> (i32, i32) {
    %c0_i32 = arith.constant 0 : i32
    return %arg2, %arg1 : i32, i32
  }
  func.func @transform_2(%arg0: i32, %arg1: i32, %arg2: i32) -> (i32, i32) {
    %c0_i32 = arith.constant 0 : i32
    %c0_i32_0 = arith.constant 0 : i32
    return %c0_i32, %arg1 : i32, i32
  }
  func.func @transform_3(%arg0: i32, %arg1: i32, %arg2: i32) -> (i32, i32) {
    %c0_i32 = arith.constant 0 : i32
    %c0_i32_0 = arith.constant 0 : i32
    return %c0_i32, %arg1 : i32, i32
  }
  func.func @transform_4(%arg0: i32, %arg1: i32, %arg2: i32) -> (i32, i32) {
    %c0_i32 = arith.constant 0 : i32
    return %arg0, %arg1 : i32, i32
  }
}

module attributes {stable_mosaic.version = 11 : i64} {
  func.func @_fused_matmul_kernel(%arg0: i32, %arg1: i32, %arg2: i32, %arg3: memref<256x128xbf16, #tpu.memory_space<vmem>>, %arg4: memref<128x128xbf16, #tpu.memory_space<vmem>>, %arg5: memref<1x128xf32, #tpu.memory_space<vmem>>, %arg6: memref<1x128xf32, #tpu.memory_space<vmem>>, %arg7: memref<256x128xbf16, #tpu.memory_space<vmem>>, %arg8: memref<256x128xf32, #tpu.memory_space<vmem>>) attributes {dimension_semantics = [#tpu.dimension_semantics<parallel>, #tpu.dimension_semantics<parallel>, #tpu.dimension_semantics<arbitrary>], iteration_bounds = array<i64: 11, 1, 1>, scalar_prefetch = 0 : i64, scratch_operands = 1 : i64, tpu.core_type = #tpu.core_type<tc>, window_params = [{transform_indices = @transform_0, window_bounds = array<i64: 256, 128>}, {transform_indices = @transform_1, window_bounds = array<i64: 128, 128>}, {transform_indices = @transform_2, window_bounds = array<i64: 1, 128>}, {transform_indices = @transform_3, window_bounds = array<i64: 1, 128>}, {transform_indices = @transform_4, window_bounds = array<i64: 256, 128>}]} {
    %c0_i32 = arith.constant 0 : i32
    %0 = arith.cmpi eq, %arg2, %c0_i32 : i32
    %1 = arith.extui %0 : i1 to i32
    %c0_i32_0 = arith.constant 0 : i32
    %2 = arith.cmpi ne, %1, %c0_i32_0 : i32
    scf.if %2 {
      %cst_10 = arith.constant 0.000000e+00 : f32
      %12 = vector.broadcast %cst_10 : f32 to vector<256x128xf32>
      %c0_11 = arith.constant 0 : index
      %c0_12 = arith.constant 0 : index
      %13 = vector.load %arg8[%c0_11, %c0_12] : memref<256x128xf32, #tpu.memory_space<vmem>>, vector<256x128xf32>
      tpu.vector_store %arg8[%c0_11, %c0_12], %12 {strides = array<i32>} : memref<256x128xf32, #tpu.memory_space<vmem>>, vector<256x128xf32>,
    } else {
    }
    %c0 = arith.constant 0 : index
    %c0_1 = arith.constant 0 : index
    %3 = vector.load %arg8[%c0, %c0_1] : memref<256x128xf32, #tpu.memory_space<vmem>>, vector<256x128xf32>
    %c0_2 = arith.constant 0 : index
    %c0_3 = arith.constant 0 : index
    %4 = vector.load %arg3[%c0_2, %c0_3] : memref<256x128xbf16, #tpu.memory_space<vmem>>, vector<256x128xbf16>
    %c0_4 = arith.constant 0 : index
    %c0_5 = arith.constant 0 : index
    %5 = vector.load %arg4[%c0_4, %c0_5] : memref<128x128xbf16, #tpu.memory_space<vmem>>, vector<128x128xbf16>
    %cst = arith.constant dense<0.000000e+00> : vector<256x128xf32>
    %6 = tpu.matmul %4, %5, %cst {dimension_numbers = #tpu.dot_dimension_numbers<[1], [0], [0], [1], [0, 0, 1, 1], [], []>} : vector<256x128xbf16>, vector<128x128xbf16>, vector<256x128xf32> -> vector<256x128xf32>
    %7 = arith.addf %3, %6 : vector<256x128xf32>
    %c0_6 = arith.constant 0 : index
    %c0_7 = arith.constant 0 : index
    %8 = vector.load %arg8[%c0_6, %c0_7] : memref<256x128xf32, #tpu.memory_space<vmem>>, vector<256x128xf32>
    tpu.vector_store %arg8[%c0_6, %c0_7], %7 {strides = array<i32>} : memref<256x128xf32, #tpu.memory_space<vmem>>, vector<256x128xf32>,
    %c0_i32_8 = arith.constant 0 : i32
    %9 = arith.cmpi eq, %arg2, %c0_i32_8 : i32
    %10 = arith.extui %9 : i1 to i32
    %c0_i32_9 = arith.constant 0 : i32
    %11 = arith.cmpi ne, %10, %c0_i32_9 : i32
    scf.if %11 {
      %c0_10 = arith.constant 0 : index
      %c0_11 = arith.constant 0 : index
      %12 = vector.load %arg8[%c0_10, %c0_11] : memref<256x128xf32, #tpu.memory_space<vmem>>, vector<256x128xf32>
      %c0_12 = arith.constant 0 : index
      %c0_13 = arith.constant 0 : index
      %13 = vector.load %arg5[%c0_12, %c0_13] : memref<1x128xf32, #tpu.memory_space<vmem>>, vector<1x128xf32>
      %14 = vector.broadcast %13 : vector<1x128xf32> to vector<256x128xf32>
      %15 = arith.mulf %12, %14 : vector<256x128xf32>
      %c0_14 = arith.constant 0 : index
      %c0_15 = arith.constant 0 : index
      %16 = vector.load %arg6[%c0_14, %c0_15] : memref<1x128xf32, #tpu.memory_space<vmem>>, vector<1x128xf32>
      %17 = vector.broadcast %16 : vector<1x128xf32> to vector<256x128xf32>
      %18 = arith.addf %15, %17 : vector<256x128xf32>
      %cst_16 = arith.constant 0.000000e+00 : f32
      %19 = vector.broadcast %cst_16 : f32 to vector<256x128xf32>
      %20 = arith.cmpf oge, %18, %19 : vector<256x128xf32>
      %cst_17 = arith.constant 0.00999999977 : f32
      %21 = vector.broadcast %cst_17 : f32 to vector<256x128xf32>
      %22 = arith.mulf %18, %21 : vector<256x128xf32>
      %23 = arith.select %20, %18, %22 : vector<256x128xi1>, vector<256x128xf32>
      %24 = arith.truncf %23 : vector<256x128xf32> to vector<256x128xbf16>
      %c0_18 = arith.constant 0 : index
      %c0_19 = arith.constant 0 : index
      %25 = vector.load %arg7[%c0_18, %c0_19] : memref<256x128xbf16, #tpu.memory_space<vmem>>, vector<256x128xbf16>
      tpu.vector_store %arg7[%c0_18, %c0_19], %24 {strides = array<i32>} : memref<256x128xbf16, #tpu.memory_space<vmem>>, vector<256x128xbf16>,
    } else {
    }
    return
  }
  func.func @transform_0(%arg0: i32, %arg1: i32, %arg2: i32) -> (i32, i32) {
    %c0_i32 = arith.constant 0 : i32
    return %arg0, %arg2 : i32, i32
  }
  func.func @transform_1(%arg0: i32, %arg1: i32, %arg2: i32) -> (i32, i32) {
    %c0_i32 = arith.constant 0 : i32
    return %arg2, %arg1 : i32, i32
  }
  func.func @transform_2(%arg0: i32, %arg1: i32, %arg2: i32) -> (i32, i32) {
    %c0_i32 = arith.constant 0 : i32
    %c0_i32_0 = arith.constant 0 : i32
    return %c0_i32, %arg1 : i32, i32
  }
  func.func @transform_3(%arg0: i32, %arg1: i32, %arg2: i32) -> (i32, i32) {
    %c0_i32 = arith.constant 0 : i32
    %c0_i32_0 = arith.constant 0 : i32
    return %c0_i32, %arg1 : i32, i32
  }
  func.func @transform_4(%arg0: i32, %arg1: i32, %arg2: i32) -> (i32, i32) {
    %c0_i32 = arith.constant 0 : i32
    return %arg0, %arg1 : i32, i32
  }
}

module attributes {stable_mosaic.version = 11 : i64} {
  func.func @_fused_matmul_kernel(%arg0: i32, %arg1: i32, %arg2: i32, %arg3: memref<256x128xbf16, #tpu.memory_space<vmem>>, %arg4: memref<128x128xbf16, #tpu.memory_space<vmem>>, %arg5: memref<1x128xf32, #tpu.memory_space<vmem>>, %arg6: memref<1x128xf32, #tpu.memory_space<vmem>>, %arg7: memref<256x128xbf16, #tpu.memory_space<vmem>>, %arg8: memref<256x128xf32, #tpu.memory_space<vmem>>) attributes {dimension_semantics = [#tpu.dimension_semantics<parallel>, #tpu.dimension_semantics<parallel>, #tpu.dimension_semantics<arbitrary>], iteration_bounds = array<i64: 9, 1, 1>, scalar_prefetch = 0 : i64, scratch_operands = 1 : i64, tpu.core_type = #tpu.core_type<tc>, window_params = [{transform_indices = @transform_0, window_bounds = array<i64: 256, 128>}, {transform_indices = @transform_1, window_bounds = array<i64: 128, 128>}, {transform_indices = @transform_2, window_bounds = array<i64: 1, 128>}, {transform_indices = @transform_3, window_bounds = array<i64: 1, 128>}, {transform_indices = @transform_4, window_bounds = array<i64: 256, 128>}]} {
    %c0_i32 = arith.constant 0 : i32
    %0 = arith.cmpi eq, %arg2, %c0_i32 : i32
    %1 = arith.extui %0 : i1 to i32
    %c0_i32_0 = arith.constant 0 : i32
    %2 = arith.cmpi ne, %1, %c0_i32_0 : i32
    scf.if %2 {
      %cst_10 = arith.constant 0.000000e+00 : f32
      %12 = vector.broadcast %cst_10 : f32 to vector<256x128xf32>
      %c0_11 = arith.constant 0 : index
      %c0_12 = arith.constant 0 : index
      %13 = vector.load %arg8[%c0_11, %c0_12] : memref<256x128xf32, #tpu.memory_space<vmem>>, vector<256x128xf32>
      tpu.vector_store %arg8[%c0_11, %c0_12], %12 {strides = array<i32>} : memref<256x128xf32, #tpu.memory_space<vmem>>, vector<256x128xf32>,
    } else {
    }
    %c0 = arith.constant 0 : index
    %c0_1 = arith.constant 0 : index
    %3 = vector.load %arg8[%c0, %c0_1] : memref<256x128xf32, #tpu.memory_space<vmem>>, vector<256x128xf32>
    %c0_2 = arith.constant 0 : index
    %c0_3 = arith.constant 0 : index
    %4 = vector.load %arg3[%c0_2, %c0_3] : memref<256x128xbf16, #tpu.memory_space<vmem>>, vector<256x128xbf16>
    %c0_4 = arith.constant 0 : index
    %c0_5 = arith.constant 0 : index
    %5 = vector.load %arg4[%c0_4, %c0_5] : memref<128x128xbf16, #tpu.memory_space<vmem>>, vector<128x128xbf16>
    %cst = arith.constant dense<0.000000e+00> : vector<256x128xf32>
    %6 = tpu.matmul %4, %5, %cst {dimension_numbers = #tpu.dot_dimension_numbers<[1], [0], [0], [1], [0, 0, 1, 1], [], []>} : vector<256x128xbf16>, vector<128x128xbf16>, vector<256x128xf32> -> vector<256x128xf32>
    %7 = arith.addf %3, %6 : vector<256x128xf32>
    %c0_6 = arith.constant 0 : index
    %c0_7 = arith.constant 0 : index
    %8 = vector.load %arg8[%c0_6, %c0_7] : memref<256x128xf32, #tpu.memory_space<vmem>>, vector<256x128xf32>
    tpu.vector_store %arg8[%c0_6, %c0_7], %7 {strides = array<i32>} : memref<256x128xf32, #tpu.memory_space<vmem>>, vector<256x128xf32>,
    %c0_i32_8 = arith.constant 0 : i32
    %9 = arith.cmpi eq, %arg2, %c0_i32_8 : i32
    %10 = arith.extui %9 : i1 to i32
    %c0_i32_9 = arith.constant 0 : i32
    %11 = arith.cmpi ne, %10, %c0_i32_9 : i32
    scf.if %11 {
      %c0_10 = arith.constant 0 : index
      %c0_11 = arith.constant 0 : index
      %12 = vector.load %arg8[%c0_10, %c0_11] : memref<256x128xf32, #tpu.memory_space<vmem>>, vector<256x128xf32>
      %c0_12 = arith.constant 0 : index
      %c0_13 = arith.constant 0 : index
      %13 = vector.load %arg5[%c0_12, %c0_13] : memref<1x128xf32, #tpu.memory_space<vmem>>, vector<1x128xf32>
      %14 = vector.broadcast %13 : vector<1x128xf32> to vector<256x128xf32>
      %15 = arith.mulf %12, %14 : vector<256x128xf32>
      %c0_14 = arith.constant 0 : index
      %c0_15 = arith.constant 0 : index
      %16 = vector.load %arg6[%c0_14, %c0_15] : memref<1x128xf32, #tpu.memory_space<vmem>>, vector<1x128xf32>
      %17 = vector.broadcast %16 : vector<1x128xf32> to vector<256x128xf32>
      %18 = arith.addf %15, %17 : vector<256x128xf32>
      %19 = arith.truncf %18 : vector<256x128xf32> to vector<256x128xbf16>
      %c0_16 = arith.constant 0 : index
      %c0_17 = arith.constant 0 : index
      %20 = vector.load %arg7[%c0_16, %c0_17] : memref<256x128xbf16, #tpu.memory_space<vmem>>, vector<256x128xbf16>
      tpu.vector_store %arg7[%c0_16, %c0_17], %19 {strides = array<i32>} : memref<256x128xbf16, #tpu.memory_space<vmem>>, vector<256x128xbf16>,
    } else {
    }
    return
  }
  func.func @transform_0(%arg0: i32, %arg1: i32, %arg2: i32) -> (i32, i32) {
    %c0_i32 = arith.constant 0 : i32
    return %arg0, %arg2 : i32, i32
  }
  func.func @transform_1(%arg0: i32, %arg1: i32, %arg2: i32) -> (i32, i32) {
    %c0_i32 = arith.constant 0 : i32
    return %arg2, %arg1 : i32, i32
  }
  func.func @transform_2(%arg0: i32, %arg1: i32, %arg2: i32) -> (i32, i32) {
    %c0_i32 = arith.constant 0 : i32
    %c0_i32_0 = arith.constant 0 : i32
    return %c0_i32, %arg1 : i32, i32
  }
  func.func @transform_3(%arg0: i32, %arg1: i32, %arg2: i32) -> (i32, i32) {
    %c0_i32 = arith.constant 0 : i32
    %c0_i32_0 = arith.constant 0 : i32
    return %c0_i32, %arg1 : i32, i32
  }
  func.func @transform_4(%arg0: i32, %arg1: i32, %arg2: i32) -> (i32, i32) {
    %c0_i32 = arith.constant 0 : i32
    return %arg0, %arg1 : i32, i32
  }
}

</mosaic_0001>

<bundles_post_ra>
// kernel: _lambda_.14
= control target key start
LH: loop header
LB: loop body
LE: loop exit
PB: predicated region body
PF: predicated region fallthrough
CT: control target
= control target key end

     0   :  { %s1431_s15 = smov 0   ;;  %s1433_s16 = smov 0   ;;  %s1608_s0 = inlined_call_operand.vmem [shape: bf16[1792,128], index: 0, kind: input, shape index: {}]   ;;  %s1609_s1 = inlined_call_operand.vmem [shape: bf16[128,128], index: 1, kind: input, shape index: {}]   ;;  %s1610_s2 = inlined_call_operand.vmem [shape: f32[1,128], index: 2, kind: input, shape index: {}]   ;;  %s1611_s3 = inlined_call_operand.vmem [shape: f32[1,128], index: 3, kind: input, shape index: {}]   ;;  %s1612_s4 = inlined_call_operand.vmem [shape: bf16[1792,128], index: 4, kind: output, shape index: {}]  }
   0x1   :  { %s1435_s17 = smov 0  }
   0x2 LB: > { %s33_s18 = sadd.s32 1, %s1400_s16  ;;  %p1110_p0 = scmp.ge.s32.totalorder %s1404_s17, 1  ;;  %s1404_s17 = sphi %s1435_s17, %s14_s17   ;;  %s1400_s16 = sphi %s1433_s16, %s1614_s16   ;;  %s1396_s15 = sphi %s1431_s15, %s1613_s15  }
   0x3   : > { %p35_p1 = scmp.ge.s32.totalorder %s33_s18, 7  ;;  %p221_p2 = scmp.lt.s32.totalorder %s1404_s17, 8 }
   0x5   : > { %s1616_s18 = smov (%p35_p1, %s33_s18), 0  ;;  %p222_p3 = pnand %p1110_p0, %p221_p2 }
   0x6   : > { %s1111_s27 = sshll.u32 (!%p222_p3), %s1396_s15, 5 }
   0x7   : > { %225 = sbr.rel (%p222_p3) target bundleno = 244 (0xf4), region = 36  ;;  %p268_p4 = scmp.lt.s32.totalorder (!%p222_p3), %s1111_s27, 223 }
   0xc   : > { %v1236_v0 = vld [vmem:[%s1609_s1 + $0x38] sm:$0xff]  ;;  %v1235_v1 = vld [vmem:[%s1609_s1 + $0x30] sm:$0xff]  ;;  %v1234_v2 = vld [vmem:[%s1609_s1 + $0x28] sm:$0xff]  ;;  %s1618_s27 = smov (!%p268_p4, %s1111_s27), 223 }
   0xd   : > { %560 = vmatpush.bf16.msra.mxu0 %v1236_v0  ;;  %1332 = vmatpush.bf16.msra.mxu1 %v1236_v0  ;;  %v1233_v3 = vld [vmem:[%s1609_s1 + $0x20] sm:$0xff]  ;;  %v1232_v4 = vld [vmem:[%s1609_s1 + $0x18] sm:$0xff]  ;;  %v1231_v5 = vld [vmem:[%s1609_s1 + $0x10] sm:$0xff]  ;;  %s1112_s8 = sshll.u32 %s1618_s27, 2 }
   0xe   : > { %1333 = vmatpush.bf16.msra.mxu2 %v1236_v0  ;;  %1334 = vmatpush.bf16.msra.mxu3 %v1236_v0  ;;  %v1230_v6 = vld [vmem:[%s1609_s1 + $0x8] sm:$0xff]  ;;  %v1229_v7 = vld [vmem:[%s1609_s1] sm:$0xff]  ;;  %s1484_s13 = scalar_lea.vmem %s1608_s0, %s1112_s8  ;;  %s1529_s23 = scalar_lea.vmem %s1612_s4, %s1112_s8 }
   0xf   : > { %v1213_v8 = vld [vmem:[%s1484_s13] sm:$0xff]  ;;  %v1214_v12 = vld [vmem:[%s1484_s13 + $0x8] sm:$0xff]  ;;  %v1215_v16 = vld [vmem:[%s1484_s13 + $0x10] sm:$0xff] }
  0x10   : > { %v1217_v9 = vld [vmem:[%s1484_s13 + $0x20] sm:$0xff]  ;;  %v1218_v13 = vld [vmem:[%s1484_s13 + $0x28] sm:$0xff]  ;;  %v1219_v17 = vld [vmem:[%s1484_s13 + $0x30] sm:$0xff] }
  0x11   : > { %561 = vmatpush.bf16.msra.mxu0 %v1235_v1  ;;  %1335 = vmatpush.bf16.msra.mxu1 %v1235_v1  ;;  %v1221_v10 = vld [vmem:[%s1484_s13 + $0x40] sm:$0xff]  ;;  %v1222_v14 = vld [vmem:[%s1484_s13 + $0x48] sm:$0xff]  ;;  %v1223_v18 = vld [vmem:[%s1484_s13 + $0x50] sm:$0xff] }
  0x12   : > { %1336 = vmatpush.bf16.msra.mxu2 %v1235_v1  ;;  %1337 = vmatpush.bf16.msra.mxu3 %v1235_v1  ;;  %v1225_v11 = vld [vmem:[%s1484_s13 + $0x60] sm:$0xff]  ;;  %v1226_v15 = vld [vmem:[%s1484_s13 + $0x68] sm:$0xff]  ;;  %v1227_v19 = vld [vmem:[%s1484_s13 + $0x70] sm:$0xff] }
  0x13   : > { %v1216_v20 = vld [vmem:[%s1484_s13 + $0x18] sm:$0xff]  ;;  %v1505_v24 = vld [vmem:[%s1610_s2] ss:$0 sm:$0xff] }
  0x14   : > { %v1220_v21 = vld [vmem:[%s1484_s13 + $0x38] sm:$0xff]  ;;  %v1511_v28 = vld [vmem:[%s1611_s3] ss:$0 sm:$0xff] }
  0x15   : > { %562 = vmatpush.bf16.msra.mxu0 %v1234_v2  ;;  %1338 = vmatpush.bf16.msra.mxu1 %v1234_v2  ;;  %v1224_v22 = vld [vmem:[%s1484_s13 + $0x58] sm:$0xff] }
  0x16   : > { %1339 = vmatpush.bf16.msra.mxu2 %v1234_v2  ;;  %1340 = vmatpush.bf16.msra.mxu3 %v1234_v2  ;;  %v1228_v23 = vld [vmem:[%s1484_s13 + $0x78] sm:$0xff] }
  0x19   : > { %563 = vmatpush.bf16.msra.mxu0 %v1233_v3  ;;  %1341 = vmatpush.bf16.msra.mxu1 %v1233_v3 }
  0x1a   : > { %1342 = vmatpush.bf16.msra.mxu2 %v1233_v3  ;;  %1343 = vmatpush.bf16.msra.mxu3 %v1233_v3 }
  0x1d   : > { %564 = vmatpush.bf16.msra.mxu0 %v1232_v4  ;;  %1344 = vmatpush.bf16.msra.mxu1 %v1232_v4 }
  0x1e   : > { %1345 = vmatpush.bf16.msra.mxu2 %v1232_v4  ;;  %1346 = vmatpush.bf16.msra.mxu3 %v1232_v4 }
  0x21   : > { %565 = vmatpush.bf16.msra.mxu0 %v1231_v5  ;;  %1347 = vmatpush.bf16.msra.mxu1 %v1231_v5 }
  0x22   : > { %1348 = vmatpush.bf16.msra.mxu2 %v1231_v5  ;;  %1349 = vmatpush.bf16.msra.mxu3 %v1231_v5 }
  0x25   : > { %566 = vmatpush.bf16.msra.mxu0 %v1230_v6  ;;  %1350 = vmatpush.bf16.msra.mxu1 %v1230_v6 }
  0x26   : > { %1351 = vmatpush.bf16.msra.mxu2 %v1230_v6  ;;  %1352 = vmatpush.bf16.msra.mxu3 %v1230_v6 }
  0x29   : > { %567 = vmatpush.bf16.msra.mxu0 %v1229_v7  ;;  %1353 = vmatpush.bf16.msra.mxu1 %v1229_v7 }
  0x2a   : > { %1354 = vmatpush.bf16.msra.mxu2 %v1229_v7  ;;  %1355 = vmatpush.bf16.msra.mxu3 %v1229_v7 }
  0x2c   : > { %568 = vmatmul.bf16.vlgmr.msra.gmra.mxu0 %v1213_v8  ;;  %588 = vmatmul.bf16.vlgmr.msra.gmra.mxu1 %v1217_v9 }
  0x2d   : > { %608 = vmatmul.bf16.vlgmr.msra.gmra.mxu2 %v1221_v10  ;;  %628 = vmatmul.bf16.vlgmr.msra.gmra.mxu3 %v1225_v11 }
  0x3c   : > { %573 = vmatmul.bf16.gmra.mxu0 %v1214_v12  ;;  %593 = vmatmul.bf16.gmra.mxu1 %v1218_v13 }
  0x3d   : > { %613 = vmatmul.bf16.gmra.mxu2 %v1222_v14  ;;  %633 = vmatmul.bf16.gmra.mxu3 %v1226_v15 }
  0x4c   : > { %578 = vmatmul.bf16.gmra.mxu0 %v1215_v16  ;;  %598 = vmatmul.bf16.gmra.mxu1 %v1219_v17 }
  0x4d   : > { %618 = vmatmul.bf16.gmra.mxu2 %v1223_v18  ;;  %638 = vmatmul.bf16.gmra.mxu3 %v1227_v19 }
  0x5c   : > { %583 = vmatmul.bf16.gmra.mxu0 %v1216_v20  ;;  %603 = vmatmul.bf16.gmra.mxu1 %v1220_v21 }
  0x5d   : > { %623 = vmatmul.bf16.gmra.mxu2 %v1224_v22  ;;  %643 = vmatmul.bf16.gmra.mxu3 %v1228_v23 }
  0xa9   : > { %v569_v25 = vpop.f32.mrf.mxu0  ;;  %v589_v26 = vpop.f32.mrf.mxu1 }
  0xaa   : > { %v752_v27 = vmul.f32 %v1505_v24, %v569_v25  ;;  %v760_v29 = vmul.f32 %v1505_v24, %v589_v26 }
  0xac   : > { %v788_v30 = vadd.f32 %v1511_v28, %v752_v27  ;;  %v796_v31 = vadd.f32 %v1511_v28, %v760_v29 }
  0xae   : > { %v852_v40 = vmul.f32 0.01, %v788_v30  ;;  %v860_v41 = vmul.f32 0.01, %v796_v31  ;;  %vm820_vm0 = vcmp.ge.f32.partialorder %v788_v30, 0.0  ;;  %vm828_vm1 = vcmp.ge.f32.partialorder %v796_v31, 0.0 }
  0xb0   : > { %v609_v32 = vpop.f32.mrf.mxu2  ;;  %v629_v33 = vpop.f32.mrf.mxu3  ;;  %v884_v48 = vsel %vm820_vm0, %v788_v30, %v852_v40  ;;  %v892_v49 = vsel %vm828_vm1, %v796_v31, %v860_v41 }
  0xb1   : > { %v571_v34 = vpop.f32.mrf.mxu0  ;;  %v591_v35 = vpop.f32.mrf.mxu1  ;;  %v768_v38 = vmul.f32 %v1505_v24, %v609_v32  ;;  %v776_v39 = vmul.f32 %v1505_v24, %v629_v33 }
  0xb2   : > { %v753_v36 = vmul.f32 %v1505_v24, %v571_v34  ;;  %v761_v37 = vmul.f32 %v1505_v24, %v591_v35 }
  0xb3   : > { %v804_v46 = vadd.f32 %v1511_v28, %v768_v38  ;;  %v812_v47 = vadd.f32 %v1511_v28, %v776_v39 }
  0xb4   : > { %v789_v42 = vadd.f32 %v1511_v28, %v753_v36  ;;  %v797_v43 = vadd.f32 %v1511_v28, %v761_v37 }
  0xb5   : > { %v868_v60 = vmul.f32 0.01, %v804_v46  ;;  %v876_v61 = vmul.f32 0.01, %v812_v47  ;;  %vm836_vm4 = vcmp.ge.f32.partialorder %v804_v46, 0.0  ;;  %vm844_vm5 = vcmp.ge.f32.partialorder %v812_v47, 0.0 }
  0xb6   : > { %vm821_vm2 = vcmp.ge.f32.partialorder %v789_v42, 0.0  ;;  %v853_v44 = vmul.f32 0.01, %v789_v42  ;;  %vm829_vm3 = vcmp.ge.f32.partialorder %v797_v43, 0.0  ;;  %v861_v45 = vmul.f32 0.01, %v797_v43 }
  0xb7   : > { %v900_v4 = vsel %vm836_vm4, %v804_v46, %v868_v60  ;;  %v908_v5 = vsel %vm844_vm5, %v812_v47, %v876_v61 }
  0xb8   : > { %v885_v50 = vsel %vm821_vm2, %v789_v42, %v853_v44  ;;  %v893_v51 = vsel %vm829_vm3, %v797_v43, %v861_v45  ;;  %v611_v52 = vpop.f32.mrf.mxu2  ;;  %v631_v53 = vpop.f32.mrf.mxu3 }
  0xb9   : > { %v1240_v54 = vpack.c.bf16 %v885_v50, %v884_v48  ;;  %v1260_v55 = vpack.c.bf16 %v893_v51, %v892_v49  ;;  %v769_v56 = vmul.f32 %v1505_v24, %v611_v52  ;;  %v777_v57 = vmul.f32 %v1505_v24, %v631_v53  ;;  %v574_v58 = vpop.f32.mrf.mxu0  ;;  %v594_v59 = vpop.f32.mrf.mxu1 }
  0xba   : > { %v754_v0 = vmul.f32 %v1505_v24, %v574_v58  ;;  %v762_v1 = vmul.f32 %v1505_v24, %v594_v59 }
  0xbb   : > { %1241 = vst [vmem:[%s1529_s23] sm:$0xff] %v1240_v54   ;;  %v805_v62 = vadd.f32 %v1511_v28, %v769_v56  ;;  %v813_v63 = vadd.f32 %v1511_v28, %v777_v57 }
  0xbc   : > { %1320 = vst [vmem:[%s1529_s23 + $0x20] sm:$0xff] %v1260_v55   ;;  %v790_v10 = vadd.f32 %v1511_v28, %v754_v0  ;;  %v798_v11 = vadd.f32 %v1511_v28, %v762_v1 }
  0xbd   : > { %vm837_vm6 = vcmp.ge.f32.partialorder %v805_v62, 0.0  ;;  %v869_v2 = vmul.f32 0.01, %v805_v62  ;;  %vm845_vm7 = vcmp.ge.f32.partialorder %v813_v63, 0.0  ;;  %v877_v3 = vmul.f32 0.01, %v813_v63 }
  0xbe   : > { %v854_v20 = vmul.f32 0.01, %v790_v10  ;;  %v862_v21 = vmul.f32 0.01, %v798_v11  ;;  %vm822_vm8 = vcmp.ge.f32.partialorder %v790_v10, 0.0  ;;  %vm830_vm9 = vcmp.ge.f32.partialorder %v798_v11, 0.0 }
  0xbf   : > { %v901_v6 = vsel %vm837_vm6, %v805_v62, %v869_v2  ;;  %v909_v7 = vsel %vm845_vm7, %v813_v63, %v877_v3 }
  0xc0   : > { %v1280_v8 = vpack.c.bf16 %v901_v6, %v900_v4  ;;  %v1300_v9 = vpack.c.bf16 %v909_v7, %v908_v5  ;;  %v614_v12 = vpop.f32.mrf.mxu2  ;;  %v634_v13 = vpop.f32.mrf.mxu3  ;;  %v886_v30 = vsel %vm822_vm8, %v790_v10, %v854_v20  ;;  %v894_v31 = vsel %vm830_vm9, %v798_v11, %v862_v21 }
  0xc1   : > { %v576_v14 = vpop.f32.mrf.mxu0  ;;  %v596_v15 = vpop.f32.mrf.mxu1  ;;  %v770_v18 = vmul.f32 %v1505_v24, %v614_v12  ;;  %v778_v19 = vmul.f32 %v1505_v24, %v634_v13 }
  0xc2   : > { %1324 = vst [vmem:[%s1529_s23 + $0x40] sm:$0xff] %v1280_v8   ;;  %v755_v16 = vmul.f32 %v1505_v24, %v576_v14  ;;  %v763_v17 = vmul.f32 %v1505_v24, %v596_v15 }
  0xc3   : > { %1328 = vst [vmem:[%s1529_s23 + $0x60] sm:$0xff] %v1300_v9   ;;  %v806_v27 = vadd.f32 %v1511_v28, %v770_v18  ;;  %v814_v29 = vadd.f32 %v1511_v28, %v778_v19 }
  0xc4   : > { %v791_v22 = vadd.f32 %v1511_v28, %v755_v16  ;;  %v799_v23 = vadd.f32 %v1511_v28, %v763_v17 }
  0xc5   : > { %v870_v42 = vmul.f32 0.01, %v806_v27  ;;  %v878_v43 = vmul.f32 0.01, %v814_v29  ;;  %vm838_vm12 = vcmp.ge.f32.partialorder %v806_v27, 0.0  ;;  %vm846_vm13 = vcmp.ge.f32.partialorder %v814_v29, 0.0 }
  0xc6   : > { %vm823_vm10 = vcmp.ge.f32.partialorder %v791_v22, 0.0  ;;  %v855_v25 = vmul.f32 0.01, %v791_v22  ;;  %vm831_vm11 = vcmp.ge.f32.partialorder %v799_v23, 0.0  ;;  %v863_v26 = vmul.f32 0.01, %v799_v23 }
  0xc7   : > { %v902_v50 = vsel %vm838_vm12, %v806_v27, %v870_v42  ;;  %v910_v51 = vsel %vm846_vm13, %v814_v29, %v878_v43 }
  0xc8   : > { %v887_v32 = vsel %vm823_vm10, %v791_v22, %v855_v25  ;;  %v895_v33 = vsel %vm831_vm11, %v799_v23, %v863_v26  ;;  %v616_v34 = vpop.f32.mrf.mxu2  ;;  %v636_v35 = vpop.f32.mrf.mxu3 }
  0xc9   : > { %v1245_v36 = vpack.c.bf16 %v887_v32, %v886_v30  ;;  %v1265_v37 = vpack.c.bf16 %v895_v33, %v894_v31  ;;  %v771_v38 = vmul.f32 %v1505_v24, %v616_v34  ;;  %v779_v39 = vmul.f32 %v1505_v24, %v636_v35  ;;  %v579_v40 = vpop.f32.mrf.mxu0  ;;  %v599_v41 = vpop.f32.mrf.mxu1 }
  0xca   : > { %v756_v46 = vmul.f32 %v1505_v24, %v579_v40  ;;  %v764_v47 = vmul.f32 %v1505_v24, %v599_v41 }
  0xcb   : > { %1317 = vst [vmem:[%s1529_s23 + $0x8] sm:$0xff] %v1245_v36   ;;  %v807_v44 = vadd.f32 %v1511_v28, %v771_v38  ;;  %v815_v45 = vadd.f32 %v1511_v28, %v779_v39 }
  0xcc   : > { %1321 = vst [vmem:[%s1529_s23 + $0x28] sm:$0xff] %v1265_v37   ;;  %v792_v56 = vadd.f32 %v1511_v28, %v756_v46  ;;  %v800_v57 = vadd.f32 %v1511_v28, %v764_v47 }
  0xcd   : > { %vm839_vm14 = vcmp.ge.f32.partialorder %v807_v44, 0.0  ;;  %v871_v48 = vmul.f32 0.01, %v807_v44  ;;  %vm847_vm15 = vcmp.ge.f32.partialorder %v815_v45, 0.0  ;;  %v879_v49 = vmul.f32 0.01, %v815_v45 }
  0xce   : > { %v856_v2 = vmul.f32 0.01, %v792_v56  ;;  %v864_v3 = vmul.f32 0.01, %v800_v57  ;;  %vm824_vm0 = vcmp.ge.f32.partialorder %v792_v56, 0.0  ;;  %vm832_vm1 = vcmp.ge.f32.partialorder %v800_v57, 0.0 }
  0xcf   : > { %v903_v52 = vsel %vm839_vm14, %v807_v44, %v871_v48  ;;  %v911_v53 = vsel %vm847_vm15, %v815_v45, %v879_v49 }
  0xd0   : > { %v1285_v54 = vpack.c.bf16 %v903_v52, %v902_v50  ;;  %v1305_v55 = vpack.c.bf16 %v911_v53, %v910_v51  ;;  %v619_v58 = vpop.f32.mrf.mxu2  ;;  %v639_v59 = vpop.f32.mrf.mxu3  ;;  %v888_v10 = vsel %vm824_vm0, %v792_v56, %v856_v2  ;;  %v896_v11 = vsel %vm832_vm1, %v800_v57, %v864_v3 }
  0xd1   : > { %v581_v60 = vpop.f32.mrf.mxu0  ;;  %v601_v61 = vpop.f32.mrf.mxu1  ;;  %v772_v0 = vmul.f32 %v1505_v24, %v619_v58  ;;  %v780_v1 = vmul.f32 %v1505_v24, %v639_v59 }
  0xd2   : > { %1325 = vst [vmem:[%s1529_s23 + $0x48] sm:$0xff] %v1285_v54   ;;  %v757_v62 = vmul.f32 %v1505_v24, %v581_v60  ;;  %v765_v63 = vmul.f32 %v1505_v24, %v601_v61 }
  0xd3   : > { %1329 = vst [vmem:[%s1529_s23 + $0x68] sm:$0xff] %v1305_v55   ;;  %v808_v8 = vadd.f32 %v1511_v28, %v772_v0  ;;  %v816_v9 = vadd.f32 %v1511_v28, %v780_v1 }
  0xd4   : > { %v793_v4 = vadd.f32 %v1511_v28, %v757_v62  ;;  %v801_v5 = vadd.f32 %v1511_v28, %v765_v63 }
  0xd5   : > { %v872_v22 = vmul.f32 0.01, %v808_v8  ;;  %v880_v23 = vmul.f32 0.01, %v816_v9  ;;  %vm840_vm4 = vcmp.ge.f32.partialorder %v808_v8, 0.0  ;;  %vm848_vm5 = vcmp.ge.f32.partialorder %v816_v9, 0.0 }
  0xd6   : > { %vm825_vm2 = vcmp.ge.f32.partialorder %v793_v4, 0.0  ;;  %v857_v6 = vmul.f32 0.01, %v793_v4  ;;  %vm833_vm3 = vcmp.ge.f32.partialorder %v801_v5, 0.0  ;;  %v865_v7 = vmul.f32 0.01, %v801_v5 }
  0xd7   : > { %v904_v32 = vsel %vm840_vm4, %v808_v8, %v872_v22  ;;  %v912_v33 = vsel %vm848_vm5, %v816_v9, %v880_v23 }
  0xd8   : > { %v889_v12 = vsel %vm825_vm2, %v793_v4, %v857_v6  ;;  %v897_v13 = vsel %vm833_vm3, %v801_v5, %v865_v7  ;;  %v621_v14 = vpop.f32.mrf.mxu2  ;;  %v641_v15 = vpop.f32.mrf.mxu3 }
  0xd9   : > { %v1250_v16 = vpack.c.bf16 %v889_v12, %v888_v10  ;;  %v1270_v17 = vpack.c.bf16 %v897_v13, %v896_v11  ;;  %v773_v18 = vmul.f32 %v1505_v24, %v621_v14  ;;  %v781_v19 = vmul.f32 %v1505_v24, %v641_v15  ;;  %v584_v20 = vpop.f32.mrf.mxu0  ;;  %v604_v21 = vpop.f32.mrf.mxu1 }
  0xda   : > { %v758_v27 = vmul.f32 %v1505_v24, %v584_v20  ;;  %v766_v29 = vmul.f32 %v1505_v24, %v604_v21 }
  0xdb   : > { %1318 = vst [vmem:[%s1529_s23 + $0x10] sm:$0xff] %v1250_v16   ;;  %v809_v25 = vadd.f32 %v1511_v28, %v773_v18  ;;  %v817_v26 = vadd.f32 %v1511_v28, %v781_v19 }
  0xdc   : > { %1322 = vst [vmem:[%s1529_s23 + $0x30] sm:$0xff] %v1270_v17   ;;  %v794_v38 = vadd.f32 %v1511_v28, %v758_v27  ;;  %v802_v39 = vadd.f32 %v1511_v28, %v766_v29 }
  0xdd   : > { %vm841_vm6 = vcmp.ge.f32.partialorder %v809_v25, 0.0  ;;  %v873_v30 = vmul.f32 0.01, %v809_v25  ;;  %vm849_vm7 = vcmp.ge.f32.partialorder %v817_v26, 0.0  ;;  %v881_v31 = vmul.f32 0.01, %v817_v26 }
  0xde   : > { %v858_v48 = vmul.f32 0.01, %v794_v38  ;;  %v866_v49 = vmul.f32 0.01, %v802_v39  ;;  %vm826_vm8 = vcmp.ge.f32.partialorder %v794_v38, 0.0  ;;  %vm834_vm9 = vcmp.ge.f32.partialorder %v802_v39, 0.0 }
  0xdf   : > { %v905_v34 = vsel %vm841_vm6, %v809_v25, %v873_v30  ;;  %v913_v35 = vsel %vm849_vm7, %v817_v26, %v881_v31 }
  0xe0   : > { %v1290_v36 = vpack.c.bf16 %v905_v34, %v904_v32  ;;  %v1310_v37 = vpack.c.bf16 %v913_v35, %v912_v33  ;;  %v624_v40 = vpop.f32.mrf.mxu2  ;;  %v644_v41 = vpop.f32.mrf.mxu3  ;;  %v890_v56 = vsel %vm826_vm8, %v794_v38, %v858_v48  ;;  %v898_v57 = vsel %vm834_vm9, %v802_v39, %v866_v49 }
  0xe1   : > { %v586_v42 = vpop.f32.mrf.mxu0  ;;  %v606_v43 = vpop.f32.mrf.mxu1  ;;  %v774_v46 = vmul.f32 %v1505_v24, %v624_v40  ;;  %v782_v47 = vmul.f32 %v1505_v24, %v644_v41 }
  0xe2   : > { %1326 = vst [vmem:[%s1529_s23 + $0x50] sm:$0xff] %v1290_v36   ;;  %v759_v44 = vmul.f32 %v1505_v24, %v586_v42  ;;  %v767_v45 = vmul.f32 %v1505_v24, %v606_v43 }
  0xe3   : > { %1330 = vst [vmem:[%s1529_s23 + $0x70] sm:$0xff] %v1310_v37   ;;  %v810_v54 = vadd.f32 %v1511_v28, %v774_v46  ;;  %v818_v55 = vadd.f32 %v1511_v28, %v782_v47 }
  0xe4   : > { %v795_v50 = vadd.f32 %v1511_v28, %v759_v44  ;;  %v803_v51 = vadd.f32 %v1511_v28, %v767_v45 }
  0xe5   : > { %v874_v2 = vmul.f32 0.01, %v810_v54  ;;  %v882_v3 = vmul.f32 0.01, %v818_v55  ;;  %vm842_vm12 = vcmp.ge.f32.partialorder %v810_v54, 0.0  ;;  %vm850_vm13 = vcmp.ge.f32.partialorder %v818_v55, 0.0 }
  0xe6   : > { %vm827_vm10 = vcmp.ge.f32.partialorder %v795_v50, 0.0  ;;  %v859_v52 = vmul.f32 0.01, %v795_v50  ;;  %vm835_vm11 = vcmp.ge.f32.partialorder %v803_v51, 0.0  ;;  %v867_v53 = vmul.f32 0.01, %v803_v51 }
  0xe7   : > { %v906_v8 = vsel %vm842_vm12, %v810_v54, %v874_v2  ;;  %v914_v9 = vsel %vm850_vm13, %v818_v55, %v882_v3 }
  0xe8   : > { %v891_v58 = vsel %vm827_vm10, %v795_v50, %v859_v52  ;;  %v899_v59 = vsel %vm835_vm11, %v803_v51, %v867_v53  ;;  %v626_v60 = vpop.f32.mrf.mxu2  ;;  %v646_v61 = vpop.f32.mrf.mxu3 }
  0xe9   : > { %v1255_v62 = vpack.c.bf16 %v891_v58, %v890_v56  ;;  %v1275_v63 = vpack.c.bf16 %v899_v59, %v898_v57  ;;  %v775_v0 = vmul.f32 %v1505_v24, %v626_v60  ;;  %v783_v1 = vmul.f32 %v1505_v24, %v646_v61 }
  0xeb   : > { %1319 = vst [vmem:[%s1529_s23 + $0x18] sm:$0xff] %v1255_v62   ;;  %v811_v4 = vadd.f32 %v1511_v28, %v775_v0  ;;  %v819_v5 = vadd.f32 %v1511_v28, %v783_v1 }
  0xec   : > { %1323 = vst [vmem:[%s1529_s23 + $0x38] sm:$0xff] %v1275_v63  }
  0xed   : > { %vm843_vm14 = vcmp.ge.f32.partialorder %v811_v4, 0.0  ;;  %v875_v6 = vmul.f32 0.01, %v811_v4  ;;  %vm851_vm15 = vcmp.ge.f32.partialorder %v819_v5, 0.0  ;;  %v883_v7 = vmul.f32 0.01, %v819_v5 }
  0xef   : > { %v907_v10 = vsel %vm843_vm14, %v811_v4, %v875_v6  ;;  %v915_v24 = vsel %vm851_vm15, %v819_v5, %v883_v7 }
  0xf0   : > { %v1295_v11 = vpack.c.bf16 %v907_v10, %v906_v8  ;;  %v1315_v12 = vpack.c.bf16 %v915_v24, %v914_v9 }
  0xf2   : > { %1327 = vst [vmem:[%s1529_s23 + $0x58] sm:$0xff] %v1295_v11  }
  0xf3   : > { %1331 = vst [vmem:[%s1529_s23 + $0x78] sm:$0xff] %v1315_v12  }
  0xf4 PF: > { %s14_s17 = sadd.s32 1, %s1404_s17   ;;  %s1613_s15 = smov %s1400_s16 }
  0xf5   : > { %p11_p5 = scmp.ge.s32.totalorder %s14_s17, 9   ;;  %s1614_s16 = smov %s1616_s18 }
  0xf7   :  { %13 = sbr.rel (!%p11_p5) target bundleno = 2 (0x2), region = 83 }

// kernel: _lambda_.15
= control target key start
LH: loop header
LB: loop body
LE: loop exit
PB: predicated region body
PF: predicated region fallthrough
CT: control target
= control target key end

     0   :  { %s1431_s15 = smov 0   ;;  %s1433_s16 = smov 0   ;;  %s1608_s0 = inlined_call_operand.vmem [shape: bf16[1536,128], index: 0, kind: input, shape index: {}]   ;;  %s1609_s1 = inlined_call_operand.vmem [shape: bf16[128,128], index: 1, kind: input, shape index: {}]   ;;  %s1610_s2 = inlined_call_operand.vmem [shape: f32[1,128], index: 2, kind: input, shape index: {}]   ;;  %s1611_s3 = inlined_call_operand.vmem [shape: f32[1,128], index: 3, kind: input, shape index: {}]   ;;  %s1612_s4 = inlined_call_operand.vmem [shape: bf16[1536,128], index: 4, kind: output, shape index: {}]  }
   0x1   :  { %s1435_s17 = smov 0  }
   0x2 LB: > { %s33_s18 = sadd.s32 1, %s1400_s16  ;;  %p1110_p0 = scmp.ge.s32.totalorder %s1404_s17, 1  ;;  %s1404_s17 = sphi %s1435_s17, %s14_s17   ;;  %s1400_s16 = sphi %s1433_s16, %s1614_s16   ;;  %s1396_s15 = sphi %s1431_s15, %s1613_s15  }
   0x3   : > { %p35_p1 = scmp.ge.s32.totalorder %s33_s18, 6  ;;  %p221_p2 = scmp.lt.s32.totalorder %s1404_s17, 7 }
   0x5   : > { %s1616_s18 = smov (%p35_p1, %s33_s18), 0  ;;  %p222_p3 = pnand %p1110_p0, %p221_p2 }
   0x6   : > { %s1111_s27 = sshll.u32 (!%p222_p3), %s1396_s15, 5 }
   0x7   : > { %225 = sbr.rel (%p222_p3) target bundleno = 244 (0xf4), region = 36  ;;  %p268_p4 = scmp.lt.s32.totalorder (!%p222_p3), %s1111_s27, 191 }
   0xc   : > { %v1236_v0 = vld [vmem:[%s1609_s1 + $0x38] sm:$0xff]  ;;  %v1235_v1 = vld [vmem:[%s1609_s1 + $0x30] sm:$0xff]  ;;  %v1234_v2 = vld [vmem:[%s1609_s1 + $0x28] sm:$0xff]  ;;  %s1618_s27 = smov (!%p268_p4, %s1111_s27), 191 }
   0xd   : > { %560 = vmatpush.bf16.msra.mxu0 %v1236_v0  ;;  %1332 = vmatpush.bf16.msra.mxu1 %v1236_v0  ;;  %v1233_v3 = vld [vmem:[%s1609_s1 + $0x20] sm:$0xff]  ;;  %v1232_v4 = vld [vmem:[%s1609_s1 + $0x18] sm:$0xff]  ;;  %v1231_v5 = vld [vmem:[%s1609_s1 + $0x10] sm:$0xff]  ;;  %s1112_s8 = sshll.u32 %s1618_s27, 2 }
   0xe   : > { %1333 = vmatpush.bf16.msra.mxu2 %v1236_v0  ;;  %1334 = vmatpush.bf16.msra.mxu3 %v1236_v0  ;;  %v1230_v6 = vld [vmem:[%s1609_s1 + $0x8] sm:$0xff]  ;;  %v1229_v7 = vld [vmem:[%s1609_s1] sm:$0xff]  ;;  %s1484_s13 = scalar_lea.vmem %s1608_s0, %s1112_s8  ;;  %s1529_s23 = scalar_lea.vmem %s1612_s4, %s1112_s8 }
   0xf   : > { %v1213_v8 = vld [vmem:[%s1484_s13] sm:$0xff]  ;;  %v1214_v12 = vld [vmem:[%s1484_s13 + $0x8] sm:$0xff]  ;;  %v1215_v16 = vld [vmem:[%s1484_s13 + $0x10] sm:$0xff] }
  0x10   : > { %v1217_v9 = vld [vmem:[%s1484_s13 + $0x20] sm:$0xff]  ;;  %v1218_v13 = vld [vmem:[%s1484_s13 + $0x28] sm:$0xff]  ;;  %v1219_v17 = vld [vmem:[%s1484_s13 + $0x30] sm:$0xff] }
  0x11   : > { %561 = vmatpush.bf16.msra.mxu0 %v1235_v1  ;;  %1335 = vmatpush.bf16.msra.mxu1 %v1235_v1  ;;  %v1221_v10 = vld [vmem:[%s1484_s13 + $0x40] sm:$0xff]  ;;  %v1222_v14 = vld [vmem:[%s1484_s13 + $0x48] sm:$0xff]  ;;  %v1223_v18 = vld [vmem:[%s1484_s13 + $0x50] sm:$0xff] }
  0x12   : > { %1336 = vmatpush.bf16.msra.mxu2 %v1235_v1  ;;  %1337 = vmatpush.bf16.msra.mxu3 %v1235_v1  ;;  %v1225_v11 = vld [vmem:[%s1484_s13 + $0x60] sm:$0xff]  ;;  %v1226_v15 = vld [vmem:[%s1484_s13 + $0x68] sm:$0xff]  ;;  %v1227_v19 = vld [vmem:[%s1484_s13 + $0x70] sm:$0xff] }
  0x13   : > { %v1216_v20 = vld [vmem:[%s1484_s13 + $0x18] sm:$0xff]  ;;  %v1505_v24 = vld [vmem:[%s1610_s2] ss:$0 sm:$0xff] }
  0x14   : > { %v1220_v21 = vld [vmem:[%s1484_s13 + $0x38] sm:$0xff]  ;;  %v1511_v28 = vld [vmem:[%s1611_s3] ss:$0 sm:$0xff] }
  0x15   : > { %562 = vmatpush.bf16.msra.mxu0 %v1234_v2  ;;  %1338 = vmatpush.bf16.msra.mxu1 %v1234_v2  ;;  %v1224_v22 = vld [vmem:[%s1484_s13 + $0x58] sm:$0xff] }
  0x16   : > { %1339 = vmatpush.bf16.msra.mxu2 %v1234_v2  ;;  %1340 = vmatpush.bf16.msra.mxu3 %v1234_v2  ;;  %v1228_v23 = vld [vmem:[%s1484_s13 + $0x78] sm:$0xff] }
  0x19   : > { %563 = vmatpush.bf16.msra.mxu0 %v1233_v3  ;;  %1341 = vmatpush.bf16.msra.mxu1 %v1233_v3 }
  0x1a   : > { %1342 = vmatpush.bf16.msra.mxu2 %v1233_v3  ;;  %1343 = vmatpush.bf16.msra.mxu3 %v1233_v3 }
  0x1d   : > { %564 = vmatpush.bf16.msra.mxu0 %v1232_v4  ;;  %1344 = vmatpush.bf16.msra.mxu1 %v1232_v4 }
  0x1e   : > { %1345 = vmatpush.bf16.msra.mxu2 %v1232_v4  ;;  %1346 = vmatpush.bf16.msra.mxu3 %v1232_v4 }
  0x21   : > { %565 = vmatpush.bf16.msra.mxu0 %v1231_v5  ;;  %1347 = vmatpush.bf16.msra.mxu1 %v1231_v5 }
  0x22   : > { %1348 = vmatpush.bf16.msra.mxu2 %v1231_v5  ;;  %1349 = vmatpush.bf16.msra.mxu3 %v1231_v5 }
  0x25   : > { %566 = vmatpush.bf16.msra.mxu0 %v1230_v6  ;;  %1350 = vmatpush.bf16.msra.mxu1 %v1230_v6 }
  0x26   : > { %1351 = vmatpush.bf16.msra.mxu2 %v1230_v6  ;;  %1352 = vmatpush.bf16.msra.mxu3 %v1230_v6 }
  0x29   : > { %567 = vmatpush.bf16.msra.mxu0 %v1229_v7  ;;  %1353 = vmatpush.bf16.msra.mxu1 %v1229_v7 }
  0x2a   : > { %1354 = vmatpush.bf16.msra.mxu2 %v1229_v7  ;;  %1355 = vmatpush.bf16.msra.mxu3 %v1229_v7 }
  0x2c   : > { %568 = vmatmul.bf16.vlgmr.msra.gmra.mxu0 %v1213_v8  ;;  %588 = vmatmul.bf16.vlgmr.msra.gmra.mxu1 %v1217_v9 }
  0x2d   : > { %608 = vmatmul.bf16.vlgmr.msra.gmra.mxu2 %v1221_v10  ;;  %628 = vmatmul.bf16.vlgmr.msra.gmra.mxu3 %v1225_v11 }
  0x3c   : > { %573 = vmatmul.bf16.gmra.mxu0 %v1214_v12  ;;  %593 = vmatmul.bf16.gmra.mxu1 %v1218_v13 }
  0x3d   : > { %613 = vmatmul.bf16.gmra.mxu2 %v1222_v14  ;;  %633 = vmatmul.bf16.gmra.mxu3 %v1226_v15 }
  0x4c   : > { %578 = vmatmul.bf16.gmra.mxu0 %v1215_v16  ;;  %598 = vmatmul.bf16.gmra.mxu1 %v1219_v17 }
  0x4d   : > { %618 = vmatmul.bf16.gmra.mxu2 %v1223_v18  ;;  %638 = vmatmul.bf16.gmra.mxu3 %v1227_v19 }
  0x5c   : > { %583 = vmatmul.bf16.gmra.mxu0 %v1216_v20  ;;  %603 = vmatmul.bf16.gmra.mxu1 %v1220_v21 }
  0x5d   : > { %623 = vmatmul.bf16.gmra.mxu2 %v1224_v22  ;;  %643 = vmatmul.bf16.gmra.mxu3 %v1228_v23 }
  0xa9   : > { %v569_v25 = vpop.f32.mrf.mxu0  ;;  %v589_v26 = vpop.f32.mrf.mxu1 }
  0xaa   : > { %v752_v27 = vmul.f32 %v1505_v24, %v569_v25  ;;  %v760_v29 = vmul.f32 %v1505_v24, %v589_v26 }
  0xac   : > { %v788_v30 = vadd.f32 %v1511_v28, %v752_v27  ;;  %v796_v31 = vadd.f32 %v1511_v28, %v760_v29 }
  0xae   : > { %v852_v40 = vmul.f32 0.01, %v788_v30  ;;  %v860_v41 = vmul.f32 0.01, %v796_v31  ;;  %vm820_vm0 = vcmp.ge.f32.partialorder %v788_v30, 0.0  ;;  %vm828_vm1 = vcmp.ge.f32.partialorder %v796_v31, 0.0 }
  0xb0   : > { %v609_v32 = vpop.f32.mrf.mxu2  ;;  %v629_v33 = vpop.f32.mrf.mxu3  ;;  %v884_v48 = vsel %vm820_vm0, %v788_v30, %v852_v40  ;;  %v892_v49 = vsel %vm828_vm1, %v796_v31, %v860_v41 }
  0xb1   : > { %v571_v34 = vpop.f32.mrf.mxu0  ;;  %v591_v35 = vpop.f32.mrf.mxu1  ;;  %v768_v38 = vmul.f32 %v1505_v24, %v609_v32  ;;  %v776_v39 = vmul.f32 %v1505_v24, %v629_v33 }
  0xb2   : > { %v753_v36 = vmul.f32 %v1505_v24, %v571_v34  ;;  %v761_v37 = vmul.f32 %v1505_v24, %v591_v35 }
  0xb3   : > { %v804_v46 = vadd.f32 %v1511_v28, %v768_v38  ;;  %v812_v47 = vadd.f32 %v1511_v28, %v776_v39 }
  0xb4   : > { %v789_v42 = vadd.f32 %v1511_v28, %v753_v36  ;;  %v797_v43 = vadd.f32 %v1511_v28, %v761_v37 }
  0xb5   : > { %v868_v60 = vmul.f32 0.01, %v804_v46  ;;  %v876_v61 = vmul.f32 0.01, %v812_v47  ;;  %vm836_vm4 = vcmp.ge.f32.partialorder %v804_v46, 0.0  ;;  %vm844_vm5 = vcmp.ge.f32.partialorder %v812_v47, 0.0 }
  0xb6   : > { %vm821_vm2 = vcmp.ge.f32.partialorder %v789_v42, 0.0  ;;  %v853_v44 = vmul.f32 0.01, %v789_v42  ;;  %vm829_vm3 = vcmp.ge.f32.partialorder %v797_v43, 0.0  ;;  %v861_v45 = vmul.f32 0.01, %v797_v43 }
  0xb7   : > { %v900_v4 = vsel %vm836_vm4, %v804_v46, %v868_v60  ;;  %v908_v5 = vsel %vm844_vm5, %v812_v47, %v876_v61 }
  0xb8   : > { %v885_v50 = vsel %vm821_vm2, %v789_v42, %v853_v44  ;;  %v893_v51 = vsel %vm829_vm3, %v797_v43, %v861_v45  ;;  %v611_v52 = vpop.f32.mrf.mxu2  ;;  %v631_v53 = vpop.f32.mrf.mxu3 }
  0xb9   : > { %v1240_v54 = vpack.c.bf16 %v885_v50, %v884_v48  ;;  %v1260_v55 = vpack.c.bf16 %v893_v51, %v892_v49  ;;  %v769_v56 = vmul.f32 %v1505_v24, %v611_v52  ;;  %v777_v57 = vmul.f32 %v1505_v24, %v631_v53  ;;  %v574_v58 = vpop.f32.mrf.mxu0  ;;  %v594_v59 = vpop.f32.mrf.mxu1 }
  0xba   : > { %v754_v0 = vmul.f32 %v1505_v24, %v574_v58  ;;  %v762_v1 = vmul.f32 %v1505_v24, %v594_v59 }
  0xbb   : > { %1241 = vst [vmem:[%s1529_s23] sm:$0xff] %v1240_v54   ;;  %v805_v62 = vadd.f32 %v1511_v28, %v769_v56  ;;  %v813_v63 = vadd.f32 %v1511_v28, %v777_v57 }
  0xbc   : > { %1320 = vst [vmem:[%s1529_s23 + $0x20] sm:$0xff] %v1260_v55   ;;  %v790_v10 = vadd.f32 %v1511_v28, %v754_v0  ;;  %v798_v11 = vadd.f32 %v1511_v28, %v762_v1 }
  0xbd   : > { %vm837_vm6 = vcmp.ge.f32.partialorder %v805_v62, 0.0  ;;  %v869_v2 = vmul.f32 0.01, %v805_v62  ;;  %vm845_vm7 = vcmp.ge.f32.partialorder %v813_v63, 0.0  ;;  %v877_v3 = vmul.f32 0.01, %v813_v63 }
  0xbe   : > { %v854_v20 = vmul.f32 0.01, %v790_v10  ;;  %v862_v21 = vmul.f32 0.01, %v798_v11  ;;  %vm822_vm8 = vcmp.ge.f32.partialorder %v790_v10, 0.0  ;;  %vm830_vm9 = vcmp.ge.f32.partialorder %v798_v11, 0.0 }
  0xbf   : > { %v901_v6 = vsel %vm837_vm6, %v805_v62, %v869_v2  ;;  %v909_v7 = vsel %vm845_vm7, %v813_v63, %v877_v3 }
  0xc0   : > { %v1280_v8 = vpack.c.bf16 %v901_v6, %v900_v4  ;;  %v1300_v9 = vpack.c.bf16 %v909_v7, %v908_v5  ;;  %v614_v12 = vpop.f32.mrf.mxu2  ;;  %v634_v13 = vpop.f32.mrf.mxu3  ;;  %v886_v30 = vsel %vm822_vm8, %v790_v10, %v854_v20  ;;  %v894_v31 = vsel %vm830_vm9, %v798_v11, %v862_v21 }
  0xc1   : > { %v576_v14 = vpop.f32.mrf.mxu0  ;;  %v596_v15 = vpop.f32.mrf.mxu1  ;;  %v770_v18 = vmul.f32 %v1505_v24, %v614_v12  ;;  %v778_v19 = vmul.f32 %v1505_v24, %v634_v13 }
  0xc2   : > { %1324 = vst [vmem:[%s1529_s23 + $0x40] sm:$0xff] %v1280_v8   ;;  %v755_v16 = vmul.f32 %v1505_v24, %v576_v14  ;;  %v763_v17 = vmul.f32 %v1505_v24, %v596_v15 }
  0xc3   : > { %1328 = vst [vmem:[%s1529_s23 + $0x60] sm:$0xff] %v1300_v9   ;;  %v806_v27 = vadd.f32 %v1511_v28, %v770_v18  ;;  %v814_v29 = vadd.f32 %v1511_v28, %v778_v19 }
  0xc4   : > { %v791_v22 = vadd.f32 %v1511_v28, %v755_v16  ;;  %v799_v23 = vadd.f32 %v1511_v28, %v763_v17 }
  0xc5   : > { %v870_v42 = vmul.f32 0.01, %v806_v27  ;;  %v878_v43 = vmul.f32 0.01, %v814_v29  ;;  %vm838_vm12 = vcmp.ge.f32.partialorder %v806_v27, 0.0  ;;  %vm846_vm13 = vcmp.ge.f32.partialorder %v814_v29, 0.0 }
  0xc6   : > { %vm823_vm10 = vcmp.ge.f32.partialorder %v791_v22, 0.0  ;;  %v855_v25 = vmul.f32 0.01, %v791_v22  ;;  %vm831_vm11 = vcmp.ge.f32.partialorder %v799_v23, 0.0  ;;  %v863_v26 = vmul.f32 0.01, %v799_v23 }
  0xc7   : > { %v902_v50 = vsel %vm838_vm12, %v806_v27, %v870_v42  ;;  %v910_v51 = vsel %vm846_vm13, %v814_v29, %v878_v43 }
  0xc8   : > { %v887_v32 = vsel %vm823_vm10, %v791_v22, %v855_v25  ;;  %v895_v33 = vsel %vm831_vm11, %v799_v23, %v863_v26  ;;  %v616_v34 = vpop.f32.mrf.mxu2  ;;  %v636_v35 = vpop.f32.mrf.mxu3 }
  0xc9   : > { %v1245_v36 = vpack.c.bf16 %v887_v32, %v886_v30  ;;  %v1265_v37 = vpack.c.bf16 %v895_v33, %v894_v31  ;;  %v771_v38 = vmul.f32 %v1505_v24, %v616_v34  ;;  %v779_v39 = vmul.f32 %v1505_v24, %v636_v35  ;;  %v579_v40 = vpop.f32.mrf.mxu0  ;;  %v599_v41 = vpop.f32.mrf.mxu1 }
  0xca   : > { %v756_v46 = vmul.f32 %v1505_v24, %v579_v40  ;;  %v764_v47 = vmul.f32 %v1505_v24, %v599_v41 }
  0xcb   : > { %1317 = vst [vmem:[%s1529_s23 + $0x8] sm:$0xff] %v1245_v36   ;;  %v807_v44 = vadd.f32 %v1511_v28, %v771_v38  ;;  %v815_v45 = vadd.f32 %v1511_v28, %v779_v39 }
  0xcc   : > { %1321 = vst [vmem:[%s1529_s23 + $0x28] sm:$0xff] %v1265_v37   ;;  %v792_v56 = vadd.f32 %v1511_v28, %v756_v46  ;;  %v800_v57 = vadd.f32 %v1511_v28, %v764_v47 }
  0xcd   : > { %vm839_vm14 = vcmp.ge.f32.partialorder %v807_v44, 0.0  ;;  %v871_v48 = vmul.f32 0.01, %v807_v44  ;;  %vm847_vm15 = vcmp.ge.f32.partialorder %v815_v45, 0.0  ;;  %v879_v49 = vmul.f32 0.01, %v815_v45 }
  0xce   : > { %v856_v2 = vmul.f32 0.01, %v792_v56  ;;  %v864_v3 = vmul.f32 0.01, %v800_v57  ;;  %vm824_vm0 = vcmp.ge.f32.partialorder %v792_v56, 0.0  ;;  %vm832_vm1 = vcmp.ge.f32.partialorder %v800_v57, 0.0 }
  0xcf   : > { %v903_v52 = vsel %vm839_vm14, %v807_v44, %v871_v48  ;;  %v911_v53 = vsel %vm847_vm15, %v815_v45, %v879_v49 }
  0xd0   : > { %v1285_v54 = vpack.c.bf16 %v903_v52, %v902_v50  ;;  %v1305_v55 = vpack.c.bf16 %v911_v53, %v910_v51  ;;  %v619_v58 = vpop.f32.mrf.mxu2  ;;  %v639_v59 = vpop.f32.mrf.mxu3  ;;  %v888_v10 = vsel %vm824_vm0, %v792_v56, %v856_v2  ;;  %v896_v11 = vsel %vm832_vm1, %v800_v57, %v864_v3 }
  0xd1   : > { %v581_v60 = vpop.f32.mrf.mxu0  ;;  %v601_v61 = vpop.f32.mrf.mxu1  ;;  %v772_v0 = vmul.f32 %v1505_v24, %v619_v58  ;;  %v780_v1 = vmul.f32 %v1505_v24, %v639_v59 }
  0xd2   : > { %1325 = vst [vmem:[%s1529_s23 + $0x48] sm:$0xff] %v1285_v54   ;;  %v757_v62 = vmul.f32 %v1505_v24, %v581_v60  ;;  %v765_v63 = vmul.f32 %v1505_v24, %v601_v61 }
  0xd3   : > { %1329 = vst [vmem:[%s1529_s23 + $0x68] sm:$0xff] %v1305_v55   ;;  %v808_v8 = vadd.f32 %v1511_v28, %v772_v0  ;;  %v816_v9 = vadd.f32 %v1511_v28, %v780_v1 }
  0xd4   : > { %v793_v4 = vadd.f32 %v1511_v28, %v757_v62  ;;  %v801_v5 = vadd.f32 %v1511_v28, %v765_v63 }
  0xd5   : > { %v872_v22 = vmul.f32 0.01, %v808_v8  ;;  %v880_v23 = vmul.f32 0.01, %v816_v9  ;;  %vm840_vm4 = vcmp.ge.f32.partialorder %v808_v8, 0.0  ;;  %vm848_vm5 = vcmp.ge.f32.partialorder %v816_v9, 0.0 }
  0xd6   : > { %vm825_vm2 = vcmp.ge.f32.partialorder %v793_v4, 0.0  ;;  %v857_v6 = vmul.f32 0.01, %v793_v4  ;;  %vm833_vm3 = vcmp.ge.f32.partialorder %v801_v5, 0.0  ;;  %v865_v7 = vmul.f32 0.01, %v801_v5 }
  0xd7   : > { %v904_v32 = vsel %vm840_vm4, %v808_v8, %v872_v22  ;;  %v912_v33 = vsel %vm848_vm5, %v816_v9, %v880_v23 }
  0xd8   : > { %v889_v12 = vsel %vm825_vm2, %v793_v4, %v857_v6  ;;  %v897_v13 = vsel %vm833_vm3, %v801_v5, %v865_v7  ;;  %v621_v14 = vpop.f32.mrf.mxu2  ;;  %v641_v15 = vpop.f32.mrf.mxu3 }
  0xd9   : > { %v1250_v16 = vpack.c.bf16 %v889_v12, %v888_v10  ;;  %v1270_v17 = vpack.c.bf16 %v897_v13, %v896_v11  ;;  %v773_v18 = vmul.f32 %v1505_v24, %v621_v14  ;;  %v781_v19 = vmul.f32 %v1505_v24, %v641_v15  ;;  %v584_v20 = vpop.f32.mrf.mxu0  ;;  %v604_v21 = vpop.f32.mrf.mxu1 }
  0xda   : > { %v758_v27 = vmul.f32 %v1505_v24, %v584_v20  ;;  %v766_v29 = vmul.f32 %v1505_v24, %v604_v21 }
  0xdb   : > { %1318 = vst [vmem:[%s1529_s23 + $0x10] sm:$0xff] %v1250_v16   ;;  %v809_v25 = vadd.f32 %v1511_v28, %v773_v18  ;;  %v817_v26 = vadd.f32 %v1511_v28, %v781_v19 }
  0xdc   : > { %1322 = vst [vmem:[%s1529_s23 + $0x30] sm:$0xff] %v1270_v17   ;;  %v794_v38 = vadd.f32 %v1511_v28, %v758_v27  ;;  %v802_v39 = vadd.f32 %v1511_v28, %v766_v29 }
  0xdd   : > { %vm841_vm6 = vcmp.ge.f32.partialorder %v809_v25, 0.0  ;;  %v873_v30 = vmul.f32 0.01, %v809_v25  ;;  %vm849_vm7 = vcmp.ge.f32.partialorder %v817_v26, 0.0  ;;  %v881_v31 = vmul.f32 0.01, %v817_v26 }
  0xde   : > { %v858_v48 = vmul.f32 0.01, %v794_v38  ;;  %v866_v49 = vmul.f32 0.01, %v802_v39  ;;  %vm826_vm8 = vcmp.ge.f32.partialorder %v794_v38, 0.0  ;;  %vm834_vm9 = vcmp.ge.f32.partialorder %v802_v39, 0.0 }
  0xdf   : > { %v905_v34 = vsel %vm841_vm6, %v809_v25, %v873_v30  ;;  %v913_v35 = vsel %vm849_vm7, %v817_v26, %v881_v31 }
  0xe0   : > { %v1290_v36 = vpack.c.bf16 %v905_v34, %v904_v32  ;;  %v1310_v37 = vpack.c.bf16 %v913_v35, %v912_v33  ;;  %v624_v40 = vpop.f32.mrf.mxu2  ;;  %v644_v41 = vpop.f32.mrf.mxu3  ;;  %v890_v56 = vsel %vm826_vm8, %v794_v38, %v858_v48  ;;  %v898_v57 = vsel %vm834_vm9, %v802_v39, %v866_v49 }
  0xe1   : > { %v586_v42 = vpop.f32.mrf.mxu0  ;;  %v606_v43 = vpop.f32.mrf.mxu1  ;;  %v774_v46 = vmul.f32 %v1505_v24, %v624_v40  ;;  %v782_v47 = vmul.f32 %v1505_v24, %v644_v41 }
  0xe2   : > { %1326 = vst [vmem:[%s1529_s23 + $0x50] sm:$0xff] %v1290_v36   ;;  %v759_v44 = vmul.f32 %v1505_v24, %v586_v42  ;;  %v767_v45 = vmul.f32 %v1505_v24, %v606_v43 }
  0xe3   : > { %1330 = vst [vmem:[%s1529_s23 + $0x70] sm:$0xff] %v1310_v37   ;;  %v810_v54 = vadd.f32 %v1511_v28, %v774_v46  ;;  %v818_v55 = vadd.f32 %v1511_v28, %v782_v47 }
  0xe4   : > { %v795_v50 = vadd.f32 %v1511_v28, %v759_v44  ;;  %v803_v51 = vadd.f32 %v1511_v28, %v767_v45 }
  0xe5   : > { %v874_v2 = vmul.f32 0.01, %v810_v54  ;;  %v882_v3 = vmul.f32 0.01, %v818_v55  ;;  %vm842_vm12 = vcmp.ge.f32.partialorder %v810_v54, 0.0  ;;  %vm850_vm13 = vcmp.ge.f32.partialorder %v818_v55, 0.0 }
  0xe6   : > { %vm827_vm10 = vcmp.ge.f32.partialorder %v795_v50, 0.0  ;;  %v859_v52 = vmul.f32 0.01, %v795_v50  ;;  %vm835_vm11 = vcmp.ge.f32.partialorder %v803_v51, 0.0  ;;  %v867_v53 = vmul.f32 0.01, %v803_v51 }
  0xe7   : > { %v906_v8 = vsel %vm842_vm12, %v810_v54, %v874_v2  ;;  %v914_v9 = vsel %vm850_vm13, %v818_v55, %v882_v3 }
  0xe8   : > { %v891_v58 = vsel %vm827_vm10, %v795_v50, %v859_v52  ;;  %v899_v59 = vsel %vm835_vm11, %v803_v51, %v867_v53  ;;  %v626_v60 = vpop.f32.mrf.mxu2  ;;  %v646_v61 = vpop.f32.mrf.mxu3 }
  0xe9   : > { %v1255_v62 = vpack.c.bf16 %v891_v58, %v890_v56  ;;  %v1275_v63 = vpack.c.bf16 %v899_v59, %v898_v57  ;;  %v775_v0 = vmul.f32 %v1505_v24, %v626_v60  ;;  %v783_v1 = vmul.f32 %v1505_v24, %v646_v61 }
  0xeb   : > { %1319 = vst [vmem:[%s1529_s23 + $0x18] sm:$0xff] %v1255_v62   ;;  %v811_v4 = vadd.f32 %v1511_v28, %v775_v0  ;;  %v819_v5 = vadd.f32 %v1511_v28, %v783_v1 }
  0xec   : > { %1323 = vst [vmem:[%s1529_s23 + $0x38] sm:$0xff] %v1275_v63  }
  0xed   : > { %vm843_vm14 = vcmp.ge.f32.partialorder %v811_v4, 0.0  ;;  %v875_v6 = vmul.f32 0.01, %v811_v4  ;;  %vm851_vm15 = vcmp.ge.f32.partialorder %v819_v5, 0.0  ;;  %v883_v7 = vmul.f32 0.01, %v819_v5 }
  0xef   : > { %v907_v10 = vsel %vm843_vm14, %v811_v4, %v875_v6  ;;  %v915_v24 = vsel %vm851_vm15, %v819_v5, %v883_v7 }
  0xf0   : > { %v1295_v11 = vpack.c.bf16 %v907_v10, %v906_v8  ;;  %v1315_v12 = vpack.c.bf16 %v915_v24, %v914_v9 }
  0xf2   : > { %1327 = vst [vmem:[%s1529_s23 + $0x58] sm:$0xff] %v1295_v11  }
  0xf3   : > { %1331 = vst [vmem:[%s1529_s23 + $0x78] sm:$0xff] %v1315_v12  }
  0xf4 PF: > { %s14_s17 = sadd.s32 1, %s1404_s17   ;;  %s1613_s15 = smov %s1400_s16 }
  0xf5   : > { %p11_p5 = scmp.ge.s32.totalorder %s14_s17, 8   ;;  %s1614_s16 = smov %s1616_s18 }
  0xf7   :  { %13 = sbr.rel (!%p11_p5) target bundleno = 2 (0x2), region = 83 }

// kernel: _lambda_.16
= control target key start
LH: loop header
LB: loop body
LE: loop exit
PB: predicated region body
PF: predicated region fallthrough
CT: control target
= control target key end

     0   :  { %s1431_s15 = smov 0   ;;  %s1433_s16 = smov 0   ;;  %s1608_s0 = inlined_call_operand.vmem [shape: bf16[512,128], index: 0, kind: input, shape index: {}]   ;;  %s1609_s1 = inlined_call_operand.vmem [shape: bf16[128,128], index: 1, kind: input, shape index: {}]   ;;  %s1610_s2 = inlined_call_operand.vmem [shape: f32[1,128], index: 2, kind: input, shape index: {}]   ;;  %s1611_s3 = inlined_call_operand.vmem [shape: f32[1,128], index: 3, kind: input, shape index: {}]   ;;  %s1612_s4 = inlined_call_operand.vmem [shape: bf16[512,128], index: 4, kind: output, shape index: {}]  }
   0x1   :  { %s1435_s17 = smov 0  }
   0x2 LB: > { %s33_s18 = sadd.s32 1, %s1400_s16  ;;  %p1110_p0 = scmp.ge.s32.totalorder %s1404_s17, 1  ;;  %s1404_s17 = sphi %s1435_s17, %s14_s17   ;;  %s1400_s16 = sphi %s1433_s16, %s1614_s16   ;;  %s1396_s15 = sphi %s1431_s15, %s1613_s15  }
   0x3   : > { %p35_p1 = scmp.ge.s32.totalorder %s33_s18, 2  ;;  %p221_p2 = scmp.lt.s32.totalorder %s1404_s17, 3 }
   0x5   : > { %s1616_s18 = smov (%p35_p1, %s33_s18), 0  ;;  %p222_p3 = pnand %p1110_p0, %p221_p2 }
   0x6   : > { %s1111_s27 = sshll.u32 (!%p222_p3), %s1396_s15, 5 }
   0x7   : > { %225 = sbr.rel (%p222_p3) target bundleno = 244 (0xf4), region = 36  ;;  %p268_p4 = scmp.lt.s32.totalorder (!%p222_p3), %s1111_s27, 63 }
   0xc   : > { %v1236_v0 = vld [vmem:[%s1609_s1 + $0x38] sm:$0xff]  ;;  %v1235_v1 = vld [vmem:[%s1609_s1 + $0x30] sm:$0xff]  ;;  %v1234_v2 = vld [vmem:[%s1609_s1 + $0x28] sm:$0xff]  ;;  %s1618_s27 = smov (!%p268_p4, %s1111_s27), 63 }
   0xd   : > { %560 = vmatpush.bf16.msra.mxu0 %v1236_v0  ;;  %1332 = vmatpush.bf16.msra.mxu1 %v1236_v0  ;;  %v1233_v3 = vld [vmem:[%s1609_s1 + $0x20] sm:$0xff]  ;;  %v1232_v4 = vld [vmem:[%s1609_s1 + $0x18] sm:$0xff]  ;;  %v1231_v5 = vld [vmem:[%s1609_s1 + $0x10] sm:$0xff]  ;;  %s1112_s8 = sshll.u32 %s1618_s27, 2 }
   0xe   : > { %1333 = vmatpush.bf16.msra.mxu2 %v1236_v0  ;;  %1334 = vmatpush.bf16.msra.mxu3 %v1236_v0  ;;  %v1230_v6 = vld [vmem:[%s1609_s1 + $0x8] sm:$0xff]  ;;  %v1229_v7 = vld [vmem:[%s1609_s1] sm:$0xff]  ;;  %s1484_s13 = scalar_lea.vmem %s1608_s0, %s1112_s8  ;;  %s1529_s23 = scalar_lea.vmem %s1612_s4, %s1112_s8 }
   0xf   : > { %v1213_v8 = vld [vmem:[%s1484_s13] sm:$0xff]  ;;  %v1214_v12 = vld [vmem:[%s1484_s13 + $0x8] sm:$0xff]  ;;  %v1215_v16 = vld [vmem:[%s1484_s13 + $0x10] sm:$0xff] }
  0x10   : > { %v1217_v9 = vld [vmem:[%s1484_s13 + $0x20] sm:$0xff]  ;;  %v1218_v13 = vld [vmem:[%s1484_s13 + $0x28] sm:$0xff]  ;;  %v1219_v17 = vld [vmem:[%s1484_s13 + $0x30] sm:$0xff] }
  0x11   : > { %561 = vmatpush.bf16.msra.mxu0 %v1235_v1  ;;  %1335 = vmatpush.bf16.msra.mxu1 %v1235_v1  ;;  %v1221_v10 = vld [vmem:[%s1484_s13 + $0x40] sm:$0xff]  ;;  %v1222_v14 = vld [vmem:[%s1484_s13 + $0x48] sm:$0xff]  ;;  %v1223_v18 = vld [vmem:[%s1484_s13 + $0x50] sm:$0xff] }
  0x12   : > { %1336 = vmatpush.bf16.msra.mxu2 %v1235_v1  ;;  %1337 = vmatpush.bf16.msra.mxu3 %v1235_v1  ;;  %v1225_v11 = vld [vmem:[%s1484_s13 + $0x60] sm:$0xff]  ;;  %v1226_v15 = vld [vmem:[%s1484_s13 + $0x68] sm:$0xff]  ;;  %v1227_v19 = vld [vmem:[%s1484_s13 + $0x70] sm:$0xff] }
  0x13   : > { %v1216_v20 = vld [vmem:[%s1484_s13 + $0x18] sm:$0xff]  ;;  %v1505_v24 = vld [vmem:[%s1610_s2] ss:$0 sm:$0xff] }
  0x14   : > { %v1220_v21 = vld [vmem:[%s1484_s13 + $0x38] sm:$0xff]  ;;  %v1511_v28 = vld [vmem:[%s1611_s3] ss:$0 sm:$0xff] }
  0x15   : > { %562 = vmatpush.bf16.msra.mxu0 %v1234_v2  ;;  %1338 = vmatpush.bf16.msra.mxu1 %v1234_v2  ;;  %v1224_v22 = vld [vmem:[%s1484_s13 + $0x58] sm:$0xff] }
  0x16   : > { %1339 = vmatpush.bf16.msra.mxu2 %v1234_v2  ;;  %1340 = vmatpush.bf16.msra.mxu3 %v1234_v2  ;;  %v1228_v23 = vld [vmem:[%s1484_s13 + $0x78] sm:$0xff] }
  0x19   : > { %563 = vmatpush.bf16.msra.mxu0 %v1233_v3  ;;  %1341 = vmatpush.bf16.msra.mxu1 %v1233_v3 }
  0x1a   : > { %1342 = vmatpush.bf16.msra.mxu2 %v1233_v3  ;;  %1343 = vmatpush.bf16.msra.mxu3 %v1233_v3 }
  0x1d   : > { %564 = vmatpush.bf16.msra.mxu0 %v1232_v4  ;;  %1344 = vmatpush.bf16.msra.mxu1 %v1232_v4 }
  0x1e   : > { %1345 = vmatpush.bf16.msra.mxu2 %v1232_v4  ;;  %1346 = vmatpush.bf16.msra.mxu3 %v1232_v4 }
  0x21   : > { %565 = vmatpush.bf16.msra.mxu0 %v1231_v5  ;;  %1347 = vmatpush.bf16.msra.mxu1 %v1231_v5 }
  0x22   : > { %1348 = vmatpush.bf16.msra.mxu2 %v1231_v5  ;;  %1349 = vmatpush.bf16.msra.mxu3 %v1231_v5 }
  0x25   : > { %566 = vmatpush.bf16.msra.mxu0 %v1230_v6  ;;  %1350 = vmatpush.bf16.msra.mxu1 %v1230_v6 }
  0x26   : > { %1351 = vmatpush.bf16.msra.mxu2 %v1230_v6  ;;  %1352 = vmatpush.bf16.msra.mxu3 %v1230_v6 }
  0x29   : > { %567 = vmatpush.bf16.msra.mxu0 %v1229_v7  ;;  %1353 = vmatpush.bf16.msra.mxu1 %v1229_v7 }
  0x2a   : > { %1354 = vmatpush.bf16.msra.mxu2 %v1229_v7  ;;  %1355 = vmatpush.bf16.msra.mxu3 %v1229_v7 }
  0x2c   : > { %568 = vmatmul.bf16.vlgmr.msra.gmra.mxu0 %v1213_v8  ;;  %588 = vmatmul.bf16.vlgmr.msra.gmra.mxu1 %v1217_v9 }
  0x2d   : > { %608 = vmatmul.bf16.vlgmr.msra.gmra.mxu2 %v1221_v10  ;;  %628 = vmatmul.bf16.vlgmr.msra.gmra.mxu3 %v1225_v11 }
  0x3c   : > { %573 = vmatmul.bf16.gmra.mxu0 %v1214_v12  ;;  %593 = vmatmul.bf16.gmra.mxu1 %v1218_v13 }
  0x3d   : > { %613 = vmatmul.bf16.gmra.mxu2 %v1222_v14  ;;  %633 = vmatmul.bf16.gmra.mxu3 %v1226_v15 }
  0x4c   : > { %578 = vmatmul.bf16.gmra.mxu0 %v1215_v16  ;;  %598 = vmatmul.bf16.gmra.mxu1 %v1219_v17 }
  0x4d   : > { %618 = vmatmul.bf16.gmra.mxu2 %v1223_v18  ;;  %638 = vmatmul.bf16.gmra.mxu3 %v1227_v19 }
  0x5c   : > { %583 = vmatmul.bf16.gmra.mxu0 %v1216_v20  ;;  %603 = vmatmul.bf16.gmra.mxu1 %v1220_v21 }
  0x5d   : > { %623 = vmatmul.bf16.gmra.mxu2 %v1224_v22  ;;  %643 = vmatmul.bf16.gmra.mxu3 %v1228_v23 }
  0xa9   : > { %v569_v25 = vpop.f32.mrf.mxu0  ;;  %v589_v26 = vpop.f32.mrf.mxu1 }
  0xaa   : > { %v752_v27 = vmul.f32 %v1505_v24, %v569_v25  ;;  %v760_v29 = vmul.f32 %v1505_v24, %v589_v26 }
  0xac   : > { %v788_v30 = vadd.f32 %v1511_v28, %v752_v27  ;;  %v796_v31 = vadd.f32 %v1511_v28, %v760_v29 }
  0xae   : > { %v852_v40 = vmul.f32 0.01, %v788_v30  ;;  %v860_v41 = vmul.f32 0.01, %v796_v31  ;;  %vm820_vm0 = vcmp.ge.f32.partialorder %v788_v30, 0.0  ;;  %vm828_vm1 = vcmp.ge.f32.partialorder %v796_v31, 0.0 }
  0xb0   : > { %v609_v32 = vpop.f32.mrf.mxu2  ;;  %v629_v33 = vpop.f32.mrf.mxu3  ;;  %v884_v48 = vsel %vm820_vm0, %v788_v30, %v852_v40  ;;  %v892_v49 = vsel %vm828_vm1, %v796_v31, %v860_v41 }
  0xb1   : > { %v571_v34 = vpop.f32.mrf.mxu0  ;;  %v591_v35 = vpop.f32.mrf.mxu1  ;;  %v768_v38 = vmul.f32 %v1505_v24, %v609_v32  ;;  %v776_v39 = vmul.f32 %v1505_v24, %v629_v33 }
  0xb2   : > { %v753_v36 = vmul.f32 %v1505_v24, %v571_v34  ;;  %v761_v37 = vmul.f32 %v1505_v24, %v591_v35 }
  0xb3   : > { %v804_v46 = vadd.f32 %v1511_v28, %v768_v38  ;;  %v812_v47 = vadd.f32 %v1511_v28, %v776_v39 }
  0xb4   : > { %v789_v42 = vadd.f32 %v1511_v28, %v753_v36  ;;  %v797_v43 = vadd.f32 %v1511_v28, %v761_v37 }
  0xb5   : > { %v868_v60 = vmul.f32 0.01, %v804_v46  ;;  %v876_v61 = vmul.f32 0.01, %v812_v47  ;;  %vm836_vm4 = vcmp.ge.f32.partialorder %v804_v46, 0.0  ;;  %vm844_vm5 = vcmp.ge.f32.partialorder %v812_v47, 0.0 }
  0xb6   : > { %vm821_vm2 = vcmp.ge.f32.partialorder %v789_v42, 0.0  ;;  %v853_v44 = vmul.f32 0.01, %v789_v42  ;;  %vm829_vm3 = vcmp.ge.f32.partialorder %v797_v43, 0.0  ;;  %v861_v45 = vmul.f32 0.01, %v797_v43 }
  0xb7   : > { %v900_v4 = vsel %vm836_vm4, %v804_v46, %v868_v60  ;;  %v908_v5 = vsel %vm844_vm5, %v812_v47, %v876_v61 }
  0xb8   : > { %v885_v50 = vsel %vm821_vm2, %v789_v42, %v853_v44  ;;  %v893_v51 = vsel %vm829_vm3, %v797_v43, %v861_v45  ;;  %v611_v52 = vpop.f32.mrf.mxu2  ;;  %v631_v53 = vpop.f32.mrf.mxu3 }
  0xb9   : > { %v1240_v54 = vpack.c.bf16 %v885_v50, %v884_v48  ;;  %v1260_v55 = vpack.c.bf16 %v893_v51, %v892_v49  ;;  %v769_v56 = vmul.f32 %v1505_v24, %v611_v52  ;;  %v777_v57 = vmul.f32 %v1505_v24, %v631_v53  ;;  %v574_v58 = vpop.f32.mrf.mxu0  ;;  %v594_v59 = vpop.f32.mrf.mxu1 }
  0xba   : > { %v754_v0 = vmul.f32 %v1505_v24, %v574_v58  ;;  %v762_v1 = vmul.f32 %v1505_v24, %v594_v59 }
  0xbb   : > { %1241 = vst [vmem:[%s1529_s23] sm:$0xff] %v1240_v54   ;;  %v805_v62 = vadd.f32 %v1511_v28, %v769_v56  ;;  %v813_v63 = vadd.f32 %v1511_v28, %v777_v57 }
  0xbc   : > { %1320 = vst [vmem:[%s1529_s23 + $0x20] sm:$0xff] %v1260_v55   ;;  %v790_v10 = vadd.f32 %v1511_v28, %v754_v0  ;;  %v798_v11 = vadd.f32 %v1511_v28, %v762_v1 }
  0xbd   : > { %vm837_vm6 = vcmp.ge.f32.partialorder %v805_v62, 0.0  ;;  %v869_v2 = vmul.f32 0.01, %v805_v62  ;;  %vm845_vm7 = vcmp.ge.f32.partialorder %v813_v63, 0.0  ;;  %v877_v3 = vmul.f32 0.01, %v813_v63 }
  0xbe   : > { %v854_v20 = vmul.f32 0.01, %v790_v10  ;;  %v862_v21 = vmul.f32 0.01, %v798_v11  ;;  %vm822_vm8 = vcmp.ge.f32.partialorder %v790_v10, 0.0  ;;  %vm830_vm9 = vcmp.ge.f32.partialorder %v798_v11, 0.0 }
  0xbf   : > { %v901_v6 = vsel %vm837_vm6, %v805_v62, %v869_v2  ;;  %v909_v7 = vsel %vm845_vm7, %v813_v63, %v877_v3 }
  0xc0   : > { %v1280_v8 = vpack.c.bf16 %v901_v6, %v900_v4  ;;  %v1300_v9 = vpack.c.bf16 %v909_v7, %v908_v5  ;;  %v614_v12 = vpop.f32.mrf.mxu2  ;;  %v634_v13 = vpop.f32.mrf.mxu3  ;;  %v886_v30 = vsel %vm822_vm8, %v790_v10, %v854_v20  ;;  %v894_v31 = vsel %vm830_vm9, %v798_v11, %v862_v21 }
  0xc1   : > { %v576_v14 = vpop.f32.mrf.mxu0  ;;  %v596_v15 = vpop.f32.mrf.mxu1  ;;  %v770_v18 = vmul.f32 %v1505_v24, %v614_v12  ;;  %v778_v19 = vmul.f32 %v1505_v24, %v634_v13 }
  0xc2   : > { %1324 = vst [vmem:[%s1529_s23 + $0x40] sm:$0xff] %v1280_v8   ;;  %v755_v16 = vmul.f32 %v1505_v24, %v576_v14  ;;  %v763_v17 = vmul.f32 %v1505_v24, %v596_v15 }
  0xc3   : > { %1328 = vst [vmem:[%s1529_s23 + $0x60] sm:$0xff] %v1300_v9   ;;  %v806_v27 = vadd.f32 %v1511_v28, %v770_v18  ;;  %v814_v29 = vadd.f32 %v1511_v28, %v778_v19 }
  0xc4   : > { %v791_v22 = vadd.f32 %v1511_v28, %v755_v16  ;;  %v799_v23 = vadd.f32 %v1511_v28, %v763_v17 }
  0xc5   : > { %v870_v42 = vmul.f32 0.01, %v806_v27  ;;  %v878_v43 = vmul.f32 0.01, %v814_v29  ;;  %vm838_vm12 = vcmp.ge.f32.partialorder %v806_v27, 0.0  ;;  %vm846_vm13 = vcmp.ge.f32.partialorder %v814_v29, 0.0 }
  0xc6   : > { %vm823_vm10 = vcmp.ge.f32.partialorder %v791_v22, 0.0  ;;  %v855_v25 = vmul.f32 0.01, %v791_v22  ;;  %vm831_vm11 = vcmp.ge.f32.partialorder %v799_v23, 0.0  ;;  %v863_v26 = vmul.f32 0.01, %v799_v23 }
  0xc7   : > { %v902_v50 = vsel %vm838_vm12, %v806_v27, %v870_v42  ;;  %v910_v51 = vsel %vm846_vm13, %v814_v29, %v878_v43 }
  0xc8   : > { %v887_v32 = vsel %vm823_vm10, %v791_v22, %v855_v25  ;;  %v895_v33 = vsel %vm831_vm11, %v799_v23, %v863_v26  ;;  %v616_v34 = vpop.f32.mrf.mxu2  ;;  %v636_v35 = vpop.f32.mrf.mxu3 }
  0xc9   : > { %v1245_v36 = vpack.c.bf16 %v887_v32, %v886_v30  ;;  %v1265_v37 = vpack.c.bf16 %v895_v33, %v894_v31  ;;  %v771_v38 = vmul.f32 %v1505_v24, %v616_v34  ;;  %v779_v39 = vmul.f32 %v1505_v24, %v636_v35  ;;  %v579_v40 = vpop.f32.mrf.mxu0  ;;  %v599_v41 = vpop.f32.mrf.mxu1 }
  0xca   : > { %v756_v46 = vmul.f32 %v1505_v24, %v579_v40  ;;  %v764_v47 = vmul.f32 %v1505_v24, %v599_v41 }
  0xcb   : > { %1317 = vst [vmem:[%s1529_s23 + $0x8] sm:$0xff] %v1245_v36   ;;  %v807_v44 = vadd.f32 %v1511_v28, %v771_v38  ;;  %v815_v45 = vadd.f32 %v1511_v28, %v779_v39 }
  0xcc   : > { %1321 = vst [vmem:[%s1529_s23 + $0x28] sm:$0xff] %v1265_v37   ;;  %v792_v56 = vadd.f32 %v1511_v28, %v756_v46  ;;  %v800_v57 = vadd.f32 %v1511_v28, %v764_v47 }
  0xcd   : > { %vm839_vm14 = vcmp.ge.f32.partialorder %v807_v44, 0.0  ;;  %v871_v48 = vmul.f32 0.01, %v807_v44  ;;  %vm847_vm15 = vcmp.ge.f32.partialorder %v815_v45, 0.0  ;;  %v879_v49 = vmul.f32 0.01, %v815_v45 }
  0xce   : > { %v856_v2 = vmul.f32 0.01, %v792_v56  ;;  %v864_v3 = vmul.f32 0.01, %v800_v57  ;;  %vm824_vm0 = vcmp.ge.f32.partialorder %v792_v56, 0.0  ;;  %vm832_vm1 = vcmp.ge.f32.partialorder %v800_v57, 0.0 }
  0xcf   : > { %v903_v52 = vsel %vm839_vm14, %v807_v44, %v871_v48  ;;  %v911_v53 = vsel %vm847_vm15, %v815_v45, %v879_v49 }
  0xd0   : > { %v1285_v54 = vpack.c.bf16 %v903_v52, %v902_v50  ;;  %v1305_v55 = vpack.c.bf16 %v911_v53, %v910_v51  ;;  %v619_v58 = vpop.f32.mrf.mxu2  ;;  %v639_v59 = vpop.f32.mrf.mxu3  ;;  %v888_v10 = vsel %vm824_vm0, %v792_v56, %v856_v2  ;;  %v896_v11 = vsel %vm832_vm1, %v800_v57, %v864_v3 }
  0xd1   : > { %v581_v60 = vpop.f32.mrf.mxu0  ;;  %v601_v61 = vpop.f32.mrf.mxu1  ;;  %v772_v0 = vmul.f32 %v1505_v24, %v619_v58  ;;  %v780_v1 = vmul.f32 %v1505_v24, %v639_v59 }
  0xd2   : > { %1325 = vst [vmem:[%s1529_s23 + $0x48] sm:$0xff] %v1285_v54   ;;  %v757_v62 = vmul.f32 %v1505_v24, %v581_v60  ;;  %v765_v63 = vmul.f32 %v1505_v24, %v601_v61 }
  0xd3   : > { %1329 = vst [vmem:[%s1529_s23 + $0x68] sm:$0xff] %v1305_v55   ;;  %v808_v8 = vadd.f32 %v1511_v28, %v772_v0  ;;  %v816_v9 = vadd.f32 %v1511_v28, %v780_v1 }
  0xd4   : > { %v793_v4 = vadd.f32 %v1511_v28, %v757_v62  ;;  %v801_v5 = vadd.f32 %v1511_v28, %v765_v63 }
  0xd5   : > { %v872_v22 = vmul.f32 0.01, %v808_v8  ;;  %v880_v23 = vmul.f32 0.01, %v816_v9  ;;  %vm840_vm4 = vcmp.ge.f32.partialorder %v808_v8, 0.0  ;;  %vm848_vm5 = vcmp.ge.f32.partialorder %v816_v9, 0.0 }
  0xd6   : > { %vm825_vm2 = vcmp.ge.f32.partialorder %v793_v4, 0.0  ;;  %v857_v6 = vmul.f32 0.01, %v793_v4  ;;  %vm833_vm3 = vcmp.ge.f32.partialorder %v801_v5, 0.0  ;;  %v865_v7 = vmul.f32 0.01, %v801_v5 }
  0xd7   : > { %v904_v32 = vsel %vm840_vm4, %v808_v8, %v872_v22  ;;  %v912_v33 = vsel %vm848_vm5, %v816_v9, %v880_v23 }
  0xd8   : > { %v889_v12 = vsel %vm825_vm2, %v793_v4, %v857_v6  ;;  %v897_v13 = vsel %vm833_vm3, %v801_v5, %v865_v7  ;;  %v621_v14 = vpop.f32.mrf.mxu2  ;;  %v641_v15 = vpop.f32.mrf.mxu3 }
  0xd9   : > { %v1250_v16 = vpack.c.bf16 %v889_v12, %v888_v10  ;;  %v1270_v17 = vpack.c.bf16 %v897_v13, %v896_v11  ;;  %v773_v18 = vmul.f32 %v1505_v24, %v621_v14  ;;  %v781_v19 = vmul.f32 %v1505_v24, %v641_v15  ;;  %v584_v20 = vpop.f32.mrf.mxu0  ;;  %v604_v21 = vpop.f32.mrf.mxu1 }
  0xda   : > { %v758_v27 = vmul.f32 %v1505_v24, %v584_v20  ;;  %v766_v29 = vmul.f32 %v1505_v24, %v604_v21 }
  0xdb   : > { %1318 = vst [vmem:[%s1529_s23 + $0x10] sm:$0xff] %v1250_v16   ;;  %v809_v25 = vadd.f32 %v1511_v28, %v773_v18  ;;  %v817_v26 = vadd.f32 %v1511_v28, %v781_v19 }
  0xdc   : > { %1322 = vst [vmem:[%s1529_s23 + $0x30] sm:$0xff] %v1270_v17   ;;  %v794_v38 = vadd.f32 %v1511_v28, %v758_v27  ;;  %v802_v39 = vadd.f32 %v1511_v28, %v766_v29 }
  0xdd   : > { %vm841_vm6 = vcmp.ge.f32.partialorder %v809_v25, 0.0  ;;  %v873_v30 = vmul.f32 0.01, %v809_v25  ;;  %vm849_vm7 = vcmp.ge.f32.partialorder %v817_v26, 0.0  ;;  %v881_v31 = vmul.f32 0.01, %v817_v26 }
  0xde   : > { %v858_v48 = vmul.f32 0.01, %v794_v38  ;;  %v866_v49 = vmul.f32 0.01, %v802_v39  ;;  %vm826_vm8 = vcmp.ge.f32.partialorder %v794_v38, 0.0  ;;  %vm834_vm9 = vcmp.ge.f32.partialorder %v802_v39, 0.0 }
  0xdf   : > { %v905_v34 = vsel %vm841_vm6, %v809_v25, %v873_v30  ;;  %v913_v35 = vsel %vm849_vm7, %v817_v26, %v881_v31 }
  0xe0   : > { %v1290_v36 = vpack.c.bf16 %v905_v34, %v904_v32  ;;  %v1310_v37 = vpack.c.bf16 %v913_v35, %v912_v33  ;;  %v624_v40 = vpop.f32.mrf.mxu2  ;;  %v644_v41 = vpop.f32.mrf.mxu3  ;;  %v890_v56 = vsel %vm826_vm8, %v794_v38, %v858_v48  ;;  %v898_v57 = vsel %vm834_vm9, %v802_v39, %v866_v49 }
  0xe1   : > { %v586_v42 = vpop.f32.mrf.mxu0  ;;  %v606_v43 = vpop.f32.mrf.mxu1  ;;  %v774_v46 = vmul.f32 %v1505_v24, %v624_v40  ;;  %v782_v47 = vmul.f32 %v1505_v24, %v644_v41 }
  0xe2   : > { %1326 = vst [vmem:[%s1529_s23 + $0x50] sm:$0xff] %v1290_v36   ;;  %v759_v44 = vmul.f32 %v1505_v24, %v586_v42  ;;  %v767_v45 = vmul.f32 %v1505_v24, %v606_v43 }
  0xe3   : > { %1330 = vst [vmem:[%s1529_s23 + $0x70] sm:$0xff] %v1310_v37   ;;  %v810_v54 = vadd.f32 %v1511_v28, %v774_v46  ;;  %v818_v55 = vadd.f32 %v1511_v28, %v782_v47 }
  0xe4   : > { %v795_v50 = vadd.f32 %v1511_v28, %v759_v44  ;;  %v803_v51 = vadd.f32 %v1511_v28, %v767_v45 }
  0xe5   : > { %v874_v2 = vmul.f32 0.01, %v810_v54  ;;  %v882_v3 = vmul.f32 0.01, %v818_v55  ;;  %vm842_vm12 = vcmp.ge.f32.partialorder %v810_v54, 0.0  ;;  %vm850_vm13 = vcmp.ge.f32.partialorder %v818_v55, 0.0 }
  0xe6   : > { %vm827_vm10 = vcmp.ge.f32.partialorder %v795_v50, 0.0  ;;  %v859_v52 = vmul.f32 0.01, %v795_v50  ;;  %vm835_vm11 = vcmp.ge.f32.partialorder %v803_v51, 0.0  ;;  %v867_v53 = vmul.f32 0.01, %v803_v51 }
  0xe7   : > { %v906_v8 = vsel %vm842_vm12, %v810_v54, %v874_v2  ;;  %v914_v9 = vsel %vm850_vm13, %v818_v55, %v882_v3 }
  0xe8   : > { %v891_v58 = vsel %vm827_vm10, %v795_v50, %v859_v52  ;;  %v899_v59 = vsel %vm835_vm11, %v803_v51, %v867_v53  ;;  %v626_v60 = vpop.f32.mrf.mxu2  ;;  %v646_v61 = vpop.f32.mrf.mxu3 }
  0xe9   : > { %v1255_v62 = vpack.c.bf16 %v891_v58, %v890_v56  ;;  %v1275_v63 = vpack.c.bf16 %v899_v59, %v898_v57  ;;  %v775_v0 = vmul.f32 %v1505_v24, %v626_v60  ;;  %v783_v1 = vmul.f32 %v1505_v24, %v646_v61 }
  0xeb   : > { %1319 = vst [vmem:[%s1529_s23 + $0x18] sm:$0xff] %v1255_v62   ;;  %v811_v4 = vadd.f32 %v1511_v28, %v775_v0  ;;  %v819_v5 = vadd.f32 %v1511_v28, %v783_v1 }
  0xec   : > { %1323 = vst [vmem:[%s1529_s23 + $0x38] sm:$0xff] %v1275_v63  }
  0xed   : > { %vm843_vm14 = vcmp.ge.f32.partialorder %v811_v4, 0.0  ;;  %v875_v6 = vmul.f32 0.01, %v811_v4  ;;  %vm851_vm15 = vcmp.ge.f32.partialorder %v819_v5, 0.0  ;;  %v883_v7 = vmul.f32 0.01, %v819_v5 }
  0xef   : > { %v907_v10 = vsel %vm843_vm14, %v811_v4, %v875_v6  ;;  %v915_v24 = vsel %vm851_vm15, %v819_v5, %v883_v7 }
  0xf0   : > { %v1295_v11 = vpack.c.bf16 %v907_v10, %v906_v8  ;;  %v1315_v12 = vpack.c.bf16 %v915_v24, %v914_v9 }
  0xf2   : > { %1327 = vst [vmem:[%s1529_s23 + $0x58] sm:$0xff] %v1295_v11  }
  0xf3   : > { %1331 = vst [vmem:[%s1529_s23 + $0x78] sm:$0xff] %v1315_v12  }
  0xf4 PF: > { %s14_s17 = sadd.s32 1, %s1404_s17   ;;  %s1613_s15 = smov %s1400_s16 }
  0xf5   : > { %p11_p5 = scmp.ge.s32.totalorder %s14_s17, 4   ;;  %s1614_s16 = smov %s1616_s18 }
  0xf7   :  { %13 = sbr.rel (!%p11_p5) target bundleno = 2 (0x2), region = 83 }

// kernel: _lambda_.17
= control target key start
LH: loop header
LB: loop body
LE: loop exit
PB: predicated region body
PF: predicated region fallthrough
CT: control target
= control target key end

     0   :  { %s1553_s1 = inlined_call_operand.vmem [shape: bf16[384,128], index: 1, kind: input, shape index: {}]   ;;  %s1554_s0 = inlined_call_operand.vmem [shape: bf16[152,384], index: 0, kind: input, shape index: {}]   ;;  %s1555_s2 = inlined_call_operand.vmem [shape: f32[1,128], index: 2, kind: input, shape index: {}]   ;;  %s1556_s3 = inlined_call_operand.vmem [shape: f32[1,128], index: 3, kind: input, shape index: {}]   ;;  %s1557_s4 = inlined_call_operand.vmem [shape: bf16[152,128], index: 4, kind: output, shape index: {}]  }
   0x1   :  { %v1061_v0 = vld [vmem:[%s1553_s1 + $0x38] sm:$0xff]  ;;  %v1060_v3 = vld [vmem:[%s1553_s1 + $0x30] sm:$0xff]  ;;  %v1059_v6 = vld [vmem:[%s1553_s1 + $0x28] sm:$0xff] }
   0x2   :  { %v1188_v1 = vld [vmem:[%s1553_s1 + $0x78] sm:$0xff]  ;;  %444 = vmatpush.bf16.msra.mxu0 %v1061_v0  ;;  %1131 = vmatpush.bf16.msra.mxu3 %v1061_v0  ;;  %v1203_v4 = vld [vmem:[%s1553_s1 + $0x70] sm:$0xff]  ;;  %v1067_v7 = vld [vmem:[%s1553_s1 + $0x68] sm:$0xff] }
   0x3   :  { %v1193_v2 = vld [vmem:[%s1553_s1 + $0xb8] sm:$0xff]  ;;  %502 = vmatpush.bf16.msra.mxu1 %v1188_v1  ;;  %v1208_v5 = vld [vmem:[%s1553_s1 + $0xb0] sm:$0xff]  ;;  %v1221_v8 = vld [vmem:[%s1553_s1 + $0xa8] sm:$0xff] }
   0x4   :  { %560 = vmatpush.bf16.msra.mxu2 %v1193_v2  ;;  %v1058_v9 = vld [vmem:[%s1553_s1 + $0x20] sm:$0xff]  ;;  %v1057_v12 = vld [vmem:[%s1553_s1 + $0x18] sm:$0xff]  ;;  %v1056_v15 = vld [vmem:[%s1553_s1 + $0x10] sm:$0xff] }
   0x5   :  { %v1230_v10 = vld [vmem:[%s1553_s1 + $0x60] sm:$0xff]  ;;  %v1065_v13 = vld [vmem:[%s1553_s1 + $0x58] sm:$0xff]  ;;  %v1064_v16 = vld [vmem:[%s1553_s1 + $0x50] sm:$0xff] }
   0x6   :  { %445 = vmatpush.bf16.msra.mxu0 %v1060_v3  ;;  %1132 = vmatpush.bf16.msra.mxu3 %v1060_v3  ;;  %v1235_v11 = vld [vmem:[%s1553_s1 + $0xa0] sm:$0xff]  ;;  %v1248_v14 = vld [vmem:[%s1553_s1 + $0x98] sm:$0xff]  ;;  %v1260_v17 = vld [vmem:[%s1553_s1 + $0x90] sm:$0xff] }
   0x7   :  { %503 = vmatpush.bf16.msra.mxu1 %v1203_v4  ;;  %v1055_v18 = vld [vmem:[%s1553_s1 + $0x8] sm:$0xff]  ;;  %v1054_v21 = vld [vmem:[%s1553_s1] sm:$0xff]  ;;  %v827_v29 = vld [vmem:[%s1554_s0 + $0xc] sm:$0xf0] }
   0x8   :  { %561 = vmatpush.bf16.msra.mxu2 %v1208_v5  ;;  %v1063_v19 = vld [vmem:[%s1553_s1 + $0x48] sm:$0xff]  ;;  %v1062_v22 = vld [vmem:[%s1553_s1 + $0x40] sm:$0xff]  ;;  %v1029_v31 = vld [vmem:[%s1554_s0 + $0x10] sm:$0xf0] }
   0x9   :  { %v1272_v20 = vld [vmem:[%s1553_s1 + $0x88] sm:$0xff]  ;;  %v1283_v23 = vld [vmem:[%s1553_s1 + $0x80] sm:$0xff]  ;;  %v95_v36 = vld [vmem:[%s1554_s0 + $0xd8] sm:$0xff] }
   0xa   :  { %446 = vmatpush.bf16.msra.mxu0 %v1059_v6  ;;  %1133 = vmatpush.bf16.msra.mxu3 %v1059_v6  ;;  %v825_v24 = vld [vmem:[%s1554_s0] sm:$0xf]  ;;  %v1028_v25 = vld [vmem:[%s1554_s0 + $0x8] sm:$0xf0]  ;;  %v1027_v28 = vld [vmem:[%s1554_s0 + $0x4] sm:$0xf]  ;;  %v237_v37 = vunpack.c.l.b16 %v95_v36  ;;  %v238_v60 = vunpack.c.h.b16 %v95_v36 }
   0xb   :  { %504 = vmatpush.bf16.msra.mxu1 %v1067_v7  ;;  %v921_v26 = vld [vmem:[%s1554_s0 + $0xc0] sm:$0xf]  ;;  %v1052_v27 = vld [vmem:[%s1554_s0 + $0xc8] sm:$0xf0]  ;;  %v833_v30 = vld [vmem:[%s1554_s0 + $0x8] sm:$0xf]  ;;  %v826_v32 = vor.u32 %v1028_v25, %v825_v24  ;;  %v830_v34 = vor.u32 %v1027_v28, %v827_v29 }
   0xc   :  { %562 = vmatpush.bf16.msra.mxu2 %v1221_v8  ;;  %v922_v33 = vor.u32 %v1052_v27, %v921_v26  ;;  %v834_v35 = vor.u32 %v1029_v31, %v833_v30  ;;  %v837_v38 = vld [vmem:[%s1554_s0 + $0x18] sm:$0xf]  ;;  %v1031_v39 = vld [vmem:[%s1554_s0 + $0x20] sm:$0xf0]  ;;  %v1030_v40 = vld [vmem:[%s1554_s0 + $0x1c] sm:$0xf]  ;;  %v267_v45 = vpack.c.b16 %v237_v37, %v237_v37 }
   0xd   :  { %v839_v41 = vld [vmem:[%s1554_s0 + $0x24] sm:$0xf0]  ;;  %v845_v42 = vld [vmem:[%s1554_s0 + $0x20] sm:$0xf]  ;;  %v1032_v43 = vld [vmem:[%s1554_s0 + $0x28] sm:$0xf0]  ;;  %v838_v44 = vor.u32 %v1031_v39, %v837_v38 }
   0xe   :  { %447 = vmatpush.bf16.msra.mxu0 %v1058_v9  ;;  %1134 = vmatpush.bf16.msra.mxu3 %v1058_v9  ;;  %v842_v46 = vor.u32 %v1030_v40, %v839_v41  ;;  %v846_v47 = vor.u32 %v1032_v43, %v845_v42  ;;  %v849_v48 = vld [vmem:[%s1554_s0 + $0x30] sm:$0xf]  ;;  %v1034_v49 = vld [vmem:[%s1554_s0 + $0x38] sm:$0xf0]  ;;  %v1033_v50 = vld [vmem:[%s1554_s0 + $0x34] sm:$0xf] }
   0xf   :  { %505 = vmatpush.bf16.msra.mxu1 %v1230_v10  ;;  %v1051_v51 = vld [vmem:[%s1554_s0 + $0xc4] sm:$0xf]  ;;  %v923_v52 = vld [vmem:[%s1554_s0 + $0xcc] sm:$0xf0]  ;;  %v851_v53 = vld [vmem:[%s1554_s0 + $0x3c] sm:$0xf0]  ;;  %v850_v56 = vor.u32 %v1034_v49, %v849_v48 }
  0x10   :  { %563 = vmatpush.bf16.msra.mxu2 %v1235_v11  ;;  %v857_v54 = vld [vmem:[%s1554_s0 + $0x38] sm:$0xf]  ;;  %v1035_v55 = vld [vmem:[%s1554_s0 + $0x40] sm:$0xf0]  ;;  %v926_v57 = vor.u32 %v1051_v51, %v923_v52  ;;  %v854_v58 = vor.u32 %v1033_v50, %v851_v53  ;;  %v861_v61 = vld [vmem:[%s1554_s0 + $0x48] sm:$0xf] }
  0x11   :  { %v858_v59 = vor.u32 %v1035_v55, %v857_v54  ;;  %v1037_v62 = vld [vmem:[%s1554_s0 + $0x50] sm:$0xf0]  ;;  %v1036_v63 = vld [vmem:[%s1554_s0 + $0x4c] sm:$0xf]  ;;  %v863_v0 = vld [vmem:[%s1554_s0 + $0x54] sm:$0xf0] }
  0x12   :  { %448 = vmatpush.bf16.msra.mxu0 %v1057_v12  ;;  %1135 = vmatpush.bf16.msra.mxu3 %v1057_v12  ;;  %v862_v3 = vor.u32 %v1037_v62, %v861_v61  ;;  %v1039_v9 = vld [vmem:[%s1554_s0 + $0x64] sm:$0xf]  ;;  %v875_v12 = vld [vmem:[%s1554_s0 + $0x6c] sm:$0xf0]  ;;  %v887_v24 = vld [vmem:[%s1554_s0 + $0x84] sm:$0xf0] }
  0x13   :  { %506 = vmatpush.bf16.msra.mxu1 %v1065_v13  ;;  %v893_v25 = vld [vmem:[%s1554_s0 + $0x80] sm:$0xf]  ;;  %v1044_v26 = vld [vmem:[%s1554_s0 + $0x88] sm:$0xf0]  ;;  %v897_v31 = vld [vmem:[%s1554_s0 + $0x90] sm:$0xf] }
  0x14   :  { %564 = vmatpush.bf16.msra.mxu2 %v1248_v14  ;;  %v894_v30 = vor.u32 %v1044_v26, %v893_v25  ;;  %v1047_v36 = vld [vmem:[%s1554_s0 + $0xa0] sm:$0xf0]  ;;  %v909_v40 = vld [vmem:[%s1554_s0 + $0xa8] sm:$0xf]  ;;  %v1049_v41 = vld [vmem:[%s1554_s0 + $0xb0] sm:$0xf0] }
  0x15   :  { %v1048_v42 = vld [vmem:[%s1554_s0 + $0xac] sm:$0xf]  ;;  %v911_v43 = vld [vmem:[%s1554_s0 + $0xb4] sm:$0xf0]  ;;  %v1471_v55 = vld [vmem:[%s1555_s2] ss:$0 sm:$0xff] }
  0x16   :  { %449 = vmatpush.bf16.msra.mxu0 %v1056_v15  ;;  %1136 = vmatpush.bf16.msra.mxu3 %v1056_v15 }
  0x17   :  { %507 = vmatpush.bf16.msra.mxu1 %v1064_v16 }
  0x18   :  { %565 = vmatpush.bf16.msra.mxu2 %v1260_v17 }
  0x1a   :  { %450 = vmatpush.bf16.msra.mxu0 %v1055_v18  ;;  %1137 = vmatpush.bf16.msra.mxu3 %v1055_v18 }
  0x1b   :  { %508 = vmatpush.bf16.msra.mxu1 %v1063_v19 }
  0x1c   :  { %566 = vmatpush.bf16.msra.mxu2 %v1272_v20 }
  0x1e   :  { %451 = vmatpush.bf16.msra.mxu0 %v1054_v21  ;;  %1138 = vmatpush.bf16.msra.mxu3 %v1054_v21  ;;  %v885_v21 = vld [vmem:[%s1554_s0 + $0x78] sm:$0xf] }
  0x1f   :  { %509 = vmatpush.bf16.msra.mxu1 %v1062_v22 }
  0x20   :  { %567 = vmatpush.bf16.msra.mxu2 %v1283_v23 }
  0x21   :  { %452 = vmatmul.bf16.vlgmr.msra.gmra.mxu0 %v826_v32  ;;  %492 = vmatmul.bf16.vlgmr.msra.gmra.mxu3 %v922_v33  ;;  %v1046_v32 = vld [vmem:[%s1554_s0 + $0x98] sm:$0xf0]  ;;  %v1045_v33 = vld [vmem:[%s1554_s0 + $0x94] sm:$0xf] }
  0x22   :  { %1139 = vmatpush.bf16.msrb.mxu3 %v1188_v1  ;;  %510 = vmatmul.bf16.vlgmr.msra.gmra.mxu1 %v830_v34  ;;  %v869_v1 = vld [vmem:[%s1554_s0 + $0x50] sm:$0xf]  ;;  %v899_v34 = vld [vmem:[%s1554_s0 + $0x9c] sm:$0xf0]  ;;  %v898_v37 = vor.u32 %v1046_v32, %v897_v31 }
  0x23   :  { %568 = vmatmul.bf16.vlgmr.msra.gmra.mxu2 %v834_v35  ;;  %v905_v35 = vld [vmem:[%s1554_s0 + $0x98] sm:$0xf]  ;;  %v902_v38 = vor.u32 %v1045_v33, %v899_v34 }
  0x24   :  { %v906_v39 = vor.u32 %v1047_v36, %v905_v35 }
  0x26   :  { %1140 = vmatpush.bf16.msrb.mxu3 %v1203_v4  ;;  %v268_v4 = vpack.c.b16 %v238_v60, %v238_v60 }
  0x2a   :  { %1141 = vmatpush.bf16.msrb.mxu3 %v1067_v7  ;;  %v873_v7 = vld [vmem:[%s1554_s0 + $0x60] sm:$0xf] }
  0x2e   :  { %1142 = vmatpush.bf16.msrb.mxu3 %v1230_v10  ;;  %v929_v10 = vld [vmem:[%s1554_s0 + $0xc8] sm:$0xf] }
  0x31   :  { %457 = vmatmul.bf16.gmra.mxu0 %v838_v44  ;;  %497 = vmatmul.bf16.gmra.mxu3 %v267_v45  ;;  %v917_v44 = vld [vmem:[%s1554_s0 + $0xb0] sm:$0xf]  ;;  %v1050_v45 = vld [vmem:[%s1554_s0 + $0xb8] sm:$0xf0] }
  0x32   :  { %1143 = vmatpush.bf16.msrb.mxu3 %v1065_v13  ;;  %515 = vmatmul.bf16.gmra.mxu1 %v842_v46  ;;  %v881_v13 = vld [vmem:[%s1554_s0 + $0x68] sm:$0xf]  ;;  %v910_v46 = vor.u32 %v1049_v41, %v909_v40  ;;  %v918_v48 = vor.u32 %v1050_v45, %v917_v44 }
  0x33   :  { %573 = vmatmul.bf16.gmra.mxu2 %v846_v47  ;;  %v914_v47 = vor.u32 %v1048_v42, %v911_v43 }
  0x36   :  { %1144 = vmatpush.bf16.msrb.mxu3 %v1064_v16 }
  0x3a   :  { %1145 = vmatpush.bf16.msrb.mxu3 %v1063_v19  ;;  %v96_v19 = vld [vmem:[%s1554_s0 + $0xe0] sm:$0xf] }
  0x3e   :  { %1146 = vmatpush.bf16.msrb.mxu3 %v1062_v22  ;;  %v1043_v22 = vld [vmem:[%s1554_s0 + $0x80] sm:$0xf0] }
  0x3f   :  { %v886_v27 = vor.u32 %v1043_v22, %v885_v21 }
  0x41   :  { %462 = vmatmul.bf16.gmra.mxu0 %v850_v56  ;;  %550 = vmatmul.bf16.vlgmr.msrb.gmra.mxu3 %v926_v57 }
  0x42   :  { %1147 = vmatpush.bf16.msra.mxu3 %v1193_v2  ;;  %520 = vmatmul.bf16.gmra.mxu1 %v854_v58  ;;  %v1038_v2 = vld [vmem:[%s1554_s0 + $0x58] sm:$0xf0] }
  0x43   :  { %578 = vmatmul.bf16.gmra.mxu2 %v858_v59  ;;  %v870_v6 = vor.u32 %v1038_v2, %v869_v1  ;;  %v1477_v59 = vld [vmem:[%s1556_s3] ss:$0 sm:$0xff] }
  0x46   :  { %1148 = vmatpush.bf16.msra.mxu3 %v1208_v5  ;;  %v866_v5 = vor.u32 %v1036_v63, %v863_v0 }
  0x4a   :  { %1149 = vmatpush.bf16.msra.mxu3 %v1221_v8  ;;  %v1040_v8 = vld [vmem:[%s1554_s0 + $0x68] sm:$0xf0] }
  0x4b   :  { %v874_v15 = vor.u32 %v1040_v8, %v873_v7 }
  0x4e   :  { %1150 = vmatpush.bf16.msra.mxu3 %v1235_v11  ;;  %v1053_v11 = vld [vmem:[%s1554_s0 + $0xd0] sm:$0xf0] }
  0x4f   :  { %v930_v16 = vor.u32 %v1053_v11, %v929_v10 }
  0x51   :  { %467 = vmatmul.bf16.gmra.mxu0 %v862_v3  ;;  %555 = vmatmul.bf16.gmra.mxu3 %v268_v4 }
  0x52   :  { %1151 = vmatpush.bf16.msra.mxu3 %v1248_v14  ;;  %525 = vmatmul.bf16.gmra.mxu1 %v866_v5  ;;  %v1041_v14 = vld [vmem:[%s1554_s0 + $0x70] sm:$0xf0] }
  0x53   :  { %583 = vmatmul.bf16.gmra.mxu2 %v870_v6  ;;  %v882_v18 = vor.u32 %v1041_v14, %v881_v13 }
  0x56   :  { %1152 = vmatpush.bf16.msra.mxu3 %v1260_v17  ;;  %v878_v17 = vor.u32 %v1039_v9, %v875_v12 }
  0x5a   :  { %1153 = vmatpush.bf16.msra.mxu3 %v1272_v20  ;;  %v239_v20 = vunpack.c.l.b16 %v96_v19 }
  0x5c   :  { %v269_v28 = vpack.c.b16 %v239_v20, %v239_v20 }
  0x5e   :  { %1154 = vmatpush.bf16.msra.mxu3 %v1283_v23  ;;  %v1042_v23 = vld [vmem:[%s1554_s0 + $0x7c] sm:$0xf] }
  0x5f   :  { %v890_v29 = vor.u32 %v1042_v23, %v887_v24 }
  0x61   :  { %472 = vmatmul.bf16.gmra.mxu0 %v874_v15  ;;  %608 = vmatmul.bf16.vlgmr.msra.gmra.mxu3 %v930_v16 }
  0x62   :  { %530 = vmatmul.bf16.gmra.mxu1 %v878_v17 }
  0x63   :  { %588 = vmatmul.bf16.gmra.mxu2 %v882_v18 }
  0x71   :  { %477 = vmatmul.bf16.gmra.mxu0 %v886_v27  ;;  %613 = vmatmul.bf16.gmra.mxu3 %v269_v28 }
  0x72   :  { %535 = vmatmul.bf16.gmra.mxu1 %v890_v29 }
  0x73   :  { %593 = vmatmul.bf16.gmra.mxu2 %v894_v30 }
  0x81   :  { %482 = vmatmul.bf16.gmra.mxu0 %v898_v37 }
  0x82   :  { %540 = vmatmul.bf16.gmra.mxu1 %v902_v38 }
  0x83   :  { %598 = vmatmul.bf16.gmra.mxu2 %v906_v39 }
  0x91   :  { %487 = vmatmul.bf16.gmra.mxu0 %v910_v46 }
  0x92   :  { %545 = vmatmul.bf16.gmra.mxu1 %v914_v47 }
  0x93   :  { %603 = vmatmul.bf16.gmra.mxu2 %v918_v48 }
  0x9e   :  { %v453_v49 = vpop.f32.mrf.mxu0 }
  0x9f   :  { %v511_v50 = vpop.f32.mrf.mxu1 }
  0xa0   :  { %v512_v51 = vadd.f32 %v511_v50, %v453_v49 }
  0xa4   :  { %v1466_v52 = vpop.f32.mrf.mxu3 }
  0xa6   :  { %v569_v53 = vpop.f32.mrf.mxu2  ;;  %v455_v56 = vpop.f32.mrf.mxu0 }
  0xa7   :  { %v570_v54 = vadd.f32 %v569_v53, %v512_v51  ;;  %v513_v57 = vpop.f32.mrf.mxu1 }
  0xa8   :  { %v514_v60 = vadd.f32 %v513_v57, %v455_v56 }
  0xa9   :  { %v682_v58 = vmul.f32 %v1471_v55, %v570_v54 }
  0xab   :  { %v705_v63 = vadd.f32 %v1477_v59, %v682_v58 }
  0xac   :  { %v1479_v61 = vpop.f32.mrf.mxu3 }
  0xad   :  { %v743_v4 = vmul.f32 0.01, %v705_v63  ;;  %vm724_vm0 = vcmp.ge.f32.partialorder %v705_v63, 0.0 }
  0xae   :  { %v571_v62 = vpop.f32.mrf.mxu2  ;;  %v458_v1 = vpop.f32.mrf.mxu0 }
  0xaf   :  { %v572_v0 = vadd.f32 %v571_v62, %v514_v60  ;;  %v516_v2 = vpop.f32.mrf.mxu1  ;;  %v762_v10 = vsel %vm724_vm0, %v705_v63, %v743_v4 }
  0xb0   :  { %v517_v6 = vadd.f32 %v516_v2, %v458_v1 }
  0xb1   :  { %v683_v3 = vmul.f32 %v1471_v55, %v572_v0 }
  0xb3   :  { %v706_v5 = vadd.f32 %v1477_v59, %v683_v3 }
  0xb4   :  { %v1484_v8 = vpop.f32.mrf.mxu3 }
  0xb5   :  { %vm725_vm1 = vcmp.ge.f32.partialorder %v706_v5, 0.0  ;;  %v744_v7 = vmul.f32 0.01, %v706_v5 }
  0xb6   :  { %v574_v9 = vpop.f32.mrf.mxu2  ;;  %v460_v13 = vpop.f32.mrf.mxu0 }
  0xb7   :  { %v763_v11 = vsel %vm725_vm1, %v706_v5, %v744_v7  ;;  %v575_v12 = vadd.f32 %v574_v9, %v517_v6  ;;  %v518_v15 = vpop.f32.mrf.mxu1 }
  0xb8   :  { %v1081_v14 = vpack.c.bf16 %v763_v11, %v762_v10  ;;  %v519_v17 = vadd.f32 %v518_v15, %v460_v13 }
  0xb9   :  { %v684_v16 = vmul.f32 %v1471_v55, %v575_v12 }
  0xba   :  { %1082 = vst [vmem:[%s1557_s4] sm:$0xff] %v1081_v14  }
  0xbb   :  { %v707_v20 = vadd.f32 %v1477_v59, %v684_v16 }
  0xbc   :  { %v500_v18 = vpop.f32.mrf.mxu3 }
  0xbd   :  { %v745_v25 = vmul.f32 0.01, %v707_v20  ;;  %vm726_vm2 = vcmp.ge.f32.partialorder %v707_v20, 0.0 }
  0xbe   :  { %v576_v19 = vpop.f32.mrf.mxu2  ;;  %v463_v22 = vpop.f32.mrf.mxu0 }
  0xbf   :  { %v577_v21 = vadd.f32 %v576_v19, %v519_v17  ;;  %v521_v23 = vpop.f32.mrf.mxu1  ;;  %v764_v31 = vsel %vm726_vm2, %v707_v20, %v745_v25 }
  0xc0   :  { %v522_v27 = vadd.f32 %v521_v23, %v463_v22 }
  0xc1   :  { %v685_v24 = vmul.f32 %v1471_v55, %v577_v21 }
  0xc3   :  { %v708_v26 = vadd.f32 %v1477_v59, %v685_v24 }
  0xc4   :  { %v551_v29 = vpop.f32.mrf.mxu3 }
  0xc5   :  { %vm727_vm3 = vcmp.ge.f32.partialorder %v708_v26, 0.0  ;;  %v746_v28 = vmul.f32 0.01, %v708_v26  ;;  %v552_v11 = vadd.f32 %v551_v29, %v1466_v52 }
  0xc6   :  { %v579_v30 = vpop.f32.mrf.mxu2  ;;  %v465_v34 = vpop.f32.mrf.mxu0 }
  0xc7   :  { %v765_v32 = vsel %vm727_vm3, %v708_v26, %v746_v28  ;;  %v580_v33 = vadd.f32 %v579_v30, %v522_v27  ;;  %v523_v36 = vpop.f32.mrf.mxu1 }
  0xc8   :  { %v1086_v35 = vpack.c.bf16 %v765_v32, %v764_v31  ;;  %v524_v38 = vadd.f32 %v523_v36, %v465_v34 }
  0xc9   :  { %v686_v37 = vmul.f32 %v1471_v55, %v580_v33 }
  0xca   :  { %1123 = vst [vmem:[%s1557_s4 + $0x8] sm:$0xff] %v1086_v35  }
  0xcb   :  { %v709_v41 = vadd.f32 %v1477_v59, %v686_v37 }
  0xcc   :  { %v553_v39 = vpop.f32.mrf.mxu3 }
  0xcd   :  { %v747_v46 = vmul.f32 0.01, %v709_v41  ;;  %vm728_vm4 = vcmp.ge.f32.partialorder %v709_v41, 0.0  ;;  %v554_v23 = vadd.f32 %v553_v39, %v1479_v61 }
  0xce   :  { %v581_v40 = vpop.f32.mrf.mxu2  ;;  %v468_v43 = vpop.f32.mrf.mxu0 }
  0xcf   :  { %v582_v42 = vadd.f32 %v581_v40, %v524_v38  ;;  %v526_v44 = vpop.f32.mrf.mxu1  ;;  %v766_v53 = vsel %vm728_vm4, %v709_v41, %v747_v46 }
  0xd0   :  { %v527_v48 = vadd.f32 %v526_v44, %v468_v43 }
  0xd1   :  { %v687_v45 = vmul.f32 %v1471_v55, %v582_v42 }
  0xd3   :  { %v710_v47 = vadd.f32 %v1477_v59, %v687_v45 }
  0xd4   :  { %v556_v50 = vpop.f32.mrf.mxu3 }
  0xd5   :  { %vm729_vm5 = vcmp.ge.f32.partialorder %v710_v47, 0.0  ;;  %v748_v49 = vmul.f32 0.01, %v710_v47  ;;  %v557_v39 = vadd.f32 %v556_v50, %v1484_v8 }
  0xd6   :  { %v584_v51 = vpop.f32.mrf.mxu2  ;;  %v470_v57 = vpop.f32.mrf.mxu0 }
  0xd7   :  { %v767_v54 = vsel %vm729_vm5, %v710_v47, %v748_v49  ;;  %v585_v56 = vadd.f32 %v584_v51, %v527_v48  ;;  %v528_v60 = vpop.f32.mrf.mxu1 }
  0xd8   :  { %v1091_v58 = vpack.c.bf16 %v767_v54, %v766_v53  ;;  %v529_v63 = vadd.f32 %v528_v60, %v470_v57 }
  0xd9   :  { %v688_v62 = vmul.f32 %v1471_v55, %v585_v56 }
  0xda   :  { %1124 = vst [vmem:[%s1557_s4 + $0x10] sm:$0xff] %v1091_v58  }
  0xdb   :  { %v711_v2 = vadd.f32 %v1477_v59, %v688_v62 }
  0xdc   :  { %v558_v0 = vpop.f32.mrf.mxu3 }
  0xdd   :  { %v749_v7 = vmul.f32 0.01, %v711_v2  ;;  %vm730_vm6 = vcmp.ge.f32.partialorder %v711_v2, 0.0 }
  0xde   :  { %v586_v1 = vpop.f32.mrf.mxu2  ;;  %v473_v4 = vpop.f32.mrf.mxu0 }
  0xdf   :  { %v587_v3 = vadd.f32 %v586_v1, %v529_v63  ;;  %v531_v5 = vpop.f32.mrf.mxu1  ;;  %v768_v16 = vsel %vm730_vm6, %v711_v2, %v749_v7 }
  0xe0   :  { %v532_v10 = vadd.f32 %v531_v5, %v473_v4 }
  0xe1   :  { %v689_v6 = vmul.f32 %v1471_v55, %v587_v3 }
  0xe3   :  { %v712_v9 = vadd.f32 %v1477_v59, %v689_v6 }
  0xe4   :  { %v609_v13 = vpop.f32.mrf.mxu3 }
  0xe5   :  { %vm731_vm7 = vcmp.ge.f32.partialorder %v712_v9, 0.0  ;;  %v750_v12 = vmul.f32 0.01, %v712_v9  ;;  %v610_v15 = vadd.f32 %v609_v13, %v552_v11 }
  0xe6   :  { %v589_v14 = vpop.f32.mrf.mxu2  ;;  %v475_v19 = vpop.f32.mrf.mxu0 }
  0xe7   :  { %v769_v17 = vsel %vm731_vm7, %v712_v9, %v750_v12  ;;  %v590_v18 = vadd.f32 %v589_v14, %v532_v10  ;;  %v533_v21 = vpop.f32.mrf.mxu1  ;;  %v698_v22 = vmul.f32 %v1471_v55, %v610_v15 }
  0xe8   :  { %v1096_v20 = vpack.c.bf16 %v769_v17, %v768_v16  ;;  %v534_v24 = vadd.f32 %v533_v21, %v475_v19 }
  0xe9   :  { %v690_v52 = vmul.f32 %v1471_v55, %v590_v18  ;;  %v721_v26 = vadd.f32 %v1477_v59, %v698_v22 }
  0xea   :  { %1125 = vst [vmem:[%s1557_s4 + $0x18] sm:$0xff] %v1096_v20  }
  0xeb   :  { %v713_v29 = vadd.f32 %v1477_v59, %v690_v52  ;;  %v759_v35 = vmul.f32 0.01, %v721_v26  ;;  %vm740_vm8 = vcmp.ge.f32.partialorder %v721_v26, 0.0 }
  0xec   :  { %v611_v25 = vpop.f32.mrf.mxu3 }
  0xed   :  { %v612_v28 = vadd.f32 %v611_v25, %v554_v23  ;;  %v751_v37 = vmul.f32 0.01, %v713_v29  ;;  %vm732_vm9 = vcmp.ge.f32.partialorder %v713_v29, 0.0  ;;  %v778_v43 = vsel %vm740_vm8, %v721_v26, %v759_v35 }
  0xee   :  { %v591_v27 = vpop.f32.mrf.mxu2  ;;  %v478_v31 = vpop.f32.mrf.mxu0 }
  0xef   :  { %v592_v30 = vadd.f32 %v591_v27, %v534_v24  ;;  %v699_v32 = vmul.f32 %v1471_v55, %v612_v28  ;;  %v536_v33 = vpop.f32.mrf.mxu1  ;;  %v770_v47 = vsel %vm732_vm9, %v713_v29, %v751_v37 }
  0xf0   :  { %v537_v38 = vadd.f32 %v536_v33, %v478_v31 }
  0xf1   :  { %v691_v34 = vmul.f32 %v1471_v55, %v592_v30  ;;  %v722_v36 = vadd.f32 %v1477_v59, %v699_v32 }
  0xf3   :  { %v714_v61 = vadd.f32 %v1477_v59, %v691_v34  ;;  %vm741_vm10 = vcmp.ge.f32.partialorder %v722_v36, 0.0  ;;  %v760_v40 = vmul.f32 0.01, %v722_v36 }
  0xf4   :  { %v614_v42 = vpop.f32.mrf.mxu3 }
  0xf5   :  { %vm733_vm11 = vcmp.ge.f32.partialorder %v714_v61, 0.0  ;;  %v752_v41 = vmul.f32 0.01, %v714_v61  ;;  %v779_v44 = vsel %vm741_vm10, %v722_v36, %v760_v40  ;;  %v615_v46 = vadd.f32 %v614_v42, %v557_v39 }
  0xf6   :  { %v594_v45 = vpop.f32.mrf.mxu2  ;;  %v1121_v49 = vpack.c.bf16 %v779_v44, %v778_v43  ;;  %v480_v53 = vpop.f32.mrf.mxu0 }
  0xf7   :  { %v771_v48 = vsel %vm733_vm11, %v714_v61, %v752_v41  ;;  %v595_v51 = vadd.f32 %v594_v45, %v537_v38  ;;  %v700_v56 = vmul.f32 %v1471_v55, %v615_v46  ;;  %v538_v57 = vpop.f32.mrf.mxu1 }
  0xf8   :  { %v1101_v54 = vpack.c.bf16 %v771_v48, %v770_v47  ;;  %1130 = vst [vmem:[%s1557_s4 + $0x40] sm:$0xff] %v1121_v49   ;;  %v539_v60 = vadd.f32 %v538_v57, %v480_v53 }
  0xf9   :  { %v723_v8 = vadd.f32 %v1477_v59, %v700_v56  ;;  %v692_v50 = vmul.f32 %v1471_v55, %v595_v51 }
  0xfa   :  { %1126 = vst [vmem:[%s1557_s4 + $0x20] sm:$0xff] %v1101_v54  }
  0xfb   :  { %vm742_vm12 = vcmp.ge.f32.partialorder %v723_v8, 0.0  ;;  %v761_v58 = vmul.f32 0.01, %v723_v8  ;;  %v715_v1 = vadd.f32 %v1477_v59, %v692_v50 }
  0xfc   :  { %v616_v62 = vpop.f32.mrf.mxu3 }
  0xfd   :  { %v780_v63 = vsel %vm742_vm12, %v723_v8, %v761_v58  ;;  %v753_v7 = vmul.f32 0.01, %v715_v1  ;;  %vm734_vm13 = vcmp.ge.f32.partialorder %v715_v1, 0.0 }
  0xfe   :  { %v596_v0 = vpop.f32.mrf.mxu2  ;;  %v799_v2 = vpack.c.bf16 %v780_v63, %v780_v63  ;;  %v483_v4 = vpop.f32.mrf.mxu0 }
  0xff   :  { %v597_v3 = vadd.f32 %v596_v0, %v539_v60  ;;  %v541_v5 = vpop.f32.mrf.mxu1  ;;  %v772_v13 = vsel %vm734_vm13, %v715_v1, %v753_v7 }
 0x100   :  { %818 = vst [vmem:[%s1557_s4 + $0x48] sm:$0xf] %v799_v2  ;;  %v542_v10 = vadd.f32 %v541_v5, %v483_v4 }
 0x101   :  { %v693_v6 = vmul.f32 %v1471_v55, %v597_v3 }
 0x103   :  { %v716_v9 = vadd.f32 %v1477_v59, %v693_v6 }
 0x105   :  { %vm735_vm14 = vcmp.ge.f32.partialorder %v716_v9, 0.0  ;;  %v754_v11 = vmul.f32 0.01, %v716_v9 }
 0x106   :  { %v599_v12 = vpop.f32.mrf.mxu2  ;;  %v485_v16 = vpop.f32.mrf.mxu0 }
 0x107   :  { %v773_v14 = vsel %vm735_vm14, %v716_v9, %v754_v11  ;;  %v600_v15 = vadd.f32 %v599_v12, %v542_v10  ;;  %v543_v18 = vpop.f32.mrf.mxu1 }
 0x108   :  { %v1106_v17 = vpack.c.bf16 %v773_v14, %v772_v13  ;;  %v544_v20 = vadd.f32 %v543_v18, %v485_v16 }
 0x109   :  { %v694_v19 = vmul.f32 %v1471_v55, %v600_v15 }
 0x10a   :  { %1127 = vst [vmem:[%s1557_s4 + $0x28] sm:$0xff] %v1106_v17  }
 0x10b   :  { %v717_v22 = vadd.f32 %v1477_v59, %v694_v19 }
 0x10d   :  { %v755_v26 = vmul.f32 0.01, %v717_v22  ;;  %vm736_vm15 = vcmp.ge.f32.partialorder %v717_v22, 0.0 }
 0x10e   :  { %v601_v21 = vpop.f32.mrf.mxu2  ;;  %v488_v23 = vpop.f32.mrf.mxu0 }
 0x10f   :  { %v602_v52 = vadd.f32 %v601_v21, %v544_v20  ;;  %v546_v24 = vpop.f32.mrf.mxu1  ;;  %v774_v31 = vsel %vm736_vm15, %v717_v22, %v755_v26 }
 0x110   :  { %v547_v28 = vadd.f32 %v546_v24, %v488_v23 }
 0x111   :  { %v695_v25 = vmul.f32 %v1471_v55, %v602_v52 }
 0x113   :  { %v718_v27 = vadd.f32 %v1477_v59, %v695_v25 }
 0x115   :  { %vm737_vm0 = vcmp.ge.f32.partialorder %v718_v27, 0.0  ;;  %v756_v29 = vmul.f32 0.01, %v718_v27 }
 0x116   :  { %v604_v30 = vpop.f32.mrf.mxu2  ;;  %v490_v35 = vpop.f32.mrf.mxu0 }
 0x117   :  { %v775_v32 = vsel %vm737_vm0, %v718_v27, %v756_v29  ;;  %v605_v33 = vadd.f32 %v604_v30, %v547_v28  ;;  %v548_v36 = vpop.f32.mrf.mxu1 }
 0x118   :  { %v1111_v34 = vpack.c.bf16 %v775_v32, %v774_v31  ;;  %v549_v61 = vadd.f32 %v548_v36, %v490_v35 }
 0x119   :  { %v696_v37 = vmul.f32 %v1471_v55, %v605_v33 }
 0x11a   :  { %1128 = vst [vmem:[%s1557_s4 + $0x30] sm:$0xff] %v1111_v34  }
 0x11b   :  { %v719_v39 = vadd.f32 %v1477_v59, %v696_v37 }
 0x11d   :  { %v757_v42 = vmul.f32 0.01, %v719_v39  ;;  %vm738_vm1 = vcmp.ge.f32.partialorder %v719_v39, 0.0 }
 0x11e   :  { %v606_v38 = vpop.f32.mrf.mxu2 }
 0x11f   :  { %v607_v40 = vadd.f32 %v606_v38, %v549_v61  ;;  %v776_v45 = vsel %vm738_vm1, %v719_v39, %v757_v42 }
 0x121   :  { %v697_v41 = vmul.f32 %v1471_v55, %v607_v40 }
 0x123   :  { %v720_v43 = vadd.f32 %v1477_v59, %v697_v41 }
 0x125   :  { %vm739_vm2 = vcmp.ge.f32.partialorder %v720_v43, 0.0  ;;  %v758_v44 = vmul.f32 0.01, %v720_v43 }
 0x127   :  { %v777_v46 = vsel %vm739_vm2, %v720_v43, %v758_v44 }
 0x128   :  { %v1116_v47 = vpack.c.bf16 %v777_v46, %v776_v45 }
 0x12a   :  { %1129 = vst [vmem:[%s1557_s4 + $0x38] sm:$0xff] %v1116_v47  }

// kernel: _lambda_.19
= control target key start
LH: loop header
LB: loop body
LE: loop exit
PB: predicated region body
PF: predicated region fallthrough
CT: control target
= control target key end

     0   :  { %s526_s1 = inlined_call_operand.vmem [shape: bf16[384,128], index: 1, kind: input, shape index: {}]   ;;  %s527_s0 = inlined_call_operand.vmem [shape: bf16[8,384], index: 0, kind: input, shape index: {}]   ;;  %s528_s2 = inlined_call_operand.vmem [shape: f32[1,128], index: 2, kind: input, shape index: {}]   ;;  %s529_s3 = inlined_call_operand.vmem [shape: f32[1,128], index: 3, kind: input, shape index: {}]   ;;  %s530_s4 = inlined_call_operand.vmem [shape: bf16[8,128], index: 4, kind: output, shape index: {}]  }
   0x1   :  { %v395_v0 = vld [vmem:[%s526_s1 + $0x38] sm:$0xff]  ;;  %v394_v3 = vld [vmem:[%s526_s1 + $0x30] sm:$0xff]  ;;  %v393_v6 = vld [vmem:[%s526_s1 + $0x28] sm:$0xff] }
   0x2   :  { %v403_v1 = vld [vmem:[%s526_s1 + $0x78] sm:$0xff]  ;;  %228 = vmatpush.bf16.msra.mxu0 %v395_v0  ;;  %v402_v4 = vld [vmem:[%s526_s1 + $0x70] sm:$0xff]  ;;  %v401_v7 = vld [vmem:[%s526_s1 + $0x68] sm:$0xff] }
   0x3   :  { %v411_v2 = vld [vmem:[%s526_s1 + $0xb8] sm:$0xff]  ;;  %241 = vmatpush.bf16.msra.mxu1 %v403_v1  ;;  %v410_v5 = vld [vmem:[%s526_s1 + $0xb0] sm:$0xff]  ;;  %v409_v8 = vld [vmem:[%s526_s1 + $0xa8] sm:$0xff] }
   0x4   :  { %254 = vmatpush.bf16.msra.mxu2 %v411_v2  ;;  %v392_v9 = vld [vmem:[%s526_s1 + $0x20] sm:$0xff]  ;;  %v391_v12 = vld [vmem:[%s526_s1 + $0x18] sm:$0xff]  ;;  %v390_v15 = vld [vmem:[%s526_s1 + $0x10] sm:$0xff] }
   0x5   :  { %v400_v10 = vld [vmem:[%s526_s1 + $0x60] sm:$0xff]  ;;  %v399_v13 = vld [vmem:[%s526_s1 + $0x58] sm:$0xff]  ;;  %v398_v16 = vld [vmem:[%s526_s1 + $0x50] sm:$0xff] }
   0x6   :  { %229 = vmatpush.bf16.msra.mxu0 %v394_v3  ;;  %v408_v11 = vld [vmem:[%s526_s1 + $0xa0] sm:$0xff]  ;;  %v407_v14 = vld [vmem:[%s526_s1 + $0x98] sm:$0xff]  ;;  %v406_v17 = vld [vmem:[%s526_s1 + $0x90] sm:$0xff] }
   0x7   :  { %242 = vmatpush.bf16.msra.mxu1 %v402_v4  ;;  %v389_v18 = vld [vmem:[%s526_s1 + $0x8] sm:$0xff]  ;;  %v23_v20 = vld [vmem:[%s527_s0] sm:$0xff] }
   0x8   :  { %255 = vmatpush.bf16.msra.mxu2 %v410_v5  ;;  %v397_v19 = vld [vmem:[%s526_s1 + $0x48] sm:$0xff]  ;;  %v75_v23 = vunpack.c.l.b16 %v23_v20  ;;  %v76_v24 = vunpack.c.h.b16 %v23_v20  ;;  %v388_v25 = vld [vmem:[%s526_s1] sm:$0xff] }
   0x9   :  { %v405_v21 = vld [vmem:[%s526_s1 + $0x88] sm:$0xff]  ;;  %v396_v26 = vld [vmem:[%s526_s1 + $0x40] sm:$0xff] }
   0xa   :  { %230 = vmatpush.bf16.msra.mxu0 %v393_v6  ;;  %v24_v22 = vld [vmem:[%s527_s0 + $0x8] sm:$0xf]  ;;  %v404_v28 = vld [vmem:[%s526_s1 + $0x80] sm:$0xff]  ;;  %v78_v29 = vpack.c.b16 %v75_v23, %v75_v23  ;;  %v79_v30 = vpack.c.b16 %v76_v24, %v76_v24 }
   0xb   :  { %243 = vmatpush.bf16.msra.mxu1 %v401_v7  ;;  %v77_v27 = vunpack.c.l.b16 %v24_v22  ;;  %v412_v35 = vld [vmem:[%s528_s2] ss:$0 sm:$0xff] }
   0xc   :  { %256 = vmatpush.bf16.msra.mxu2 %v409_v8  ;;  %v413_v38 = vld [vmem:[%s529_s3] ss:$0 sm:$0xff] }
   0xd   :  { %v80_v31 = vpack.c.b16 %v77_v27, %v77_v27 }
   0xe   :  { %231 = vmatpush.bf16.msra.mxu0 %v392_v9 }
   0xf   :  { %244 = vmatpush.bf16.msra.mxu1 %v400_v10 }
  0x10   :  { %257 = vmatpush.bf16.msra.mxu2 %v408_v11 }
  0x12   :  { %232 = vmatpush.bf16.msra.mxu0 %v391_v12 }
  0x13   :  { %245 = vmatpush.bf16.msra.mxu1 %v399_v13 }
  0x14   :  { %258 = vmatpush.bf16.msra.mxu2 %v407_v14 }
  0x16   :  { %233 = vmatpush.bf16.msra.mxu0 %v390_v15 }
  0x17   :  { %246 = vmatpush.bf16.msra.mxu1 %v398_v16 }
  0x18   :  { %259 = vmatpush.bf16.msra.mxu2 %v406_v17 }
  0x1a   :  { %234 = vmatpush.bf16.msra.mxu0 %v389_v18 }
  0x1b   :  { %247 = vmatpush.bf16.msra.mxu1 %v397_v19 }
  0x1c   :  { %260 = vmatpush.bf16.msra.mxu2 %v405_v21 }
  0x1e   :  { %235 = vmatpush.bf16.msra.mxu0 %v388_v25 }
  0x1f   :  { %248 = vmatpush.bf16.msra.mxu1 %v396_v26 }
  0x20   :  { %261 = vmatpush.bf16.msra.mxu2 %v404_v28 }
  0x21   :  { %236 = vmatmul.bf16.vlgmr.msra.gmra.mxu0 %v78_v29 }
  0x22   :  { %249 = vmatmul.bf16.vlgmr.msra.gmra.mxu1 %v79_v30 }
  0x23   :  { %262 = vmatmul.bf16.vlgmr.msra.gmra.mxu2 %v80_v31 }
  0x9e   :  { %v237_v32 = vpop.f32.mrf.mxu0 }
  0x9f   :  { %v250_v33 = vpop.f32.mrf.mxu1 }
  0xa0   :  { %v251_v34 = vadd.f32 %v250_v33, %v237_v32 }
  0xa6   :  { %v263_v36 = vpop.f32.mrf.mxu2  ;;  %v239_v39 = vpop.f32.mrf.mxu0 }
  0xa7   :  { %v264_v37 = vadd.f32 %v263_v36, %v251_v34  ;;  %v252_v40 = vpop.f32.mrf.mxu1 }
  0xa9   :  { %v277_v41 = vmul.f32 %v412_v35, %v264_v37 }
  0xab   :  { %v282_v42 = vadd.f32 %v413_v38, %v277_v41 }
  0xad   :  { %vm283_vm0 = vcmp.ge.f32.partialorder %v282_v42, 0.0  ;;  %v284_v43 = vmul.f32 0.01, %v282_v42 }
  0xae   :  { %v265_v44 = vpop.f32.mrf.mxu2 }
  0xaf   :  { %v285_v45 = vsel %vm283_vm0, %v282_v42, %v284_v43 }
  0xb0   :  { %v286_v46 = vpack.c.bf16 %v285_v45, %v285_v45 }
  0xb2   :  { %287 = vst [vmem:[%s530_s4] sm:$0xf] %v286_v46 }

// kernel: _lambda_.18
= control target key start
LH: loop header
LB: loop body
LE: loop exit
PB: predicated region body
PF: predicated region fallthrough
CT: control target
= control target key end

     0   :  { %s854_s1 = inlined_call_operand.vmem [shape: bf16[384,128], index: 1, kind: input, shape index: {}]   ;;  %s855_s0 = inlined_call_operand.vmem [shape: bf16[56,384], index: 0, kind: input, shape index: {}]   ;;  %s856_s2 = inlined_call_operand.vmem [shape: f32[1,128], index: 2, kind: input, shape index: {}]   ;;  %s857_s3 = inlined_call_operand.vmem [shape: f32[1,128], index: 3, kind: input, shape index: {}]   ;;  %s858_s4 = inlined_call_operand.vmem [shape: bf16[56,128], index: 4, kind: output, shape index: {}]  }
   0x1   :  { %v617_v0 = vld [vmem:[%s854_s1 + $0x38] sm:$0xff]  ;;  %v616_v3 = vld [vmem:[%s854_s1 + $0x30] sm:$0xff]  ;;  %v615_v6 = vld [vmem:[%s854_s1 + $0x28] sm:$0xff] }
   0x2   :  { %v625_v1 = vld [vmem:[%s854_s1 + $0x78] sm:$0xff]  ;;  %300 = vmatpush.bf16.msra.mxu0 %v617_v0  ;;  %v624_v4 = vld [vmem:[%s854_s1 + $0x70] sm:$0xff]  ;;  %651 = vmatpush.bf16.msra.mxu3 %v617_v0  ;;  %v623_v7 = vld [vmem:[%s854_s1 + $0x68] sm:$0xff] }
   0x3   :  { %v633_v2 = vld [vmem:[%s854_s1 + $0xb8] sm:$0xff]  ;;  %328 = vmatpush.bf16.msra.mxu1 %v625_v1  ;;  %v632_v5 = vld [vmem:[%s854_s1 + $0xb0] sm:$0xff]  ;;  %v631_v8 = vld [vmem:[%s854_s1 + $0xa8] sm:$0xff] }
   0x4   :  { %356 = vmatpush.bf16.msra.mxu2 %v633_v2  ;;  %v614_v9 = vld [vmem:[%s854_s1 + $0x20] sm:$0xff]  ;;  %v613_v12 = vld [vmem:[%s854_s1 + $0x18] sm:$0xff]  ;;  %v612_v15 = vld [vmem:[%s854_s1 + $0x10] sm:$0xff] }
   0x5   :  { %v622_v10 = vld [vmem:[%s854_s1 + $0x60] sm:$0xff]  ;;  %v621_v13 = vld [vmem:[%s854_s1 + $0x58] sm:$0xff]  ;;  %v620_v16 = vld [vmem:[%s854_s1 + $0x50] sm:$0xff] }
   0x6   :  { %301 = vmatpush.bf16.msra.mxu0 %v616_v3  ;;  %652 = vmatpush.bf16.msra.mxu3 %v616_v3  ;;  %v630_v11 = vld [vmem:[%s854_s1 + $0xa0] sm:$0xff]  ;;  %v629_v14 = vld [vmem:[%s854_s1 + $0x98] sm:$0xff]  ;;  %v628_v17 = vld [vmem:[%s854_s1 + $0x90] sm:$0xff] }
   0x7   :  { %329 = vmatpush.bf16.msra.mxu1 %v624_v4  ;;  %v611_v18 = vld [vmem:[%s854_s1 + $0x8] sm:$0xff]  ;;  %v610_v21 = vld [vmem:[%s854_s1] sm:$0xff]  ;;  %v473_v27 = vld [vmem:[%s855_s0 + $0xc] sm:$0xf0] }
   0x8   :  { %357 = vmatpush.bf16.msra.mxu2 %v632_v5  ;;  %v619_v19 = vld [vmem:[%s854_s1 + $0x48] sm:$0xff]  ;;  %v618_v22 = vld [vmem:[%s854_s1 + $0x40] sm:$0xff]  ;;  %v603_v29 = vld [vmem:[%s855_s0 + $0x10] sm:$0xf0] }
   0x9   :  { %v627_v20 = vld [vmem:[%s854_s1 + $0x88] sm:$0xff]  ;;  %v626_v23 = vld [vmem:[%s854_s1 + $0x80] sm:$0xff]  ;;  %v483_v30 = vld [vmem:[%s855_s0 + $0x18] sm:$0xf] }
   0xa   :  { %302 = vmatpush.bf16.msra.mxu0 %v615_v6  ;;  %653 = vmatpush.bf16.msra.mxu3 %v615_v6  ;;  %v471_v24 = vld [vmem:[%s855_s0] sm:$0xf]  ;;  %v602_v25 = vld [vmem:[%s855_s0 + $0x8] sm:$0xf0]  ;;  %v601_v26 = vld [vmem:[%s855_s0 + $0x4] sm:$0xf] }
   0xb   :  { %330 = vmatpush.bf16.msra.mxu1 %v623_v7  ;;  %v479_v28 = vld [vmem:[%s855_s0 + $0x8] sm:$0xf]  ;;  %v605_v31 = vld [vmem:[%s855_s0 + $0x20] sm:$0xf0]  ;;  %v472_v32 = vor.u32 %v602_v25, %v471_v24  ;;  %v476_v33 = vor.u32 %v601_v26, %v473_v27  ;;  %v604_v36 = vld [vmem:[%s855_s0 + $0x1c] sm:$0xf] }
   0xc   :  { %358 = vmatpush.bf16.msra.mxu2 %v631_v8  ;;  %v480_v34 = vor.u32 %v603_v29, %v479_v28  ;;  %v484_v35 = vor.u32 %v605_v31, %v483_v30  ;;  %v485_v37 = vld [vmem:[%s855_s0 + $0x24] sm:$0xf0]  ;;  %v491_v38 = vld [vmem:[%s855_s0 + $0x20] sm:$0xf]  ;;  %v606_v39 = vld [vmem:[%s855_s0 + $0x28] sm:$0xf0] }
   0xd   :  { %v495_v40 = vld [vmem:[%s855_s0 + $0x30] sm:$0xf]  ;;  %v608_v41 = vld [vmem:[%s855_s0 + $0x38] sm:$0xf0]  ;;  %v488_v42 = vor.u32 %v604_v36, %v485_v37  ;;  %v492_v43 = vor.u32 %v606_v39, %v491_v38  ;;  %v47_v45 = vld [vmem:[%s855_s0 + $0x48] sm:$0xff] }
   0xe   :  { %303 = vmatpush.bf16.msra.mxu0 %v614_v9  ;;  %654 = vmatpush.bf16.msra.mxu3 %v614_v9  ;;  %v496_v44 = vor.u32 %v608_v41, %v495_v40  ;;  %v607_v46 = vld [vmem:[%s855_s0 + $0x34] sm:$0xf]  ;;  %v497_v47 = vld [vmem:[%s855_s0 + $0x3c] sm:$0xf0]  ;;  %v129_v48 = vunpack.c.l.b16 %v47_v45  ;;  %v503_v49 = vld [vmem:[%s855_s0 + $0x38] sm:$0xf]  ;;  %v130_v55 = vunpack.c.h.b16 %v47_v45 }
   0xf   :  { %331 = vmatpush.bf16.msra.mxu1 %v622_v10  ;;  %v609_v50 = vld [vmem:[%s855_s0 + $0x40] sm:$0xf0]  ;;  %v500_v51 = vor.u32 %v607_v46, %v497_v47  ;;  %v48_v54 = vld [vmem:[%s855_s0 + $0x50] sm:$0xf]  ;;  %v821_v1 = vld [vmem:[%s856_s2] ss:$0 sm:$0xff] }
  0x10   :  { %359 = vmatpush.bf16.msra.mxu2 %v630_v11  ;;  %v504_v52 = vor.u32 %v609_v50, %v503_v49  ;;  %v141_v53 = vpack.c.b16 %v129_v48, %v129_v48  ;;  %v131_v56 = vunpack.c.l.b16 %v48_v54  ;;  %v142_v57 = vpack.c.b16 %v130_v55, %v130_v55  ;;  %v827_v5 = vld [vmem:[%s857_s3] ss:$0 sm:$0xff] }
  0x12   :  { %304 = vmatpush.bf16.msra.mxu0 %v613_v12  ;;  %655 = vmatpush.bf16.msra.mxu3 %v613_v12  ;;  %v143_v58 = vpack.c.b16 %v131_v56, %v131_v56 }
  0x13   :  { %332 = vmatpush.bf16.msra.mxu1 %v621_v13 }
  0x14   :  { %360 = vmatpush.bf16.msra.mxu2 %v629_v14 }
  0x16   :  { %305 = vmatpush.bf16.msra.mxu0 %v612_v15  ;;  %656 = vmatpush.bf16.msra.mxu3 %v612_v15 }
  0x17   :  { %333 = vmatpush.bf16.msra.mxu1 %v620_v16 }
  0x18   :  { %361 = vmatpush.bf16.msra.mxu2 %v628_v17 }
  0x1a   :  { %306 = vmatpush.bf16.msra.mxu0 %v611_v18  ;;  %657 = vmatpush.bf16.msra.mxu3 %v611_v18 }
  0x1b   :  { %334 = vmatpush.bf16.msra.mxu1 %v619_v19 }
  0x1c   :  { %362 = vmatpush.bf16.msra.mxu2 %v627_v20 }
  0x1e   :  { %307 = vmatpush.bf16.msra.mxu0 %v610_v21  ;;  %658 = vmatpush.bf16.msra.mxu3 %v610_v21 }
  0x1f   :  { %335 = vmatpush.bf16.msra.mxu1 %v618_v22 }
  0x20   :  { %363 = vmatpush.bf16.msra.mxu2 %v626_v23 }
  0x21   :  { %308 = vmatmul.bf16.vlgmr.msra.gmra.mxu0 %v472_v32  ;;  %313 = vmatmul.bf16.vlgmr.msra.gmra.mxu3 %v484_v35 }
  0x22   :  { %336 = vmatmul.bf16.vlgmr.msra.gmra.mxu1 %v476_v33 }
  0x23   :  { %364 = vmatmul.bf16.vlgmr.msra.gmra.mxu2 %v480_v34 }
  0x31   :  { %318 = vmatmul.bf16.gmra.mxu3 %v496_v44 }
  0x32   :  { %341 = vmatmul.bf16.gmra.mxu1 %v488_v42 }
  0x33   :  { %369 = vmatmul.bf16.gmra.mxu2 %v492_v43 }
  0x41   :  { %323 = vmatmul.bf16.gmra.mxu3 %v141_v53 }
  0x42   :  { %346 = vmatmul.bf16.gmra.mxu1 %v500_v51 }
  0x43   :  { %374 = vmatmul.bf16.gmra.mxu2 %v504_v52 }
  0x52   :  { %351 = vmatmul.bf16.gmra.mxu1 %v142_v57 }
  0x53   :  { %379 = vmatmul.bf16.gmra.mxu2 %v143_v58 }
  0x9e   :  { %v309_v60 = vpop.f32.mrf.mxu0 }
  0x9f   :  { %v337_v59 = vpop.f32.mrf.mxu1 }
  0xa0   :  { %v338_v61 = vadd.f32 %v337_v59, %v309_v60 }
  0xa4   :  { %v314_v63 = vpop.f32.mrf.mxu3 }
  0xa6   :  { %v365_v62 = vpop.f32.mrf.mxu2  ;;  %v311_v3 = vpop.f32.mrf.mxu0 }
  0xa7   :  { %v366_v0 = vadd.f32 %v365_v62, %v338_v61  ;;  %v339_v2 = vpop.f32.mrf.mxu1 }
  0xa8   :  { %v340_v6 = vadd.f32 %v339_v2, %v311_v3 }
  0xa9   :  { %v412_v4 = vmul.f32 %v821_v1, %v366_v0 }
  0xab   :  { %v423_v9 = vadd.f32 %v827_v5, %v412_v4 }
  0xac   :  { %v316_v8 = vpop.f32.mrf.mxu3 }
  0xad   :  { %v437_v13 = vmul.f32 0.01, %v423_v9  ;;  %vm430_vm0 = vcmp.ge.f32.partialorder %v423_v9, 0.0 }
  0xae   :  { %v367_v7 = vpop.f32.mrf.mxu2 }
  0xaf   :  { %v368_v10 = vadd.f32 %v367_v7, %v340_v6  ;;  %v342_v11 = vpop.f32.mrf.mxu1  ;;  %v444_v19 = vsel %vm430_vm0, %v423_v9, %v437_v13 }
  0xb0   :  { %v343_v15 = vadd.f32 %v342_v11, %v314_v63 }
  0xb1   :  { %v413_v12 = vmul.f32 %v821_v1, %v368_v10 }
  0xb3   :  { %v424_v14 = vadd.f32 %v827_v5, %v413_v12 }
  0xb4   :  { %v319_v18 = vpop.f32.mrf.mxu3 }
  0xb5   :  { %vm431_vm1 = vcmp.ge.f32.partialorder %v424_v14, 0.0  ;;  %v438_v16 = vmul.f32 0.01, %v424_v14 }
  0xb6   :  { %v370_v17 = vpop.f32.mrf.mxu2 }
  0xb7   :  { %v445_v20 = vsel %vm431_vm1, %v424_v14, %v438_v16  ;;  %v371_v21 = vadd.f32 %v370_v17, %v343_v15  ;;  %v344_v22 = vpop.f32.mrf.mxu1 }
  0xb8   :  { %v637_v23 = vpack.c.bf16 %v445_v20, %v444_v19  ;;  %v345_v25 = vadd.f32 %v344_v22, %v316_v8 }
  0xb9   :  { %v414_v24 = vmul.f32 %v821_v1, %v371_v21 }
  0xba   :  { %638 = vst [vmem:[%s858_s4] sm:$0xff] %v637_v23  }
  0xbb   :  { %v425_v28 = vadd.f32 %v827_v5, %v414_v24 }
  0xbc   :  { %v321_v27 = vpop.f32.mrf.mxu3 }
  0xbd   :  { %v439_v32 = vmul.f32 0.01, %v425_v28  ;;  %vm432_vm2 = vcmp.ge.f32.partialorder %v425_v28, 0.0 }
  0xbe   :  { %v372_v26 = vpop.f32.mrf.mxu2 }
  0xbf   :  { %v373_v29 = vadd.f32 %v372_v26, %v345_v25  ;;  %v347_v30 = vpop.f32.mrf.mxu1  ;;  %v446_v38 = vsel %vm432_vm2, %v425_v28, %v439_v32 }
  0xc0   :  { %v348_v34 = vadd.f32 %v347_v30, %v319_v18 }
  0xc1   :  { %v415_v31 = vmul.f32 %v821_v1, %v373_v29 }
  0xc3   :  { %v426_v33 = vadd.f32 %v827_v5, %v415_v31 }
  0xc4   :  { %v324_v37 = vpop.f32.mrf.mxu3 }
  0xc5   :  { %vm433_vm3 = vcmp.ge.f32.partialorder %v426_v33, 0.0  ;;  %v440_v35 = vmul.f32 0.01, %v426_v33 }
  0xc6   :  { %v375_v36 = vpop.f32.mrf.mxu2 }
  0xc7   :  { %v447_v39 = vsel %vm433_vm3, %v426_v33, %v440_v35  ;;  %v376_v40 = vadd.f32 %v375_v36, %v348_v34  ;;  %v349_v41 = vpop.f32.mrf.mxu1 }
  0xc8   :  { %v642_v42 = vpack.c.bf16 %v447_v39, %v446_v38  ;;  %v350_v44 = vadd.f32 %v349_v41, %v321_v27 }
  0xc9   :  { %v416_v43 = vmul.f32 %v821_v1, %v376_v40 }
  0xca   :  { %649 = vst [vmem:[%s858_s4 + $0x8] sm:$0xff] %v642_v42  }
  0xcb   :  { %v427_v47 = vadd.f32 %v827_v5, %v416_v43 }
  0xcc   :  { %v326_v46 = vpop.f32.mrf.mxu3 }
  0xcd   :  { %v441_v51 = vmul.f32 0.01, %v427_v47  ;;  %vm434_vm4 = vcmp.ge.f32.partialorder %v427_v47, 0.0 }
  0xce   :  { %v377_v45 = vpop.f32.mrf.mxu2 }
  0xcf   :  { %v378_v48 = vadd.f32 %v377_v45, %v350_v44  ;;  %v352_v49 = vpop.f32.mrf.mxu1  ;;  %v448_v56 = vsel %vm434_vm4, %v427_v47, %v441_v51 }
  0xd0   :  { %v353_v53 = vadd.f32 %v352_v49, %v324_v37 }
  0xd1   :  { %v417_v50 = vmul.f32 %v821_v1, %v378_v48 }
  0xd3   :  { %v428_v52 = vadd.f32 %v827_v5, %v417_v50 }
  0xd5   :  { %vm435_vm5 = vcmp.ge.f32.partialorder %v428_v52, 0.0  ;;  %v442_v54 = vmul.f32 0.01, %v428_v52 }
  0xd6   :  { %v380_v55 = vpop.f32.mrf.mxu2 }
  0xd7   :  { %v449_v57 = vsel %vm435_vm5, %v428_v52, %v442_v54  ;;  %v381_v58 = vadd.f32 %v380_v55, %v353_v53  ;;  %v354_v59 = vpop.f32.mrf.mxu1 }
  0xd8   :  { %v647_v60 = vpack.c.bf16 %v449_v57, %v448_v56 }
  0xd9   :  { %v418_v61 = vmul.f32 %v821_v1, %v381_v58 }
  0xda   :  { %650 = vst [vmem:[%s858_s4 + $0x10] sm:$0xff] %v647_v60  }
  0xdb   :  { %v429_v62 = vadd.f32 %v827_v5, %v418_v61 }
  0xdd   :  { %vm436_vm6 = vcmp.ge.f32.partialorder %v429_v62, 0.0  ;;  %v443_v63 = vmul.f32 0.01, %v429_v62 }
  0xde   :  { %v382_v0 = vpop.f32.mrf.mxu2 }
  0xdf   :  { %v450_v2 = vsel %vm436_vm6, %v429_v62, %v443_v63 }
  0xe0   :  { %v457_v3 = vpack.c.bf16 %v450_v2, %v450_v2 }
  0xe2   :  { %464 = vst [vmem:[%s858_s4 + $0x18] sm:$0xf] %v457_v3 }

// kernel: _lambda_.20
= control target key start
LH: loop header
LB: loop body
LE: loop exit
PB: predicated region body
PF: predicated region fallthrough
CT: control target
= control target key end

     0   :  { %s1384_s15 = smov 0   ;;  %s1386_s16 = smov 0   ;;  %s1531_s0 = inlined_call_operand.vmem [shape: bf16[56,1536], index: 0, kind: input, shape index: {}]   ;;  %s1532_s1 = inlined_call_operand.vmem [shape: bf16[1536,128], index: 1, kind: input, shape index: {}]   ;;  %s1533_s2 = inlined_call_operand.vmem [shape: f32[1,128], index: 2, kind: input, shape index: {}]   ;;  %s1534_s3 = inlined_call_operand.vmem [shape: f32[1,128], index: 3, kind: input, shape index: {}]   ;;  %s1535_s4 = inlined_call_operand.vmem [shape: bf16[56,128], index: 4, kind: output, shape index: {}]  }
   0x1   :  { %s1388_s17 = smov 0   ;;  %s1390_s18 = smov 0  }
   0x2   :  { %s1392_s19 = smov 0  }
   0x3 LB: > { %s26_s20 = sadd.s32 1, %s1352_s18  ;;  %p49_p1 = scmp.ne.s32.totalorder %s1344_s16, %s1340_s15  ;;  %s1356_s19 = sphi %s1392_s19, %s14_s19   ;;  %s1352_s18 = sphi %s1390_s18, %s1539_s18   ;;  %s1348_s17 = sphi %s1388_s17, %s1538_s17   ;;  %s1344_s16 = sphi %s1386_s16, %s1537_s16   ;;  %s1340_s15 = sphi %s1384_s15, %s1536_s15  }
   0x4   : > { %p27_p0 = scmp.ge.s32.totalorder %s26_s20, 3  ;;  %p50_p2 = scmp.eq.s32.totalorder %s1356_s19, 0 }
   0x5   : > { %s42_s22 = sadd.s32 1, %s1344_s16  ;;  %p1023_p5 = scmp.ge.s32.totalorder %s1356_s19, 3 }
   0x6   : > { %s1541_s20 = smov (%p27_p0, %s26_s20), 0  ;;  %p51_p3 = por %p50_p2, %p49_p1 }
   0x7   : > { %s38_s21 = ssub.s32 %s1352_s18, %s1541_s20  ;;  %195 = sbr.rel (%p1023_p5) target bundleno = 30 (0x1e), region = 24 }
   0x8   : > { %p40_p4 = scmp.eq.s32.totalorder %s38_s21, 0 }
   0xa   : > { %s1419_s23 = scalar_select %p40_p4, %s1344_s16, %s42_s22  }
   0xc   : > { %198 = sbr.rel (!%p51_p3) target bundleno = 30 (0x1e), region = 28  ;;  %s200_s24 = sand.u32 (%p51_p3), 1, %s1344_s16  }
   0xd   : > { %s1211_s25 = sshll.u32 (%p51_p3), %s1352_s18, 4  ;;  %s1273_s26 = smul.u32 (%p51_p3), 112, %s200_s24 }
   0xe   : > { %s208_s29 = scalar_lea.vmem (%p51_p3), %s1531_s0, %s1211_s25 }
   0xf   : > { %v221_v0 = vld [vmem:[%s208_s29] sm:$0xff] (%p51_p3)  ;;  %v223_v1 = vld [vmem:[%s208_s29 + $0x8] sm:$0xff] (%p51_p3)  ;;  %v225_v2 = vld [vmem:[%s208_s29 + $0x30] sm:$0xff] (%p51_p3)  ;;  %s202_s30 = scalar_lea.vmem (%p51_p3), [#allocation3], %s1273_s26 }
  0x10   : > { %222 = vst [vmem:[%s202_s30] sm:$0xff] (%p51_p3), %v221_v0  ;;  %v227_v3 = vld [vmem:[%s208_s29 + $0x38] sm:$0xff] (%p51_p3)  ;;  %v229_v4 = vld [vmem:[%s208_s29 + $0x60] sm:$0xff] (%p51_p3)  ;;  %v231_v5 = vld [vmem:[%s208_s29 + $0x68] sm:$0xff] (%p51_p3) }
  0x11   : > { %224 = vst [vmem:[%s202_s30 + $0x8] sm:$0xff] %v223_v1  ;;  %v233_v6 = vld [vmem:[%s208_s29 + $0x90] sm:$0xff]  ;;  %v235_v7 = vld [vmem:[%s208_s29 + $0x98] sm:$0xff]  ;;  %v237_v8 = vld [vmem:[%s208_s29 + $0xc0] sm:$0xff] }
  0x12   : > { %226 = vst [vmem:[%s202_s30 + $0x10] sm:$0xff] %v225_v2  ;;  %v239_v9 = vld [vmem:[%s208_s29 + $0xc8] sm:$0xff]  ;;  %v241_v10 = vld [vmem:[%s208_s29 + $0xf0] sm:$0xff]  ;;  %v243_v11 = vld [vmem:[%s208_s29 + $0xf8] sm:$0xff] }
  0x13   : > { %228 = vst [vmem:[%s202_s30 + $0x18] sm:$0xff] %v227_v3  ;;  %v245_v12 = vld [vmem:[%s208_s29 + $0x120] sm:$0xff]  ;;  %v247_v13 = vld [vmem:[%s208_s29 + $0x128] sm:$0xff] }
  0x14   : > { %230 = vst [vmem:[%s202_s30 + $0x20] sm:$0xff] %v229_v4 }
  0x15   : > { %232 = vst [vmem:[%s202_s30 + $0x28] sm:$0xff] %v231_v5 }
  0x16   : > { %234 = vst [vmem:[%s202_s30 + $0x30] sm:$0xff] %v233_v6 }
  0x17   : > { %236 = vst [vmem:[%s202_s30 + $0x38] sm:$0xff] %v235_v7 }
  0x18   : > { %238 = vst [vmem:[%s202_s30 + $0x40] sm:$0xff] %v237_v8 }
  0x19   : > { %240 = vst [vmem:[%s202_s30 + $0x48] sm:$0xff] %v239_v9 }
  0x1a   : > { %242 = vst [vmem:[%s202_s30 + $0x50] sm:$0xff] %v241_v10 }
  0x1b   : > { %244 = vst [vmem:[%s202_s30 + $0x58] sm:$0xff] %v243_v11 }
  0x1c   : > { %246 = vst [vmem:[%s202_s30 + $0x60] sm:$0xff] %v245_v12 }
  0x1d   : > { %248 = vst [vmem:[%s202_s30 + $0x68] sm:$0xff] %v247_v13 }
  0x1e PF: > { %p1026_p6 = scmp.ge.s32.totalorder %s1356_s19, 1  ;;  %p265_p7 = scmp.lt.s32.totalorder %s1356_s19, 4 }
  0x20   : > { %p266_p8 = pnand %p1026_p6, %p265_p7 }
  0x21   : > { %s272_s5 = sand.u32 (!%p266_p8), 1, %s1340_s15   ;;  %s1027_s6 = sshll.u32 (!%p266_p8), %s1348_s17, 6 }
  0x22   : > { %269 = sbr.rel (%p266_p8) target bundleno = 292 (0x124), region = 55  ;;  %p317_p9 = scmp.lt.s32.totalorder (!%p266_p8), %s1027_s6, 191 }
  0x23   : > { %s1274_s7 = smul.u32 (!%p266_p8), 112, %s272_s5  ;;  %p1029_p10 = scmp.ne.s32.totalorder (!%p266_p8), %s1348_s17, 0 }
  0x25   : > { %s1436_s12 = scalar_lea.vmem (!%p266_p8), [#allocation3], %s1274_s7 }
  0x27   : > { %s1543_s6 = smov (!%p317_p9, %s1027_s6), 191  ;;  %343 = sbr.rel (%p1029_p10) target bundleno = 52 (0x34), region = 63 }
  0x28   : > { %s1028_s8 = sshll.u32 %s1543_s6, 2 }
  0x29   : > { %s1434_s11 = scalar_lea.vmem %s1532_s1, %s1028_s8 }
  0x2c   : > { %v1358_v14 = vmov 0.0  }
  0x2d   : > { %344 = vst [vmem:[#allocation2 + $0x30] sm:$0xff] %v1358_v14 }
  0x2e   : > { %345 = vst [vmem:[#allocation2] sm:$0xff] %v1358_v14 }
  0x2f   : > { %346 = vst [vmem:[#allocation2 + $0x18] sm:$0xff] %v1358_v14 }
  0x30   : > { %347 = vst [vmem:[#allocation2 + $0x10] sm:$0xff] %v1358_v14 }
  0x31   : > { %348 = vst [vmem:[#allocation2 + $0x8] sm:$0xff] %v1358_v14 }
  0x32   : > { %349 = vst [vmem:[#allocation2 + $0x20] sm:$0xff] %v1358_v14 }
  0x33   : > { %350 = vst [vmem:[#allocation2 + $0x28] sm:$0xff] %v1358_v14 }
  0x34 PF: > { %v1231_v15 = vld [vmem:[%s1434_s11 + $0x38] sm:$0xff]  ;;  %v1230_v19 = vld [vmem:[%s1434_s11 + $0x30] sm:$0xff]  ;;  %v1229_v23 = vld [vmem:[%s1434_s11 + $0x28] sm:$0xff]  ;;  %p1206_p11 = scmp.ne.s32.totalorder %s1348_s17, 2 }
  0x35   : > { %v1239_v16 = vld [vmem:[%s1434_s11 + $0x78] sm:$0xff]  ;;  %702 = vmatpush.bf16.msra.mxu0 %v1231_v15  ;;  %v1238_v20 = vld [vmem:[%s1434_s11 + $0x70] sm:$0xff]  ;;  %v1237_v24 = vld [vmem:[%s1434_s11 + $0x68] sm:$0xff] }
  0x36   : > { %v1247_v17 = vld [vmem:[%s1434_s11 + $0xb8] sm:$0xff]  ;;  %730 = vmatpush.bf16.msra.mxu1 %v1239_v16  ;;  %v1246_v21 = vld [vmem:[%s1434_s11 + $0xb0] sm:$0xff]  ;;  %v1245_v25 = vld [vmem:[%s1434_s11 + $0xa8] sm:$0xff] }
  0x37   : > { %v1255_v18 = vld [vmem:[%s1434_s11 + $0xf8] sm:$0xff]  ;;  %758 = vmatpush.bf16.msra.mxu2 %v1247_v17  ;;  %v1254_v22 = vld [vmem:[%s1434_s11 + $0xf0] sm:$0xff]  ;;  %v1253_v26 = vld [vmem:[%s1434_s11 + $0xe8] sm:$0xff] }
  0x38   : > { %786 = vmatpush.bf16.msra.mxu3 %v1255_v18  ;;  %v1228_v27 = vld [vmem:[%s1434_s11 + $0x20] sm:$0xff]  ;;  %v1227_v31 = vld [vmem:[%s1434_s11 + $0x18] sm:$0xff]  ;;  %v1226_v35 = vld [vmem:[%s1434_s11 + $0x10] sm:$0xff] }
  0x39   : > { %703 = vmatpush.bf16.msra.mxu0 %v1230_v19  ;;  %v1236_v28 = vld [vmem:[%s1434_s11 + $0x60] sm:$0xff]  ;;  %v1235_v32 = vld [vmem:[%s1434_s11 + $0x58] sm:$0xff]  ;;  %v1234_v36 = vld [vmem:[%s1434_s11 + $0x50] sm:$0xff] }
  0x3a   : > { %731 = vmatpush.bf16.msra.mxu1 %v1238_v20  ;;  %v1244_v29 = vld [vmem:[%s1434_s11 + $0xa0] sm:$0xff]  ;;  %v1243_v33 = vld [vmem:[%s1434_s11 + $0x98] sm:$0xff]  ;;  %v1242_v37 = vld [vmem:[%s1434_s11 + $0x90] sm:$0xff] }
  0x3b   : > { %759 = vmatpush.bf16.msra.mxu2 %v1246_v21  ;;  %v1252_v30 = vld [vmem:[%s1434_s11 + $0xe0] sm:$0xff]  ;;  %v1251_v34 = vld [vmem:[%s1434_s11 + $0xd8] sm:$0xff]  ;;  %v1250_v38 = vld [vmem:[%s1434_s11 + $0xd0] sm:$0xff] }
  0x3c   : > { %787 = vmatpush.bf16.msra.mxu3 %v1254_v22  ;;  %v1225_v39 = vld [vmem:[%s1434_s11 + $0x8] sm:$0xff]  ;;  %v1224_v43 = vld [vmem:[%s1434_s11] sm:$0xff] }
  0x3d   : > { %704 = vmatpush.bf16.msra.mxu0 %v1229_v23  ;;  %v1233_v40 = vld [vmem:[%s1434_s11 + $0x48] sm:$0xff]  ;;  %v1232_v44 = vld [vmem:[%s1434_s11 + $0x40] sm:$0xff] }
  0x3e   : > { %732 = vmatpush.bf16.msra.mxu1 %v1237_v24  ;;  %v1241_v41 = vld [vmem:[%s1434_s11 + $0x88] sm:$0xff]  ;;  %v1240_v45 = vld [vmem:[%s1434_s11 + $0x80] sm:$0xff] }
  0x3f   : > { %760 = vmatpush.bf16.msra.mxu2 %v1245_v25  ;;  %v1249_v42 = vld [vmem:[%s1434_s11 + $0xc8] sm:$0xff]  ;;  %v1248_v46 = vld [vmem:[%s1434_s11 + $0xc0] sm:$0xff] }
  0x40   : > { %788 = vmatpush.bf16.msra.mxu3 %v1253_v26  ;;  %v1032_v47 = vld [vmem:[%s1436_s12] sm:$0xf]  ;;  %v1214_v48 = vld [vmem:[%s1436_s12 + $0xc] sm:$0xf0]  ;;  %v1212_v49 = vld [vmem:[%s1436_s12 + $0x4] sm:$0xf] }
  0x41   : > { %705 = vmatpush.bf16.msra.mxu0 %v1228_v27  ;;  %v1034_v50 = vld [vmem:[%s1436_s12 + $0x10] sm:$0xf0]  ;;  %v1040_v51 = vld [vmem:[%s1436_s12 + $0x8] sm:$0xf]  ;;  %v1215_v52 = vld [vmem:[%s1436_s12 + $0x14] sm:$0xf0]  ;;  %v1033_v55 = vor.u32 %v1214_v48, %v1032_v47 }
  0x42   : > { %733 = vmatpush.bf16.msra.mxu1 %v1236_v28  ;;  %v1213_v53 = vld [vmem:[%s1436_s12 + $0xc] sm:$0xf]  ;;  %v1042_v54 = vld [vmem:[%s1436_s12 + $0x18] sm:$0xf0]  ;;  %v1037_v56 = vor.u32 %v1212_v49, %v1034_v50  ;;  %v1041_v57 = vor.u32 %v1215_v52, %v1040_v51  ;;  %v1048_v59 = vld [vmem:[%s1436_s12 + $0x20] sm:$0xf] }
  0x43   : > { %761 = vmatpush.bf16.msra.mxu2 %v1244_v29  ;;  %v1045_v58 = vor.u32 %v1213_v53, %v1042_v54  ;;  %v1218_v60 = vld [vmem:[%s1436_s12 + $0x2c] sm:$0xf0]  ;;  %v1216_v61 = vld [vmem:[%s1436_s12 + $0x24] sm:$0xf]  ;;  %v1050_v62 = vld [vmem:[%s1436_s12 + $0x30] sm:$0xf0] }
  0x44   : > { %789 = vmatpush.bf16.msra.mxu3 %v1252_v30  ;;  %v1056_v63 = vld [vmem:[%s1436_s12 + $0x28] sm:$0xf]  ;;  %v1219_v0 = vld [vmem:[%s1436_s12 + $0x34] sm:$0xf0]  ;;  %v1217_v1 = vld [vmem:[%s1436_s12 + $0x2c] sm:$0xf]  ;;  %v1049_v3 = vor.u32 %v1218_v60, %v1048_v59  ;;  %v1053_v4 = vor.u32 %v1216_v61, %v1050_v62 }
  0x45   : > { %706 = vmatpush.bf16.msra.mxu0 %v1227_v31  ;;  %v1058_v2 = vld [vmem:[%s1436_s12 + $0x38] sm:$0xf0]  ;;  %v1057_v5 = vor.u32 %v1219_v0, %v1056_v63  ;;  %v1064_v7 = vld [vmem:[%s1436_s12 + $0x40] sm:$0xf]  ;;  %v1222_v8 = vld [vmem:[%s1436_s12 + $0x4c] sm:$0xf0] }
  0x46   : > { %734 = vmatpush.bf16.msra.mxu1 %v1235_v32  ;;  %v1061_v6 = vor.u32 %v1217_v1, %v1058_v2  ;;  %v1220_v9 = vld [vmem:[%s1436_s12 + $0x44] sm:$0xf]  ;;  %v1066_v10 = vld [vmem:[%s1436_s12 + $0x50] sm:$0xf0]  ;;  %v1072_v11 = vld [vmem:[%s1436_s12 + $0x48] sm:$0xf]  ;;  %v1065_v15 = vor.u32 %v1222_v8, %v1064_v7 }
  0x47   : > { %762 = vmatpush.bf16.msra.mxu2 %v1243_v33  ;;  %v1223_v12 = vld [vmem:[%s1436_s12 + $0x54] sm:$0xf0]  ;;  %v1221_v13 = vld [vmem:[%s1436_s12 + $0x4c] sm:$0xf]  ;;  %v1074_v14 = vld [vmem:[%s1436_s12 + $0x58] sm:$0xf0]  ;;  %v1069_v16 = vor.u32 %v1220_v9, %v1066_v10 }
  0x48   : > { %790 = vmatpush.bf16.msra.mxu3 %v1251_v34  ;;  %v1073_v17 = vor.u32 %v1223_v12, %v1072_v11  ;;  %v1077_v18 = vor.u32 %v1221_v13, %v1074_v14  ;;  %v370_v19 = vld [vmem:[%s1436_s12 + $0x60] sm:$0xff]  ;;  %v371_v20 = vld [vmem:[%s1436_s12 + $0x68] sm:$0xff] }
  0x49   : > { %707 = vmatpush.bf16.msra.mxu0 %v1226_v35  ;;  %v474_v21 = vunpack.c.l.b16 %v370_v19  ;;  %v475_v22 = vunpack.c.h.b16 %v370_v19  ;;  %v476_v23 = vunpack.c.l.b16 %v371_v20  ;;  %v477_v24 = vunpack.c.h.b16 %v371_v20  ;;  %v354_v0 = vld [vmem:[#allocation2 + $0x10] sm:$0xff]  ;;  %v355_v9 = vld [vmem:[#allocation2 + $0x8] sm:$0xff] }
  0x4a   : > { %735 = vmatpush.bf16.msra.mxu1 %v1234_v36 }
  0x4b   : > { %763 = vmatpush.bf16.msra.mxu2 %v1242_v37  ;;  %v490_v25 = vpack.c.b16 %v474_v21, %v474_v21  ;;  %v491_v26 = vpack.c.b16 %v475_v22, %v475_v22  ;;  %v492_v27 = vpack.c.b16 %v476_v23, %v476_v23  ;;  %v493_v28 = vpack.c.b16 %v477_v24, %v477_v24  ;;  %v351_v37 = vld [vmem:[#allocation2 + $0x30] sm:$0xff] }
  0x4c   : > { %791 = vmatpush.bf16.msra.mxu3 %v1250_v38 }
  0x4d   : > { %708 = vmatpush.bf16.msra.mxu0 %v1225_v39 }
  0x4e   : > { %736 = vmatpush.bf16.msra.mxu1 %v1233_v40 }
  0x4f   : > { %764 = vmatpush.bf16.msra.mxu2 %v1241_v41 }
  0x50   : > { %792 = vmatpush.bf16.msra.mxu3 %v1249_v42 }
  0x51   : > { %709 = vmatpush.bf16.msra.mxu0 %v1224_v43 }
  0x52   : > { %737 = vmatpush.bf16.msra.mxu1 %v1232_v44 }
  0x53   : > { %765 = vmatpush.bf16.msra.mxu2 %v1240_v45 }
  0x54   : > { %793 = vmatpush.bf16.msra.mxu3 %v1248_v46  ;;  %710 = vmatmul.bf16.vlgmr.msra.gmra.mxu0 %v1033_v55  ;;  %v352_v46 = vld [vmem:[#allocation2] sm:$0xff]  ;;  %v353_v55 = vld [vmem:[#allocation2 + $0x18] sm:$0xff] }
  0x55   : > { %738 = vmatmul.bf16.vlgmr.msra.gmra.mxu1 %v1037_v56 }
  0x56   : > { %766 = vmatmul.bf16.vlgmr.msra.gmra.mxu2 %v1041_v57 }
  0x57   : > { %794 = vmatmul.bf16.vlgmr.msra.gmra.mxu3 %v1045_v58 }
  0x64   : > { %715 = vmatmul.bf16.gmra.mxu0 %v1049_v3 }
  0x65   : > { %743 = vmatmul.bf16.gmra.mxu1 %v1053_v4 }
  0x66   : > { %771 = vmatmul.bf16.gmra.mxu2 %v1057_v5 }
  0x67   : > { %799 = vmatmul.bf16.gmra.mxu3 %v1061_v6 }
  0x74   : > { %720 = vmatmul.bf16.gmra.mxu0 %v1065_v15 }
  0x75   : > { %748 = vmatmul.bf16.gmra.mxu1 %v1069_v16 }
  0x76   : > { %776 = vmatmul.bf16.gmra.mxu2 %v1073_v17 }
  0x77   : > { %804 = vmatmul.bf16.gmra.mxu3 %v1077_v18  ;;  %v356_v18 = vld [vmem:[#allocation2 + $0x20] sm:$0xff] }
  0x84   : > { %725 = vmatmul.bf16.gmra.mxu0 %v490_v25 }
  0x85   : > { %753 = vmatmul.bf16.gmra.mxu1 %v491_v26 }
  0x86   : > { %781 = vmatmul.bf16.gmra.mxu2 %v492_v27  ;;  %v357_v27 = vld [vmem:[#allocation2 + $0x28] sm:$0xff] }
  0x87   : > { %809 = vmatmul.bf16.gmra.mxu3 %v493_v28 }
  0xd1   : > { %v711_v29 = vpop.f32.mrf.mxu0 }
  0xd2   : > { %v739_v30 = vpop.f32.mrf.mxu1 }
  0xd3   : > { %v740_v31 = vadd.f32 %v739_v30, %v711_v29 }
  0xd9   : > { %v767_v32 = vpop.f32.mrf.mxu2  ;;  %v713_v35 = vpop.f32.mrf.mxu0 }
  0xda   : > { %v795_v33 = vpop.f32.mrf.mxu3  ;;  %v768_v34 = vadd.f32 %v767_v32, %v740_v31  ;;  %v741_v36 = vpop.f32.mrf.mxu1 }
  0xdb   : > { %v742_v40 = vadd.f32 %v741_v36, %v713_v35 }
  0xdc   : > { %v796_v38 = vadd.f32 %v795_v33, %v768_v34 }
  0xde   : > { %v814_v39 = vadd.f32 %v796_v38, %v351_v37 }
  0xe0   : > { %821 = vst [vmem:[#allocation2 + $0x30] sm:$0xff] %v814_v39 }
  0xe1   : > { %v769_v41 = vpop.f32.mrf.mxu2  ;;  %v716_v44 = vpop.f32.mrf.mxu0 }
  0xe2   : > { %v797_v42 = vpop.f32.mrf.mxu3  ;;  %v770_v43 = vadd.f32 %v769_v41, %v742_v40  ;;  %v744_v45 = vpop.f32.mrf.mxu1 }
  0xe3   : > { %v745_v49 = vadd.f32 %v744_v45, %v716_v44 }
  0xe4   : > { %v798_v47 = vadd.f32 %v797_v42, %v770_v43 }
  0xe6   : > { %v815_v48 = vadd.f32 %v798_v47, %v352_v46 }
  0xe8   : > { %822 = vst [vmem:[#allocation2] sm:$0xff] %v815_v48 }
  0xe9   : > { %v772_v50 = vpop.f32.mrf.mxu2  ;;  %v718_v53 = vpop.f32.mrf.mxu0 }
  0xea   : > { %v800_v51 = vpop.f32.mrf.mxu3  ;;  %v773_v52 = vadd.f32 %v772_v50, %v745_v49  ;;  %v746_v54 = vpop.f32.mrf.mxu1 }
  0xeb   : > { %v747_v58 = vadd.f32 %v746_v54, %v718_v53 }
  0xec   : > { %v801_v56 = vadd.f32 %v800_v51, %v773_v52 }
  0xee   : > { %v816_v57 = vadd.f32 %v801_v56, %v353_v55 }
  0xf0   : > { %823 = vst [vmem:[#allocation2 + $0x18] sm:$0xff] %v816_v57 }
  0xf1   : > { %v774_v59 = vpop.f32.mrf.mxu2  ;;  %v721_v62 = vpop.f32.mrf.mxu0 }
  0xf2   : > { %v802_v60 = vpop.f32.mrf.mxu3  ;;  %v775_v61 = vadd.f32 %v774_v59, %v747_v58  ;;  %v749_v63 = vpop.f32.mrf.mxu1 }
  0xf3   : > { %v750_v3 = vadd.f32 %v749_v63, %v721_v62 }
  0xf4   : > { %v803_v1 = vadd.f32 %v802_v60, %v775_v61 }
  0xf6   : > { %v817_v2 = vadd.f32 %v803_v1, %v354_v0 }
  0xf8   : > { %824 = vst [vmem:[#allocation2 + $0x10] sm:$0xff] %v817_v2 }
  0xf9   : > { %v777_v4 = vpop.f32.mrf.mxu2  ;;  %v723_v7 = vpop.f32.mrf.mxu0 }
  0xfa   : > { %v805_v5 = vpop.f32.mrf.mxu3  ;;  %v778_v6 = vadd.f32 %v777_v4, %v750_v3  ;;  %v751_v8 = vpop.f32.mrf.mxu1 }
  0xfb   : > { %v752_v12 = vadd.f32 %v751_v8, %v723_v7 }
  0xfc   : > { %v806_v10 = vadd.f32 %v805_v5, %v778_v6 }
  0xfe   : > { %v818_v11 = vadd.f32 %v806_v10, %v355_v9 }
 0x100   : > { %825 = vst [vmem:[#allocation2 + $0x8] sm:$0xff] %v818_v11 }
 0x101   : > { %v779_v13 = vpop.f32.mrf.mxu2  ;;  %v726_v16 = vpop.f32.mrf.mxu0 }
 0x102   : > { %v807_v14 = vpop.f32.mrf.mxu3  ;;  %v780_v15 = vadd.f32 %v779_v13, %v752_v12  ;;  %v754_v17 = vpop.f32.mrf.mxu1 }
 0x103   : > { %v755_v21 = vadd.f32 %v754_v17, %v726_v16 }
 0x104   : > { %v808_v19 = vadd.f32 %v807_v14, %v780_v15 }
 0x106   : > { %v819_v20 = vadd.f32 %v808_v19, %v356_v18 }
 0x108   : > { %826 = vst [vmem:[#allocation2 + $0x20] sm:$0xff] %v819_v20 }
 0x109   : > { %v782_v22 = vpop.f32.mrf.mxu2  ;;  %v728_v25 = vpop.f32.mrf.mxu0 }
 0x10a   : > { %v810_v23 = vpop.f32.mrf.mxu3  ;;  %v783_v24 = vadd.f32 %v782_v22, %v755_v21  ;;  %v756_v26 = vpop.f32.mrf.mxu1 }
 0x10c   : > { %v811_v28 = vadd.f32 %v810_v23, %v783_v24 }
 0x10e   : > { %v820_v29 = vadd.f32 %v811_v28, %v357_v27  ;;  %831 = sbr.rel (%p1206_p11) target bundleno = 292 (0x124), region = 67 }
 0x110   : > { %827 = vst [vmem:[#allocation2 + $0x28] sm:$0xff] %v820_v29 }
 0x111   : > { %v784_v30 = vpop.f32.mrf.mxu2 }
 0x112   : > { %v812_v31 = vpop.f32.mrf.mxu3 }
 0x113   : > { %v832_v32 = vld [vmem:[#allocation2 + $0x30] sm:$0xff]  ;;  %v833_v33 = vld [vmem:[#allocation2] sm:$0xff]  ;;  %v834_v36 = vld [vmem:[#allocation2 + $0x18] sm:$0xff] }
 0x114   : > { %v1316_v34 = vld [vmem:[%s1533_s2] ss:$0 sm:$0xff]  ;;  %v835_v37 = vld [vmem:[#allocation2 + $0x10] sm:$0xff]  ;;  %v836_v38 = vld [vmem:[#allocation2 + $0x8] sm:$0xff] }
 0x115   : > { %v1317_v35 = vld [vmem:[%s1534_s3] ss:$0 sm:$0xff]  ;;  %v843_v39 = vmul.f32 %v1316_v34, %v832_v32  ;;  %v844_v40 = vmul.f32 %v1316_v34, %v833_v33  ;;  %v845_v41 = vmul.f32 %v1316_v34, %v834_v36  ;;  %v846_v42 = vmul.f32 %v1316_v34, %v835_v37 }
 0x116   : > { %v837_v43 = vld [vmem:[#allocation2 + $0x20] sm:$0xff]  ;;  %v847_v45 = vmul.f32 %v1316_v34, %v836_v38 }
 0x117   : > { %v838_v44 = vld [vmem:[#allocation2 + $0x28] sm:$0xff]  ;;  %v848_v46 = vmul.f32 %v1316_v34, %v837_v43  ;;  %v854_v48 = vadd.f32 %v1317_v35, %v843_v39  ;;  %v855_v49 = vadd.f32 %v1317_v35, %v844_v40  ;;  %v856_v50 = vadd.f32 %v1317_v35, %v845_v41 }
 0x118   : > { %v849_v47 = vmul.f32 %v1316_v34, %v838_v44  ;;  %v857_v51 = vadd.f32 %v1317_v35, %v846_v42  ;;  %v858_v52 = vadd.f32 %v1317_v35, %v847_v45 }
 0x119   : > { %v859_v53 = vadd.f32 %v1317_v35, %v848_v46  ;;  %vm861_vm0 = vcmp.ge.f32.partialorder %v854_v48, 0.0  ;;  %vm862_vm1 = vcmp.ge.f32.partialorder %v855_v49, 0.0  ;;  %v868_v55 = vmul.f32 0.01, %v854_v48 }
 0x11a   : > { %v860_v54 = vadd.f32 %v1317_v35, %v849_v47  ;;  %v869_v56 = vmul.f32 0.01, %v855_v49  ;;  %vm863_vm2 = vcmp.ge.f32.partialorder %v856_v50, 0.0  ;;  %vm864_vm3 = vcmp.ge.f32.partialorder %v857_v51, 0.0 }
 0x11b   : > { %v870_v57 = vmul.f32 0.01, %v856_v50  ;;  %v871_v58 = vmul.f32 0.01, %v857_v51  ;;  %v875_v59 = vsel %vm861_vm0, %v854_v48, %v868_v55  ;;  %vm865_vm4 = vcmp.ge.f32.partialorder %v858_v52, 0.0 }
 0x11c   : > { %v876_v60 = vsel %vm862_vm1, %v855_v49, %v869_v56  ;;  %vm866_vm5 = vcmp.ge.f32.partialorder %v859_v53, 0.0  ;;  %v872_v0 = vmul.f32 0.01, %v858_v52  ;;  %v873_v2 = vmul.f32 0.01, %v859_v53 }
 0x11d   : > { %v1259_v61 = vpack.c.bf16 %v876_v60, %v875_v59  ;;  %v877_v62 = vsel %vm863_vm2, %v856_v50, %v870_v57  ;;  %v878_v63 = vsel %vm864_vm3, %v857_v51, %v871_v58  ;;  %vm867_vm6 = vcmp.ge.f32.partialorder %v860_v54, 0.0 }
 0x11e   : > { %v1264_v1 = vpack.c.bf16 %v878_v63, %v877_v62  ;;  %v874_v3 = vmul.f32 0.01, %v860_v54  ;;  %v879_v4 = vsel %vm865_vm4, %v858_v52, %v872_v0  ;;  %v880_v5 = vsel %vm866_vm5, %v859_v53, %v873_v2 }
 0x11f   : > { %1260 = vst [vmem:[%s1535_s4] sm:$0xff] %v1259_v61   ;;  %v1269_v7 = vpack.c.bf16 %v880_v5, %v879_v4 }
 0x120   : > { %1271 = vst [vmem:[%s1535_s4 + $0x8] sm:$0xff] %v1264_v1   ;;  %v881_v6 = vsel %vm867_vm6, %v860_v54, %v874_v3 }
 0x121   : > { %v888_v8 = vpack.c.bf16 %v881_v6, %v881_v6  ;;  %1272 = vst [vmem:[%s1535_s4 + $0x10] sm:$0xff] %v1269_v7  }
 0x123   : > { %895 = vst [vmem:[%s1535_s4 + $0x18] sm:$0xf] %v888_v8 }
 0x124 PF: > { %s14_s19 = sadd.s32 1, %s1356_s19   ;;  %s1536_s15 = smov %s1344_s16 }
 0x125   : > { %p11_p12 = scmp.ge.s32.totalorder %s14_s19, 5   ;;  %s1537_s16 = smov %s1419_s23 }
 0x126   : > { %s1538_s17 = smov %s1352_s18  ;;  %s1539_s18 = smov %s1541_s20 }
 0x127   :  { %13 = sbr.rel (!%p11_p12) target bundleno = 3 (0x3), region = 111 }

// kernel: _lambda_.21
= control target key start
LH: loop header
LB: loop body
LE: loop exit
PB: predicated region body
PF: predicated region fallthrough
CT: control target
= control target key end

     0   :  { %s1996_s15 = smov 0   ;;  %s1998_s16 = smov 0   ;;  %s2332_s0 = inlined_call_operand.vmem [shape: bf16[152,1024], index: 0, kind: input, shape index: {}]   ;;  %s2333_s1 = inlined_call_operand.vmem [shape: bf16[1024,128], index: 1, kind: input, shape index: {}]   ;;  %s2334_s2 = inlined_call_operand.vmem [shape: f32[1,128], index: 2, kind: input, shape index: {}]   ;;  %s2335_s3 = inlined_call_operand.vmem [shape: f32[1,128], index: 3, kind: input, shape index: {}]   ;;  %s2336_s4 = inlined_call_operand.vmem [shape: bf16[152,128], index: 4, kind: output, shape index: {}]  }
   0x1   :  { %s2000_s17 = smov 0   ;;  %s2002_s18 = smov 0  }
   0x2   :  { %s2004_s19 = smov 0  }
   0x3 LB: > { %s26_s20 = sadd.s32 1, %s1964_s18  ;;  %p49_p1 = scmp.ne.s32.totalorder %s1956_s16, %s1952_s15  ;;  %s1968_s19 = sphi %s2004_s19, %s14_s19   ;;  %s1964_s18 = sphi %s2002_s18, %s2340_s18   ;;  %s1960_s17 = sphi %s2000_s17, %s2339_s17   ;;  %s1956_s16 = sphi %s1998_s16, %s2338_s16   ;;  %s1952_s15 = sphi %s1996_s15, %s2337_s15  }
   0x4   : > { %p27_p0 = scmp.ge.s32.totalorder %s26_s20, 2  ;;  %p50_p2 = scmp.eq.s32.totalorder %s1968_s19, 0 }
   0x5   : > { %s42_s22 = sadd.s32 1, %s1956_s16  ;;  %p1479_p5 = scmp.ge.s32.totalorder %s1968_s19, 2 }
   0x6   : > { %s2342_s20 = smov (%p27_p0, %s26_s20), 0  ;;  %p51_p3 = por %p50_p2, %p49_p1 }
   0x7   : > { %s38_s21 = ssub.s32 %s1964_s18, %s2342_s20  ;;  %195 = sbr.rel (%p1479_p5) target bundleno = 54 (0x36), region = 24 }
   0x8   : > { %p40_p4 = scmp.eq.s32.totalorder %s38_s21, 0 }
   0xa   : > { %s2031_s23 = scalar_select %p40_p4, %s1956_s16, %s42_s22  }
   0xc   : > { %198 = sbr.rel (!%p51_p3) target bundleno = 54 (0x36), region = 28  ;;  %s200_s24 = sand.u32 (%p51_p3), 1, %s1956_s16  }
   0xd   : > { %s1763_s25 = sshll.u32 (%p51_p3), %s1964_s18, 4  ;;  %s1885_s26 = smul.u32 (%p51_p3), 304, %s200_s24 }
   0xe   : > { %s2039_s29 = scalar_lea.vmem (%p51_p3), %s2332_s0, %s1763_s25 }
   0xf   : > { %v221_v0 = vld [vmem:[%s2039_s29] sm:$0xff] (%p51_p3)  ;;  %v223_v1 = vld [vmem:[%s2039_s29 + $0x8] sm:$0xff] (%p51_p3)  ;;  %s2044_s30 = scalar_lea.vmem (%p51_p3), [#allocation3], %s1885_s26 }
  0x10   : > { %v225_v2 = vld [vmem:[%s2039_s29 + $0x20] sm:$0xff] (%p51_p3)  ;;  %222 = vst [vmem:[%s2044_s30] sm:$0xff] (%p51_p3), %v221_v0  ;;  %v227_v3 = vld [vmem:[%s2039_s29 + $0x28] sm:$0xff] (%p51_p3) }
  0x11   : > { %224 = vst [vmem:[%s2044_s30 + $0x8] sm:$0xff] %v223_v1  ;;  %v229_v4 = vld [vmem:[%s2039_s29 + $0x40] sm:$0xff]  ;;  %v231_v5 = vld [vmem:[%s2039_s29 + $0x48] sm:$0xff] }
  0x12   : > { %226 = vst [vmem:[%s2044_s30 + $0x10] sm:$0xff] %v225_v2  ;;  %v233_v6 = vld [vmem:[%s2039_s29 + $0x60] sm:$0xff]  ;;  %v235_v7 = vld [vmem:[%s2039_s29 + $0x68] sm:$0xff] }
  0x13   : > { %228 = vst [vmem:[%s2044_s30 + $0x18] sm:$0xff] %v227_v3  ;;  %v237_v8 = vld [vmem:[%s2039_s29 + $0x80] sm:$0xff]  ;;  %v239_v9 = vld [vmem:[%s2039_s29 + $0x88] sm:$0xff] }
  0x14   : > { %230 = vst [vmem:[%s2044_s30 + $0x20] sm:$0xff] %v229_v4  ;;  %v241_v10 = vld [vmem:[%s2039_s29 + $0xa0] sm:$0xff]  ;;  %v243_v11 = vld [vmem:[%s2039_s29 + $0xa8] sm:$0xff] }
  0x15   : > { %232 = vst [vmem:[%s2044_s30 + $0x28] sm:$0xff] %v231_v5  ;;  %v245_v12 = vld [vmem:[%s2039_s29 + $0xc0] sm:$0xff]  ;;  %v247_v13 = vld [vmem:[%s2039_s29 + $0xc8] sm:$0xff] }
  0x16   : > { %234 = vst [vmem:[%s2044_s30 + $0x30] sm:$0xff] %v233_v6  ;;  %v249_v14 = vld [vmem:[%s2039_s29 + $0xe0] sm:$0xff]  ;;  %v251_v15 = vld [vmem:[%s2039_s29 + $0xe8] sm:$0xff] }
  0x17   : > { %236 = vst [vmem:[%s2044_s30 + $0x38] sm:$0xff] %v235_v7  ;;  %v253_v16 = vld [vmem:[%s2039_s29 + $0x100] sm:$0xff]  ;;  %v255_v17 = vld [vmem:[%s2039_s29 + $0x108] sm:$0xff] }
  0x18   : > { %238 = vst [vmem:[%s2044_s30 + $0x40] sm:$0xff] %v237_v8  ;;  %v257_v18 = vld [vmem:[%s2039_s29 + $0x120] sm:$0xff]  ;;  %v259_v19 = vld [vmem:[%s2039_s29 + $0x128] sm:$0xff] }
  0x19   : > { %240 = vst [vmem:[%s2044_s30 + $0x48] sm:$0xff] %v239_v9  ;;  %v261_v20 = vld [vmem:[%s2039_s29 + $0x140] sm:$0xff]  ;;  %v263_v21 = vld [vmem:[%s2039_s29 + $0x148] sm:$0xff] }
  0x1a   : > { %242 = vst [vmem:[%s2044_s30 + $0x50] sm:$0xff] %v241_v10  ;;  %v265_v22 = vld [vmem:[%s2039_s29 + $0x160] sm:$0xff]  ;;  %v267_v23 = vld [vmem:[%s2039_s29 + $0x168] sm:$0xff] }
  0x1b   : > { %244 = vst [vmem:[%s2044_s30 + $0x58] sm:$0xff] %v243_v11  ;;  %v269_v24 = vld [vmem:[%s2039_s29 + $0x180] sm:$0xff]  ;;  %v271_v25 = vld [vmem:[%s2039_s29 + $0x188] sm:$0xff] }
  0x1c   : > { %246 = vst [vmem:[%s2044_s30 + $0x60] sm:$0xff] %v245_v12  ;;  %v273_v26 = vld [vmem:[%s2039_s29 + $0x1a0] sm:$0xff]  ;;  %v275_v27 = vld [vmem:[%s2039_s29 + $0x1a8] sm:$0xff] }
  0x1d   : > { %248 = vst [vmem:[%s2044_s30 + $0x68] sm:$0xff] %v247_v13  ;;  %v277_v28 = vld [vmem:[%s2039_s29 + $0x1c0] sm:$0xff]  ;;  %v279_v29 = vld [vmem:[%s2039_s29 + $0x1c8] sm:$0xff] }
  0x1e   : > { %250 = vst [vmem:[%s2044_s30 + $0x70] sm:$0xff] %v249_v14  ;;  %v281_v30 = vld [vmem:[%s2039_s29 + $0x1e0] sm:$0xff]  ;;  %v283_v31 = vld [vmem:[%s2039_s29 + $0x1e8] sm:$0xff] }
  0x1f   : > { %252 = vst [vmem:[%s2044_s30 + $0x78] sm:$0xff] %v251_v15  ;;  %v285_v32 = vld [vmem:[%s2039_s29 + $0x200] sm:$0xff]  ;;  %v287_v33 = vld [vmem:[%s2039_s29 + $0x208] sm:$0xff] }
  0x20   : > { %254 = vst [vmem:[%s2044_s30 + $0x80] sm:$0xff] %v253_v16  ;;  %v289_v34 = vld [vmem:[%s2039_s29 + $0x220] sm:$0xff]  ;;  %v291_v35 = vld [vmem:[%s2039_s29 + $0x228] sm:$0xff] }
  0x21   : > { %256 = vst [vmem:[%s2044_s30 + $0x88] sm:$0xff] %v255_v17  ;;  %v293_v36 = vld [vmem:[%s2039_s29 + $0x240] sm:$0xff]  ;;  %v295_v37 = vld [vmem:[%s2039_s29 + $0x248] sm:$0xff] }
  0x22   : > { %258 = vst [vmem:[%s2044_s30 + $0x90] sm:$0xff] %v257_v18 }
  0x23   : > { %260 = vst [vmem:[%s2044_s30 + $0x98] sm:$0xff] %v259_v19 }
  0x24   : > { %262 = vst [vmem:[%s2044_s30 + $0xa0] sm:$0xff] %v261_v20 }
  0x25   : > { %264 = vst [vmem:[%s2044_s30 + $0xa8] sm:$0xff] %v263_v21 }
  0x26   : > { %266 = vst [vmem:[%s2044_s30 + $0xb0] sm:$0xff] %v265_v22 }
  0x27   : > { %268 = vst [vmem:[%s2044_s30 + $0xb8] sm:$0xff] %v267_v23 }
  0x28   : > { %270 = vst [vmem:[%s2044_s30 + $0xc0] sm:$0xff] %v269_v24 }
  0x29   : > { %272 = vst [vmem:[%s2044_s30 + $0xc8] sm:$0xff] %v271_v25 }
  0x2a   : > { %274 = vst [vmem:[%s2044_s30 + $0xd0] sm:$0xff] %v273_v26 }
  0x2b   : > { %276 = vst [vmem:[%s2044_s30 + $0xd8] sm:$0xff] %v275_v27 }
  0x2c   : > { %278 = vst [vmem:[%s2044_s30 + $0xe0] sm:$0xff] %v277_v28 }
  0x2d   : > { %280 = vst [vmem:[%s2044_s30 + $0xe8] sm:$0xff] %v279_v29 }
  0x2e   : > { %282 = vst [vmem:[%s2044_s30 + $0xf0] sm:$0xff] %v281_v30 }
  0x2f   : > { %284 = vst [vmem:[%s2044_s30 + $0xf8] sm:$0xff] %v283_v31 }
  0x30   : > { %286 = vst [vmem:[%s2044_s30 + $0x100] sm:$0xff] %v285_v32 }
  0x31   : > { %288 = vst [vmem:[%s2044_s30 + $0x108] sm:$0xff] %v287_v33 }
  0x32   : > { %290 = vst [vmem:[%s2044_s30 + $0x110] sm:$0xff] %v289_v34 }
  0x33   : > { %292 = vst [vmem:[%s2044_s30 + $0x118] sm:$0xff] %v291_v35 }
  0x34   : > { %294 = vst [vmem:[%s2044_s30 + $0x120] sm:$0xff] %v293_v36 }
  0x35   : > { %296 = vst [vmem:[%s2044_s30 + $0x128] sm:$0xff] %v295_v37 }
  0x36 PF: > { %p1482_p6 = scmp.ge.s32.totalorder %s1968_s19, 1  ;;  %p313_p7 = scmp.lt.s32.totalorder %s1968_s19, 3 }
  0x38   : > { %p314_p8 = pnand %p1482_p6, %p313_p7 }
  0x39   : > { %s320_s5 = sand.u32 (!%p314_p8), 1, %s1952_s15   ;;  %s1483_s6 = sshll.u32 (!%p314_p8), %s1960_s17, 6 }
  0x3a   : > { %317 = sbr.rel (%p314_p8) target bundleno = 441 (0x1b9), region = 55  ;;  %p365_p9 = scmp.lt.s32.totalorder (!%p314_p8), %s1483_s6, 127 }
  0x3b   : > { %s1886_s7 = smul.u32 (!%p314_p8), 304, %s320_s5  ;;  %p1485_p10 = scmp.ne.s32.totalorder (!%p314_p8), %s1960_s17, 0 }
  0x3d   : > { %s2128_s12 = scalar_lea.vmem (!%p314_p8), [#allocation3], %s1886_s7 }
  0x3f   : > { %s2344_s6 = smov (!%p365_p9, %s1483_s6), 127  ;;  %391 = sbr.rel (%p1485_p10) target bundleno = 88 (0x58), region = 63 }
  0x40   : > { %s1484_s8 = sshll.u32 %s2344_s6, 2 }
  0x41   : > { %s2126_s11 = scalar_lea.vmem %s2333_s1, %s1484_s8 }
  0x44   : > { %v1970_v38 = vmov 0.0  }
  0x45   : > { %392 = vst [vmem:[#allocation2] sm:$0xff] %v1970_v38 }
  0x46   : > { %393 = vst [vmem:[#allocation2 + $0x38] sm:$0xff] %v1970_v38 }
  0x47   : > { %394 = vst [vmem:[#allocation2 + $0x50] sm:$0xff] %v1970_v38 }
  0x48   : > { %395 = vst [vmem:[#allocation2 + $0x18] sm:$0xff] %v1970_v38 }
  0x49   : > { %396 = vst [vmem:[#allocation2 + $0x30] sm:$0xff] %v1970_v38 }
  0x4a   : > { %397 = vst [vmem:[#allocation2 + $0x68] sm:$0xff] %v1970_v38 }
  0x4b   : > { %398 = vst [vmem:[#allocation2 + $0x78] sm:$0xff] %v1970_v38 }
  0x4c   : > { %399 = vst [vmem:[#allocation2 + $0x80] sm:$0xff] %v1970_v38 }
  0x4d   : > { %400 = vst [vmem:[#allocation2 + $0x8] sm:$0xff] %v1970_v38 }
  0x4e   : > { %401 = vst [vmem:[#allocation2 + $0x88] sm:$0xff] %v1970_v38 }
  0x4f   : > { %402 = vst [vmem:[#allocation2 + $0x28] sm:$0xff] %v1970_v38 }
  0x50   : > { %403 = vst [vmem:[#allocation2 + $0x40] sm:$0xff] %v1970_v38 }
  0x51   : > { %404 = vst [vmem:[#allocation2 + $0x58] sm:$0xff] %v1970_v38 }
  0x52   : > { %405 = vst [vmem:[#allocation2 + $0x10] sm:$0xff] %v1970_v38 }
  0x53   : > { %406 = vst [vmem:[#allocation2 + $0x20] sm:$0xff] %v1970_v38 }
  0x54   : > { %407 = vst [vmem:[#allocation2 + $0x70] sm:$0xff] %v1970_v38 }
  0x55   : > { %408 = vst [vmem:[#allocation2 + $0x60] sm:$0xff] %v1970_v38 }
  0x56   : > { %409 = vst [vmem:[#allocation2 + $0x90] sm:$0xff] %v1970_v38 }
  0x57   : > { %410 = vst [vmem:[#allocation2 + $0x48] sm:$0xff] %v1970_v38 }
  0x58 PF: > { %v1807_v39 = vld [vmem:[%s2126_s11 + $0x38] sm:$0xff]  ;;  %v1806_v43 = vld [vmem:[%s2126_s11 + $0x30] sm:$0xff]  ;;  %v1805_v47 = vld [vmem:[%s2126_s11 + $0x28] sm:$0xff]  ;;  %p1758_p11 = scmp.ne.s32.totalorder %s1960_s17, 1 }
  0x59   : > { %v1815_v40 = vld [vmem:[%s2126_s11 + $0x78] sm:$0xff]  ;;  %918 = vmatpush.bf16.msra.mxu0 %v1807_v39  ;;  %v1814_v44 = vld [vmem:[%s2126_s11 + $0x70] sm:$0xff]  ;;  %v1813_v48 = vld [vmem:[%s2126_s11 + $0x68] sm:$0xff] }
  0x5a   : > { %v1823_v41 = vld [vmem:[%s2126_s11 + $0xb8] sm:$0xff]  ;;  %976 = vmatpush.bf16.msra.mxu1 %v1815_v40  ;;  %v1822_v45 = vld [vmem:[%s2126_s11 + $0xb0] sm:$0xff]  ;;  %v1821_v49 = vld [vmem:[%s2126_s11 + $0xa8] sm:$0xff] }
  0x5b   : > { %v1831_v42 = vld [vmem:[%s2126_s11 + $0xf8] sm:$0xff]  ;;  %1034 = vmatpush.bf16.msra.mxu2 %v1823_v41  ;;  %v1830_v46 = vld [vmem:[%s2126_s11 + $0xf0] sm:$0xff]  ;;  %v1829_v50 = vld [vmem:[%s2126_s11 + $0xe8] sm:$0xff] }
  0x5c   : > { %1092 = vmatpush.bf16.msra.mxu3 %v1831_v42  ;;  %v1804_v51 = vld [vmem:[%s2126_s11 + $0x20] sm:$0xff]  ;;  %v1803_v55 = vld [vmem:[%s2126_s11 + $0x18] sm:$0xff]  ;;  %v1802_v59 = vld [vmem:[%s2126_s11 + $0x10] sm:$0xff] }
  0x5d   : > { %919 = vmatpush.bf16.msra.mxu0 %v1806_v43  ;;  %v1812_v52 = vld [vmem:[%s2126_s11 + $0x60] sm:$0xff]  ;;  %v1811_v56 = vld [vmem:[%s2126_s11 + $0x58] sm:$0xff]  ;;  %v1810_v60 = vld [vmem:[%s2126_s11 + $0x50] sm:$0xff] }
  0x5e   : > { %977 = vmatpush.bf16.msra.mxu1 %v1814_v44  ;;  %v1820_v53 = vld [vmem:[%s2126_s11 + $0xa0] sm:$0xff]  ;;  %v1819_v57 = vld [vmem:[%s2126_s11 + $0x98] sm:$0xff]  ;;  %v1818_v61 = vld [vmem:[%s2126_s11 + $0x90] sm:$0xff] }
  0x5f   : > { %1035 = vmatpush.bf16.msra.mxu2 %v1822_v45  ;;  %v1828_v54 = vld [vmem:[%s2126_s11 + $0xe0] sm:$0xff]  ;;  %v1827_v58 = vld [vmem:[%s2126_s11 + $0xd8] sm:$0xff]  ;;  %v1826_v62 = vld [vmem:[%s2126_s11 + $0xd0] sm:$0xff] }
  0x60   : > { %1093 = vmatpush.bf16.msra.mxu3 %v1830_v46  ;;  %v1801_v63 = vld [vmem:[%s2126_s11 + $0x8] sm:$0xff]  ;;  %v1800_v3 = vld [vmem:[%s2126_s11] sm:$0xff] }
  0x61   : > { %920 = vmatpush.bf16.msra.mxu0 %v1805_v47  ;;  %v1809_v0 = vld [vmem:[%s2126_s11 + $0x48] sm:$0xff]  ;;  %v1808_v4 = vld [vmem:[%s2126_s11 + $0x40] sm:$0xff] }
  0x62   : > { %978 = vmatpush.bf16.msra.mxu1 %v1813_v48  ;;  %v1817_v1 = vld [vmem:[%s2126_s11 + $0x88] sm:$0xff]  ;;  %v1816_v5 = vld [vmem:[%s2126_s11 + $0x80] sm:$0xff] }
  0x63   : > { %1036 = vmatpush.bf16.msra.mxu2 %v1821_v49  ;;  %v1825_v2 = vld [vmem:[%s2126_s11 + $0xc8] sm:$0xff]  ;;  %v1824_v6 = vld [vmem:[%s2126_s11 + $0xc0] sm:$0xff] }
  0x64   : > { %1094 = vmatpush.bf16.msra.mxu3 %v1829_v50  ;;  %v1488_v7 = vld [vmem:[%s2128_s12] sm:$0xf]  ;;  %v1766_v8 = vld [vmem:[%s2128_s12 + $0xc] sm:$0xf0]  ;;  %v1764_v9 = vld [vmem:[%s2128_s12 + $0x4] sm:$0xf] }
  0x65   : > { %921 = vmatpush.bf16.msra.mxu0 %v1804_v51  ;;  %v1490_v10 = vld [vmem:[%s2128_s12 + $0x10] sm:$0xf0]  ;;  %v1496_v11 = vld [vmem:[%s2128_s12 + $0x8] sm:$0xf]  ;;  %v1767_v12 = vld [vmem:[%s2128_s12 + $0x14] sm:$0xf0]  ;;  %v1489_v15 = vor.u32 %v1766_v8, %v1488_v7 }
  0x66   : > { %979 = vmatpush.bf16.msra.mxu1 %v1812_v52  ;;  %v1765_v13 = vld [vmem:[%s2128_s12 + $0xc] sm:$0xf]  ;;  %v1498_v14 = vld [vmem:[%s2128_s12 + $0x18] sm:$0xf0]  ;;  %v1493_v16 = vor.u32 %v1764_v9, %v1490_v10  ;;  %v1497_v17 = vor.u32 %v1767_v12, %v1496_v11  ;;  %v1504_v19 = vld [vmem:[%s2128_s12 + $0x20] sm:$0xf] }
  0x67   : > { %1037 = vmatpush.bf16.msra.mxu2 %v1820_v53  ;;  %v1501_v18 = vor.u32 %v1765_v13, %v1498_v14  ;;  %v1770_v20 = vld [vmem:[%s2128_s12 + $0x2c] sm:$0xf0]  ;;  %v1768_v21 = vld [vmem:[%s2128_s12 + $0x24] sm:$0xf]  ;;  %v1506_v22 = vld [vmem:[%s2128_s12 + $0x30] sm:$0xf0] }
  0x68   : > { %1095 = vmatpush.bf16.msra.mxu3 %v1828_v54  ;;  %v1512_v23 = vld [vmem:[%s2128_s12 + $0x28] sm:$0xf]  ;;  %v1771_v24 = vld [vmem:[%s2128_s12 + $0x34] sm:$0xf0]  ;;  %v1769_v25 = vld [vmem:[%s2128_s12 + $0x2c] sm:$0xf]  ;;  %v1505_v27 = vor.u32 %v1770_v20, %v1504_v19  ;;  %v1509_v28 = vor.u32 %v1768_v21, %v1506_v22 }
  0x69   : > { %922 = vmatpush.bf16.msra.mxu0 %v1803_v55  ;;  %v1514_v26 = vld [vmem:[%s2128_s12 + $0x38] sm:$0xf0]  ;;  %v1513_v29 = vor.u32 %v1771_v24, %v1512_v23  ;;  %v1520_v31 = vld [vmem:[%s2128_s12 + $0x40] sm:$0xf]  ;;  %v1774_v32 = vld [vmem:[%s2128_s12 + $0x4c] sm:$0xf0] }
  0x6a   : > { %980 = vmatpush.bf16.msra.mxu1 %v1811_v56  ;;  %v1517_v30 = vor.u32 %v1769_v25, %v1514_v26  ;;  %v1772_v33 = vld [vmem:[%s2128_s12 + $0x44] sm:$0xf]  ;;  %v1522_v34 = vld [vmem:[%s2128_s12 + $0x50] sm:$0xf0]  ;;  %v1528_v35 = vld [vmem:[%s2128_s12 + $0x48] sm:$0xf]  ;;  %v1521_v39 = vor.u32 %v1774_v32, %v1520_v31 }
  0x6b   : > { %1038 = vmatpush.bf16.msra.mxu2 %v1819_v57  ;;  %v1775_v36 = vld [vmem:[%s2128_s12 + $0x54] sm:$0xf0]  ;;  %v1773_v37 = vld [vmem:[%s2128_s12 + $0x4c] sm:$0xf]  ;;  %v1530_v38 = vld [vmem:[%s2128_s12 + $0x58] sm:$0xf0]  ;;  %v1525_v40 = vor.u32 %v1772_v33, %v1522_v34 }
  0x6c   : > { %1096 = vmatpush.bf16.msra.mxu3 %v1827_v58  ;;  %v1529_v41 = vor.u32 %v1775_v36, %v1528_v35  ;;  %v1533_v42 = vor.u32 %v1773_v37, %v1530_v38  ;;  %v1536_v43 = vld [vmem:[%s2128_s12 + $0x60] sm:$0xf]  ;;  %v1778_v44 = vld [vmem:[%s2128_s12 + $0x6c] sm:$0xf0]  ;;  %v1776_v45 = vld [vmem:[%s2128_s12 + $0x64] sm:$0xf] }
  0x6d   : > { %923 = vmatpush.bf16.msra.mxu0 %v1802_v59  ;;  %v1538_v46 = vld [vmem:[%s2128_s12 + $0x70] sm:$0xf0]  ;;  %v1544_v47 = vld [vmem:[%s2128_s12 + $0x68] sm:$0xf]  ;;  %v1779_v48 = vld [vmem:[%s2128_s12 + $0x74] sm:$0xf0]  ;;  %v1537_v51 = vor.u32 %v1778_v44, %v1536_v43 }
  0x6e   : > { %981 = vmatpush.bf16.msra.mxu1 %v1810_v60  ;;  %v1777_v49 = vld [vmem:[%s2128_s12 + $0x6c] sm:$0xf]  ;;  %v1546_v50 = vld [vmem:[%s2128_s12 + $0x78] sm:$0xf0]  ;;  %v1541_v52 = vor.u32 %v1776_v45, %v1538_v46  ;;  %v1545_v53 = vor.u32 %v1779_v48, %v1544_v47  ;;  %v1552_v55 = vld [vmem:[%s2128_s12 + $0x80] sm:$0xf] }
  0x6f   : > { %1039 = vmatpush.bf16.msra.mxu2 %v1818_v61  ;;  %v1549_v54 = vor.u32 %v1777_v49, %v1546_v50  ;;  %v1782_v56 = vld [vmem:[%s2128_s12 + $0x8c] sm:$0xf0]  ;;  %v1780_v57 = vld [vmem:[%s2128_s12 + $0x84] sm:$0xf]  ;;  %v1554_v58 = vld [vmem:[%s2128_s12 + $0x90] sm:$0xf0] }
  0x70   : > { %1097 = vmatpush.bf16.msra.mxu3 %v1826_v62  ;;  %v1560_v59 = vld [vmem:[%s2128_s12 + $0x88] sm:$0xf]  ;;  %v1783_v60 = vld [vmem:[%s2128_s12 + $0x94] sm:$0xf0]  ;;  %v1781_v61 = vld [vmem:[%s2128_s12 + $0x8c] sm:$0xf] }
  0x71   : > { %924 = vmatpush.bf16.msra.mxu0 %v1801_v63  ;;  %v1562_v62 = vld [vmem:[%s2128_s12 + $0x98] sm:$0xf0]  ;;  %v1553_v63 = vor.u32 %v1782_v56, %v1552_v55  ;;  %v1576_v7 = vld [vmem:[%s2128_s12 + $0xa8] sm:$0xf]  ;;  %v1787_v8 = vld [vmem:[%s2128_s12 + $0xb4] sm:$0xf0] }
  0x72   : > { %982 = vmatpush.bf16.msra.mxu1 %v1809_v0  ;;  %v1557_v0 = vor.u32 %v1780_v57, %v1554_v58  ;;  %v1785_v9 = vld [vmem:[%s2128_s12 + $0xac] sm:$0xf]  ;;  %v1578_v10 = vld [vmem:[%s2128_s12 + $0xb8] sm:$0xf0]  ;;  %v1577_v13 = vor.u32 %v1787_v8, %v1576_v7  ;;  %v1592_v19 = vld [vmem:[%s2128_s12 + $0xc8] sm:$0xf] }
  0x73   : > { %1040 = vmatpush.bf16.msra.mxu2 %v1817_v1  ;;  %v1561_v1 = vor.u32 %v1783_v60, %v1560_v59  ;;  %v1581_v14 = vor.u32 %v1785_v9, %v1578_v10  ;;  %v1791_v20 = vld [vmem:[%s2128_s12 + $0xd4] sm:$0xf0]  ;;  %v1789_v21 = vld [vmem:[%s2128_s12 + $0xcc] sm:$0xf]  ;;  %v1594_v22 = vld [vmem:[%s2128_s12 + $0xd8] sm:$0xf0] }
  0x74   : > { %1098 = vmatpush.bf16.msra.mxu3 %v1825_v2  ;;  %v1565_v2 = vor.u32 %v1781_v61, %v1562_v62  ;;  %v1593_v25 = vor.u32 %v1791_v20, %v1592_v19  ;;  %v1597_v26 = vor.u32 %v1789_v21, %v1594_v22  ;;  %v1608_v31 = vld [vmem:[%s2128_s12 + $0xe8] sm:$0xf]  ;;  %v1795_v32 = vld [vmem:[%s2128_s12 + $0xf4] sm:$0xf0]  ;;  %v1793_v33 = vld [vmem:[%s2128_s12 + $0xec] sm:$0xf] }
  0x75   : > { %925 = vmatpush.bf16.msra.mxu0 %v1800_v3  ;;  %v1568_v3 = vld [vmem:[%s2128_s12 + $0xa0] sm:$0xf]  ;;  %v1610_v34 = vld [vmem:[%s2128_s12 + $0xf8] sm:$0xf0]  ;;  %v1609_v37 = vor.u32 %v1795_v32, %v1608_v31  ;;  %v1624_v43 = vld [vmem:[%s2128_s12 + $0x108] sm:$0xf] }
  0x76   : > { %983 = vmatpush.bf16.msra.mxu1 %v1808_v4  ;;  %v1786_v4 = vld [vmem:[%s2128_s12 + $0xac] sm:$0xf0]  ;;  %v1613_v38 = vor.u32 %v1793_v33, %v1610_v34  ;;  %v1799_v44 = vld [vmem:[%s2128_s12 + $0x114] sm:$0xf0]  ;;  %v1797_v45 = vld [vmem:[%s2128_s12 + $0x10c] sm:$0xf] }
  0x77   : > { %1041 = vmatpush.bf16.msra.mxu2 %v1816_v5  ;;  %v1784_v5 = vld [vmem:[%s2128_s12 + $0xa4] sm:$0xf]  ;;  %v1569_v11 = vor.u32 %v1786_v4, %v1568_v3  ;;  %v1626_v46 = vld [vmem:[%s2128_s12 + $0x118] sm:$0xf0]  ;;  %v467_v61 = vld [vmem:[%s2128_s12 + $0x128] sm:$0xff] }
  0x78   : > { %1099 = vmatpush.bf16.msra.mxu3 %v1824_v6  ;;  %926 = vmatmul.bf16.vlgmr.msra.gmra.mxu0 %v1489_v15  ;;  %v1570_v6 = vld [vmem:[%s2128_s12 + $0xb0] sm:$0xf0]  ;;  %v1584_v15 = vld [vmem:[%s2128_s12 + $0xc0] sm:$0xf]  ;;  %v411_v60 = vld [vmem:[#allocation2] sm:$0xff]  ;;  %v645_v3 = vunpack.c.h.b16 %v467_v61 }
  0x79   : > { %984 = vmatmul.bf16.vlgmr.msra.gmra.mxu1 %v1493_v16  ;;  %v1573_v12 = vor.u32 %v1784_v5, %v1570_v6  ;;  %v1790_v16 = vld [vmem:[%s2128_s12 + $0xcc] sm:$0xf0]  ;;  %v466_v59 = vld [vmem:[%s2128_s12 + $0x120] sm:$0xff] }
  0x7a   : > { %1042 = vmatmul.bf16.vlgmr.msra.gmra.mxu2 %v1497_v17  ;;  %v1788_v17 = vld [vmem:[%s2128_s12 + $0xc4] sm:$0xf]  ;;  %v1585_v23 = vor.u32 %v1790_v16, %v1584_v15 }
  0x7b   : > { %1100 = vmatmul.bf16.vlgmr.msra.gmra.mxu3 %v1501_v18  ;;  %v1586_v18 = vld [vmem:[%s2128_s12 + $0xd0] sm:$0xf0] }
  0x7c   : > { %v1589_v24 = vor.u32 %v1788_v17, %v1586_v18  ;;  %v414_v32 = vld [vmem:[#allocation2 + $0x18] sm:$0xff] }
  0x88   : > { %931 = vmatmul.bf16.gmra.mxu0 %v1505_v27  ;;  %v1600_v27 = vld [vmem:[%s2128_s12 + $0xe0] sm:$0xf] }
  0x89   : > { %989 = vmatmul.bf16.gmra.mxu1 %v1509_v28  ;;  %v1794_v28 = vld [vmem:[%s2128_s12 + $0xec] sm:$0xf0] }
  0x8a   : > { %1047 = vmatmul.bf16.gmra.mxu2 %v1513_v29  ;;  %v1792_v29 = vld [vmem:[%s2128_s12 + $0xe4] sm:$0xf]  ;;  %v1601_v35 = vor.u32 %v1794_v28, %v1600_v27 }
  0x8b   : > { %1105 = vmatmul.bf16.gmra.mxu3 %v1517_v30  ;;  %v1602_v30 = vld [vmem:[%s2128_s12 + $0xf0] sm:$0xf0] }
  0x8c   : > { %v1605_v36 = vor.u32 %v1792_v29, %v1602_v30 }
  0x98   : > { %936 = vmatmul.bf16.gmra.mxu0 %v1521_v39  ;;  %v1616_v39 = vld [vmem:[%s2128_s12 + $0x100] sm:$0xf] }
  0x99   : > { %994 = vmatmul.bf16.gmra.mxu1 %v1525_v40  ;;  %v1798_v40 = vld [vmem:[%s2128_s12 + $0x10c] sm:$0xf0] }
  0x9a   : > { %1052 = vmatmul.bf16.gmra.mxu2 %v1529_v41  ;;  %v1796_v41 = vld [vmem:[%s2128_s12 + $0x104] sm:$0xf]  ;;  %v1617_v47 = vor.u32 %v1798_v40, %v1616_v39 }
  0x9b   : > { %1110 = vmatmul.bf16.gmra.mxu3 %v1533_v42  ;;  %v1618_v42 = vld [vmem:[%s2128_s12 + $0x110] sm:$0xf0] }
  0x9c   : > { %v1621_v48 = vor.u32 %v1796_v41, %v1618_v42  ;;  %v415_v41 = vld [vmem:[#allocation2 + $0x30] sm:$0xff] }
  0xa8   : > { %941 = vmatmul.bf16.gmra.mxu0 %v1537_v51  ;;  %v1625_v51 = vor.u32 %v1799_v44, %v1624_v43 }
  0xa9   : > { %999 = vmatmul.bf16.gmra.mxu1 %v1541_v52  ;;  %v1629_v52 = vor.u32 %v1797_v45, %v1626_v46 }
  0xaa   : > { %1057 = vmatmul.bf16.gmra.mxu2 %v1545_v53 }
  0xab   : > { %1115 = vmatmul.bf16.gmra.mxu3 %v1549_v54 }
  0xb8   : > { %946 = vmatmul.bf16.gmra.mxu0 %v1553_v63  ;;  %v642_v63 = vunpack.c.l.b16 %v466_v59 }
  0xb9   : > { %1004 = vmatmul.bf16.gmra.mxu1 %v1557_v0  ;;  %v643_v0 = vunpack.c.h.b16 %v466_v59  ;;  %v417_v59 = vld [vmem:[#allocation2 + $0x78] sm:$0xff] }
  0xba   : > { %1062 = vmatmul.bf16.gmra.mxu2 %v1561_v1  ;;  %v682_v7 = vpack.c.b16 %v642_v63, %v642_v63 }
  0xbb   : > { %1120 = vmatmul.bf16.gmra.mxu3 %v1565_v2  ;;  %v644_v2 = vunpack.c.l.b16 %v467_v61  ;;  %v683_v8 = vpack.c.b16 %v643_v0, %v643_v0 }
  0xc8   : > { %951 = vmatmul.bf16.gmra.mxu0 %v1569_v11 }
  0xc9   : > { %1009 = vmatmul.bf16.gmra.mxu1 %v1573_v12  ;;  %v684_v12 = vpack.c.b16 %v644_v2, %v644_v2 }
  0xca   : > { %1067 = vmatmul.bf16.gmra.mxu2 %v1577_v13  ;;  %v685_v13 = vpack.c.b16 %v645_v3, %v645_v3 }
  0xcb   : > { %1125 = vmatmul.bf16.gmra.mxu3 %v1581_v14  ;;  %v412_v14 = vld [vmem:[#allocation2 + $0x38] sm:$0xff] }
  0xd8   : > { %956 = vmatmul.bf16.gmra.mxu0 %v1585_v23  ;;  %v413_v23 = vld [vmem:[#allocation2 + $0x50] sm:$0xff] }
  0xd9   : > { %1014 = vmatmul.bf16.gmra.mxu1 %v1589_v24 }
  0xda   : > { %1072 = vmatmul.bf16.gmra.mxu2 %v1593_v25 }
  0xdb   : > { %1130 = vmatmul.bf16.gmra.mxu3 %v1597_v26 }
  0xe8   : > { %961 = vmatmul.bf16.gmra.mxu0 %v1601_v35 }
  0xe9   : > { %1019 = vmatmul.bf16.gmra.mxu1 %v1605_v36 }
  0xea   : > { %1077 = vmatmul.bf16.gmra.mxu2 %v1609_v37 }
  0xeb   : > { %1135 = vmatmul.bf16.gmra.mxu3 %v1613_v38 }
  0xf5   : > { %v927_v49 = vpop.f32.mrf.mxu0 }
  0xf6   : > { %v985_v50 = vpop.f32.mrf.mxu1 }
  0xf7   : > { %v986_v53 = vadd.f32 %v985_v50, %v927_v49  ;;  %v416_v50 = vld [vmem:[#allocation2 + $0x68] sm:$0xff] }
  0xf8   : > { %966 = vmatmul.bf16.gmra.mxu0 %v1617_v47 }
  0xf9   : > { %1024 = vmatmul.bf16.gmra.mxu1 %v1621_v48 }
  0xfa   : > { %1082 = vmatmul.bf16.gmra.mxu2 %v1625_v51 }
  0xfb   : > { %1140 = vmatmul.bf16.gmra.mxu3 %v1629_v52 }
  0xfd   : > { %v1043_v54 = vpop.f32.mrf.mxu2  ;;  %v929_v57 = vpop.f32.mrf.mxu0 }
  0xfe   : > { %v1101_v55 = vpop.f32.mrf.mxu3  ;;  %v1044_v56 = vadd.f32 %v1043_v54, %v986_v53  ;;  %v987_v58 = vpop.f32.mrf.mxu1 }
  0xff   : > { %v988_v4 = vadd.f32 %v987_v58, %v929_v57 }
 0x100   : > { %v1102_v62 = vadd.f32 %v1101_v55, %v1044_v56 }
 0x102   : > { %v1150_v1 = vadd.f32 %v1102_v62, %v411_v60 }
 0x104   : > { %1169 = vst [vmem:[#allocation2] sm:$0xff] %v1150_v1 }
 0x105   : > { %v1045_v5 = vpop.f32.mrf.mxu2  ;;  %v932_v10 = vpop.f32.mrf.mxu0 }
 0x106   : > { %v1103_v6 = vpop.f32.mrf.mxu3  ;;  %v1046_v9 = vadd.f32 %v1045_v5, %v988_v4  ;;  %v990_v11 = vpop.f32.mrf.mxu1  ;;  %v418_v4 = vld [vmem:[#allocation2 + $0x80] sm:$0xff] }
 0x107   : > { %v991_v17 = vadd.f32 %v990_v11, %v932_v10 }
 0x108   : > { %v1104_v15 = vadd.f32 %v1103_v6, %v1046_v9  ;;  %971 = vmatmul.bf16.gmra.mxu0 %v682_v7 }
 0x109   : > { %1029 = vmatmul.bf16.gmra.mxu1 %v683_v8 }
 0x10a   : > { %v1151_v16 = vadd.f32 %v1104_v15, %v412_v14  ;;  %1087 = vmatmul.bf16.gmra.mxu2 %v684_v12 }
 0x10b   : > { %1145 = vmatmul.bf16.gmra.mxu3 %v685_v13  ;;  %v419_v13 = vld [vmem:[#allocation2 + $0x8] sm:$0xff] }
 0x10c   : > { %1170 = vst [vmem:[#allocation2 + $0x38] sm:$0xff] %v1151_v16 }
 0x10d   : > { %v1048_v18 = vpop.f32.mrf.mxu2  ;;  %v934_v21 = vpop.f32.mrf.mxu0 }
 0x10e   : > { %v1106_v19 = vpop.f32.mrf.mxu3  ;;  %v1049_v20 = vadd.f32 %v1048_v18, %v991_v17  ;;  %v992_v22 = vpop.f32.mrf.mxu1 }
 0x10f   : > { %v993_v26 = vadd.f32 %v992_v22, %v934_v21  ;;  %v420_v22 = vld [vmem:[#allocation2 + $0x88] sm:$0xff] }
 0x110   : > { %v1107_v24 = vadd.f32 %v1106_v19, %v1049_v20 }
 0x112   : > { %v1152_v25 = vadd.f32 %v1107_v24, %v413_v23 }
 0x114   : > { %1171 = vst [vmem:[#allocation2 + $0x50] sm:$0xff] %v1152_v25 }
 0x115   : > { %v1050_v27 = vpop.f32.mrf.mxu2  ;;  %v937_v30 = vpop.f32.mrf.mxu0 }
 0x116   : > { %v1108_v28 = vpop.f32.mrf.mxu3  ;;  %v1051_v29 = vadd.f32 %v1050_v27, %v993_v26  ;;  %v995_v31 = vpop.f32.mrf.mxu1 }
 0x117   : > { %v996_v35 = vadd.f32 %v995_v31, %v937_v30  ;;  %v421_v31 = vld [vmem:[#allocation2 + $0x28] sm:$0xff] }
 0x118   : > { %v1109_v33 = vadd.f32 %v1108_v28, %v1051_v29 }
 0x11a   : > { %v1153_v34 = vadd.f32 %v1109_v33, %v414_v32 }
 0x11c   : > { %1172 = vst [vmem:[#allocation2 + $0x18] sm:$0xff] %v1153_v34 }
 0x11d   : > { %v1053_v36 = vpop.f32.mrf.mxu2  ;;  %v939_v39 = vpop.f32.mrf.mxu0 }
 0x11e   : > { %v1111_v37 = vpop.f32.mrf.mxu3  ;;  %v1054_v38 = vadd.f32 %v1053_v36, %v996_v35  ;;  %v997_v40 = vpop.f32.mrf.mxu1 }
 0x11f   : > { %v998_v44 = vadd.f32 %v997_v40, %v939_v39  ;;  %v422_v40 = vld [vmem:[#allocation2 + $0x40] sm:$0xff] }
 0x120   : > { %v1112_v42 = vadd.f32 %v1111_v37, %v1054_v38 }
 0x122   : > { %v1154_v43 = vadd.f32 %v1112_v42, %v415_v41 }
 0x124   : > { %1173 = vst [vmem:[#allocation2 + $0x30] sm:$0xff] %v1154_v43 }
 0x125   : > { %v1055_v45 = vpop.f32.mrf.mxu2  ;;  %v942_v48 = vpop.f32.mrf.mxu0 }
 0x126   : > { %v1113_v46 = vpop.f32.mrf.mxu3  ;;  %v1056_v47 = vadd.f32 %v1055_v45, %v998_v44  ;;  %v1000_v49 = vpop.f32.mrf.mxu1 }
 0x127   : > { %v1001_v53 = vadd.f32 %v1000_v49, %v942_v48  ;;  %v423_v49 = vld [vmem:[#allocation2 + $0x58] sm:$0xff] }
 0x128   : > { %v1114_v51 = vadd.f32 %v1113_v46, %v1056_v47 }
 0x12a   : > { %v1155_v52 = vadd.f32 %v1114_v51, %v416_v50 }
 0x12c   : > { %1174 = vst [vmem:[#allocation2 + $0x68] sm:$0xff] %v1155_v52 }
 0x12d   : > { %v1058_v54 = vpop.f32.mrf.mxu2  ;;  %v944_v57 = vpop.f32.mrf.mxu0 }
 0x12e   : > { %v1116_v55 = vpop.f32.mrf.mxu3  ;;  %v1059_v56 = vadd.f32 %v1058_v54, %v1001_v53  ;;  %v1002_v58 = vpop.f32.mrf.mxu1 }
 0x12f   : > { %v1003_v62 = vadd.f32 %v1002_v58, %v944_v57  ;;  %v424_v58 = vld [vmem:[#allocation2 + $0x10] sm:$0xff] }
 0x130   : > { %v1117_v60 = vadd.f32 %v1116_v55, %v1059_v56 }
 0x132   : > { %v1156_v61 = vadd.f32 %v1117_v60, %v417_v59 }
 0x134   : > { %1175 = vst [vmem:[#allocation2 + $0x78] sm:$0xff] %v1156_v61 }
 0x135   : > { %v1060_v63 = vpop.f32.mrf.mxu2  ;;  %v947_v2 = vpop.f32.mrf.mxu0 }
 0x136   : > { %v1118_v0 = vpop.f32.mrf.mxu3  ;;  %v1061_v1 = vadd.f32 %v1060_v63, %v1003_v62  ;;  %v1005_v3 = vpop.f32.mrf.mxu1 }
 0x137   : > { %v1006_v7 = vadd.f32 %v1005_v3, %v947_v2  ;;  %v425_v3 = vld [vmem:[#allocation2 + $0x20] sm:$0xff] }
 0x138   : > { %v1119_v5 = vadd.f32 %v1118_v0, %v1061_v1 }
 0x13a   : > { %v1157_v6 = vadd.f32 %v1119_v5, %v418_v4 }
 0x13c   : > { %1176 = vst [vmem:[#allocation2 + $0x80] sm:$0xff] %v1157_v6 }
 0x13d   : > { %v1063_v8 = vpop.f32.mrf.mxu2  ;;  %v949_v11 = vpop.f32.mrf.mxu0 }
 0x13e   : > { %v1121_v9 = vpop.f32.mrf.mxu3  ;;  %v1064_v10 = vadd.f32 %v1063_v8, %v1006_v7  ;;  %v1007_v12 = vpop.f32.mrf.mxu1 }
 0x13f   : > { %v1008_v16 = vadd.f32 %v1007_v12, %v949_v11  ;;  %v426_v12 = vld [vmem:[#allocation2 + $0x70] sm:$0xff] }
 0x140   : > { %v1122_v14 = vadd.f32 %v1121_v9, %v1064_v10 }
 0x142   : > { %v1158_v15 = vadd.f32 %v1122_v14, %v419_v13 }
 0x144   : > { %1177 = vst [vmem:[#allocation2 + $0x8] sm:$0xff] %v1158_v15 }
 0x145   : > { %v1065_v17 = vpop.f32.mrf.mxu2  ;;  %v952_v20 = vpop.f32.mrf.mxu0 }
 0x146   : > { %v1123_v18 = vpop.f32.mrf.mxu3  ;;  %v1066_v19 = vadd.f32 %v1065_v17, %v1008_v16  ;;  %v1010_v21 = vpop.f32.mrf.mxu1 }
 0x147   : > { %v1011_v25 = vadd.f32 %v1010_v21, %v952_v20  ;;  %v427_v21 = vld [vmem:[#allocation2 + $0x60] sm:$0xff] }
 0x148   : > { %v1124_v23 = vadd.f32 %v1123_v18, %v1066_v19 }
 0x14a   : > { %v1159_v24 = vadd.f32 %v1124_v23, %v420_v22 }
 0x14c   : > { %1178 = vst [vmem:[#allocation2 + $0x88] sm:$0xff] %v1159_v24 }
 0x14d   : > { %v1068_v26 = vpop.f32.mrf.mxu2  ;;  %v954_v29 = vpop.f32.mrf.mxu0 }
 0x14e   : > { %v1126_v27 = vpop.f32.mrf.mxu3  ;;  %v1069_v28 = vadd.f32 %v1068_v26, %v1011_v25  ;;  %v1012_v30 = vpop.f32.mrf.mxu1 }
 0x14f   : > { %v1013_v34 = vadd.f32 %v1012_v30, %v954_v29  ;;  %v428_v30 = vld [vmem:[#allocation2 + $0x90] sm:$0xff] }
 0x150   : > { %v1127_v32 = vadd.f32 %v1126_v27, %v1069_v28 }
 0x152   : > { %v1160_v33 = vadd.f32 %v1127_v32, %v421_v31 }
 0x154   : > { %1179 = vst [vmem:[#allocation2 + $0x28] sm:$0xff] %v1160_v33 }
 0x155   : > { %v1070_v35 = vpop.f32.mrf.mxu2  ;;  %v957_v38 = vpop.f32.mrf.mxu0 }
 0x156   : > { %v1128_v36 = vpop.f32.mrf.mxu3  ;;  %v1071_v37 = vadd.f32 %v1070_v35, %v1013_v34  ;;  %v1015_v39 = vpop.f32.mrf.mxu1 }
 0x157   : > { %v1016_v43 = vadd.f32 %v1015_v39, %v957_v38  ;;  %v429_v39 = vld [vmem:[#allocation2 + $0x48] sm:$0xff] }
 0x158   : > { %v1129_v41 = vadd.f32 %v1128_v36, %v1071_v37 }
 0x15a   : > { %v1161_v42 = vadd.f32 %v1129_v41, %v422_v40 }
 0x15c   : > { %1180 = vst [vmem:[#allocation2 + $0x40] sm:$0xff] %v1161_v42 }
 0x15d   : > { %v1073_v44 = vpop.f32.mrf.mxu2  ;;  %v959_v47 = vpop.f32.mrf.mxu0 }
 0x15e   : > { %v1131_v45 = vpop.f32.mrf.mxu3  ;;  %v1074_v46 = vadd.f32 %v1073_v44, %v1016_v43  ;;  %v1017_v48 = vpop.f32.mrf.mxu1 }
 0x15f   : > { %v1018_v52 = vadd.f32 %v1017_v48, %v959_v47 }
 0x160   : > { %v1132_v50 = vadd.f32 %v1131_v45, %v1074_v46 }
 0x162   : > { %v1162_v51 = vadd.f32 %v1132_v50, %v423_v49 }
 0x164   : > { %1181 = vst [vmem:[#allocation2 + $0x58] sm:$0xff] %v1162_v51 }
 0x165   : > { %v1075_v53 = vpop.f32.mrf.mxu2  ;;  %v962_v56 = vpop.f32.mrf.mxu0 }
 0x166   : > { %v1133_v54 = vpop.f32.mrf.mxu3  ;;  %v1076_v55 = vadd.f32 %v1075_v53, %v1018_v52  ;;  %v1020_v57 = vpop.f32.mrf.mxu1 }
 0x167   : > { %v1021_v61 = vadd.f32 %v1020_v57, %v962_v56 }
 0x168   : > { %v1134_v59 = vadd.f32 %v1133_v54, %v1076_v55 }
 0x16a   : > { %v1163_v60 = vadd.f32 %v1134_v59, %v424_v58 }
 0x16c   : > { %1182 = vst [vmem:[#allocation2 + $0x10] sm:$0xff] %v1163_v60 }
 0x16d   : > { %v1078_v62 = vpop.f32.mrf.mxu2  ;;  %v964_v1 = vpop.f32.mrf.mxu0 }
 0x16e   : > { %v1136_v63 = vpop.f32.mrf.mxu3  ;;  %v1079_v0 = vadd.f32 %v1078_v62, %v1021_v61  ;;  %v1022_v2 = vpop.f32.mrf.mxu1 }
 0x16f   : > { %v1023_v6 = vadd.f32 %v1022_v2, %v964_v1 }
 0x170   : > { %v1137_v4 = vadd.f32 %v1136_v63, %v1079_v0 }
 0x172   : > { %v1164_v5 = vadd.f32 %v1137_v4, %v425_v3 }
 0x174   : > { %1183 = vst [vmem:[#allocation2 + $0x20] sm:$0xff] %v1164_v5 }
 0x175   : > { %v1080_v7 = vpop.f32.mrf.mxu2  ;;  %v967_v10 = vpop.f32.mrf.mxu0 }
 0x176   : > { %v1138_v8 = vpop.f32.mrf.mxu3  ;;  %v1081_v9 = vadd.f32 %v1080_v7, %v1023_v6  ;;  %v1025_v11 = vpop.f32.mrf.mxu1 }
 0x177   : > { %v1026_v15 = vadd.f32 %v1025_v11, %v967_v10 }
 0x178   : > { %v1139_v13 = vadd.f32 %v1138_v8, %v1081_v9 }
 0x17a   : > { %v1165_v14 = vadd.f32 %v1139_v13, %v426_v12 }
 0x17c   : > { %1184 = vst [vmem:[#allocation2 + $0x70] sm:$0xff] %v1165_v14 }
 0x17d   : > { %v1083_v16 = vpop.f32.mrf.mxu2  ;;  %v969_v19 = vpop.f32.mrf.mxu0 }
 0x17e   : > { %v1141_v17 = vpop.f32.mrf.mxu3  ;;  %v1084_v18 = vadd.f32 %v1083_v16, %v1026_v15  ;;  %v1027_v20 = vpop.f32.mrf.mxu1 }
 0x17f   : > { %v1028_v24 = vadd.f32 %v1027_v20, %v969_v19 }
 0x180   : > { %v1142_v22 = vadd.f32 %v1141_v17, %v1084_v18 }
 0x182   : > { %v1166_v23 = vadd.f32 %v1142_v22, %v427_v21 }
 0x184   : > { %1185 = vst [vmem:[#allocation2 + $0x60] sm:$0xff] %v1166_v23 }
 0x185   : > { %v1085_v25 = vpop.f32.mrf.mxu2  ;;  %v972_v28 = vpop.f32.mrf.mxu0 }
 0x186   : > { %v1143_v26 = vpop.f32.mrf.mxu3  ;;  %v1086_v27 = vadd.f32 %v1085_v25, %v1028_v24  ;;  %v1030_v29 = vpop.f32.mrf.mxu1 }
 0x187   : > { %v1031_v33 = vadd.f32 %v1030_v29, %v972_v28 }
 0x188   : > { %v1144_v31 = vadd.f32 %v1143_v26, %v1086_v27 }
 0x18a   : > { %v1167_v32 = vadd.f32 %v1144_v31, %v428_v30 }
 0x18c   : > { %1186 = vst [vmem:[#allocation2 + $0x90] sm:$0xff] %v1167_v32 }
 0x18d   : > { %v1088_v34 = vpop.f32.mrf.mxu2  ;;  %v974_v37 = vpop.f32.mrf.mxu0 }
 0x18e   : > { %v1146_v35 = vpop.f32.mrf.mxu3  ;;  %v1089_v36 = vadd.f32 %v1088_v34, %v1031_v33  ;;  %v1032_v38 = vpop.f32.mrf.mxu1 }
 0x190   : > { %v1147_v40 = vadd.f32 %v1146_v35, %v1089_v36 }
 0x192   : > { %v1168_v41 = vadd.f32 %v1147_v40, %v429_v39  ;;  %1191 = sbr.rel (%p1758_p11) target bundleno = 441 (0x1b9), region = 67 }
 0x194   : > { %1187 = vst [vmem:[#allocation2 + $0x48] sm:$0xff] %v1168_v41 }
 0x195   : > { %v1090_v42 = vpop.f32.mrf.mxu2 }
 0x196   : > { %v1148_v43 = vpop.f32.mrf.mxu3 }
 0x197   : > { %v1192_v44 = vld [vmem:[#allocation2] sm:$0xff]  ;;  %v1193_v45 = vld [vmem:[#allocation2 + $0x38] sm:$0xff]  ;;  %v1194_v48 = vld [vmem:[#allocation2 + $0x50] sm:$0xff] }
 0x198   : > { %v2241_v46 = vld [vmem:[%s2334_s2] ss:$0 sm:$0xff]  ;;  %v1195_v49 = vld [vmem:[#allocation2 + $0x18] sm:$0xff]  ;;  %v1196_v50 = vld [vmem:[#allocation2 + $0x30] sm:$0xff] }
 0x199   : > { %v2246_v47 = vld [vmem:[%s2335_s3] ss:$0 sm:$0xff]  ;;  %v1215_v51 = vmul.f32 %v2241_v46, %v1192_v44  ;;  %v1216_v52 = vmul.f32 %v2241_v46, %v1193_v45  ;;  %v1217_v53 = vmul.f32 %v2241_v46, %v1194_v48  ;;  %v1218_v54 = vmul.f32 %v2241_v46, %v1195_v49  ;;  %v1197_v55 = vld [vmem:[#allocation2 + $0x68] sm:$0xff]  ;;  %v1198_v56 = vld [vmem:[#allocation2 + $0x78] sm:$0xff] }
 0x19a   : > { %v1199_v57 = vld [vmem:[#allocation2 + $0x80] sm:$0xff]  ;;  %v1219_v58 = vmul.f32 %v2241_v46, %v1196_v50  ;;  %v1220_v59 = vmul.f32 %v2241_v46, %v1197_v55  ;;  %v1221_v60 = vmul.f32 %v2241_v46, %v1198_v56  ;;  %v1200_v12 = vld [vmem:[#allocation2 + $0x8] sm:$0xff]  ;;  %v1204_v30 = vld [vmem:[#allocation2 + $0x58] sm:$0xff] }
 0x19b   : > { %v1222_v61 = vmul.f32 %v2241_v46, %v1199_v57  ;;  %v1238_v62 = vadd.f32 %v2246_v47, %v1215_v51  ;;  %v1239_v63 = vadd.f32 %v2246_v47, %v1216_v52  ;;  %v1240_v0 = vadd.f32 %v2246_v47, %v1217_v53  ;;  %v1201_v17 = vld [vmem:[#allocation2 + $0x88] sm:$0xff]  ;;  %v1203_v19 = vld [vmem:[#allocation2 + $0x40] sm:$0xff]  ;;  %v1205_v31 = vld [vmem:[#allocation2 + $0x10] sm:$0xff] }
 0x19c   : > { %v1241_v1 = vadd.f32 %v2246_v47, %v1218_v54  ;;  %v1242_v2 = vadd.f32 %v2246_v47, %v1219_v58  ;;  %v1243_v3 = vadd.f32 %v2246_v47, %v1220_v59  ;;  %v1244_v4 = vadd.f32 %v2246_v47, %v1221_v60  ;;  %v1202_v18 = vld [vmem:[#allocation2 + $0x28] sm:$0xff]  ;;  %v1206_v43 = vld [vmem:[#allocation2 + $0x20] sm:$0xff]  ;;  %v1207_v44 = vld [vmem:[#allocation2 + $0x70] sm:$0xff] }
 0x19d   : > { %v1245_v5 = vadd.f32 %v2246_v47, %v1222_v61  ;;  %vm1257_vm0 = vcmp.ge.f32.partialorder %v1238_v62, 0.0  ;;  %vm1258_vm1 = vcmp.ge.f32.partialorder %v1239_v63, 0.0  ;;  %v1276_v6 = vmul.f32 0.01, %v1238_v62  ;;  %v1208_v56 = vld [vmem:[#allocation2 + $0x60] sm:$0xff]  ;;  %v1209_v57 = vld [vmem:[#allocation2 + $0x90] sm:$0xff] }
 0x19e   : > { %v1277_v7 = vmul.f32 0.01, %v1239_v63  ;;  %vm1259_vm2 = vcmp.ge.f32.partialorder %v1240_v0, 0.0  ;;  %vm1260_vm3 = vcmp.ge.f32.partialorder %v1241_v1, 0.0  ;;  %v1278_v8 = vmul.f32 0.01, %v1240_v0 }
 0x19f   : > { %v1279_v9 = vmul.f32 0.01, %v1241_v1  ;;  %v1295_v10 = vsel %vm1257_vm0, %v1238_v62, %v1276_v6  ;;  %vm1261_vm4 = vcmp.ge.f32.partialorder %v1242_v2, 0.0  ;;  %vm1262_vm5 = vcmp.ge.f32.partialorder %v1243_v3, 0.0  ;;  %v1210_v61 = vld [vmem:[#allocation2 + $0x48] sm:$0xff] }
 0x1a0   : > { %v1296_v11 = vsel %vm1258_vm1, %v1239_v63, %v1277_v7  ;;  %v1297_v14 = vsel %vm1259_vm2, %v1240_v0, %v1278_v8  ;;  %v1280_v16 = vmul.f32 0.01, %v1242_v2  ;;  %v1281_v21 = vmul.f32 0.01, %v1243_v3 }
 0x1a1   : > { %v1835_v13 = vpack.c.bf16 %v1296_v11, %v1295_v10  ;;  %v1298_v15 = vsel %vm1260_vm3, %v1241_v1, %v1279_v9  ;;  %vm1263_vm6 = vcmp.ge.f32.partialorder %v1244_v4, 0.0  ;;  %vm1264_vm7 = vcmp.ge.f32.partialorder %v1245_v5, 0.0 }
 0x1a2   : > { %v1840_v20 = vpack.c.bf16 %v1298_v15, %v1297_v14  ;;  %v1299_v22 = vsel %vm1261_vm4, %v1242_v2, %v1280_v16  ;;  %v1282_v23 = vmul.f32 0.01, %v1244_v4  ;;  %v1283_v24 = vmul.f32 0.01, %v1245_v5 }
 0x1a3   : > { %1836 = vst [vmem:[%s2336_s4] sm:$0xff] %v1835_v13   ;;  %v1223_v25 = vmul.f32 %v2241_v46, %v1200_v12  ;;  %v1300_v26 = vsel %vm1262_vm5, %v1243_v3, %v1281_v21  ;;  %v1224_v27 = vmul.f32 %v2241_v46, %v1201_v17  ;;  %v1225_v28 = vmul.f32 %v2241_v46, %v1202_v18 }
 0x1a4   : > { %1877 = vst [vmem:[%s2336_s4 + $0x8] sm:$0xff] %v1840_v20   ;;  %v1226_v29 = vmul.f32 %v2241_v46, %v1203_v19  ;;  %v1845_v32 = vpack.c.bf16 %v1300_v26, %v1299_v22  ;;  %v1301_v33 = vsel %vm1263_vm6, %v1244_v4, %v1282_v23  ;;  %v1302_v34 = vsel %vm1264_vm7, %v1245_v5, %v1283_v24 }
 0x1a5   : > { %v1246_v35 = vadd.f32 %v2246_v47, %v1223_v25  ;;  %v1850_v36 = vpack.c.bf16 %v1302_v34, %v1301_v33  ;;  %v1247_v37 = vadd.f32 %v2246_v47, %v1224_v27  ;;  %v1248_v38 = vadd.f32 %v2246_v47, %v1225_v28 }
 0x1a6   : > { %v1249_v39 = vadd.f32 %v2246_v47, %v1226_v29  ;;  %1878 = vst [vmem:[%s2336_s4 + $0x10] sm:$0xff] %v1845_v32   ;;  %v1227_v41 = vmul.f32 %v2241_v46, %v1204_v30  ;;  %v1228_v42 = vmul.f32 %v2241_v46, %v1205_v31  ;;  %v1229_v54 = vmul.f32 %v2241_v46, %v1206_v43 }
 0x1a7   : > { %vm1265_vm8 = vcmp.ge.f32.partialorder %v1246_v35, 0.0  ;;  %v1284_v40 = vmul.f32 0.01, %v1246_v35  ;;  %1879 = vst [vmem:[%s2336_s4 + $0x18] sm:$0xff] %v1850_v36   ;;  %vm1266_vm9 = vcmp.ge.f32.partialorder %v1247_v37, 0.0  ;;  %vm1267_vm10 = vcmp.ge.f32.partialorder %v1248_v38, 0.0 }
 0x1a8   : > { %v1285_v45 = vmul.f32 0.01, %v1247_v37  ;;  %vm1268_vm11 = vcmp.ge.f32.partialorder %v1249_v39, 0.0  ;;  %v1286_v49 = vmul.f32 0.01, %v1248_v38  ;;  %v1250_v51 = vadd.f32 %v2246_v47, %v1227_v41 }
 0x1a9   : > { %v1303_v48 = vsel %vm1265_vm8, %v1246_v35, %v1284_v40  ;;  %v1287_v50 = vmul.f32 0.01, %v1249_v39  ;;  %v1251_v53 = vadd.f32 %v2246_v47, %v1228_v42  ;;  %v1230_v55 = vmul.f32 %v2241_v46, %v1207_v44 }
 0x1aa   : > { %v1304_v52 = vsel %vm1266_vm9, %v1247_v37, %v1285_v45  ;;  %v1305_v59 = vsel %vm1267_vm10, %v1248_v38, %v1286_v49  ;;  %vm1269_vm12 = vcmp.ge.f32.partialorder %v1250_v51, 0.0  ;;  %v1288_v63 = vmul.f32 0.01, %v1250_v51 }
 0x1ab   : > { %v1855_v58 = vpack.c.bf16 %v1304_v52, %v1303_v48  ;;  %v1306_v60 = vsel %vm1268_vm11, %v1249_v39, %v1287_v50  ;;  %vm1270_vm13 = vcmp.ge.f32.partialorder %v1251_v53, 0.0  ;;  %v1289_v0 = vmul.f32 0.01, %v1251_v53 }
 0x1ac   : > { %v1860_v62 = vpack.c.bf16 %v1306_v60, %v1305_v59  ;;  %v1252_v1 = vadd.f32 %v2246_v47, %v1229_v54  ;;  %v1253_v2 = vadd.f32 %v2246_v47, %v1230_v55  ;;  %v1231_v3 = vmul.f32 %v2241_v46, %v1208_v56 }
 0x1ad   : > { %1880 = vst [vmem:[%s2336_s4 + $0x20] sm:$0xff] %v1855_v58   ;;  %v1232_v4 = vmul.f32 %v2241_v46, %v1209_v57  ;;  %v1307_v5 = vsel %vm1269_vm12, %v1250_v51, %v1288_v63  ;;  %v1308_v6 = vsel %vm1270_vm13, %v1251_v53, %v1289_v0  ;;  %v1233_v7 = vmul.f32 %v2241_v46, %v1210_v61 }
 0x1ae   : > { %1881 = vst [vmem:[%s2336_s4 + $0x28] sm:$0xff] %v1860_v62   ;;  %v1865_v8 = vpack.c.bf16 %v1308_v6, %v1307_v5  ;;  %vm1271_vm14 = vcmp.ge.f32.partialorder %v1252_v1, 0.0  ;;  %vm1272_vm15 = vcmp.ge.f32.partialorder %v1253_v2, 0.0  ;;  %v1290_v9 = vmul.f32 0.01, %v1252_v1 }
 0x1af   : > { %v1291_v10 = vmul.f32 0.01, %v1253_v2  ;;  %v1254_v11 = vadd.f32 %v2246_v47, %v1231_v3  ;;  %v1255_v12 = vadd.f32 %v2246_v47, %v1232_v4  ;;  %v1256_v13 = vadd.f32 %v2246_v47, %v1233_v7 }
 0x1b0   : > { %1882 = vst [vmem:[%s2336_s4 + $0x30] sm:$0xff] %v1865_v8   ;;  %v1309_v14 = vsel %vm1271_vm14, %v1252_v1, %v1290_v9 }
 0x1b1   : > { %v1310_v15 = vsel %vm1272_vm15, %v1253_v2, %v1291_v10  ;;  %vm1273_vm0 = vcmp.ge.f32.partialorder %v1254_v11, 0.0  ;;  %vm1274_vm1 = vcmp.ge.f32.partialorder %v1255_v12, 0.0  ;;  %v1292_v46 = vmul.f32 0.01, %v1254_v11 }
 0x1b2   : > { %v1870_v16 = vpack.c.bf16 %v1310_v15, %v1309_v14  ;;  %v1293_v17 = vmul.f32 0.01, %v1255_v12  ;;  %vm1275_vm2 = vcmp.ge.f32.partialorder %v1256_v13, 0.0  ;;  %v1294_v18 = vmul.f32 0.01, %v1256_v13 }
 0x1b3   : > { %v1311_v19 = vsel %vm1273_vm0, %v1254_v11, %v1292_v46 }
 0x1b4   : > { %1883 = vst [vmem:[%s2336_s4 + $0x38] sm:$0xff] %v1870_v16   ;;  %v1312_v20 = vsel %vm1274_vm1, %v1255_v12, %v1293_v17  ;;  %v1313_v47 = vsel %vm1275_vm2, %v1256_v13, %v1294_v18 }
 0x1b5   : > { %v1875_v21 = vpack.c.bf16 %v1312_v20, %v1311_v19  ;;  %v1332_v22 = vpack.c.bf16 %v1313_v47, %v1313_v47 }
 0x1b7   : > { %1884 = vst [vmem:[%s2336_s4 + $0x40] sm:$0xff] %v1875_v21  }
 0x1b8   : > { %1351 = vst [vmem:[%s2336_s4 + $0x48] sm:$0xf] %v1332_v22 }
 0x1b9 PF: > { %s14_s19 = sadd.s32 1, %s1968_s19   ;;  %s2337_s15 = smov %s1956_s16 }
 0x1ba   : > { %p11_p12 = scmp.ge.s32.totalorder %s14_s19, 4   ;;  %s2338_s16 = smov %s2031_s23 }
 0x1bb   : > { %s2339_s17 = smov %s1964_s18  ;;  %s2340_s18 = smov %s2342_s20 }
 0x1bc   :  { %13 = sbr.rel (!%p11_p12) target bundleno = 3 (0x3), region = 111 }

// kernel: _lambda_.22
= control target key start
LH: loop header
LB: loop body
LE: loop exit
PB: predicated region body
PF: predicated region fallthrough
CT: control target
= control target key end

     0   :  { %s2181_s15 = smov 0   ;;  %s2183_s16 = smov 0   ;;  %s2579_s0 = inlined_call_operand.vmem [shape: bf16[512,384], index: 0, kind: input, shape index: {}]   ;;  %s2580_s1 = inlined_call_operand.vmem [shape: bf16[384,128], index: 1, kind: input, shape index: {}]   ;;  %s2581_s2 = inlined_call_operand.vmem [shape: f32[1,128], index: 2, kind: input, shape index: {}]   ;;  %s2582_s3 = inlined_call_operand.vmem [shape: f32[1,128], index: 3, kind: input, shape index: {}]   ;;  %s2583_s4 = inlined_call_operand.vmem [shape: bf16[512,128], index: 4, kind: output, shape index: {}]  }
   0x1   :  { %s2185_s17 = smov 0  }
   0x2 LB: > { %s33_s18 = sadd.s32 1, %s2150_s16  ;;  %p1619_p0 = scmp.ge.s32.totalorder %s2154_s17, 1  ;;  %s2154_s17 = sphi %s2185_s17, %s14_s17   ;;  %s2150_s16 = sphi %s2183_s16, %s2585_s16   ;;  %s2146_s15 = sphi %s2181_s15, %s2584_s15  }
   0x3   : > { %p35_p1 = scmp.ge.s32.totalorder %s33_s18, 2  ;;  %p224_p2 = scmp.lt.s32.totalorder %s2154_s17, 3 }
   0x5   : > { %s2587_s18 = smov (%p35_p1, %s33_s18), 0  ;;  %p225_p3 = pnand %p1619_p0, %p224_p2 }
   0x6   : > { %s1620_s11 = sshll.u32 (!%p225_p3), %s2146_s15, 5 }
   0x7   : > { %228 = sbr.rel (%p225_p3) target bundleno = 374 (0x176), region = 36  ;;  %p274_p4 = scmp.lt.s32.totalorder (!%p225_p3), %s1620_s11, 63 }
   0xc   : > { %v1969_v0 = vld [vmem:[%s2580_s1 + $0x38] sm:$0xff]  ;;  %v1968_v3 = vld [vmem:[%s2580_s1 + $0x30] sm:$0xff]  ;;  %v1967_v6 = vld [vmem:[%s2580_s1 + $0x28] sm:$0xff]  ;;  %s2589_s11 = smov (!%p274_p4, %s1620_s11), 63 }
   0xd   : > { %v2207_v1 = vld [vmem:[%s2580_s1 + $0x78] sm:$0xff]  ;;  %888 = vmatpush.bf16.msra.mxu0 %v1969_v0  ;;  %2081 = vmatpush.bf16.msra.mxu3 %v1969_v0  ;;  %v2222_v4 = vld [vmem:[%s2580_s1 + $0x70] sm:$0xff]  ;;  %v2237_v7 = vld [vmem:[%s2580_s1 + $0x68] sm:$0xff]  ;;  %s2105_s29 = smul.u32 12, %s2589_s11  ;;  %s1623_s5 = sshll.u32 %s2589_s11, 2 }
   0xe   : > { %v2212_v2 = vld [vmem:[%s2580_s1 + $0xb8] sm:$0xff]  ;;  %977 = vmatpush.bf16.msra.mxu1 %v2207_v1  ;;  %v2227_v5 = vld [vmem:[%s2580_s1 + $0xb0] sm:$0xff]  ;;  %v2242_v8 = vld [vmem:[%s2580_s1 + $0xa8] sm:$0xff]  ;;  %s2434_s8 = scalar_lea.vmem %s2583_s4, %s1623_s5 }
   0xf   : > { %1066 = vmatpush.bf16.msra.mxu2 %v2212_v2  ;;  %v1966_v9 = vld [vmem:[%s2580_s1 + $0x20] sm:$0xff]  ;;  %v1965_v12 = vld [vmem:[%s2580_s1 + $0x18] sm:$0xff]  ;;  %v1964_v15 = vld [vmem:[%s2580_s1 + $0x10] sm:$0xff]  ;;  %s2294_s13 = scalar_lea.vmem %s2579_s0, %s2105_s29 }
  0x10   : > { %v2251_v10 = vld [vmem:[%s2580_s1 + $0x60] sm:$0xff]  ;;  %v1973_v13 = vld [vmem:[%s2580_s1 + $0x58] sm:$0xff]  ;;  %v1972_v16 = vld [vmem:[%s2580_s1 + $0x50] sm:$0xff] }
  0x11   : > { %889 = vmatpush.bf16.msra.mxu0 %v1968_v3  ;;  %2082 = vmatpush.bf16.msra.mxu3 %v1968_v3  ;;  %v2258_v11 = vld [vmem:[%s2580_s1 + $0xa0] sm:$0xff]  ;;  %v2273_v14 = vld [vmem:[%s2580_s1 + $0x98] sm:$0xff]  ;;  %v2286_v17 = vld [vmem:[%s2580_s1 + $0x90] sm:$0xff] }
  0x12   : > { %978 = vmatpush.bf16.msra.mxu1 %v2222_v4  ;;  %v1963_v18 = vld [vmem:[%s2580_s1 + $0x8] sm:$0xff]  ;;  %v1962_v21 = vld [vmem:[%s2580_s1] sm:$0xff]  ;;  %v1628_v29 = vld [vmem:[%s2294_s13 + $0xc] sm:$0xf0] }
  0x13   : > { %1067 = vmatpush.bf16.msra.mxu2 %v2227_v5  ;;  %v1971_v19 = vld [vmem:[%s2580_s1 + $0x48] sm:$0xff]  ;;  %v1970_v22 = vld [vmem:[%s2580_s1 + $0x40] sm:$0xff]  ;;  %v1916_v31 = vld [vmem:[%s2294_s13 + $0x10] sm:$0xf0] }
  0x14   : > { %v2303_v20 = vld [vmem:[%s2580_s1 + $0x88] sm:$0xff]  ;;  %v2314_v23 = vld [vmem:[%s2580_s1 + $0x80] sm:$0xff]  ;;  %v1638_v36 = vld [vmem:[%s2294_s13 + $0x18] sm:$0xf] }
  0x15   : > { %890 = vmatpush.bf16.msra.mxu0 %v1967_v6  ;;  %2083 = vmatpush.bf16.msra.mxu3 %v1967_v6  ;;  %v1626_v24 = vld [vmem:[%s2294_s13] sm:$0xf]  ;;  %v1915_v25 = vld [vmem:[%s2294_s13 + $0x8] sm:$0xf0]  ;;  %v1914_v28 = vld [vmem:[%s2294_s13 + $0x4] sm:$0xf] }
  0x16   : > { %979 = vmatpush.bf16.msra.mxu1 %v2237_v7  ;;  %v1770_v26 = vld [vmem:[%s2294_s13 + $0x120] sm:$0xf]  ;;  %v1951_v27 = vld [vmem:[%s2294_s13 + $0x128] sm:$0xf0]  ;;  %v1634_v30 = vld [vmem:[%s2294_s13 + $0x8] sm:$0xf]  ;;  %v1627_v32 = vor.u32 %v1915_v25, %v1626_v24  ;;  %v1631_v34 = vor.u32 %v1914_v28, %v1628_v29 }
  0x17   : > { %1068 = vmatpush.bf16.msra.mxu2 %v2242_v8  ;;  %v1771_v33 = vor.u32 %v1951_v27, %v1770_v26  ;;  %v1635_v35 = vor.u32 %v1916_v31, %v1634_v30  ;;  %v1918_v37 = vld [vmem:[%s2294_s13 + $0x20] sm:$0xf0]  ;;  %v1782_v38 = vld [vmem:[%s2294_s13 + $0x138] sm:$0xf]  ;;  %v1917_v40 = vld [vmem:[%s2294_s13 + $0x1c] sm:$0xf] }
  0x18   : > { %v1954_v39 = vld [vmem:[%s2294_s13 + $0x140] sm:$0xf0]  ;;  %v1640_v41 = vld [vmem:[%s2294_s13 + $0x24] sm:$0xf0]  ;;  %v1646_v42 = vld [vmem:[%s2294_s13 + $0x20] sm:$0xf]  ;;  %v1639_v44 = vor.u32 %v1918_v37, %v1638_v36 }
  0x19   : > { %891 = vmatpush.bf16.msra.mxu0 %v1966_v9  ;;  %2084 = vmatpush.bf16.msra.mxu3 %v1966_v9  ;;  %v1919_v43 = vld [vmem:[%s2294_s13 + $0x28] sm:$0xf0]  ;;  %v1783_v45 = vor.u32 %v1954_v39, %v1782_v38  ;;  %v1643_v46 = vor.u32 %v1917_v40, %v1640_v41  ;;  %v1650_v48 = vld [vmem:[%s2294_s13 + $0x30] sm:$0xf]  ;;  %v1921_v49 = vld [vmem:[%s2294_s13 + $0x38] sm:$0xf0] }
  0x1a   : > { %980 = vmatpush.bf16.msra.mxu1 %v2251_v10  ;;  %v1647_v47 = vor.u32 %v1919_v43, %v1646_v42  ;;  %v1794_v50 = vld [vmem:[%s2294_s13 + $0x150] sm:$0xf]  ;;  %v1957_v51 = vld [vmem:[%s2294_s13 + $0x158] sm:$0xf0]  ;;  %v1920_v52 = vld [vmem:[%s2294_s13 + $0x34] sm:$0xf]  ;;  %v1651_v56 = vor.u32 %v1921_v49, %v1650_v48 }
  0x1b   : > { %1069 = vmatpush.bf16.msra.mxu2 %v2258_v11  ;;  %v1652_v53 = vld [vmem:[%s2294_s13 + $0x3c] sm:$0xf0]  ;;  %v1658_v54 = vld [vmem:[%s2294_s13 + $0x38] sm:$0xf]  ;;  %v1922_v55 = vld [vmem:[%s2294_s13 + $0x40] sm:$0xf0]  ;;  %v1795_v57 = vor.u32 %v1957_v51, %v1794_v50 }
  0x1c   : > { %v1655_v58 = vor.u32 %v1920_v52, %v1652_v53  ;;  %v1659_v59 = vor.u32 %v1922_v55, %v1658_v54  ;;  %v1662_v60 = vld [vmem:[%s2294_s13 + $0x48] sm:$0xf]  ;;  %v1924_v61 = vld [vmem:[%s2294_s13 + $0x50] sm:$0xf0]  ;;  %v1923_v0 = vld [vmem:[%s2294_s13 + $0x4c] sm:$0xf] }
  0x1d   : > { %892 = vmatpush.bf16.msra.mxu0 %v1965_v12  ;;  %2085 = vmatpush.bf16.msra.mxu3 %v1965_v12  ;;  %v1806_v62 = vld [vmem:[%s2294_s13 + $0x168] sm:$0xf]  ;;  %v1960_v63 = vld [vmem:[%s2294_s13 + $0x170] sm:$0xf0]  ;;  %v1925_v3 = vld [vmem:[%s2294_s13 + $0x58] sm:$0xf0] }
  0x1e   : > { %981 = vmatpush.bf16.msra.mxu1 %v1973_v13  ;;  %v1927_v9 = vld [vmem:[%s2294_s13 + $0x68] sm:$0xf0]  ;;  %v1772_v12 = vld [vmem:[%s2294_s13 + $0x12c] sm:$0xf0]  ;;  %v1953_v24 = vld [vmem:[%s2294_s13 + $0x13c] sm:$0xf] }
  0x1f   : > { %1070 = vmatpush.bf16.msra.mxu2 %v2273_v14  ;;  %v1784_v25 = vld [vmem:[%s2294_s13 + $0x144] sm:$0xf0]  ;;  %v1694_v26 = vld [vmem:[%s2294_s13 + $0x80] sm:$0xf]  ;;  %v1931_v27 = vld [vmem:[%s2294_s13 + $0x88] sm:$0xf0] }
  0x20   : > { %v1787_v29 = vor.u32 %v1953_v24, %v1784_v25  ;;  %v1695_v31 = vor.u32 %v1931_v27, %v1694_v26  ;;  %v1796_v36 = vld [vmem:[%s2294_s13 + $0x15c] sm:$0xf0]  ;;  %v1706_v38 = vld [vmem:[%s2294_s13 + $0x98] sm:$0xf]  ;;  %v1934_v39 = vld [vmem:[%s2294_s13 + $0xa0] sm:$0xf0] }
  0x21   : > { %893 = vmatpush.bf16.msra.mxu0 %v1964_v15  ;;  %2086 = vmatpush.bf16.msra.mxu3 %v1964_v15  ;;  %v1928_v15 = vld [vmem:[%s2294_s13 + $0x70] sm:$0xf0]  ;;  %v1700_v37 = vld [vmem:[%s2294_s13 + $0x9c] sm:$0xf0]  ;;  %v1707_v43 = vor.u32 %v1934_v39, %v1706_v38  ;;  %v1808_v48 = vld [vmem:[%s2294_s13 + $0x174] sm:$0xf0] }
  0x22   : > { %982 = vmatpush.bf16.msra.mxu1 %v1972_v16  ;;  %v1712_v49 = vld [vmem:[%s2294_s13 + $0xb4] sm:$0xf0]  ;;  %v1718_v50 = vld [vmem:[%s2294_s13 + $0xb0] sm:$0xf]  ;;  %v1937_v51 = vld [vmem:[%s2294_s13 + $0xb8] sm:$0xf0] }
  0x23   : > { %1071 = vmatpush.bf16.msra.mxu2 %v2286_v17  ;;  %v1719_v55 = vor.u32 %v1937_v51, %v1718_v50  ;;  %v1944_v50 = vld [vmem:[%s2294_s13 + $0xf4] sm:$0xf]  ;;  %v1802_v51 = vld [vmem:[%s2294_s13 + $0x158] sm:$0xf] }
  0x25   : > { %894 = vmatpush.bf16.msra.mxu0 %v1963_v18  ;;  %2087 = vmatpush.bf16.msra.mxu3 %v1963_v18 }
  0x26   : > { %983 = vmatpush.bf16.msra.mxu1 %v1971_v19 }
  0x27   : > { %1072 = vmatpush.bf16.msra.mxu2 %v2303_v20 }
  0x29   : > { %895 = vmatpush.bf16.msra.mxu0 %v1962_v21  ;;  %2088 = vmatpush.bf16.msra.mxu3 %v1962_v21  ;;  %v1930_v21 = vld [vmem:[%s2294_s13 + $0x80] sm:$0xf0] }
  0x2a   : > { %984 = vmatpush.bf16.msra.mxu1 %v1970_v22 }
  0x2b   : > { %1073 = vmatpush.bf16.msra.mxu2 %v2314_v23 }
  0x2c   : > { %896 = vmatmul.bf16.vlgmr.msra.gmra.mxu0 %v1627_v32  ;;  %956 = vmatmul.bf16.vlgmr.msra.gmra.mxu3 %v1771_v33  ;;  %v1698_v32 = vld [vmem:[%s2294_s13 + $0x90] sm:$0xf]  ;;  %v1933_v33 = vld [vmem:[%s2294_s13 + $0x98] sm:$0xf0] }
  0x2d   : > { %2089 = vmatpush.bf16.msrb.mxu3 %v2207_v1  ;;  %985 = vmatmul.bf16.vlgmr.msra.gmra.mxu1 %v1631_v34  ;;  %v1664_v1 = vld [vmem:[%s2294_s13 + $0x54] sm:$0xf0]  ;;  %v1932_v34 = vld [vmem:[%s2294_s13 + $0x94] sm:$0xf]  ;;  %v1699_v40 = vor.u32 %v1933_v33, %v1698_v32 }
  0x2e   : > { %1074 = vmatmul.bf16.vlgmr.msra.gmra.mxu2 %v1635_v35  ;;  %v1667_v6 = vor.u32 %v1923_v0, %v1664_v1  ;;  %v1956_v35 = vld [vmem:[%s2294_s13 + $0x154] sm:$0xf]  ;;  %v1703_v42 = vor.u32 %v1932_v34, %v1700_v37 }
  0x2f   : > { %v1799_v41 = vor.u32 %v1956_v35, %v1796_v36 }
  0x31   : > { %2090 = vmatpush.bf16.msrb.mxu3 %v2222_v4  ;;  %v1663_v4 = vor.u32 %v1924_v61, %v1662_v60  ;;  %v1952_v60 = vld [vmem:[%s2294_s13 + $0x130] sm:$0xf0]  ;;  %v1724_v61 = vld [vmem:[%s2294_s13 + $0xcc] sm:$0xf0] }
  0x35   : > { %2091 = vmatpush.bf16.msrb.mxu3 %v2237_v7 }
  0x39   : > { %2092 = vmatpush.bf16.msrb.mxu3 %v2251_v10  ;;  %v1926_v10 = vld [vmem:[%s2294_s13 + $0x64] sm:$0xf] }
  0x3c   : > { %901 = vmatmul.bf16.gmra.mxu0 %v1639_v44  ;;  %961 = vmatmul.bf16.gmra.mxu3 %v1783_v45  ;;  %v1710_v44 = vld [vmem:[%s2294_s13 + $0xa8] sm:$0xf]  ;;  %v1936_v45 = vld [vmem:[%s2294_s13 + $0xb0] sm:$0xf0] }
  0x3d   : > { %2093 = vmatpush.bf16.msrb.mxu3 %v1973_v13  ;;  %990 = vmatmul.bf16.gmra.mxu1 %v1643_v46  ;;  %v1676_v13 = vld [vmem:[%s2294_s13 + $0x6c] sm:$0xf0]  ;;  %v1935_v46 = vld [vmem:[%s2294_s13 + $0xac] sm:$0xf]  ;;  %v1711_v52 = vor.u32 %v1936_v45, %v1710_v44 }
  0x3e   : > { %1079 = vmatmul.bf16.gmra.mxu2 %v1647_v47  ;;  %v1679_v18 = vor.u32 %v1926_v10, %v1676_v13  ;;  %v1959_v47 = vld [vmem:[%s2294_s13 + $0x16c] sm:$0xf]  ;;  %v1715_v54 = vor.u32 %v1935_v46, %v1712_v49  ;;  %v2407_v10 = vld [vmem:[%s2581_s2] ss:$0 sm:$0xff] }
  0x3f   : > { %v1811_v53 = vor.u32 %v1959_v47, %v1808_v48  ;;  %v2412_v13 = vld [vmem:[%s2582_s3] ss:$0 sm:$0xff]  ;;  %v1746_v47 = vld [vmem:[%s2294_s13 + $0xf0] sm:$0xf]  ;;  %v1945_v48 = vld [vmem:[%s2294_s13 + $0xf8] sm:$0xf0] }
  0x41   : > { %2094 = vmatpush.bf16.msrb.mxu3 %v1972_v16 }
  0x45   : > { %2095 = vmatpush.bf16.msrb.mxu3 %v1971_v19 }
  0x49   : > { %2096 = vmatpush.bf16.msrb.mxu3 %v1970_v22  ;;  %v1929_v22 = vld [vmem:[%s2294_s13 + $0x7c] sm:$0xf] }
  0x4c   : > { %906 = vmatmul.bf16.gmra.mxu0 %v1651_v56  ;;  %966 = vmatmul.bf16.gmra.mxu3 %v1795_v57  ;;  %v1722_v56 = vld [vmem:[%s2294_s13 + $0xc0] sm:$0xf]  ;;  %v1939_v57 = vld [vmem:[%s2294_s13 + $0xc8] sm:$0xf0] }
  0x4d   : > { %2097 = vmatpush.bf16.msra.mxu3 %v2212_v2  ;;  %995 = vmatmul.bf16.gmra.mxu1 %v1655_v58  ;;  %v1670_v2 = vld [vmem:[%s2294_s13 + $0x50] sm:$0xf]  ;;  %v1938_v58 = vld [vmem:[%s2294_s13 + $0xc4] sm:$0xf]  ;;  %v1723_v0 = vor.u32 %v1939_v57, %v1722_v56 }
  0x4e   : > { %1084 = vmatmul.bf16.gmra.mxu2 %v1659_v59  ;;  %v1671_v7 = vor.u32 %v1925_v3, %v1670_v2  ;;  %v1778_v59 = vld [vmem:[%s2294_s13 + $0x128] sm:$0xf]  ;;  %v1727_v3 = vor.u32 %v1938_v58, %v1724_v61 }
  0x4f   : > { %v1779_v1 = vor.u32 %v1952_v60, %v1778_v59  ;;  %v1747_v59 = vor.u32 %v1945_v48, %v1746_v47 }
  0x51   : > { %2098 = vmatpush.bf16.msra.mxu3 %v2227_v5  ;;  %v1807_v5 = vor.u32 %v1960_v63, %v1806_v62  ;;  %v1730_v62 = vld [vmem:[%s2294_s13 + $0xc8] sm:$0xf]  ;;  %v1940_v63 = vld [vmem:[%s2294_s13 + $0xd0] sm:$0xf0] }
  0x55   : > { %2099 = vmatpush.bf16.msra.mxu3 %v2242_v8  ;;  %v1674_v8 = vld [vmem:[%s2294_s13 + $0x60] sm:$0xf] }
  0x56   : > { %v1675_v16 = vor.u32 %v1927_v9, %v1674_v8 }
  0x59   : > { %2100 = vmatpush.bf16.msra.mxu3 %v2258_v11  ;;  %v1950_v11 = vld [vmem:[%s2294_s13 + $0x124] sm:$0xf] }
  0x5c   : > { %911 = vmatmul.bf16.gmra.mxu0 %v1663_v4  ;;  %971 = vmatmul.bf16.gmra.mxu3 %v1807_v5  ;;  %v1731_v4 = vor.u32 %v1940_v63, %v1730_v62 }
  0x5d   : > { %2101 = vmatpush.bf16.msra.mxu3 %v2273_v14  ;;  %1000 = vmatmul.bf16.gmra.mxu1 %v1667_v6  ;;  %v1682_v14 = vld [vmem:[%s2294_s13 + $0x68] sm:$0xf] }
  0x5e   : > { %1089 = vmatmul.bf16.gmra.mxu2 %v1671_v7  ;;  %v1683_v19 = vor.u32 %v1928_v15, %v1682_v14  ;;  %v1734_v14 = vld [vmem:[%s2294_s13 + $0xd8] sm:$0xf]  ;;  %v1942_v15 = vld [vmem:[%s2294_s13 + $0xe0] sm:$0xf0] }
  0x5f   : > { %v1735_v26 = vor.u32 %v1942_v15, %v1734_v14 }
  0x61   : > { %2102 = vmatpush.bf16.msra.mxu3 %v2286_v17  ;;  %v1775_v17 = vor.u32 %v1950_v11, %v1772_v12 }
  0x65   : > { %2103 = vmatpush.bf16.msra.mxu3 %v2303_v20  ;;  %v1686_v20 = vld [vmem:[%s2294_s13 + $0x78] sm:$0xf] }
  0x66   : > { %v1687_v28 = vor.u32 %v1930_v21, %v1686_v20  ;;  %v1736_v20 = vld [vmem:[%s2294_s13 + $0xe4] sm:$0xf0]  ;;  %v1742_v21 = vld [vmem:[%s2294_s13 + $0xe0] sm:$0xf] }
  0x69   : > { %2104 = vmatpush.bf16.msra.mxu3 %v2314_v23  ;;  %v1688_v23 = vld [vmem:[%s2294_s13 + $0x84] sm:$0xf0] }
  0x6a   : > { %v1691_v30 = vor.u32 %v1929_v22, %v1688_v23  ;;  %v1943_v22 = vld [vmem:[%s2294_s13 + $0xe8] sm:$0xf0] }
  0x6b   : > { %v1743_v32 = vor.u32 %v1943_v22, %v1742_v21  ;;  %v1947_v22 = vld [vmem:[%s2294_s13 + $0x10c] sm:$0xf] }
  0x6c   : > { %916 = vmatmul.bf16.gmra.mxu0 %v1675_v16  ;;  %1045 = vmatmul.bf16.vlgmr.msrb.gmra.mxu3 %v1775_v17  ;;  %v1941_v17 = vld [vmem:[%s2294_s13 + $0xdc] sm:$0xf] }
  0x6d   : > { %1005 = vmatmul.bf16.gmra.mxu1 %v1679_v18  ;;  %v1790_v18 = vld [vmem:[%s2294_s13 + $0x140] sm:$0xf] }
  0x6e   : > { %1094 = vmatmul.bf16.gmra.mxu2 %v1683_v19  ;;  %v1955_v19 = vld [vmem:[%s2294_s13 + $0x148] sm:$0xf0] }
  0x6f   : > { %v1791_v27 = vor.u32 %v1955_v19, %v1790_v18  ;;  %v1758_v19 = vld [vmem:[%s2294_s13 + $0x108] sm:$0xf] }
  0x7c   : > { %921 = vmatmul.bf16.gmra.mxu0 %v1687_v28  ;;  %1050 = vmatmul.bf16.gmra.mxu3 %v1787_v29 }
  0x7d   : > { %1010 = vmatmul.bf16.gmra.mxu1 %v1691_v30 }
  0x7e   : > { %1099 = vmatmul.bf16.gmra.mxu2 %v1695_v31  ;;  %v1739_v31 = vor.u32 %v1941_v17, %v1736_v20  ;;  %v1948_v20 = vld [vmem:[%s2294_s13 + $0x110] sm:$0xf0] }
  0x8c   : > { %926 = vmatmul.bf16.gmra.mxu0 %v1699_v40  ;;  %1055 = vmatmul.bf16.gmra.mxu3 %v1799_v41 }
  0x8d   : > { %1015 = vmatmul.bf16.gmra.mxu1 %v1703_v42 }
  0x8e   : > { %1104 = vmatmul.bf16.gmra.mxu2 %v1707_v43 }
  0x9c   : > { %931 = vmatmul.bf16.gmra.mxu0 %v1711_v52  ;;  %1060 = vmatmul.bf16.gmra.mxu3 %v1811_v53  ;;  %v1958_v52 = vld [vmem:[%s2294_s13 + $0x160] sm:$0xf0]  ;;  %v1748_v53 = vld [vmem:[%s2294_s13 + $0xfc] sm:$0xf0] }
  0x9d   : > { %1020 = vmatmul.bf16.gmra.mxu1 %v1715_v54  ;;  %v1754_v54 = vld [vmem:[%s2294_s13 + $0xf8] sm:$0xf]  ;;  %v1803_v60 = vor.u32 %v1958_v52, %v1802_v51 }
  0x9e   : > { %1109 = vmatmul.bf16.gmra.mxu2 %v1719_v55  ;;  %v1946_v55 = vld [vmem:[%s2294_s13 + $0x100] sm:$0xf0] }
  0xa9   : > { %v897_v2 = vpop.f32.mrf.mxu0 }
  0xaa   : > { %v986_v5 = vpop.f32.mrf.mxu1 }
  0xab   : > { %v987_v6 = vadd.f32 %v986_v5, %v897_v2 }
  0xac   : > { %936 = vmatmul.bf16.gmra.mxu0 %v1723_v0  ;;  %1134 = vmatmul.bf16.vlgmr.msra.gmra.mxu3 %v1779_v1  ;;  %v1751_v0 = vor.u32 %v1944_v50, %v1748_v53  ;;  %v1755_v1 = vor.u32 %v1946_v55, %v1754_v54 }
  0xad   : > { %1025 = vmatmul.bf16.gmra.mxu1 %v1727_v3 }
  0xae   : > { %1114 = vmatmul.bf16.gmra.mxu2 %v1731_v4 }
  0xaf   : > { %v2402_v7 = vpop.f32.mrf.mxu3 }
  0xb1   : > { %v1075_v8 = vpop.f32.mrf.mxu2  ;;  %v899_v11 = vpop.f32.mrf.mxu0 }
  0xb2   : > { %v1076_v9 = vadd.f32 %v1075_v8, %v987_v6  ;;  %v988_v12 = vpop.f32.mrf.mxu1 }
  0xb3   : > { %v989_v24 = vadd.f32 %v988_v12, %v899_v11 }
  0xb4   : > { %v1258_v16 = vmul.f32 %v2407_v10, %v1076_v9 }
  0xb6   : > { %v1294_v28 = vadd.f32 %v2412_v13, %v1258_v16 }
  0xb7   : > { %v2423_v25 = vpop.f32.mrf.mxu3 }
  0xb8   : > { %v1358_v35 = vmul.f32 0.01, %v1294_v28  ;;  %vm1326_vm0 = vcmp.ge.f32.partialorder %v1294_v28, 0.0 }
  0xb9   : > { %v1077_v23 = vpop.f32.mrf.mxu2  ;;  %v902_v30 = vpop.f32.mrf.mxu0 }
  0xba   : > { %v1078_v29 = vadd.f32 %v1077_v23, %v989_v24  ;;  %v991_v33 = vpop.f32.mrf.mxu1  ;;  %v1390_v41 = vsel %vm1326_vm0, %v1294_v28, %v1358_v35  ;;  %v1814_v24 = vld [vmem:[%s2294_s13 + $0x170] sm:$0xf]  ;;  %v1961_v23 = vld [vmem:[%s2294_s13 + $0x178] sm:$0xf0] }
  0xbb   : > { %v992_v37 = vadd.f32 %v991_v33, %v902_v30  ;;  %v1949_v28 = vld [vmem:[%s2294_s13 + $0x118] sm:$0xf0]  ;;  %v1815_v33 = vor.u32 %v1961_v23, %v1814_v24 }
  0xbc   : > { %v1259_v34 = vmul.f32 %v2407_v10, %v1078_v29  ;;  %941 = vmatmul.bf16.gmra.mxu0 %v1735_v26  ;;  %1139 = vmatmul.bf16.gmra.mxu3 %v1791_v27  ;;  %v1760_v26 = vld [vmem:[%s2294_s13 + $0x114] sm:$0xf0]  ;;  %v1766_v27 = vld [vmem:[%s2294_s13 + $0x110] sm:$0xf] }
  0xbd   : > { %1030 = vmatmul.bf16.gmra.mxu1 %v1739_v31 }
  0xbe   : > { %v1295_v36 = vadd.f32 %v2412_v13, %v1259_v34  ;;  %1119 = vmatmul.bf16.gmra.mxu2 %v1743_v32  ;;  %v1759_v32 = vor.u32 %v1948_v20, %v1758_v19 }
  0xbf   : > { %v2429_v39 = vpop.f32.mrf.mxu3 }
  0xc0   : > { %vm1327_vm1 = vcmp.ge.f32.partialorder %v1295_v36, 0.0  ;;  %v1359_v38 = vmul.f32 0.01, %v1295_v36 }
  0xc1   : > { %v1080_v40 = vpop.f32.mrf.mxu2  ;;  %v904_v44 = vpop.f32.mrf.mxu0 }
  0xc2   : > { %v1391_v42 = vsel %vm1327_vm1, %v1295_v36, %v1359_v38  ;;  %v1081_v43 = vadd.f32 %v1080_v40, %v992_v37  ;;  %v993_v46 = vpop.f32.mrf.mxu1  ;;  %v1763_v37 = vor.u32 %v1947_v22, %v1760_v26  ;;  %v1767_v38 = vor.u32 %v1949_v28, %v1766_v27 }
  0xc3   : > { %v1989_v45 = vpack.c.bf16 %v1391_v42, %v1390_v41  ;;  %v994_v56 = vadd.f32 %v993_v46, %v904_v44 }
  0xc4   : > { %v1260_v49 = vmul.f32 %v2407_v10, %v1081_v43 }
  0xc5   : > { %1990 = vst [vmem:[%s2434_s8] sm:$0xff] %v1989_v45  }
  0xc6   : > { %v1296_v61 = vadd.f32 %v2412_v13, %v1260_v49 }
  0xc7   : > { %v2446_v57 = vpop.f32.mrf.mxu3 }
  0xc8   : > { %v1360_v4 = vmul.f32 0.01, %v1296_v61  ;;  %vm1328_vm2 = vcmp.ge.f32.partialorder %v1296_v61, 0.0 }
  0xc9   : > { %v1082_v58 = vpop.f32.mrf.mxu2  ;;  %v907_v63 = vpop.f32.mrf.mxu0 }
  0xca   : > { %v1083_v62 = vadd.f32 %v1082_v58, %v994_v56  ;;  %v996_v2 = vpop.f32.mrf.mxu1  ;;  %v1392_v12 = vsel %vm1328_vm2, %v1296_v61, %v1360_v4 }
  0xcb   : > { %v997_v6 = vadd.f32 %v996_v2, %v907_v63 }
  0xcc   : > { %v1261_v3 = vmul.f32 %v2407_v10, %v1083_v62  ;;  %946 = vmatmul.bf16.gmra.mxu0 %v1747_v59  ;;  %1144 = vmatmul.bf16.gmra.mxu3 %v1803_v60 }
  0xcd   : > { %1035 = vmatmul.bf16.gmra.mxu1 %v1751_v0 }
  0xce   : > { %v1297_v5 = vadd.f32 %v2412_v13, %v1261_v3  ;;  %1124 = vmatmul.bf16.gmra.mxu2 %v1755_v1 }
  0xcf   : > { %v2451_v9 = vpop.f32.mrf.mxu3 }
  0xd0   : > { %vm1329_vm3 = vcmp.ge.f32.partialorder %v1297_v5, 0.0  ;;  %v1361_v8 = vmul.f32 0.01, %v1297_v5 }
  0xd1   : > { %v1085_v11 = vpop.f32.mrf.mxu2  ;;  %v909_v16 = vpop.f32.mrf.mxu0 }
  0xd2   : > { %v1393_v14 = vsel %vm1329_vm3, %v1297_v5, %v1361_v8  ;;  %v1086_v15 = vadd.f32 %v1085_v11, %v997_v6  ;;  %v998_v18 = vpop.f32.mrf.mxu1 }
  0xd3   : > { %v1994_v17 = vpack.c.bf16 %v1393_v14, %v1392_v12  ;;  %v999_v29 = vadd.f32 %v998_v18, %v909_v16 }
  0xd4   : > { %v1262_v21 = vmul.f32 %v2407_v10, %v1086_v15 }
  0xd5   : > { %2066 = vst [vmem:[%s2434_s8 + $0x8] sm:$0xff] %v1994_v17  }
  0xd6   : > { %v1298_v34 = vadd.f32 %v2412_v13, %v1262_v21 }
  0xd7   : > { %v2463_v30 = vpop.f32.mrf.mxu3 }
  0xd8   : > { %v1362_v42 = vmul.f32 0.01, %v1298_v34  ;;  %vm1330_vm4 = vcmp.ge.f32.partialorder %v1298_v34, 0.0 }
  0xd9   : > { %v1087_v31 = vpop.f32.mrf.mxu2  ;;  %v912_v36 = vpop.f32.mrf.mxu0 }
  0xda   : > { %v1088_v35 = vadd.f32 %v1087_v31, %v999_v29  ;;  %v1001_v40 = vpop.f32.mrf.mxu1  ;;  %v1394_v48 = vsel %vm1330_vm4, %v1298_v34, %v1362_v42 }
  0xdb   : > { %v1002_v44 = vadd.f32 %v1001_v40, %v912_v36 }
  0xdc   : > { %v1263_v41 = vmul.f32 %v2407_v10, %v1088_v35  ;;  %951 = vmatmul.bf16.gmra.mxu0 %v1759_v32  ;;  %1149 = vmatmul.bf16.gmra.mxu3 %v1815_v33 }
  0xdd   : > { %1040 = vmatmul.bf16.gmra.mxu1 %v1763_v37 }
  0xde   : > { %v1299_v43 = vadd.f32 %v2412_v13, %v1263_v41  ;;  %1129 = vmatmul.bf16.gmra.mxu2 %v1767_v38 }
  0xdf   : > { %v2468_v46 = vpop.f32.mrf.mxu3 }
  0xe0   : > { %vm1331_vm5 = vcmp.ge.f32.partialorder %v1299_v43, 0.0  ;;  %v1363_v45 = vmul.f32 0.01, %v1299_v43 }
  0xe1   : > { %v1090_v47 = vpop.f32.mrf.mxu2  ;;  %v914_v51 = vpop.f32.mrf.mxu0 }
  0xe2   : > { %v1395_v49 = vsel %vm1331_vm5, %v1299_v43, %v1363_v45  ;;  %v1091_v50 = vadd.f32 %v1090_v47, %v1002_v44  ;;  %v1003_v53 = vpop.f32.mrf.mxu1 }
  0xe3   : > { %v1999_v52 = vpack.c.bf16 %v1395_v49, %v1394_v48  ;;  %v1004_v55 = vadd.f32 %v1003_v53, %v914_v51 }
  0xe4   : > { %v1264_v54 = vmul.f32 %v2407_v10, %v1091_v50 }
  0xe5   : > { %2067 = vst [vmem:[%s2434_s8 + $0x10] sm:$0xff] %v1999_v52  }
  0xe6   : > { %v1300_v59 = vadd.f32 %v2412_v13, %v1264_v54 }
  0xe7   : > { %v2472_v56 = vpop.f32.mrf.mxu3 }
  0xe8   : > { %v1364_v0 = vmul.f32 0.01, %v1300_v59  ;;  %vm1332_vm6 = vcmp.ge.f32.partialorder %v1300_v59, 0.0 }
  0xe9   : > { %v1092_v58 = vpop.f32.mrf.mxu2  ;;  %v917_v61 = vpop.f32.mrf.mxu0 }
  0xea   : > { %v1093_v60 = vadd.f32 %v1092_v58, %v1004_v55  ;;  %v1006_v62 = vpop.f32.mrf.mxu1  ;;  %v1396_v8 = vsel %vm1332_vm6, %v1300_v59, %v1364_v0 }
  0xeb   : > { %v1007_v2 = vadd.f32 %v1006_v62, %v917_v61 }
  0xec   : > { %v1265_v63 = vmul.f32 %v2407_v10, %v1093_v60 }
  0xee   : > { %v1301_v1 = vadd.f32 %v2412_v13, %v1265_v63 }
  0xef   : > { %v1046_v4 = vpop.f32.mrf.mxu3 }
  0xf0   : > { %vm1333_vm7 = vcmp.ge.f32.partialorder %v1301_v1, 0.0  ;;  %v1365_v3 = vmul.f32 0.01, %v1301_v1  ;;  %v2478_v5 = vadd.f32 %v1046_v4, %v2402_v7 }
  0xf1   : > { %v1095_v6 = vpop.f32.mrf.mxu2  ;;  %v919_v14 = vpop.f32.mrf.mxu0 }
  0xf2   : > { %v1397_v11 = vsel %vm1333_vm7, %v1301_v1, %v1365_v3  ;;  %v1096_v12 = vadd.f32 %v1095_v6, %v1007_v2  ;;  %v1008_v16 = vpop.f32.mrf.mxu1 }
  0xf3   : > { %v2004_v15 = vpack.c.bf16 %v1397_v11, %v1396_v8  ;;  %v1009_v18 = vadd.f32 %v1008_v16, %v919_v14 }
  0xf4   : > { %v1266_v17 = vmul.f32 %v2407_v10, %v1096_v12 }
  0xf5   : > { %2068 = vst [vmem:[%s2434_s8 + $0x18] sm:$0xff] %v2004_v15  }
  0xf6   : > { %v1302_v21 = vadd.f32 %v2412_v13, %v1266_v17 }
  0xf7   : > { %v2482_v19 = vpop.f32.mrf.mxu3 }
  0xf8   : > { %v1366_v26 = vmul.f32 0.01, %v1302_v21  ;;  %vm1334_vm8 = vcmp.ge.f32.partialorder %v1302_v21, 0.0 }
  0xf9   : > { %v1097_v20 = vpop.f32.mrf.mxu2  ;;  %v922_v24 = vpop.f32.mrf.mxu0 }
  0xfa   : > { %v1098_v22 = vadd.f32 %v1097_v20, %v1009_v18  ;;  %v1011_v7 = vpop.f32.mrf.mxu1  ;;  %v1398_v34 = vsel %vm1334_vm8, %v1302_v21, %v1366_v26 }
  0xfb   : > { %v1012_v28 = vadd.f32 %v1011_v7, %v922_v24 }
  0xfc   : > { %v1267_v23 = vmul.f32 %v2407_v10, %v1098_v22 }
  0xfe   : > { %v1303_v27 = vadd.f32 %v2412_v13, %v1267_v23 }
  0xff   : > { %v1051_v31 = vpop.f32.mrf.mxu3 }
 0x100   : > { %vm1335_vm9 = vcmp.ge.f32.partialorder %v1303_v27, 0.0  ;;  %v1367_v29 = vmul.f32 0.01, %v1303_v27  ;;  %v2488_v32 = vadd.f32 %v1051_v31, %v2429_v39 }
 0x101   : > { %v1100_v33 = vpop.f32.mrf.mxu2  ;;  %v924_v37 = vpop.f32.mrf.mxu0 }
 0x102   : > { %v1399_v35 = vsel %vm1335_vm9, %v1303_v27, %v1367_v29  ;;  %v1101_v36 = vadd.f32 %v1100_v33, %v1012_v28  ;;  %v1013_v40 = vpop.f32.mrf.mxu1 }
 0x103   : > { %v2009_v38 = vpack.c.bf16 %v1399_v35, %v1398_v34  ;;  %v1014_v42 = vadd.f32 %v1013_v40, %v924_v37 }
 0x104   : > { %v1268_v41 = vmul.f32 %v2407_v10, %v1101_v36 }
 0x105   : > { %2069 = vst [vmem:[%s2434_s8 + $0x20] sm:$0xff] %v2009_v38  }
 0x106   : > { %v1304_v45 = vadd.f32 %v2412_v13, %v1268_v41 }
 0x107   : > { %v2492_v43 = vpop.f32.mrf.mxu3 }
 0x108   : > { %v1368_v50 = vmul.f32 0.01, %v1304_v45  ;;  %vm1336_vm10 = vcmp.ge.f32.partialorder %v1304_v45, 0.0 }
 0x109   : > { %v1102_v44 = vpop.f32.mrf.mxu2  ;;  %v927_v48 = vpop.f32.mrf.mxu0 }
 0x10a   : > { %v1103_v47 = vadd.f32 %v1102_v44, %v1014_v42  ;;  %v1016_v39 = vpop.f32.mrf.mxu1  ;;  %v1400_v59 = vsel %vm1336_vm10, %v1304_v45, %v1368_v50 }
 0x10b   : > { %v1017_v52 = vadd.f32 %v1016_v39, %v927_v48 }
 0x10c   : > { %v1269_v49 = vmul.f32 %v2407_v10, %v1103_v47 }
 0x10e   : > { %v1305_v51 = vadd.f32 %v2412_v13, %v1269_v49 }
 0x10f   : > { %v1056_v54 = vpop.f32.mrf.mxu3 }
 0x110   : > { %vm1337_vm11 = vcmp.ge.f32.partialorder %v1305_v51, 0.0  ;;  %v1369_v53 = vmul.f32 0.01, %v1305_v51  ;;  %v2498_v55 = vadd.f32 %v1056_v54, %v2451_v9 }
 0x111   : > { %v1105_v58 = vpop.f32.mrf.mxu2  ;;  %v929_v62 = vpop.f32.mrf.mxu0 }
 0x112   : > { %v1401_v60 = vsel %vm1337_vm11, %v1305_v51, %v1369_v53  ;;  %v1106_v61 = vadd.f32 %v1105_v58, %v1017_v52  ;;  %v1018_v0 = vpop.f32.mrf.mxu1  ;;  %v1049_v58 = vadd.f32 %v2482_v19, %v2423_v25 }
 0x113   : > { %v2014_v63 = vpack.c.bf16 %v1401_v60, %v1400_v59  ;;  %v1019_v2 = vadd.f32 %v1018_v0, %v929_v62 }
 0x114   : > { %v1270_v1 = vmul.f32 %v2407_v10, %v1106_v61 }
 0x115   : > { %2070 = vst [vmem:[%s2434_s8 + $0x28] sm:$0xff] %v2014_v63  }
 0x116   : > { %v1306_v6 = vadd.f32 %v2412_v13, %v1270_v1 }
 0x117   : > { %v2502_v3 = vpop.f32.mrf.mxu3 }
 0x118   : > { %v1370_v14 = vmul.f32 0.01, %v1306_v6  ;;  %vm1338_vm12 = vcmp.ge.f32.partialorder %v1306_v6, 0.0 }
 0x119   : > { %v1107_v4 = vpop.f32.mrf.mxu2  ;;  %v932_v11 = vpop.f32.mrf.mxu0 }
 0x11a   : > { %v1108_v8 = vadd.f32 %v1107_v4, %v1019_v2  ;;  %v1021_v9 = vpop.f32.mrf.mxu1  ;;  %v1402_v22 = vsel %vm1338_vm12, %v1306_v6, %v1370_v14 }
 0x11b   : > { %v1022_v16 = vadd.f32 %v1021_v9, %v932_v11 }
 0x11c   : > { %v1271_v12 = vmul.f32 %v2407_v10, %v1108_v8 }
 0x11e   : > { %v1307_v15 = vadd.f32 %v2412_v13, %v1271_v12 }
 0x11f   : > { %v1061_v18 = vpop.f32.mrf.mxu3 }
 0x120   : > { %vm1339_vm13 = vcmp.ge.f32.partialorder %v1307_v15, 0.0  ;;  %v1371_v17 = vmul.f32 0.01, %v1307_v15  ;;  %v2508_v20 = vadd.f32 %v1061_v18, %v2468_v46 }
 0x121   : > { %v1110_v21 = vpop.f32.mrf.mxu2  ;;  %v934_v23 = vpop.f32.mrf.mxu0 }
 0x122   : > { %v1403_v24 = vsel %vm1339_vm13, %v1307_v15, %v1371_v17  ;;  %v1111_v7 = vadd.f32 %v1110_v21, %v1022_v16  ;;  %v1023_v27 = vpop.f32.mrf.mxu1 }
 0x123   : > { %v2019_v26 = vpack.c.bf16 %v1403_v24, %v1402_v22  ;;  %v1024_v29 = vadd.f32 %v1023_v27, %v934_v23 }
 0x124   : > { %v1272_v28 = vmul.f32 %v2407_v10, %v1111_v7 }
 0x125   : > { %2071 = vst [vmem:[%s2434_s8 + $0x30] sm:$0xff] %v2019_v26  }
 0x126   : > { %v1308_v34 = vadd.f32 %v2412_v13, %v1272_v28 }
 0x127   : > { %v2512_v31 = vpop.f32.mrf.mxu3 }
 0x128   : > { %v1372_v38 = vmul.f32 0.01, %v1308_v34  ;;  %vm1340_vm14 = vcmp.ge.f32.partialorder %v1308_v34, 0.0 }
 0x129   : > { %v1112_v33 = vpop.f32.mrf.mxu2  ;;  %v937_v36 = vpop.f32.mrf.mxu0 }
 0x12a   : > { %v1113_v35 = vadd.f32 %v1112_v33, %v1024_v29  ;;  %v1026_v46 = vpop.f32.mrf.mxu1  ;;  %v1404_v48 = vsel %vm1340_vm14, %v1308_v34, %v1372_v38  ;;  %v1054_v34 = vadd.f32 %v2492_v43, %v2446_v57 }
 0x12b   : > { %v1027_v41 = vadd.f32 %v1026_v46, %v937_v36 }
 0x12c   : > { %v1273_v37 = vmul.f32 %v2407_v10, %v1113_v35 }
 0x12e   : > { %v1309_v40 = vadd.f32 %v2412_v13, %v1273_v37 }
 0x12f   : > { %v1135_v44 = vpop.f32.mrf.mxu3 }
 0x130   : > { %vm1341_vm15 = vcmp.ge.f32.partialorder %v1309_v40, 0.0  ;;  %v1373_v42 = vmul.f32 0.01, %v1309_v40  ;;  %v1136_v47 = vadd.f32 %v1135_v44, %v2478_v5 }
 0x131   : > { %v1115_v45 = vpop.f32.mrf.mxu2  ;;  %v939_v50 = vpop.f32.mrf.mxu0 }
 0x132   : > { %v1405_v39 = vsel %vm1341_vm15, %v1309_v40, %v1373_v42  ;;  %v1116_v49 = vadd.f32 %v1115_v45, %v1027_v41  ;;  %v1028_v52 = vpop.f32.mrf.mxu1  ;;  %v1282_v53 = vmul.f32 %v2407_v10, %v1136_v47 }
 0x133   : > { %v2024_v51 = vpack.c.bf16 %v1405_v39, %v1404_v48  ;;  %v1029_v59 = vadd.f32 %v1028_v52, %v939_v50 }
 0x134   : > { %v1274_v54 = vmul.f32 %v2407_v10, %v1116_v49  ;;  %v1318_v61 = vadd.f32 %v2412_v13, %v1282_v53 }
 0x135   : > { %2072 = vst [vmem:[%s2434_s8 + $0x38] sm:$0xff] %v2024_v51  }
 0x136   : > { %v1310_v63 = vadd.f32 %v2412_v13, %v1274_v54  ;;  %v1382_v8 = vmul.f32 0.01, %v1318_v61  ;;  %vm1350_vm0 = vcmp.ge.f32.partialorder %v1318_v61, 0.0 }
 0x137   : > { %v1137_v60 = vpop.f32.mrf.mxu3 }
 0x138   : > { %v1138_v5 = vadd.f32 %v1137_v60, %v1049_v58  ;;  %v1374_v9 = vmul.f32 0.01, %v1310_v63  ;;  %vm1342_vm1 = vcmp.ge.f32.partialorder %v1310_v63, 0.0  ;;  %v1414_v16 = vsel %vm1350_vm0, %v1318_v61, %v1382_v8 }
 0x139   : > { %v1117_v62 = vpop.f32.mrf.mxu2  ;;  %v942_v1 = vpop.f32.mrf.mxu0 }
 0x13a   : > { %v1118_v0 = vadd.f32 %v1117_v62, %v1029_v59  ;;  %v1283_v2 = vmul.f32 %v2407_v10, %v1138_v5  ;;  %v1031_v4 = vpop.f32.mrf.mxu1  ;;  %v1406_v22 = vsel %vm1342_vm1, %v1310_v63, %v1374_v9 }
 0x13b   : > { %v1032_v19 = vadd.f32 %v1031_v4, %v942_v1  ;;  %v1059_v4 = vadd.f32 %v2502_v3, %v2463_v30 }
 0x13c   : > { %v1275_v6 = vmul.f32 %v2407_v10, %v1118_v0  ;;  %v1319_v11 = vadd.f32 %v2412_v13, %v1283_v2 }
 0x13e   : > { %v1311_v25 = vadd.f32 %v2412_v13, %v1275_v6  ;;  %vm1351_vm2 = vcmp.ge.f32.partialorder %v1319_v11, 0.0  ;;  %v1383_v12 = vmul.f32 0.01, %v1319_v11 }
 0x13f   : > { %v1140_v15 = vpop.f32.mrf.mxu3 }
 0x140   : > { %vm1343_vm3 = vcmp.ge.f32.partialorder %v1311_v25, 0.0  ;;  %v1375_v14 = vmul.f32 0.01, %v1311_v25  ;;  %v1415_v17 = vsel %vm1351_vm2, %v1319_v11, %v1383_v12  ;;  %v1141_v21 = vadd.f32 %v1140_v15, %v2488_v32 }
 0x141   : > { %v1120_v18 = vpop.f32.mrf.mxu2  ;;  %v2049_v7 = vpack.c.bf16 %v1415_v17, %v1414_v16  ;;  %v944_v26 = vpop.f32.mrf.mxu0 }
 0x142   : > { %v1407_v24 = vsel %vm1343_vm3, %v1311_v25, %v1375_v14  ;;  %v1121_v23 = vadd.f32 %v1120_v18, %v1032_v19  ;;  %v1033_v28 = vpop.f32.mrf.mxu1  ;;  %v1284_v29 = vmul.f32 %v2407_v10, %v1141_v21 }
 0x143   : > { %v2029_v27 = vpack.c.bf16 %v1407_v24, %v1406_v22  ;;  %2077 = vst [vmem:[%s2434_s8 + $0x60] sm:$0xff] %v2049_v7   ;;  %v1034_v35 = vadd.f32 %v1033_v28, %v944_v26 }
 0x144   : > { %v1276_v33 = vmul.f32 %v2407_v10, %v1121_v23  ;;  %v1320_v32 = vadd.f32 %v2412_v13, %v1284_v29 }
 0x145   : > { %2073 = vst [vmem:[%s2434_s8 + $0x40] sm:$0xff] %v2029_v27  }
 0x146   : > { %v1312_v38 = vadd.f32 %v2412_v13, %v1276_v33  ;;  %v1384_v47 = vmul.f32 0.01, %v1320_v32  ;;  %vm1352_vm4 = vcmp.ge.f32.partialorder %v1320_v32, 0.0 }
 0x147   : > { %v1142_v36 = vpop.f32.mrf.mxu3 }
 0x148   : > { %v1143_v37 = vadd.f32 %v1142_v36, %v1054_v34  ;;  %v1376_v39 = vmul.f32 0.01, %v1312_v38  ;;  %vm1344_vm5 = vcmp.ge.f32.partialorder %v1312_v38, 0.0  ;;  %v1416_v52 = vsel %vm1352_vm4, %v1320_v32, %v1384_v47 }
 0x149   : > { %v1122_v46 = vpop.f32.mrf.mxu2  ;;  %v947_v41 = vpop.f32.mrf.mxu0 }
 0x14a   : > { %v1123_v40 = vadd.f32 %v1122_v46, %v1034_v35  ;;  %v1285_v42 = vmul.f32 %v2407_v10, %v1143_v37  ;;  %v1036_v44 = vpop.f32.mrf.mxu1  ;;  %v1408_v59 = vsel %vm1344_vm5, %v1312_v38, %v1376_v39 }
 0x14b   : > { %v1037_v43 = vadd.f32 %v1036_v44, %v947_v41 }
 0x14c   : > { %v1277_v45 = vmul.f32 %v2407_v10, %v1123_v40  ;;  %v1321_v48 = vadd.f32 %v2412_v13, %v1285_v42  ;;  %v1064_v40 = vadd.f32 %v2512_v31, %v2472_v56 }
 0x14e   : > { %v1313_v57 = vadd.f32 %v2412_v13, %v1277_v45  ;;  %vm1353_vm6 = vcmp.ge.f32.partialorder %v1321_v48, 0.0  ;;  %v1385_v49 = vmul.f32 0.01, %v1321_v48 }
 0x14f   : > { %v1145_v51 = vpop.f32.mrf.mxu3 }
 0x150   : > { %vm1345_vm7 = vcmp.ge.f32.partialorder %v1313_v57, 0.0  ;;  %v1377_v50 = vmul.f32 0.01, %v1313_v57  ;;  %v1417_v53 = vsel %vm1353_vm6, %v1321_v48, %v1385_v49  ;;  %v1146_v58 = vadd.f32 %v1145_v51, %v2498_v55 }
 0x151   : > { %v1125_v54 = vpop.f32.mrf.mxu2  ;;  %v2054_v61 = vpack.c.bf16 %v1417_v53, %v1416_v52  ;;  %v949_v5 = vpop.f32.mrf.mxu0 }
 0x152   : > { %v1409_v60 = vsel %vm1345_vm7, %v1313_v57, %v1377_v50  ;;  %v1126_v62 = vadd.f32 %v1125_v54, %v1037_v43  ;;  %v1038_v0 = vpop.f32.mrf.mxu1  ;;  %v1286_v1 = vmul.f32 %v2407_v10, %v1146_v58 }
 0x153   : > { %v2034_v63 = vpack.c.bf16 %v1409_v60, %v1408_v59  ;;  %2078 = vst [vmem:[%s2434_s8 + $0x68] sm:$0xff] %v2054_v61   ;;  %v1039_v6 = vadd.f32 %v1038_v0, %v949_v5 }
 0x154   : > { %v1278_v2 = vmul.f32 %v2407_v10, %v1126_v62  ;;  %v1322_v55 = vadd.f32 %v2412_v13, %v1286_v1 }
 0x155   : > { %2074 = vst [vmem:[%s2434_s8 + $0x48] sm:$0xff] %v2034_v63  }
 0x156   : > { %v1314_v25 = vadd.f32 %v2412_v13, %v1278_v2  ;;  %v1386_v17 = vmul.f32 0.01, %v1322_v55  ;;  %vm1354_vm8 = vcmp.ge.f32.partialorder %v1322_v55, 0.0 }
 0x157   : > { %v1147_v8 = vpop.f32.mrf.mxu3 }
 0x158   : > { %v1148_v9 = vadd.f32 %v1147_v8, %v1059_v4  ;;  %v1378_v21 = vmul.f32 0.01, %v1314_v25  ;;  %vm1346_vm9 = vcmp.ge.f32.partialorder %v1314_v25, 0.0  ;;  %v1418_v23 = vsel %vm1354_vm8, %v1322_v55, %v1386_v17 }
 0x159   : > { %v1127_v11 = vpop.f32.mrf.mxu2  ;;  %v952_v14 = vpop.f32.mrf.mxu0 }
 0x15a   : > { %v1128_v19 = vadd.f32 %v1127_v11, %v1039_v6  ;;  %v1287_v12 = vmul.f32 %v2407_v10, %v1148_v9  ;;  %v1041_v15 = vpop.f32.mrf.mxu1  ;;  %v1410_v29 = vsel %vm1346_vm9, %v1314_v25, %v1378_v21 }
 0x15b   : > { %v1042_v3 = vadd.f32 %v1041_v15, %v952_v14 }
 0x15c   : > { %v1279_v16 = vmul.f32 %v2407_v10, %v1128_v19  ;;  %v1323_v18 = vadd.f32 %v2412_v13, %v1287_v12 }
 0x15e   : > { %v1315_v30 = vadd.f32 %v2412_v13, %v1279_v16  ;;  %vm1355_vm10 = vcmp.ge.f32.partialorder %v1323_v18, 0.0  ;;  %v1387_v22 = vmul.f32 0.01, %v1323_v18 }
 0x15f   : > { %v1150_v7 = vpop.f32.mrf.mxu3 }
 0x160   : > { %vm1347_vm11 = vcmp.ge.f32.partialorder %v1315_v30, 0.0  ;;  %v1379_v24 = vmul.f32 0.01, %v1315_v30  ;;  %v1419_v26 = vsel %vm1355_vm10, %v1323_v18, %v1387_v22  ;;  %v1151_v28 = vadd.f32 %v1150_v7, %v2508_v20 }
 0x161   : > { %v1130_v27 = vpop.f32.mrf.mxu2  ;;  %v2059_v34 = vpack.c.bf16 %v1419_v26, %v1418_v23  ;;  %v954_v46 = vpop.f32.mrf.mxu0 }
 0x162   : > { %v1411_v33 = vsel %vm1347_vm11, %v1315_v30, %v1379_v24  ;;  %v1131_v35 = vadd.f32 %v1130_v27, %v1042_v3  ;;  %v1288_v32 = vmul.f32 %v2407_v10, %v1151_v28  ;;  %v1043_v37 = vpop.f32.mrf.mxu1 }
 0x163   : > { %v2039_v36 = vpack.c.bf16 %v1411_v33, %v1410_v29  ;;  %2079 = vst [vmem:[%s2434_s8 + $0x70] sm:$0xff] %v2059_v34   ;;  %v1044_v41 = vadd.f32 %v1043_v37, %v954_v46 }
 0x164   : > { %v1280_v38 = vmul.f32 %v2407_v10, %v1131_v35  ;;  %v1324_v20 = vadd.f32 %v2412_v13, %v1288_v32 }
 0x165   : > { %2075 = vst [vmem:[%s2434_s8 + $0x50] sm:$0xff] %v2039_v36  }
 0x166   : > { %v1316_v47 = vadd.f32 %v2412_v13, %v1280_v38  ;;  %v1388_v43 = vmul.f32 0.01, %v1324_v20  ;;  %vm1356_vm12 = vcmp.ge.f32.partialorder %v1324_v20, 0.0 }
 0x167   : > { %v1152_v42 = vpop.f32.mrf.mxu3 }
 0x168   : > { %v1153_v45 = vadd.f32 %v1152_v42, %v1064_v40  ;;  %v1380_v50 = vmul.f32 0.01, %v1316_v47  ;;  %vm1348_vm13 = vcmp.ge.f32.partialorder %v1316_v47, 0.0  ;;  %v1420_v52 = vsel %vm1356_vm12, %v1324_v20, %v1388_v43 }
 0x169   : > { %v1132_v44 = vpop.f32.mrf.mxu2 }
 0x16a   : > { %v1133_v48 = vadd.f32 %v1132_v44, %v1044_v41  ;;  %v1289_v39 = vmul.f32 %v2407_v10, %v1153_v45  ;;  %v1412_v54 = vsel %vm1348_vm13, %v1316_v47, %v1380_v50 }
 0x16c   : > { %v1281_v57 = vmul.f32 %v2407_v10, %v1133_v48  ;;  %v1325_v49 = vadd.f32 %v2412_v13, %v1289_v39 }
 0x16e   : > { %v1317_v56 = vadd.f32 %v2412_v13, %v1281_v57  ;;  %vm1357_vm14 = vcmp.ge.f32.partialorder %v1325_v49, 0.0  ;;  %v1389_v31 = vmul.f32 0.01, %v1325_v49 }
 0x170   : > { %vm1349_vm15 = vcmp.ge.f32.partialorder %v1317_v56, 0.0  ;;  %v1381_v51 = vmul.f32 0.01, %v1317_v56  ;;  %v1421_v53 = vsel %vm1357_vm14, %v1325_v49, %v1389_v31 }
 0x171   : > { %v2064_v59 = vpack.c.bf16 %v1421_v53, %v1420_v52 }
 0x172   : > { %v1413_v58 = vsel %vm1349_vm15, %v1317_v56, %v1381_v51 }
 0x173   : > { %v2044_v10 = vpack.c.bf16 %v1413_v58, %v1412_v54  ;;  %2080 = vst [vmem:[%s2434_s8 + $0x78] sm:$0xff] %v2064_v59  }
 0x175   : > { %2076 = vst [vmem:[%s2434_s8 + $0x58] sm:$0xff] %v2044_v10  }
 0x176 PF: > { %s14_s17 = sadd.s32 1, %s2154_s17   ;;  %s2584_s15 = smov %s2150_s16 }
 0x177   : > { %p11_p5 = scmp.ge.s32.totalorder %s14_s17, 4   ;;  %s2585_s16 = smov %s2587_s18 }
 0x179   :  { %13 = sbr.rel (!%p11_p5) target bundleno = 2 (0x2), region = 83 }

// kernel: _lambda_.23
= control target key start
LH: loop header
LB: loop body
LE: loop exit
PB: predicated region body
PF: predicated region fallthrough
CT: control target
= control target key end

     0   :  { %s2181_s15 = smov 0   ;;  %s2183_s16 = smov 0   ;;  %s2579_s0 = inlined_call_operand.vmem [shape: bf16[1536,384], index: 0, kind: input, shape index: {}]   ;;  %s2580_s1 = inlined_call_operand.vmem [shape: bf16[384,128], index: 1, kind: input, shape index: {}]   ;;  %s2581_s2 = inlined_call_operand.vmem [shape: f32[1,128], index: 2, kind: input, shape index: {}]   ;;  %s2582_s3 = inlined_call_operand.vmem [shape: f32[1,128], index: 3, kind: input, shape index: {}]   ;;  %s2583_s4 = inlined_call_operand.vmem [shape: bf16[1536,128], index: 4, kind: output, shape index: {}]  }
   0x1   :  { %s2185_s17 = smov 0  }
   0x2 LB: > { %s33_s18 = sadd.s32 1, %s2150_s16  ;;  %p1619_p0 = scmp.ge.s32.totalorder %s2154_s17, 1  ;;  %s2154_s17 = sphi %s2185_s17, %s14_s17   ;;  %s2150_s16 = sphi %s2183_s16, %s2585_s16   ;;  %s2146_s15 = sphi %s2181_s15, %s2584_s15  }
   0x3   : > { %p35_p1 = scmp.ge.s32.totalorder %s33_s18, 6  ;;  %p224_p2 = scmp.lt.s32.totalorder %s2154_s17, 7 }
   0x5   : > { %s2587_s18 = smov (%p35_p1, %s33_s18), 0  ;;  %p225_p3 = pnand %p1619_p0, %p224_p2 }
   0x6   : > { %s1620_s11 = sshll.u32 (!%p225_p3), %s2146_s15, 5 }
   0x7   : > { %228 = sbr.rel (%p225_p3) target bundleno = 374 (0x176), region = 36  ;;  %p274_p4 = scmp.lt.s32.totalorder (!%p225_p3), %s1620_s11, 191 }
   0xc   : > { %v1969_v0 = vld [vmem:[%s2580_s1 + $0x38] sm:$0xff]  ;;  %v1968_v3 = vld [vmem:[%s2580_s1 + $0x30] sm:$0xff]  ;;  %v1967_v6 = vld [vmem:[%s2580_s1 + $0x28] sm:$0xff]  ;;  %s2589_s11 = smov (!%p274_p4, %s1620_s11), 191 }
   0xd   : > { %v2207_v1 = vld [vmem:[%s2580_s1 + $0x78] sm:$0xff]  ;;  %888 = vmatpush.bf16.msra.mxu0 %v1969_v0  ;;  %2081 = vmatpush.bf16.msra.mxu3 %v1969_v0  ;;  %v2222_v4 = vld [vmem:[%s2580_s1 + $0x70] sm:$0xff]  ;;  %v2237_v7 = vld [vmem:[%s2580_s1 + $0x68] sm:$0xff]  ;;  %s2105_s29 = smul.u32 12, %s2589_s11  ;;  %s1623_s5 = sshll.u32 %s2589_s11, 2 }
   0xe   : > { %v2212_v2 = vld [vmem:[%s2580_s1 + $0xb8] sm:$0xff]  ;;  %977 = vmatpush.bf16.msra.mxu1 %v2207_v1  ;;  %v2227_v5 = vld [vmem:[%s2580_s1 + $0xb0] sm:$0xff]  ;;  %v2242_v8 = vld [vmem:[%s2580_s1 + $0xa8] sm:$0xff]  ;;  %s2434_s8 = scalar_lea.vmem %s2583_s4, %s1623_s5 }
   0xf   : > { %1066 = vmatpush.bf16.msra.mxu2 %v2212_v2  ;;  %v1966_v9 = vld [vmem:[%s2580_s1 + $0x20] sm:$0xff]  ;;  %v1965_v12 = vld [vmem:[%s2580_s1 + $0x18] sm:$0xff]  ;;  %v1964_v15 = vld [vmem:[%s2580_s1 + $0x10] sm:$0xff]  ;;  %s2294_s13 = scalar_lea.vmem %s2579_s0, %s2105_s29 }
  0x10   : > { %v2251_v10 = vld [vmem:[%s2580_s1 + $0x60] sm:$0xff]  ;;  %v1973_v13 = vld [vmem:[%s2580_s1 + $0x58] sm:$0xff]  ;;  %v1972_v16 = vld [vmem:[%s2580_s1 + $0x50] sm:$0xff] }
  0x11   : > { %889 = vmatpush.bf16.msra.mxu0 %v1968_v3  ;;  %2082 = vmatpush.bf16.msra.mxu3 %v1968_v3  ;;  %v2258_v11 = vld [vmem:[%s2580_s1 + $0xa0] sm:$0xff]  ;;  %v2273_v14 = vld [vmem:[%s2580_s1 + $0x98] sm:$0xff]  ;;  %v2286_v17 = vld [vmem:[%s2580_s1 + $0x90] sm:$0xff] }
  0x12   : > { %978 = vmatpush.bf16.msra.mxu1 %v2222_v4  ;;  %v1963_v18 = vld [vmem:[%s2580_s1 + $0x8] sm:$0xff]  ;;  %v1962_v21 = vld [vmem:[%s2580_s1] sm:$0xff]  ;;  %v1628_v29 = vld [vmem:[%s2294_s13 + $0xc] sm:$0xf0] }
  0x13   : > { %1067 = vmatpush.bf16.msra.mxu2 %v2227_v5  ;;  %v1971_v19 = vld [vmem:[%s2580_s1 + $0x48] sm:$0xff]  ;;  %v1970_v22 = vld [vmem:[%s2580_s1 + $0x40] sm:$0xff]  ;;  %v1916_v31 = vld [vmem:[%s2294_s13 + $0x10] sm:$0xf0] }
  0x14   : > { %v2303_v20 = vld [vmem:[%s2580_s1 + $0x88] sm:$0xff]  ;;  %v2314_v23 = vld [vmem:[%s2580_s1 + $0x80] sm:$0xff]  ;;  %v1638_v36 = vld [vmem:[%s2294_s13 + $0x18] sm:$0xf] }
  0x15   : > { %890 = vmatpush.bf16.msra.mxu0 %v1967_v6  ;;  %2083 = vmatpush.bf16.msra.mxu3 %v1967_v6  ;;  %v1626_v24 = vld [vmem:[%s2294_s13] sm:$0xf]  ;;  %v1915_v25 = vld [vmem:[%s2294_s13 + $0x8] sm:$0xf0]  ;;  %v1914_v28 = vld [vmem:[%s2294_s13 + $0x4] sm:$0xf] }
  0x16   : > { %979 = vmatpush.bf16.msra.mxu1 %v2237_v7  ;;  %v1770_v26 = vld [vmem:[%s2294_s13 + $0x120] sm:$0xf]  ;;  %v1951_v27 = vld [vmem:[%s2294_s13 + $0x128] sm:$0xf0]  ;;  %v1634_v30 = vld [vmem:[%s2294_s13 + $0x8] sm:$0xf]  ;;  %v1627_v32 = vor.u32 %v1915_v25, %v1626_v24  ;;  %v1631_v34 = vor.u32 %v1914_v28, %v1628_v29 }
  0x17   : > { %1068 = vmatpush.bf16.msra.mxu2 %v2242_v8  ;;  %v1771_v33 = vor.u32 %v1951_v27, %v1770_v26  ;;  %v1635_v35 = vor.u32 %v1916_v31, %v1634_v30  ;;  %v1918_v37 = vld [vmem:[%s2294_s13 + $0x20] sm:$0xf0]  ;;  %v1782_v38 = vld [vmem:[%s2294_s13 + $0x138] sm:$0xf]  ;;  %v1917_v40 = vld [vmem:[%s2294_s13 + $0x1c] sm:$0xf] }
  0x18   : > { %v1954_v39 = vld [vmem:[%s2294_s13 + $0x140] sm:$0xf0]  ;;  %v1640_v41 = vld [vmem:[%s2294_s13 + $0x24] sm:$0xf0]  ;;  %v1646_v42 = vld [vmem:[%s2294_s13 + $0x20] sm:$0xf]  ;;  %v1639_v44 = vor.u32 %v1918_v37, %v1638_v36 }
  0x19   : > { %891 = vmatpush.bf16.msra.mxu0 %v1966_v9  ;;  %2084 = vmatpush.bf16.msra.mxu3 %v1966_v9  ;;  %v1919_v43 = vld [vmem:[%s2294_s13 + $0x28] sm:$0xf0]  ;;  %v1783_v45 = vor.u32 %v1954_v39, %v1782_v38  ;;  %v1643_v46 = vor.u32 %v1917_v40, %v1640_v41  ;;  %v1650_v48 = vld [vmem:[%s2294_s13 + $0x30] sm:$0xf]  ;;  %v1921_v49 = vld [vmem:[%s2294_s13 + $0x38] sm:$0xf0] }
  0x1a   : > { %980 = vmatpush.bf16.msra.mxu1 %v2251_v10  ;;  %v1647_v47 = vor.u32 %v1919_v43, %v1646_v42  ;;  %v1794_v50 = vld [vmem:[%s2294_s13 + $0x150] sm:$0xf]  ;;  %v1957_v51 = vld [vmem:[%s2294_s13 + $0x158] sm:$0xf0]  ;;  %v1920_v52 = vld [vmem:[%s2294_s13 + $0x34] sm:$0xf]  ;;  %v1651_v56 = vor.u32 %v1921_v49, %v1650_v48 }
  0x1b   : > { %1069 = vmatpush.bf16.msra.mxu2 %v2258_v11  ;;  %v1652_v53 = vld [vmem:[%s2294_s13 + $0x3c] sm:$0xf0]  ;;  %v1658_v54 = vld [vmem:[%s2294_s13 + $0x38] sm:$0xf]  ;;  %v1922_v55 = vld [vmem:[%s2294_s13 + $0x40] sm:$0xf0]  ;;  %v1795_v57 = vor.u32 %v1957_v51, %v1794_v50 }
  0x1c   : > { %v1655_v58 = vor.u32 %v1920_v52, %v1652_v53  ;;  %v1659_v59 = vor.u32 %v1922_v55, %v1658_v54  ;;  %v1662_v60 = vld [vmem:[%s2294_s13 + $0x48] sm:$0xf]  ;;  %v1924_v61 = vld [vmem:[%s2294_s13 + $0x50] sm:$0xf0]  ;;  %v1923_v0 = vld [vmem:[%s2294_s13 + $0x4c] sm:$0xf] }
  0x1d   : > { %892 = vmatpush.bf16.msra.mxu0 %v1965_v12  ;;  %2085 = vmatpush.bf16.msra.mxu3 %v1965_v12  ;;  %v1806_v62 = vld [vmem:[%s2294_s13 + $0x168] sm:$0xf]  ;;  %v1960_v63 = vld [vmem:[%s2294_s13 + $0x170] sm:$0xf0]  ;;  %v1925_v3 = vld [vmem:[%s2294_s13 + $0x58] sm:$0xf0] }
  0x1e   : > { %981 = vmatpush.bf16.msra.mxu1 %v1973_v13  ;;  %v1927_v9 = vld [vmem:[%s2294_s13 + $0x68] sm:$0xf0]  ;;  %v1772_v12 = vld [vmem:[%s2294_s13 + $0x12c] sm:$0xf0]  ;;  %v1953_v24 = vld [vmem:[%s2294_s13 + $0x13c] sm:$0xf] }
  0x1f   : > { %1070 = vmatpush.bf16.msra.mxu2 %v2273_v14  ;;  %v1784_v25 = vld [vmem:[%s2294_s13 + $0x144] sm:$0xf0]  ;;  %v1694_v26 = vld [vmem:[%s2294_s13 + $0x80] sm:$0xf]  ;;  %v1931_v27 = vld [vmem:[%s2294_s13 + $0x88] sm:$0xf0] }
  0x20   : > { %v1787_v29 = vor.u32 %v1953_v24, %v1784_v25  ;;  %v1695_v31 = vor.u32 %v1931_v27, %v1694_v26  ;;  %v1796_v36 = vld [vmem:[%s2294_s13 + $0x15c] sm:$0xf0]  ;;  %v1706_v38 = vld [vmem:[%s2294_s13 + $0x98] sm:$0xf]  ;;  %v1934_v39 = vld [vmem:[%s2294_s13 + $0xa0] sm:$0xf0] }
  0x21   : > { %893 = vmatpush.bf16.msra.mxu0 %v1964_v15  ;;  %2086 = vmatpush.bf16.msra.mxu3 %v1964_v15  ;;  %v1928_v15 = vld [vmem:[%s2294_s13 + $0x70] sm:$0xf0]  ;;  %v1700_v37 = vld [vmem:[%s2294_s13 + $0x9c] sm:$0xf0]  ;;  %v1707_v43 = vor.u32 %v1934_v39, %v1706_v38  ;;  %v1808_v48 = vld [vmem:[%s2294_s13 + $0x174] sm:$0xf0] }
  0x22   : > { %982 = vmatpush.bf16.msra.mxu1 %v1972_v16  ;;  %v1712_v49 = vld [vmem:[%s2294_s13 + $0xb4] sm:$0xf0]  ;;  %v1718_v50 = vld [vmem:[%s2294_s13 + $0xb0] sm:$0xf]  ;;  %v1937_v51 = vld [vmem:[%s2294_s13 + $0xb8] sm:$0xf0] }
  0x23   : > { %1071 = vmatpush.bf16.msra.mxu2 %v2286_v17  ;;  %v1719_v55 = vor.u32 %v1937_v51, %v1718_v50  ;;  %v1944_v50 = vld [vmem:[%s2294_s13 + $0xf4] sm:$0xf]  ;;  %v1802_v51 = vld [vmem:[%s2294_s13 + $0x158] sm:$0xf] }
  0x25   : > { %894 = vmatpush.bf16.msra.mxu0 %v1963_v18  ;;  %2087 = vmatpush.bf16.msra.mxu3 %v1963_v18 }
  0x26   : > { %983 = vmatpush.bf16.msra.mxu1 %v1971_v19 }
  0x27   : > { %1072 = vmatpush.bf16.msra.mxu2 %v2303_v20 }
  0x29   : > { %895 = vmatpush.bf16.msra.mxu0 %v1962_v21  ;;  %2088 = vmatpush.bf16.msra.mxu3 %v1962_v21  ;;  %v1930_v21 = vld [vmem:[%s2294_s13 + $0x80] sm:$0xf0] }
  0x2a   : > { %984 = vmatpush.bf16.msra.mxu1 %v1970_v22 }
  0x2b   : > { %1073 = vmatpush.bf16.msra.mxu2 %v2314_v23 }
  0x2c   : > { %896 = vmatmul.bf16.vlgmr.msra.gmra.mxu0 %v1627_v32  ;;  %956 = vmatmul.bf16.vlgmr.msra.gmra.mxu3 %v1771_v33  ;;  %v1698_v32 = vld [vmem:[%s2294_s13 + $0x90] sm:$0xf]  ;;  %v1933_v33 = vld [vmem:[%s2294_s13 + $0x98] sm:$0xf0] }
  0x2d   : > { %2089 = vmatpush.bf16.msrb.mxu3 %v2207_v1  ;;  %985 = vmatmul.bf16.vlgmr.msra.gmra.mxu1 %v1631_v34  ;;  %v1664_v1 = vld [vmem:[%s2294_s13 + $0x54] sm:$0xf0]  ;;  %v1932_v34 = vld [vmem:[%s2294_s13 + $0x94] sm:$0xf]  ;;  %v1699_v40 = vor.u32 %v1933_v33, %v1698_v32 }
  0x2e   : > { %1074 = vmatmul.bf16.vlgmr.msra.gmra.mxu2 %v1635_v35  ;;  %v1667_v6 = vor.u32 %v1923_v0, %v1664_v1  ;;  %v1956_v35 = vld [vmem:[%s2294_s13 + $0x154] sm:$0xf]  ;;  %v1703_v42 = vor.u32 %v1932_v34, %v1700_v37 }
  0x2f   : > { %v1799_v41 = vor.u32 %v1956_v35, %v1796_v36 }
  0x31   : > { %2090 = vmatpush.bf16.msrb.mxu3 %v2222_v4  ;;  %v1663_v4 = vor.u32 %v1924_v61, %v1662_v60  ;;  %v1952_v60 = vld [vmem:[%s2294_s13 + $0x130] sm:$0xf0]  ;;  %v1724_v61 = vld [vmem:[%s2294_s13 + $0xcc] sm:$0xf0] }
  0x35   : > { %2091 = vmatpush.bf16.msrb.mxu3 %v2237_v7 }
  0x39   : > { %2092 = vmatpush.bf16.msrb.mxu3 %v2251_v10  ;;  %v1926_v10 = vld [vmem:[%s2294_s13 + $0x64] sm:$0xf] }
  0x3c   : > { %901 = vmatmul.bf16.gmra.mxu0 %v1639_v44  ;;  %961 = vmatmul.bf16.gmra.mxu3 %v1783_v45  ;;  %v1710_v44 = vld [vmem:[%s2294_s13 + $0xa8] sm:$0xf]  ;;  %v1936_v45 = vld [vmem:[%s2294_s13 + $0xb0] sm:$0xf0] }
  0x3d   : > { %2093 = vmatpush.bf16.msrb.mxu3 %v1973_v13  ;;  %990 = vmatmul.bf16.gmra.mxu1 %v1643_v46  ;;  %v1676_v13 = vld [vmem:[%s2294_s13 + $0x6c] sm:$0xf0]  ;;  %v1935_v46 = vld [vmem:[%s2294_s13 + $0xac] sm:$0xf]  ;;  %v1711_v52 = vor.u32 %v1936_v45, %v1710_v44 }
  0x3e   : > { %1079 = vmatmul.bf16.gmra.mxu2 %v1647_v47  ;;  %v1679_v18 = vor.u32 %v1926_v10, %v1676_v13  ;;  %v1959_v47 = vld [vmem:[%s2294_s13 + $0x16c] sm:$0xf]  ;;  %v1715_v54 = vor.u32 %v1935_v46, %v1712_v49  ;;  %v2407_v10 = vld [vmem:[%s2581_s2] ss:$0 sm:$0xff] }
  0x3f   : > { %v1811_v53 = vor.u32 %v1959_v47, %v1808_v48  ;;  %v2412_v13 = vld [vmem:[%s2582_s3] ss:$0 sm:$0xff]  ;;  %v1746_v47 = vld [vmem:[%s2294_s13 + $0xf0] sm:$0xf]  ;;  %v1945_v48 = vld [vmem:[%s2294_s13 + $0xf8] sm:$0xf0] }
  0x41   : > { %2094 = vmatpush.bf16.msrb.mxu3 %v1972_v16 }
  0x45   : > { %2095 = vmatpush.bf16.msrb.mxu3 %v1971_v19 }
  0x49   : > { %2096 = vmatpush.bf16.msrb.mxu3 %v1970_v22  ;;  %v1929_v22 = vld [vmem:[%s2294_s13 + $0x7c] sm:$0xf] }
  0x4c   : > { %906 = vmatmul.bf16.gmra.mxu0 %v1651_v56  ;;  %966 = vmatmul.bf16.gmra.mxu3 %v1795_v57  ;;  %v1722_v56 = vld [vmem:[%s2294_s13 + $0xc0] sm:$0xf]  ;;  %v1939_v57 = vld [vmem:[%s2294_s13 + $0xc8] sm:$0xf0] }
  0x4d   : > { %2097 = vmatpush.bf16.msra.mxu3 %v2212_v2  ;;  %995 = vmatmul.bf16.gmra.mxu1 %v1655_v58  ;;  %v1670_v2 = vld [vmem:[%s2294_s13 + $0x50] sm:$0xf]  ;;  %v1938_v58 = vld [vmem:[%s2294_s13 + $0xc4] sm:$0xf]  ;;  %v1723_v0 = vor.u32 %v1939_v57, %v1722_v56 }
  0x4e   : > { %1084 = vmatmul.bf16.gmra.mxu2 %v1659_v59  ;;  %v1671_v7 = vor.u32 %v1925_v3, %v1670_v2  ;;  %v1778_v59 = vld [vmem:[%s2294_s13 + $0x128] sm:$0xf]  ;;  %v1727_v3 = vor.u32 %v1938_v58, %v1724_v61 }
  0x4f   : > { %v1779_v1 = vor.u32 %v1952_v60, %v1778_v59  ;;  %v1747_v59 = vor.u32 %v1945_v48, %v1746_v47 }
  0x51   : > { %2098 = vmatpush.bf16.msra.mxu3 %v2227_v5  ;;  %v1807_v5 = vor.u32 %v1960_v63, %v1806_v62  ;;  %v1730_v62 = vld [vmem:[%s2294_s13 + $0xc8] sm:$0xf]  ;;  %v1940_v63 = vld [vmem:[%s2294_s13 + $0xd0] sm:$0xf0] }
  0x55   : > { %2099 = vmatpush.bf16.msra.mxu3 %v2242_v8  ;;  %v1674_v8 = vld [vmem:[%s2294_s13 + $0x60] sm:$0xf] }
  0x56   : > { %v1675_v16 = vor.u32 %v1927_v9, %v1674_v8 }
  0x59   : > { %2100 = vmatpush.bf16.msra.mxu3 %v2258_v11  ;;  %v1950_v11 = vld [vmem:[%s2294_s13 + $0x124] sm:$0xf] }
  0x5c   : > { %911 = vmatmul.bf16.gmra.mxu0 %v1663_v4  ;;  %971 = vmatmul.bf16.gmra.mxu3 %v1807_v5  ;;  %v1731_v4 = vor.u32 %v1940_v63, %v1730_v62 }
  0x5d   : > { %2101 = vmatpush.bf16.msra.mxu3 %v2273_v14  ;;  %1000 = vmatmul.bf16.gmra.mxu1 %v1667_v6  ;;  %v1682_v14 = vld [vmem:[%s2294_s13 + $0x68] sm:$0xf] }
  0x5e   : > { %1089 = vmatmul.bf16.gmra.mxu2 %v1671_v7  ;;  %v1683_v19 = vor.u32 %v1928_v15, %v1682_v14  ;;  %v1734_v14 = vld [vmem:[%s2294_s13 + $0xd8] sm:$0xf]  ;;  %v1942_v15 = vld [vmem:[%s2294_s13 + $0xe0] sm:$0xf0] }
  0x5f   : > { %v1735_v26 = vor.u32 %v1942_v15, %v1734_v14 }
  0x61   : > { %2102 = vmatpush.bf16.msra.mxu3 %v2286_v17  ;;  %v1775_v17 = vor.u32 %v1950_v11, %v1772_v12 }
  0x65   : > { %2103 = vmatpush.bf16.msra.mxu3 %v2303_v20  ;;  %v1686_v20 = vld [vmem:[%s2294_s13 + $0x78] sm:$0xf] }
  0x66   : > { %v1687_v28 = vor.u32 %v1930_v21, %v1686_v20  ;;  %v1736_v20 = vld [vmem:[%s2294_s13 + $0xe4] sm:$0xf0]  ;;  %v1742_v21 = vld [vmem:[%s2294_s13 + $0xe0] sm:$0xf] }
  0x69   : > { %2104 = vmatpush.bf16.msra.mxu3 %v2314_v23  ;;  %v1688_v23 = vld [vmem:[%s2294_s13 + $0x84] sm:$0xf0] }
  0x6a   : > { %v1691_v30 = vor.u32 %v1929_v22, %v1688_v23  ;;  %v1943_v22 = vld [vmem:[%s2294_s13 + $0xe8] sm:$0xf0] }
  0x6b   : > { %v1743_v32 = vor.u32 %v1943_v22, %v1742_v21  ;;  %v1947_v22 = vld [vmem:[%s2294_s13 + $0x10c] sm:$0xf] }
  0x6c   : > { %916 = vmatmul.bf16.gmra.mxu0 %v1675_v16  ;;  %1045 = vmatmul.bf16.vlgmr.msrb.gmra.mxu3 %v1775_v17  ;;  %v1941_v17 = vld [vmem:[%s2294_s13 + $0xdc] sm:$0xf] }
  0x6d   : > { %1005 = vmatmul.bf16.gmra.mxu1 %v1679_v18  ;;  %v1790_v18 = vld [vmem:[%s2294_s13 + $0x140] sm:$0xf] }
  0x6e   : > { %1094 = vmatmul.bf16.gmra.mxu2 %v1683_v19  ;;  %v1955_v19 = vld [vmem:[%s2294_s13 + $0x148] sm:$0xf0] }
  0x6f   : > { %v1791_v27 = vor.u32 %v1955_v19, %v1790_v18  ;;  %v1758_v19 = vld [vmem:[%s2294_s13 + $0x108] sm:$0xf] }
  0x7c   : > { %921 = vmatmul.bf16.gmra.mxu0 %v1687_v28  ;;  %1050 = vmatmul.bf16.gmra.mxu3 %v1787_v29 }
  0x7d   : > { %1010 = vmatmul.bf16.gmra.mxu1 %v1691_v30 }
  0x7e   : > { %1099 = vmatmul.bf16.gmra.mxu2 %v1695_v31  ;;  %v1739_v31 = vor.u32 %v1941_v17, %v1736_v20  ;;  %v1948_v20 = vld [vmem:[%s2294_s13 + $0x110] sm:$0xf0] }
  0x8c   : > { %926 = vmatmul.bf16.gmra.mxu0 %v1699_v40  ;;  %1055 = vmatmul.bf16.gmra.mxu3 %v1799_v41 }
  0x8d   : > { %1015 = vmatmul.bf16.gmra.mxu1 %v1703_v42 }
  0x8e   : > { %1104 = vmatmul.bf16.gmra.mxu2 %v1707_v43 }
  0x9c   : > { %931 = vmatmul.bf16.gmra.mxu0 %v1711_v52  ;;  %1060 = vmatmul.bf16.gmra.mxu3 %v1811_v53  ;;  %v1958_v52 = vld [vmem:[%s2294_s13 + $0x160] sm:$0xf0]  ;;  %v1748_v53 = vld [vmem:[%s2294_s13 + $0xfc] sm:$0xf0] }
  0x9d   : > { %1020 = vmatmul.bf16.gmra.mxu1 %v1715_v54  ;;  %v1754_v54 = vld [vmem:[%s2294_s13 + $0xf8] sm:$0xf]  ;;  %v1803_v60 = vor.u32 %v1958_v52, %v1802_v51 }
  0x9e   : > { %1109 = vmatmul.bf16.gmra.mxu2 %v1719_v55  ;;  %v1946_v55 = vld [vmem:[%s2294_s13 + $0x100] sm:$0xf0] }
  0xa9   : > { %v897_v2 = vpop.f32.mrf.mxu0 }
  0xaa   : > { %v986_v5 = vpop.f32.mrf.mxu1 }
  0xab   : > { %v987_v6 = vadd.f32 %v986_v5, %v897_v2 }
  0xac   : > { %936 = vmatmul.bf16.gmra.mxu0 %v1723_v0  ;;  %1134 = vmatmul.bf16.vlgmr.msra.gmra.mxu3 %v1779_v1  ;;  %v1751_v0 = vor.u32 %v1944_v50, %v1748_v53  ;;  %v1755_v1 = vor.u32 %v1946_v55, %v1754_v54 }
  0xad   : > { %1025 = vmatmul.bf16.gmra.mxu1 %v1727_v3 }
  0xae   : > { %1114 = vmatmul.bf16.gmra.mxu2 %v1731_v4 }
  0xaf   : > { %v2402_v7 = vpop.f32.mrf.mxu3 }
  0xb1   : > { %v1075_v8 = vpop.f32.mrf.mxu2  ;;  %v899_v11 = vpop.f32.mrf.mxu0 }
  0xb2   : > { %v1076_v9 = vadd.f32 %v1075_v8, %v987_v6  ;;  %v988_v12 = vpop.f32.mrf.mxu1 }
  0xb3   : > { %v989_v24 = vadd.f32 %v988_v12, %v899_v11 }
  0xb4   : > { %v1258_v16 = vmul.f32 %v2407_v10, %v1076_v9 }
  0xb6   : > { %v1294_v28 = vadd.f32 %v2412_v13, %v1258_v16 }
  0xb7   : > { %v2423_v25 = vpop.f32.mrf.mxu3 }
  0xb8   : > { %v1358_v35 = vmul.f32 0.01, %v1294_v28  ;;  %vm1326_vm0 = vcmp.ge.f32.partialorder %v1294_v28, 0.0 }
  0xb9   : > { %v1077_v23 = vpop.f32.mrf.mxu2  ;;  %v902_v30 = vpop.f32.mrf.mxu0 }
  0xba   : > { %v1078_v29 = vadd.f32 %v1077_v23, %v989_v24  ;;  %v991_v33 = vpop.f32.mrf.mxu1  ;;  %v1390_v41 = vsel %vm1326_vm0, %v1294_v28, %v1358_v35  ;;  %v1814_v24 = vld [vmem:[%s2294_s13 + $0x170] sm:$0xf]  ;;  %v1961_v23 = vld [vmem:[%s2294_s13 + $0x178] sm:$0xf0] }
  0xbb   : > { %v992_v37 = vadd.f32 %v991_v33, %v902_v30  ;;  %v1949_v28 = vld [vmem:[%s2294_s13 + $0x118] sm:$0xf0]  ;;  %v1815_v33 = vor.u32 %v1961_v23, %v1814_v24 }
  0xbc   : > { %v1259_v34 = vmul.f32 %v2407_v10, %v1078_v29  ;;  %941 = vmatmul.bf16.gmra.mxu0 %v1735_v26  ;;  %1139 = vmatmul.bf16.gmra.mxu3 %v1791_v27  ;;  %v1760_v26 = vld [vmem:[%s2294_s13 + $0x114] sm:$0xf0]  ;;  %v1766_v27 = vld [vmem:[%s2294_s13 + $0x110] sm:$0xf] }
  0xbd   : > { %1030 = vmatmul.bf16.gmra.mxu1 %v1739_v31 }
  0xbe   : > { %v1295_v36 = vadd.f32 %v2412_v13, %v1259_v34  ;;  %1119 = vmatmul.bf16.gmra.mxu2 %v1743_v32  ;;  %v1759_v32 = vor.u32 %v1948_v20, %v1758_v19 }
  0xbf   : > { %v2429_v39 = vpop.f32.mrf.mxu3 }
  0xc0   : > { %vm1327_vm1 = vcmp.ge.f32.partialorder %v1295_v36, 0.0  ;;  %v1359_v38 = vmul.f32 0.01, %v1295_v36 }
  0xc1   : > { %v1080_v40 = vpop.f32.mrf.mxu2  ;;  %v904_v44 = vpop.f32.mrf.mxu0 }
  0xc2   : > { %v1391_v42 = vsel %vm1327_vm1, %v1295_v36, %v1359_v38  ;;  %v1081_v43 = vadd.f32 %v1080_v40, %v992_v37  ;;  %v993_v46 = vpop.f32.mrf.mxu1  ;;  %v1763_v37 = vor.u32 %v1947_v22, %v1760_v26  ;;  %v1767_v38 = vor.u32 %v1949_v28, %v1766_v27 }
  0xc3   : > { %v1989_v45 = vpack.c.bf16 %v1391_v42, %v1390_v41  ;;  %v994_v56 = vadd.f32 %v993_v46, %v904_v44 }
  0xc4   : > { %v1260_v49 = vmul.f32 %v2407_v10, %v1081_v43 }
  0xc5   : > { %1990 = vst [vmem:[%s2434_s8] sm:$0xff] %v1989_v45  }
  0xc6   : > { %v1296_v61 = vadd.f32 %v2412_v13, %v1260_v49 }
  0xc7   : > { %v2446_v57 = vpop.f32.mrf.mxu3 }
  0xc8   : > { %v1360_v4 = vmul.f32 0.01, %v1296_v61  ;;  %vm1328_vm2 = vcmp.ge.f32.partialorder %v1296_v61, 0.0 }
  0xc9   : > { %v1082_v58 = vpop.f32.mrf.mxu2  ;;  %v907_v63 = vpop.f32.mrf.mxu0 }
  0xca   : > { %v1083_v62 = vadd.f32 %v1082_v58, %v994_v56  ;;  %v996_v2 = vpop.f32.mrf.mxu1  ;;  %v1392_v12 = vsel %vm1328_vm2, %v1296_v61, %v1360_v4 }
  0xcb   : > { %v997_v6 = vadd.f32 %v996_v2, %v907_v63 }
  0xcc   : > { %v1261_v3 = vmul.f32 %v2407_v10, %v1083_v62  ;;  %946 = vmatmul.bf16.gmra.mxu0 %v1747_v59  ;;  %1144 = vmatmul.bf16.gmra.mxu3 %v1803_v60 }
  0xcd   : > { %1035 = vmatmul.bf16.gmra.mxu1 %v1751_v0 }
  0xce   : > { %v1297_v5 = vadd.f32 %v2412_v13, %v1261_v3  ;;  %1124 = vmatmul.bf16.gmra.mxu2 %v1755_v1 }
  0xcf   : > { %v2451_v9 = vpop.f32.mrf.mxu3 }
  0xd0   : > { %vm1329_vm3 = vcmp.ge.f32.partialorder %v1297_v5, 0.0  ;;  %v1361_v8 = vmul.f32 0.01, %v1297_v5 }
  0xd1   : > { %v1085_v11 = vpop.f32.mrf.mxu2  ;;  %v909_v16 = vpop.f32.mrf.mxu0 }
  0xd2   : > { %v1393_v14 = vsel %vm1329_vm3, %v1297_v5, %v1361_v8  ;;  %v1086_v15 = vadd.f32 %v1085_v11, %v997_v6  ;;  %v998_v18 = vpop.f32.mrf.mxu1 }
  0xd3   : > { %v1994_v17 = vpack.c.bf16 %v1393_v14, %v1392_v12  ;;  %v999_v29 = vadd.f32 %v998_v18, %v909_v16 }
  0xd4   : > { %v1262_v21 = vmul.f32 %v2407_v10, %v1086_v15 }
  0xd5   : > { %2066 = vst [vmem:[%s2434_s8 + $0x8] sm:$0xff] %v1994_v17  }
  0xd6   : > { %v1298_v34 = vadd.f32 %v2412_v13, %v1262_v21 }
  0xd7   : > { %v2463_v30 = vpop.f32.mrf.mxu3 }
  0xd8   : > { %v1362_v42 = vmul.f32 0.01, %v1298_v34  ;;  %vm1330_vm4 = vcmp.ge.f32.partialorder %v1298_v34, 0.0 }
  0xd9   : > { %v1087_v31 = vpop.f32.mrf.mxu2  ;;  %v912_v36 = vpop.f32.mrf.mxu0 }
  0xda   : > { %v1088_v35 = vadd.f32 %v1087_v31, %v999_v29  ;;  %v1001_v40 = vpop.f32.mrf.mxu1  ;;  %v1394_v48 = vsel %vm1330_vm4, %v1298_v34, %v1362_v42 }
  0xdb   : > { %v1002_v44 = vadd.f32 %v1001_v40, %v912_v36 }
  0xdc   : > { %v1263_v41 = vmul.f32 %v2407_v10, %v1088_v35  ;;  %951 = vmatmul.bf16.gmra.mxu0 %v1759_v32  ;;  %1149 = vmatmul.bf16.gmra.mxu3 %v1815_v33 }
  0xdd   : > { %1040 = vmatmul.bf16.gmra.mxu1 %v1763_v37 }
  0xde   : > { %v1299_v43 = vadd.f32 %v2412_v13, %v1263_v41  ;;  %1129 = vmatmul.bf16.gmra.mxu2 %v1767_v38 }
  0xdf   : > { %v2468_v46 = vpop.f32.mrf.mxu3 }
  0xe0   : > { %vm1331_vm5 = vcmp.ge.f32.partialorder %v1299_v43, 0.0  ;;  %v1363_v45 = vmul.f32 0.01, %v1299_v43 }
  0xe1   : > { %v1090_v47 = vpop.f32.mrf.mxu2  ;;  %v914_v51 = vpop.f32.mrf.mxu0 }
  0xe2   : > { %v1395_v49 = vsel %vm1331_vm5, %v1299_v43, %v1363_v45  ;;  %v1091_v50 = vadd.f32 %v1090_v47, %v1002_v44  ;;  %v1003_v53 = vpop.f32.mrf.mxu1 }
  0xe3   : > { %v1999_v52 = vpack.c.bf16 %v1395_v49, %v1394_v48  ;;  %v1004_v55 = vadd.f32 %v1003_v53, %v914_v51 }
  0xe4   : > { %v1264_v54 = vmul.f32 %v2407_v10, %v1091_v50 }
  0xe5   : > { %2067 = vst [vmem:[%s2434_s8 + $0x10] sm:$0xff] %v1999_v52  }
  0xe6   : > { %v1300_v59 = vadd.f32 %v2412_v13, %v1264_v54 }
  0xe7   : > { %v2472_v56 = vpop.f32.mrf.mxu3 }
  0xe8   : > { %v1364_v0 = vmul.f32 0.01, %v1300_v59  ;;  %vm1332_vm6 = vcmp.ge.f32.partialorder %v1300_v59, 0.0 }
  0xe9   : > { %v1092_v58 = vpop.f32.mrf.mxu2  ;;  %v917_v61 = vpop.f32.mrf.mxu0 }
  0xea   : > { %v1093_v60 = vadd.f32 %v1092_v58, %v1004_v55  ;;  %v1006_v62 = vpop.f32.mrf.mxu1  ;;  %v1396_v8 = vsel %vm1332_vm6, %v1300_v59, %v1364_v0 }
  0xeb   : > { %v1007_v2 = vadd.f32 %v1006_v62, %v917_v61 }
  0xec   : > { %v1265_v63 = vmul.f32 %v2407_v10, %v1093_v60 }
  0xee   : > { %v1301_v1 = vadd.f32 %v2412_v13, %v1265_v63 }
  0xef   : > { %v1046_v4 = vpop.f32.mrf.mxu3 }
  0xf0   : > { %vm1333_vm7 = vcmp.ge.f32.partialorder %v1301_v1, 0.0  ;;  %v1365_v3 = vmul.f32 0.01, %v1301_v1  ;;  %v2478_v5 = vadd.f32 %v1046_v4, %v2402_v7 }
  0xf1   : > { %v1095_v6 = vpop.f32.mrf.mxu2  ;;  %v919_v14 = vpop.f32.mrf.mxu0 }
  0xf2   : > { %v1397_v11 = vsel %vm1333_vm7, %v1301_v1, %v1365_v3  ;;  %v1096_v12 = vadd.f32 %v1095_v6, %v1007_v2  ;;  %v1008_v16 = vpop.f32.mrf.mxu1 }
  0xf3   : > { %v2004_v15 = vpack.c.bf16 %v1397_v11, %v1396_v8  ;;  %v1009_v18 = vadd.f32 %v1008_v16, %v919_v14 }
  0xf4   : > { %v1266_v17 = vmul.f32 %v2407_v10, %v1096_v12 }
  0xf5   : > { %2068 = vst [vmem:[%s2434_s8 + $0x18] sm:$0xff] %v2004_v15  }
  0xf6   : > { %v1302_v21 = vadd.f32 %v2412_v13, %v1266_v17 }
  0xf7   : > { %v2482_v19 = vpop.f32.mrf.mxu3 }
  0xf8   : > { %v1366_v26 = vmul.f32 0.01, %v1302_v21  ;;  %vm1334_vm8 = vcmp.ge.f32.partialorder %v1302_v21, 0.0 }
  0xf9   : > { %v1097_v20 = vpop.f32.mrf.mxu2  ;;  %v922_v24 = vpop.f32.mrf.mxu0 }
  0xfa   : > { %v1098_v22 = vadd.f32 %v1097_v20, %v1009_v18  ;;  %v1011_v7 = vpop.f32.mrf.mxu1  ;;  %v1398_v34 = vsel %vm1334_vm8, %v1302_v21, %v1366_v26 }
  0xfb   : > { %v1012_v28 = vadd.f32 %v1011_v7, %v922_v24 }
  0xfc   : > { %v1267_v23 = vmul.f32 %v2407_v10, %v1098_v22 }
  0xfe   : > { %v1303_v27 = vadd.f32 %v2412_v13, %v1267_v23 }
  0xff   : > { %v1051_v31 = vpop.f32.mrf.mxu3 }
 0x100   : > { %vm1335_vm9 = vcmp.ge.f32.partialorder %v1303_v27, 0.0  ;;  %v1367_v29 = vmul.f32 0.01, %v1303_v27  ;;  %v2488_v32 = vadd.f32 %v1051_v31, %v2429_v39 }
 0x101   : > { %v1100_v33 = vpop.f32.mrf.mxu2  ;;  %v924_v37 = vpop.f32.mrf.mxu0 }
 0x102   : > { %v1399_v35 = vsel %vm1335_vm9, %v1303_v27, %v1367_v29  ;;  %v1101_v36 = vadd.f32 %v1100_v33, %v1012_v28  ;;  %v1013_v40 = vpop.f32.mrf.mxu1 }
 0x103   : > { %v2009_v38 = vpack.c.bf16 %v1399_v35, %v1398_v34  ;;  %v1014_v42 = vadd.f32 %v1013_v40, %v924_v37 }
 0x104   : > { %v1268_v41 = vmul.f32 %v2407_v10, %v1101_v36 }
 0x105   : > { %2069 = vst [vmem:[%s2434_s8 + $0x20] sm:$0xff] %v2009_v38  }
 0x106   : > { %v1304_v45 = vadd.f32 %v2412_v13, %v1268_v41 }
 0x107   : > { %v2492_v43 = vpop.f32.mrf.mxu3 }
 0x108   : > { %v1368_v50 = vmul.f32 0.01, %v1304_v45  ;;  %vm1336_vm10 = vcmp.ge.f32.partialorder %v1304_v45, 0.0 }
 0x109   : > { %v1102_v44 = vpop.f32.mrf.mxu2  ;;  %v927_v48 = vpop.f32.mrf.mxu0 }
 0x10a   : > { %v1103_v47 = vadd.f32 %v1102_v44, %v1014_v42  ;;  %v1016_v39 = vpop.f32.mrf.mxu1  ;;  %v1400_v59 = vsel %vm1336_vm10, %v1304_v45, %v1368_v50 }
 0x10b   : > { %v1017_v52 = vadd.f32 %v1016_v39, %v927_v48 }
 0x10c   : > { %v1269_v49 = vmul.f32 %v2407_v10, %v1103_v47 }
 0x10e   : > { %v1305_v51 = vadd.f32 %v2412_v13, %v1269_v49 }
 0x10f   : > { %v1056_v54 = vpop.f32.mrf.mxu3 }
 0x110   : > { %vm1337_vm11 = vcmp.ge.f32.partialorder %v1305_v51, 0.0  ;;  %v1369_v53 = vmul.f32 0.01, %v1305_v51  ;;  %v2498_v55 = vadd.f32 %v1056_v54, %v2451_v9 }
 0x111   : > { %v1105_v58 = vpop.f32.mrf.mxu2  ;;  %v929_v62 = vpop.f32.mrf.mxu0 }
 0x112   : > { %v1401_v60 = vsel %vm1337_vm11, %v1305_v51, %v1369_v53  ;;  %v1106_v61 = vadd.f32 %v1105_v58, %v1017_v52  ;;  %v1018_v0 = vpop.f32.mrf.mxu1  ;;  %v1049_v58 = vadd.f32 %v2482_v19, %v2423_v25 }
 0x113   : > { %v2014_v63 = vpack.c.bf16 %v1401_v60, %v1400_v59  ;;  %v1019_v2 = vadd.f32 %v1018_v0, %v929_v62 }
 0x114   : > { %v1270_v1 = vmul.f32 %v2407_v10, %v1106_v61 }
 0x115   : > { %2070 = vst [vmem:[%s2434_s8 + $0x28] sm:$0xff] %v2014_v63  }
 0x116   : > { %v1306_v6 = vadd.f32 %v2412_v13, %v1270_v1 }
 0x117   : > { %v2502_v3 = vpop.f32.mrf.mxu3 }
 0x118   : > { %v1370_v14 = vmul.f32 0.01, %v1306_v6  ;;  %vm1338_vm12 = vcmp.ge.f32.partialorder %v1306_v6, 0.0 }
 0x119   : > { %v1107_v4 = vpop.f32.mrf.mxu2  ;;  %v932_v11 = vpop.f32.mrf.mxu0 }
 0x11a   : > { %v1108_v8 = vadd.f32 %v1107_v4, %v1019_v2  ;;  %v1021_v9 = vpop.f32.mrf.mxu1  ;;  %v1402_v22 = vsel %vm1338_vm12, %v1306_v6, %v1370_v14 }
 0x11b   : > { %v1022_v16 = vadd.f32 %v1021_v9, %v932_v11 }
 0x11c   : > { %v1271_v12 = vmul.f32 %v2407_v10, %v1108_v8 }
 0x11e   : > { %v1307_v15 = vadd.f32 %v2412_v13, %v1271_v12 }
 0x11f   : > { %v1061_v18 = vpop.f32.mrf.mxu3 }
 0x120   : > { %vm1339_vm13 = vcmp.ge.f32.partialorder %v1307_v15, 0.0  ;;  %v1371_v17 = vmul.f32 0.01, %v1307_v15  ;;  %v2508_v20 = vadd.f32 %v1061_v18, %v2468_v46 }
 0x121   : > { %v1110_v21 = vpop.f32.mrf.mxu2  ;;  %v934_v23 = vpop.f32.mrf.mxu0 }
 0x122   : > { %v1403_v24 = vsel %vm1339_vm13, %v1307_v15, %v1371_v17  ;;  %v1111_v7 = vadd.f32 %v1110_v21, %v1022_v16  ;;  %v1023_v27 = vpop.f32.mrf.mxu1 }
 0x123   : > { %v2019_v26 = vpack.c.bf16 %v1403_v24, %v1402_v22  ;;  %v1024_v29 = vadd.f32 %v1023_v27, %v934_v23 }
 0x124   : > { %v1272_v28 = vmul.f32 %v2407_v10, %v1111_v7 }
 0x125   : > { %2071 = vst [vmem:[%s2434_s8 + $0x30] sm:$0xff] %v2019_v26  }
 0x126   : > { %v1308_v34 = vadd.f32 %v2412_v13, %v1272_v28 }
 0x127   : > { %v2512_v31 = vpop.f32.mrf.mxu3 }
 0x128   : > { %v1372_v38 = vmul.f32 0.01, %v1308_v34  ;;  %vm1340_vm14 = vcmp.ge.f32.partialorder %v1308_v34, 0.0 }
 0x129   : > { %v1112_v33 = vpop.f32.mrf.mxu2  ;;  %v937_v36 = vpop.f32.mrf.mxu0 }
 0x12a   : > { %v1113_v35 = vadd.f32 %v1112_v33, %v1024_v29  ;;  %v1026_v46 = vpop.f32.mrf.mxu1  ;;  %v1404_v48 = vsel %vm1340_vm14, %v1308_v34, %v1372_v38  ;;  %v1054_v34 = vadd.f32 %v2492_v43, %v2446_v57 }
 0x12b   : > { %v1027_v41 = vadd.f32 %v1026_v46, %v937_v36 }
 0x12c   : > { %v1273_v37 = vmul.f32 %v2407_v10, %v1113_v35 }
 0x12e   : > { %v1309_v40 = vadd.f32 %v2412_v13, %v1273_v37 }
 0x12f   : > { %v1135_v44 = vpop.f32.mrf.mxu3 }
 0x130   : > { %vm1341_vm15 = vcmp.ge.f32.partialorder %v1309_v40, 0.0  ;;  %v1373_v42 = vmul.f32 0.01, %v1309_v40  ;;  %v1136_v47 = vadd.f32 %v1135_v44, %v2478_v5 }
 0x131   : > { %v1115_v45 = vpop.f32.mrf.mxu2  ;;  %v939_v50 = vpop.f32.mrf.mxu0 }
 0x132   : > { %v1405_v39 = vsel %vm1341_vm15, %v1309_v40, %v1373_v42  ;;  %v1116_v49 = vadd.f32 %v1115_v45, %v1027_v41  ;;  %v1028_v52 = vpop.f32.mrf.mxu1  ;;  %v1282_v53 = vmul.f32 %v2407_v10, %v1136_v47 }
 0x133   : > { %v2024_v51 = vpack.c.bf16 %v1405_v39, %v1404_v48  ;;  %v1029_v59 = vadd.f32 %v1028_v52, %v939_v50 }
 0x134   : > { %v1274_v54 = vmul.f32 %v2407_v10, %v1116_v49  ;;  %v1318_v61 = vadd.f32 %v2412_v13, %v1282_v53 }
 0x135   : > { %2072 = vst [vmem:[%s2434_s8 + $0x38] sm:$0xff] %v2024_v51  }
 0x136   : > { %v1310_v63 = vadd.f32 %v2412_v13, %v1274_v54  ;;  %v1382_v8 = vmul.f32 0.01, %v1318_v61  ;;  %vm1350_vm0 = vcmp.ge.f32.partialorder %v1318_v61, 0.0 }
 0x137   : > { %v1137_v60 = vpop.f32.mrf.mxu3 }
 0x138   : > { %v1138_v5 = vadd.f32 %v1137_v60, %v1049_v58  ;;  %v1374_v9 = vmul.f32 0.01, %v1310_v63  ;;  %vm1342_vm1 = vcmp.ge.f32.partialorder %v1310_v63, 0.0  ;;  %v1414_v16 = vsel %vm1350_vm0, %v1318_v61, %v1382_v8 }
 0x139   : > { %v1117_v62 = vpop.f32.mrf.mxu2  ;;  %v942_v1 = vpop.f32.mrf.mxu0 }
 0x13a   : > { %v1118_v0 = vadd.f32 %v1117_v62, %v1029_v59  ;;  %v1283_v2 = vmul.f32 %v2407_v10, %v1138_v5  ;;  %v1031_v4 = vpop.f32.mrf.mxu1  ;;  %v1406_v22 = vsel %vm1342_vm1, %v1310_v63, %v1374_v9 }
 0x13b   : > { %v1032_v19 = vadd.f32 %v1031_v4, %v942_v1  ;;  %v1059_v4 = vadd.f32 %v2502_v3, %v2463_v30 }
 0x13c   : > { %v1275_v6 = vmul.f32 %v2407_v10, %v1118_v0  ;;  %v1319_v11 = vadd.f32 %v2412_v13, %v1283_v2 }
 0x13e   : > { %v1311_v25 = vadd.f32 %v2412_v13, %v1275_v6  ;;  %vm1351_vm2 = vcmp.ge.f32.partialorder %v1319_v11, 0.0  ;;  %v1383_v12 = vmul.f32 0.01, %v1319_v11 }
 0x13f   : > { %v1140_v15 = vpop.f32.mrf.mxu3 }
 0x140   : > { %vm1343_vm3 = vcmp.ge.f32.partialorder %v1311_v25, 0.0  ;;  %v1375_v14 = vmul.f32 0.01, %v1311_v25  ;;  %v1415_v17 = vsel %vm1351_vm2, %v1319_v11, %v1383_v12  ;;  %v1141_v21 = vadd.f32 %v1140_v15, %v2488_v32 }
 0x141   : > { %v1120_v18 = vpop.f32.mrf.mxu2  ;;  %v2049_v7 = vpack.c.bf16 %v1415_v17, %v1414_v16  ;;  %v944_v26 = vpop.f32.mrf.mxu0 }
 0x142   : > { %v1407_v24 = vsel %vm1343_vm3, %v1311_v25, %v1375_v14  ;;  %v1121_v23 = vadd.f32 %v1120_v18, %v1032_v19  ;;  %v1033_v28 = vpop.f32.mrf.mxu1  ;;  %v1284_v29 = vmul.f32 %v2407_v10, %v1141_v21 }
 0x143   : > { %v2029_v27 = vpack.c.bf16 %v1407_v24, %v1406_v22  ;;  %2077 = vst [vmem:[%s2434_s8 + $0x60] sm:$0xff] %v2049_v7   ;;  %v1034_v35 = vadd.f32 %v1033_v28, %v944_v26 }
 0x144   : > { %v1276_v33 = vmul.f32 %v2407_v10, %v1121_v23  ;;  %v1320_v32 = vadd.f32 %v2412_v13, %v1284_v29 }
 0x145   : > { %2073 = vst [vmem:[%s2434_s8 + $0x40] sm:$0xff] %v2029_v27  }
 0x146   : > { %v1312_v38 = vadd.f32 %v2412_v13, %v1276_v33  ;;  %v1384_v47 = vmul.f32 0.01, %v1320_v32  ;;  %vm1352_vm4 = vcmp.ge.f32.partialorder %v1320_v32, 0.0 }
 0x147   : > { %v1142_v36 = vpop.f32.mrf.mxu3 }
 0x148   : > { %v1143_v37 = vadd.f32 %v1142_v36, %v1054_v34  ;;  %v1376_v39 = vmul.f32 0.01, %v1312_v38  ;;  %vm1344_vm5 = vcmp.ge.f32.partialorder %v1312_v38, 0.0  ;;  %v1416_v52 = vsel %vm1352_vm4, %v1320_v32, %v1384_v47 }
 0x149   : > { %v1122_v46 = vpop.f32.mrf.mxu2  ;;  %v947_v41 = vpop.f32.mrf.mxu0 }
 0x14a   : > { %v1123_v40 = vadd.f32 %v1122_v46, %v1034_v35  ;;  %v1285_v42 = vmul.f32 %v2407_v10, %v1143_v37  ;;  %v1036_v44 = vpop.f32.mrf.mxu1  ;;  %v1408_v59 = vsel %vm1344_vm5, %v1312_v38, %v1376_v39 }
 0x14b   : > { %v1037_v43 = vadd.f32 %v1036_v44, %v947_v41 }
 0x14c   : > { %v1277_v45 = vmul.f32 %v2407_v10, %v1123_v40  ;;  %v1321_v48 = vadd.f32 %v2412_v13, %v1285_v42  ;;  %v1064_v40 = vadd.f32 %v2512_v31, %v2472_v56 }
 0x14e   : > { %v1313_v57 = vadd.f32 %v2412_v13, %v1277_v45  ;;  %vm1353_vm6 = vcmp.ge.f32.partialorder %v1321_v48, 0.0  ;;  %v1385_v49 = vmul.f32 0.01, %v1321_v48 }
 0x14f   : > { %v1145_v51 = vpop.f32.mrf.mxu3 }
 0x150   : > { %vm1345_vm7 = vcmp.ge.f32.partialorder %v1313_v57, 0.0  ;;  %v1377_v50 = vmul.f32 0.01, %v1313_v57  ;;  %v1417_v53 = vsel %vm1353_vm6, %v1321_v48, %v1385_v49  ;;  %v1146_v58 = vadd.f32 %v1145_v51, %v2498_v55 }
 0x151   : > { %v1125_v54 = vpop.f32.mrf.mxu2  ;;  %v2054_v61 = vpack.c.bf16 %v1417_v53, %v1416_v52  ;;  %v949_v5 = vpop.f32.mrf.mxu0 }
 0x152   : > { %v1409_v60 = vsel %vm1345_vm7, %v1313_v57, %v1377_v50  ;;  %v1126_v62 = vadd.f32 %v1125_v54, %v1037_v43  ;;  %v1038_v0 = vpop.f32.mrf.mxu1  ;;  %v1286_v1 = vmul.f32 %v2407_v10, %v1146_v58 }
 0x153   : > { %v2034_v63 = vpack.c.bf16 %v1409_v60, %v1408_v59  ;;  %2078 = vst [vmem:[%s2434_s8 + $0x68] sm:$0xff] %v2054_v61   ;;  %v1039_v6 = vadd.f32 %v1038_v0, %v949_v5 }
 0x154   : > { %v1278_v2 = vmul.f32 %v2407_v10, %v1126_v62  ;;  %v1322_v55 = vadd.f32 %v2412_v13, %v1286_v1 }
 0x155   : > { %2074 = vst [vmem:[%s2434_s8 + $0x48] sm:$0xff] %v2034_v63  }
 0x156   : > { %v1314_v25 = vadd.f32 %v2412_v13, %v1278_v2  ;;  %v1386_v17 = vmul.f32 0.01, %v1322_v55  ;;  %vm1354_vm8 = vcmp.ge.f32.partialorder %v1322_v55, 0.0 }
 0x157   : > { %v1147_v8 = vpop.f32.mrf.mxu3 }
 0x158   : > { %v1148_v9 = vadd.f32 %v1147_v8, %v1059_v4  ;;  %v1378_v21 = vmul.f32 0.01, %v1314_v25  ;;  %vm1346_vm9 = vcmp.ge.f32.partialorder %v1314_v25, 0.0  ;;  %v1418_v23 = vsel %vm1354_vm8, %v1322_v55, %v1386_v17 }
 0x159   : > { %v1127_v11 = vpop.f32.mrf.mxu2  ;;  %v952_v14 = vpop.f32.mrf.mxu0 }
 0x15a   : > { %v1128_v19 = vadd.f32 %v1127_v11, %v1039_v6  ;;  %v1287_v12 = vmul.f32 %v2407_v10, %v1148_v9  ;;  %v1041_v15 = vpop.f32.mrf.mxu1  ;;  %v1410_v29 = vsel %vm1346_vm9, %v1314_v25, %v1378_v21 }
 0x15b   : > { %v1042_v3 = vadd.f32 %v1041_v15, %v952_v14 }
 0x15c   : > { %v1279_v16 = vmul.f32 %v2407_v10, %v1128_v19  ;;  %v1323_v18 = vadd.f32 %v2412_v13, %v1287_v12 }
 0x15e   : > { %v1315_v30 = vadd.f32 %v2412_v13, %v1279_v16  ;;  %vm1355_vm10 = vcmp.ge.f32.partialorder %v1323_v18, 0.0  ;;  %v1387_v22 = vmul.f32 0.01, %v1323_v18 }
 0x15f   : > { %v1150_v7 = vpop.f32.mrf.mxu3 }
 0x160   : > { %vm1347_vm11 = vcmp.ge.f32.partialorder %v1315_v30, 0.0  ;;  %v1379_v24 = vmul.f32 0.01, %v1315_v30  ;;  %v1419_v26 = vsel %vm1355_vm10, %v1323_v18, %v1387_v22  ;;  %v1151_v28 = vadd.f32 %v1150_v7, %v2508_v20 }
 0x161   : > { %v1130_v27 = vpop.f32.mrf.mxu2  ;;  %v2059_v34 = vpack.c.bf16 %v1419_v26, %v1418_v23  ;;  %v954_v46 = vpop.f32.mrf.mxu0 }
 0x162   : > { %v1411_v33 = vsel %vm1347_vm11, %v1315_v30, %v1379_v24  ;;  %v1131_v35 = vadd.f32 %v1130_v27, %v1042_v3  ;;  %v1288_v32 = vmul.f32 %v2407_v10, %v1151_v28  ;;  %v1043_v37 = vpop.f32.mrf.mxu1 }
 0x163   : > { %v2039_v36 = vpack.c.bf16 %v1411_v33, %v1410_v29  ;;  %2079 = vst [vmem:[%s2434_s8 + $0x70] sm:$0xff] %v2059_v34   ;;  %v1044_v41 = vadd.f32 %v1043_v37, %v954_v46 }
 0x164   : > { %v1280_v38 = vmul.f32 %v2407_v10, %v1131_v35  ;;  %v1324_v20 = vadd.f32 %v2412_v13, %v1288_v32 }
 0x165   : > { %2075 = vst [vmem:[%s2434_s8 + $0x50] sm:$0xff] %v2039_v36  }
 0x166   : > { %v1316_v47 = vadd.f32 %v2412_v13, %v1280_v38  ;;  %v1388_v43 = vmul.f32 0.01, %v1324_v20  ;;  %vm1356_vm12 = vcmp.ge.f32.partialorder %v1324_v20, 0.0 }
 0x167   : > { %v1152_v42 = vpop.f32.mrf.mxu3 }
 0x168   : > { %v1153_v45 = vadd.f32 %v1152_v42, %v1064_v40  ;;  %v1380_v50 = vmul.f32 0.01, %v1316_v47  ;;  %vm1348_vm13 = vcmp.ge.f32.partialorder %v1316_v47, 0.0  ;;  %v1420_v52 = vsel %vm1356_vm12, %v1324_v20, %v1388_v43 }
 0x169   : > { %v1132_v44 = vpop.f32.mrf.mxu2 }
 0x16a   : > { %v1133_v48 = vadd.f32 %v1132_v44, %v1044_v41  ;;  %v1289_v39 = vmul.f32 %v2407_v10, %v1153_v45  ;;  %v1412_v54 = vsel %vm1348_vm13, %v1316_v47, %v1380_v50 }
 0x16c   : > { %v1281_v57 = vmul.f32 %v2407_v10, %v1133_v48  ;;  %v1325_v49 = vadd.f32 %v2412_v13, %v1289_v39 }
 0x16e   : > { %v1317_v56 = vadd.f32 %v2412_v13, %v1281_v57  ;;  %vm1357_vm14 = vcmp.ge.f32.partialorder %v1325_v49, 0.0  ;;  %v1389_v31 = vmul.f32 0.01, %v1325_v49 }
 0x170   : > { %vm1349_vm15 = vcmp.ge.f32.partialorder %v1317_v56, 0.0  ;;  %v1381_v51 = vmul.f32 0.01, %v1317_v56  ;;  %v1421_v53 = vsel %vm1357_vm14, %v1325_v49, %v1389_v31 }
 0x171   : > { %v2064_v59 = vpack.c.bf16 %v1421_v53, %v1420_v52 }
 0x172   : > { %v1413_v58 = vsel %vm1349_vm15, %v1317_v56, %v1381_v51 }
 0x173   : > { %v2044_v10 = vpack.c.bf16 %v1413_v58, %v1412_v54  ;;  %2080 = vst [vmem:[%s2434_s8 + $0x78] sm:$0xff] %v2064_v59  }
 0x175   : > { %2076 = vst [vmem:[%s2434_s8 + $0x58] sm:$0xff] %v2044_v10  }
 0x176 PF: > { %s14_s17 = sadd.s32 1, %s2154_s17   ;;  %s2584_s15 = smov %s2150_s16 }
 0x177   : > { %p11_p5 = scmp.ge.s32.totalorder %s14_s17, 8   ;;  %s2585_s16 = smov %s2587_s18 }
 0x179   :  { %13 = sbr.rel (!%p11_p5) target bundleno = 2 (0x2), region = 83 }

// kernel: _lambda_.24
= control target key start
LH: loop header
LB: loop body
LE: loop exit
PB: predicated region body
PF: predicated region fallthrough
CT: control target
= control target key end

     0   :  { %s1773_s15 = smov 0   ;;  %s1775_s16 = smov 0   ;;  %s2019_s0 = inlined_call_operand.vmem [shape: bf16[1792,256], index: 0, kind: input, shape index: {}]   ;;  %s2020_s1 = inlined_call_operand.vmem [shape: bf16[256,128], index: 1, kind: input, shape index: {}]   ;;  %s2021_s2 = inlined_call_operand.vmem [shape: f32[1,128], index: 2, kind: input, shape index: {}]   ;;  %s2022_s3 = inlined_call_operand.vmem [shape: f32[1,128], index: 3, kind: input, shape index: {}]   ;;  %s2023_s4 = inlined_call_operand.vmem [shape: bf16[1792,128], index: 4, kind: output, shape index: {}]  }
   0x1   :  { %s1777_s17 = smov 0  }
   0x2 LB: > { %s33_s18 = sadd.s32 1, %s1742_s16  ;;  %p1338_p0 = scmp.ge.s32.totalorder %s1746_s17, 1  ;;  %s1746_s17 = sphi %s1777_s17, %s14_s17   ;;  %s1742_s16 = sphi %s1775_s16, %s2025_s16   ;;  %s1738_s15 = sphi %s1773_s15, %s2024_s15  }
   0x3   : > { %p35_p1 = scmp.ge.s32.totalorder %s33_s18, 7  ;;  %p224_p2 = scmp.lt.s32.totalorder %s1746_s17, 8 }
   0x5   : > { %s2027_s18 = smov (%p35_p1, %s33_s18), 0  ;;  %p225_p3 = pnand %p1338_p0, %p224_p2 }
   0x6   : > { %s1339_s5 = sshll.u32 (!%p225_p3), %s1738_s15, 5 }
   0x7   : > { %228 = sbr.rel (%p225_p3) target bundleno = 309 (0x135), region = 36  ;;  %p274_p4 = scmp.lt.s32.totalorder (!%p225_p3), %s1339_s5, 223 }
   0xc   : > { %v1578_v0 = vld [vmem:[%s2020_s1 + $0x38] sm:$0xff]  ;;  %v1577_v2 = vld [vmem:[%s2020_s1 + $0x30] sm:$0xff]  ;;  %v1576_v4 = vld [vmem:[%s2020_s1 + $0x28] sm:$0xff]  ;;  %s2029_s5 = smov (!%p274_p4, %s1339_s5), 223 }
   0xd   : > { %v1586_v1 = vld [vmem:[%s2020_s1 + $0x78] sm:$0xff]  ;;  %696 = vmatpush.bf16.msra.mxu0 %v1578_v0  ;;  %1682 = vmatpush.bf16.msra.mxu2 %v1578_v0  ;;  %v1585_v3 = vld [vmem:[%s2020_s1 + $0x70] sm:$0xff]  ;;  %v1584_v5 = vld [vmem:[%s2020_s1 + $0x68] sm:$0xff]  ;;  %s1538_s21 = sshll.u32 %s2029_s5, 3  ;;  %s1343_s12 = sshll.u32 %s2029_s5, 2 }
   0xe   : > { %785 = vmatpush.bf16.msra.mxu1 %v1586_v1  ;;  %1690 = vmatpush.bf16.msra.mxu3 %v1586_v1  ;;  %v1575_v6 = vld [vmem:[%s2020_s1 + $0x20] sm:$0xff]  ;;  %v1574_v8 = vld [vmem:[%s2020_s1 + $0x18] sm:$0xff]  ;;  %v1573_v10 = vld [vmem:[%s2020_s1 + $0x10] sm:$0xff]  ;;  %s1839_s26 = scalar_lea.vmem %s2019_s0, %s1538_s21  ;;  %s1934_s15 = scalar_lea.vmem %s2023_s4, %s1343_s12 }
   0xf   : > { %v1583_v7 = vld [vmem:[%s2020_s1 + $0x60] sm:$0xff]  ;;  %v1582_v9 = vld [vmem:[%s2020_s1 + $0x58] sm:$0xff]  ;;  %v1581_v11 = vld [vmem:[%s2020_s1 + $0x50] sm:$0xff] }
  0x10   : > { %v1572_v12 = vld [vmem:[%s2020_s1 + $0x8] sm:$0xff]  ;;  %v1571_v14 = vld [vmem:[%s2020_s1] sm:$0xff]  ;;  %v1354_v28 = vld [vmem:[%s1839_s26 + $0x10] sm:$0xf] }
  0x11   : > { %697 = vmatpush.bf16.msra.mxu0 %v1577_v2  ;;  %1683 = vmatpush.bf16.msra.mxu2 %v1577_v2  ;;  %v1580_v13 = vld [vmem:[%s2020_s1 + $0x48] sm:$0xff]  ;;  %v1579_v15 = vld [vmem:[%s2020_s1 + $0x40] sm:$0xff]  ;;  %v1542_v29 = vld [vmem:[%s1839_s26 + $0x14] sm:$0xf0] }
  0x12   : > { %786 = vmatpush.bf16.msra.mxu1 %v1585_v3  ;;  %1691 = vmatpush.bf16.msra.mxu3 %v1585_v3  ;;  %v1346_v16 = vld [vmem:[%s1839_s26] sm:$0xf]  ;;  %v1540_v17 = vld [vmem:[%s1839_s26 + $0x4] sm:$0xf0]  ;;  %v1539_v20 = vld [vmem:[%s1839_s26 + $0x4] sm:$0xf]  ;;  %v1355_v36 = vor.u32 %v1542_v29, %v1354_v28 }
  0x13   : > { %v1410_v18 = vld [vmem:[%s1839_s26 + $0x80] sm:$0xf]  ;;  %v1556_v19 = vld [vmem:[%s1839_s26 + $0x84] sm:$0xf0]  ;;  %v1348_v21 = vld [vmem:[%s1839_s26 + $0x8] sm:$0xf0]  ;;  %v1347_v24 = vor.u32 %v1540_v17, %v1346_v16 }
  0x14   : > { %v1555_v22 = vld [vmem:[%s1839_s26 + $0x84] sm:$0xf]  ;;  %v1412_v23 = vld [vmem:[%s1839_s26 + $0x88] sm:$0xf0]  ;;  %v1411_v25 = vor.u32 %v1556_v19, %v1410_v18  ;;  %v1351_v26 = vor.u32 %v1539_v20, %v1348_v21  ;;  %v1418_v30 = vld [vmem:[%s1839_s26 + $0x90] sm:$0xf] }
  0x15   : > { %698 = vmatpush.bf16.msra.mxu0 %v1576_v4  ;;  %1684 = vmatpush.bf16.msra.mxu2 %v1576_v4  ;;  %v1415_v27 = vor.u32 %v1555_v22, %v1412_v23  ;;  %v1558_v31 = vld [vmem:[%s1839_s26 + $0x94] sm:$0xf0]  ;;  %v1541_v32 = vld [vmem:[%s1839_s26 + $0x14] sm:$0xf]  ;;  %v1356_v33 = vld [vmem:[%s1839_s26 + $0x18] sm:$0xf0] }
  0x16   : > { %787 = vmatpush.bf16.msra.mxu1 %v1584_v5  ;;  %1692 = vmatpush.bf16.msra.mxu3 %v1584_v5  ;;  %v1557_v34 = vld [vmem:[%s1839_s26 + $0x94] sm:$0xf]  ;;  %v1420_v35 = vld [vmem:[%s1839_s26 + $0x98] sm:$0xf0]  ;;  %v1419_v37 = vor.u32 %v1558_v31, %v1418_v30  ;;  %v1359_v38 = vor.u32 %v1541_v32, %v1356_v33  ;;  %v1362_v40 = vld [vmem:[%s1839_s26 + $0x20] sm:$0xf] }
  0x17   : > { %v1423_v39 = vor.u32 %v1557_v34, %v1420_v35  ;;  %v1544_v41 = vld [vmem:[%s1839_s26 + $0x24] sm:$0xf0]  ;;  %v1426_v42 = vld [vmem:[%s1839_s26 + $0xa0] sm:$0xf]  ;;  %v1543_v44 = vld [vmem:[%s1839_s26 + $0x24] sm:$0xf] }
  0x18   : > { %v1560_v43 = vld [vmem:[%s1839_s26 + $0xa4] sm:$0xf0]  ;;  %v1364_v45 = vld [vmem:[%s1839_s26 + $0x28] sm:$0xf0]  ;;  %v1559_v46 = vld [vmem:[%s1839_s26 + $0xa4] sm:$0xf]  ;;  %v1363_v48 = vor.u32 %v1544_v41, %v1362_v40 }
  0x19   : > { %699 = vmatpush.bf16.msra.mxu0 %v1575_v6  ;;  %1685 = vmatpush.bf16.msra.mxu2 %v1575_v6  ;;  %v1428_v47 = vld [vmem:[%s1839_s26 + $0xa8] sm:$0xf0]  ;;  %v1427_v49 = vor.u32 %v1560_v43, %v1426_v42  ;;  %v1367_v50 = vor.u32 %v1543_v44, %v1364_v45  ;;  %v1370_v52 = vld [vmem:[%s1839_s26 + $0x30] sm:$0xf]  ;;  %v1546_v53 = vld [vmem:[%s1839_s26 + $0x34] sm:$0xf0] }
  0x1a   : > { %788 = vmatpush.bf16.msra.mxu1 %v1583_v7  ;;  %1693 = vmatpush.bf16.msra.mxu3 %v1583_v7  ;;  %v1431_v51 = vor.u32 %v1559_v46, %v1428_v47  ;;  %v1434_v54 = vld [vmem:[%s1839_s26 + $0xb0] sm:$0xf]  ;;  %v1562_v55 = vld [vmem:[%s1839_s26 + $0xb4] sm:$0xf0]  ;;  %v1545_v56 = vld [vmem:[%s1839_s26 + $0x34] sm:$0xf]  ;;  %v1371_v60 = vor.u32 %v1546_v53, %v1370_v52 }
  0x1b   : > { %v1372_v57 = vld [vmem:[%s1839_s26 + $0x38] sm:$0xf0]  ;;  %v1561_v58 = vld [vmem:[%s1839_s26 + $0xb4] sm:$0xf]  ;;  %v1435_v61 = vor.u32 %v1562_v55, %v1434_v54  ;;  %v1378_v0 = vld [vmem:[%s1839_s26 + $0x40] sm:$0xf] }
  0x1c   : > { %v1436_v59 = vld [vmem:[%s1839_s26 + $0xb8] sm:$0xf0]  ;;  %v1375_v62 = vor.u32 %v1545_v56, %v1372_v57  ;;  %v1548_v1 = vld [vmem:[%s1839_s26 + $0x44] sm:$0xf0]  ;;  %v1442_v2 = vld [vmem:[%s1839_s26 + $0xc0] sm:$0xf] }
  0x1d   : > { %700 = vmatpush.bf16.msra.mxu0 %v1574_v8  ;;  %1686 = vmatpush.bf16.msra.mxu2 %v1574_v8  ;;  %v1439_v63 = vor.u32 %v1561_v58, %v1436_v59  ;;  %v1564_v3 = vld [vmem:[%s1839_s26 + $0xc4] sm:$0xf0]  ;;  %v1547_v4 = vld [vmem:[%s1839_s26 + $0x44] sm:$0xf]  ;;  %v1380_v5 = vld [vmem:[%s1839_s26 + $0x48] sm:$0xf0]  ;;  %v1379_v8 = vor.u32 %v1548_v1, %v1378_v0 }
  0x1e   : > { %789 = vmatpush.bf16.msra.mxu1 %v1582_v9  ;;  %1694 = vmatpush.bf16.msra.mxu3 %v1582_v9  ;;  %v1563_v6 = vld [vmem:[%s1839_s26 + $0xc4] sm:$0xf]  ;;  %v1444_v7 = vld [vmem:[%s1839_s26 + $0xc8] sm:$0xf0]  ;;  %v1443_v9 = vor.u32 %v1564_v3, %v1442_v2  ;;  %v1549_v16 = vld [vmem:[%s1839_s26 + $0x54] sm:$0xf] }
  0x1f   : > { %v1388_v17 = vld [vmem:[%s1839_s26 + $0x58] sm:$0xf0]  ;;  %v1565_v18 = vld [vmem:[%s1839_s26 + $0xd4] sm:$0xf]  ;;  %v1551_v28 = vld [vmem:[%s1839_s26 + $0x64] sm:$0xf] }
  0x20   : > { %v1452_v19 = vld [vmem:[%s1839_s26 + $0xd8] sm:$0xf0]  ;;  %v1391_v22 = vor.u32 %v1549_v16, %v1388_v17  ;;  %v1396_v29 = vld [vmem:[%s1839_s26 + $0x68] sm:$0xf0]  ;;  %v1567_v30 = vld [vmem:[%s1839_s26 + $0xe4] sm:$0xf] }
  0x21   : > { %701 = vmatpush.bf16.msra.mxu0 %v1573_v10  ;;  %1687 = vmatpush.bf16.msra.mxu2 %v1573_v10  ;;  %v1383_v10 = vor.u32 %v1547_v4, %v1380_v5  ;;  %v1455_v23 = vor.u32 %v1565_v18, %v1452_v19  ;;  %v1460_v31 = vld [vmem:[%s1839_s26 + $0xe8] sm:$0xf0]  ;;  %v1399_v34 = vor.u32 %v1551_v28, %v1396_v29  ;;  %v1553_v40 = vld [vmem:[%s1839_s26 + $0x74] sm:$0xf]  ;;  %v1404_v41 = vld [vmem:[%s1839_s26 + $0x78] sm:$0xf0] }
  0x22   : > { %790 = vmatpush.bf16.msra.mxu1 %v1581_v11  ;;  %1695 = vmatpush.bf16.msra.mxu3 %v1581_v11  ;;  %v1447_v11 = vor.u32 %v1563_v6, %v1444_v7  ;;  %v1463_v35 = vor.u32 %v1567_v30, %v1460_v31  ;;  %v1569_v42 = vld [vmem:[%s1839_s26 + $0xf4] sm:$0xf]  ;;  %v1468_v43 = vld [vmem:[%s1839_s26 + $0xf8] sm:$0xf0]  ;;  %v1407_v46 = vor.u32 %v1553_v40, %v1404_v41  ;;  %v1923_v53 = vld [vmem:[%s2022_s3] ss:$0 sm:$0xff] }
  0x23   : > { %v1471_v47 = vor.u32 %v1569_v42, %v1468_v43 }
  0x25   : > { %702 = vmatpush.bf16.msra.mxu0 %v1572_v12  ;;  %1688 = vmatpush.bf16.msra.mxu2 %v1572_v12  ;;  %v1386_v12 = vld [vmem:[%s1839_s26 + $0x50] sm:$0xf] }
  0x26   : > { %791 = vmatpush.bf16.msra.mxu1 %v1580_v13  ;;  %1696 = vmatpush.bf16.msra.mxu3 %v1580_v13  ;;  %v1550_v13 = vld [vmem:[%s1839_s26 + $0x54] sm:$0xf0] }
  0x27   : > { %v1387_v20 = vor.u32 %v1550_v13, %v1386_v12 }
  0x29   : > { %703 = vmatpush.bf16.msra.mxu0 %v1571_v14  ;;  %1689 = vmatpush.bf16.msra.mxu2 %v1571_v14  ;;  %v1450_v14 = vld [vmem:[%s1839_s26 + $0xd0] sm:$0xf] }
  0x2a   : > { %792 = vmatpush.bf16.msra.mxu1 %v1579_v15  ;;  %1697 = vmatpush.bf16.msra.mxu3 %v1579_v15  ;;  %v1566_v15 = vld [vmem:[%s1839_s26 + $0xd4] sm:$0xf0] }
  0x2b   : > { %v1451_v21 = vor.u32 %v1566_v15, %v1450_v14 }
  0x2c   : > { %704 = vmatmul.bf16.vlgmr.msra.gmra.mxu0 %v1347_v24  ;;  %744 = vmatmul.bf16.vlgmr.msra.gmra.mxu2 %v1411_v25  ;;  %v1394_v24 = vld [vmem:[%s1839_s26 + $0x60] sm:$0xf]  ;;  %v1552_v25 = vld [vmem:[%s1839_s26 + $0x64] sm:$0xf0] }
  0x2d   : > { %793 = vmatmul.bf16.vlgmr.msra.gmra.mxu1 %v1351_v26  ;;  %833 = vmatmul.bf16.vlgmr.msra.gmra.mxu3 %v1415_v27  ;;  %v1458_v26 = vld [vmem:[%s1839_s26 + $0xe0] sm:$0xf]  ;;  %v1568_v27 = vld [vmem:[%s1839_s26 + $0xe4] sm:$0xf0]  ;;  %v1395_v32 = vor.u32 %v1552_v25, %v1394_v24 }
  0x2e   : > { %v1459_v33 = vor.u32 %v1568_v27, %v1458_v26 }
  0x3c   : > { %709 = vmatmul.bf16.gmra.mxu0 %v1355_v36  ;;  %749 = vmatmul.bf16.gmra.mxu2 %v1419_v37  ;;  %v1402_v36 = vld [vmem:[%s1839_s26 + $0x70] sm:$0xf]  ;;  %v1554_v37 = vld [vmem:[%s1839_s26 + $0x74] sm:$0xf0] }
  0x3d   : > { %798 = vmatmul.bf16.gmra.mxu1 %v1359_v38  ;;  %838 = vmatmul.bf16.gmra.mxu3 %v1423_v39  ;;  %v1466_v38 = vld [vmem:[%s1839_s26 + $0xf0] sm:$0xf]  ;;  %v1570_v39 = vld [vmem:[%s1839_s26 + $0xf4] sm:$0xf0]  ;;  %v1403_v44 = vor.u32 %v1554_v37, %v1402_v36 }
  0x3e   : > { %v1467_v45 = vor.u32 %v1570_v39, %v1466_v38 }
  0x4c   : > { %714 = vmatmul.bf16.gmra.mxu0 %v1363_v48  ;;  %754 = vmatmul.bf16.gmra.mxu2 %v1427_v49 }
  0x4d   : > { %803 = vmatmul.bf16.gmra.mxu1 %v1367_v50  ;;  %843 = vmatmul.bf16.gmra.mxu3 %v1431_v51  ;;  %v1917_v51 = vld [vmem:[%s2021_s2] ss:$0 sm:$0xff] }
  0x5c   : > { %719 = vmatmul.bf16.gmra.mxu0 %v1371_v60  ;;  %759 = vmatmul.bf16.gmra.mxu2 %v1435_v61 }
  0x5d   : > { %808 = vmatmul.bf16.gmra.mxu1 %v1375_v62  ;;  %848 = vmatmul.bf16.gmra.mxu3 %v1439_v63 }
  0x6c   : > { %724 = vmatmul.bf16.gmra.mxu0 %v1379_v8  ;;  %764 = vmatmul.bf16.gmra.mxu2 %v1443_v9 }
  0x6d   : > { %813 = vmatmul.bf16.gmra.mxu1 %v1383_v10  ;;  %853 = vmatmul.bf16.gmra.mxu3 %v1447_v11 }
  0x7c   : > { %729 = vmatmul.bf16.gmra.mxu0 %v1387_v20  ;;  %769 = vmatmul.bf16.gmra.mxu2 %v1451_v21 }
  0x7d   : > { %818 = vmatmul.bf16.gmra.mxu1 %v1391_v22  ;;  %858 = vmatmul.bf16.gmra.mxu3 %v1455_v23 }
  0x8c   : > { %734 = vmatmul.bf16.gmra.mxu0 %v1395_v32  ;;  %774 = vmatmul.bf16.gmra.mxu2 %v1459_v33 }
  0x8d   : > { %823 = vmatmul.bf16.gmra.mxu1 %v1399_v34  ;;  %863 = vmatmul.bf16.gmra.mxu3 %v1463_v35 }
  0x9c   : > { %739 = vmatmul.bf16.gmra.mxu0 %v1403_v44  ;;  %779 = vmatmul.bf16.gmra.mxu2 %v1467_v45 }
  0x9d   : > { %828 = vmatmul.bf16.gmra.mxu1 %v1407_v46  ;;  %868 = vmatmul.bf16.gmra.mxu3 %v1471_v47 }
  0xa9   : > { %v705_v48 = vpop.f32.mrf.mxu0 }
  0xaa   : > { %v794_v49 = vpop.f32.mrf.mxu1 }
  0xab   : > { %v795_v50 = vadd.f32 %v794_v49, %v705_v48 }
  0xad   : > { %v977_v52 = vmul.f32 %v1917_v51, %v795_v50 }
  0xaf   : > { %v745_v54 = vpop.f32.mrf.mxu2  ;;  %v1013_v59 = vadd.f32 %v1923_v53, %v977_v52 }
  0xb0   : > { %v834_v55 = vpop.f32.mrf.mxu3 }
  0xb1   : > { %v835_v56 = vadd.f32 %v834_v55, %v745_v54  ;;  %v707_v57 = vpop.f32.mrf.mxu0  ;;  %v1077_v63 = vmul.f32 0.01, %v1013_v59  ;;  %vm1045_vm0 = vcmp.ge.f32.partialorder %v1013_v59, 0.0 }
  0xb2   : > { %v796_v58 = vpop.f32.mrf.mxu1 }
  0xb3   : > { %v797_v60 = vadd.f32 %v796_v58, %v707_v57  ;;  %v993_v61 = vmul.f32 %v1917_v51, %v835_v56  ;;  %v1109_v8 = vsel %vm1045_vm0, %v1013_v59, %v1077_v63 }
  0xb5   : > { %v978_v62 = vmul.f32 %v1917_v51, %v797_v60  ;;  %v1029_v3 = vadd.f32 %v1923_v53, %v993_v61 }
  0xb7   : > { %v1014_v0 = vadd.f32 %v1923_v53, %v978_v62  ;;  %v747_v1 = vpop.f32.mrf.mxu2  ;;  %v1093_v13 = vmul.f32 0.01, %v1029_v3  ;;  %vm1061_vm2 = vcmp.ge.f32.partialorder %v1029_v3, 0.0 }
  0xb8   : > { %v836_v2 = vpop.f32.mrf.mxu3 }
  0xb9   : > { %vm1046_vm1 = vcmp.ge.f32.partialorder %v1014_v0, 0.0  ;;  %v1078_v4 = vmul.f32 0.01, %v1014_v0  ;;  %v837_v5 = vadd.f32 %v836_v2, %v747_v1  ;;  %v710_v6 = vpop.f32.mrf.mxu0  ;;  %v1125_v19 = vsel %vm1061_vm2, %v1029_v3, %v1093_v13 }
  0xba   : > { %v799_v7 = vpop.f32.mrf.mxu1 }
  0xbb   : > { %v1110_v9 = vsel %vm1046_vm1, %v1014_v0, %v1078_v4  ;;  %v994_v10 = vmul.f32 %v1917_v51, %v837_v5  ;;  %v800_v11 = vadd.f32 %v799_v7, %v710_v6 }
  0xbc   : > { %v1590_v12 = vpack.c.bf16 %v1110_v9, %v1109_v8 }
  0xbd   : > { %v1030_v14 = vadd.f32 %v1923_v53, %v994_v10  ;;  %v979_v16 = vmul.f32 %v1917_v51, %v800_v11 }
  0xbe   : > { %1591 = vst [vmem:[%s1934_s15] sm:$0xff] %v1590_v12  }
  0xbf   : > { %vm1062_vm3 = vcmp.ge.f32.partialorder %v1030_v14, 0.0  ;;  %v1094_v15 = vmul.f32 0.01, %v1030_v14  ;;  %v750_v17 = vpop.f32.mrf.mxu2  ;;  %v1015_v25 = vadd.f32 %v1923_v53, %v979_v16 }
  0xc0   : > { %v839_v18 = vpop.f32.mrf.mxu3 }
  0xc1   : > { %v1126_v20 = vsel %vm1062_vm3, %v1030_v14, %v1094_v15  ;;  %v840_v21 = vadd.f32 %v839_v18, %v750_v17  ;;  %v712_v22 = vpop.f32.mrf.mxu0  ;;  %v1079_v29 = vmul.f32 0.01, %v1015_v25  ;;  %vm1047_vm4 = vcmp.ge.f32.partialorder %v1015_v25, 0.0 }
  0xc2   : > { %v1630_v23 = vpack.c.bf16 %v1126_v20, %v1125_v19  ;;  %v801_v24 = vpop.f32.mrf.mxu1 }
  0xc3   : > { %v802_v26 = vadd.f32 %v801_v24, %v712_v22  ;;  %v995_v27 = vmul.f32 %v1917_v51, %v840_v21  ;;  %v1111_v38 = vsel %vm1047_vm4, %v1015_v25, %v1079_v29 }
  0xc4   : > { %1674 = vst [vmem:[%s1934_s15 + $0x40] sm:$0xff] %v1630_v23  }
  0xc5   : > { %v980_v28 = vmul.f32 %v1917_v51, %v802_v26  ;;  %v1031_v33 = vadd.f32 %v1923_v53, %v995_v27 }
  0xc7   : > { %v1016_v30 = vadd.f32 %v1923_v53, %v980_v28  ;;  %v752_v31 = vpop.f32.mrf.mxu2  ;;  %v1095_v43 = vmul.f32 0.01, %v1031_v33  ;;  %vm1063_vm6 = vcmp.ge.f32.partialorder %v1031_v33, 0.0 }
  0xc8   : > { %v841_v32 = vpop.f32.mrf.mxu3 }
  0xc9   : > { %vm1048_vm5 = vcmp.ge.f32.partialorder %v1016_v30, 0.0  ;;  %v1080_v34 = vmul.f32 0.01, %v1016_v30  ;;  %v842_v35 = vadd.f32 %v841_v32, %v752_v31  ;;  %v715_v36 = vpop.f32.mrf.mxu0  ;;  %v1127_v49 = vsel %vm1063_vm6, %v1031_v33, %v1095_v43 }
  0xca   : > { %v804_v37 = vpop.f32.mrf.mxu1 }
  0xcb   : > { %v1112_v39 = vsel %vm1048_vm5, %v1016_v30, %v1080_v34  ;;  %v996_v40 = vmul.f32 %v1917_v51, %v842_v35  ;;  %v805_v41 = vadd.f32 %v804_v37, %v715_v36 }
  0xcc   : > { %v1595_v42 = vpack.c.bf16 %v1112_v39, %v1111_v38 }
  0xcd   : > { %v1032_v44 = vadd.f32 %v1923_v53, %v996_v40  ;;  %v981_v46 = vmul.f32 %v1917_v51, %v805_v41 }
  0xce   : > { %1667 = vst [vmem:[%s1934_s15 + $0x8] sm:$0xff] %v1595_v42  }
  0xcf   : > { %vm1064_vm7 = vcmp.ge.f32.partialorder %v1032_v44, 0.0  ;;  %v1096_v45 = vmul.f32 0.01, %v1032_v44  ;;  %v755_v47 = vpop.f32.mrf.mxu2  ;;  %v1017_v57 = vadd.f32 %v1923_v53, %v981_v46 }
  0xd0   : > { %v844_v48 = vpop.f32.mrf.mxu3 }
  0xd1   : > { %v1128_v50 = vsel %vm1064_vm7, %v1032_v44, %v1096_v45  ;;  %v845_v52 = vadd.f32 %v844_v48, %v755_v47  ;;  %v717_v54 = vpop.f32.mrf.mxu0  ;;  %v1081_v61 = vmul.f32 0.01, %v1017_v57  ;;  %vm1049_vm8 = vcmp.ge.f32.partialorder %v1017_v57, 0.0 }
  0xd2   : > { %v1635_v55 = vpack.c.bf16 %v1128_v50, %v1127_v49  ;;  %v806_v56 = vpop.f32.mrf.mxu1 }
  0xd3   : > { %v807_v58 = vadd.f32 %v806_v56, %v717_v54  ;;  %v997_v59 = vmul.f32 %v1917_v51, %v845_v52  ;;  %v1113_v6 = vsel %vm1049_vm8, %v1017_v57, %v1081_v61 }
  0xd4   : > { %1675 = vst [vmem:[%s1934_s15 + $0x48] sm:$0xff] %v1635_v55  }
  0xd5   : > { %v982_v60 = vmul.f32 %v1917_v51, %v807_v58  ;;  %v1033_v1 = vadd.f32 %v1923_v53, %v997_v59 }
  0xd7   : > { %v1018_v62 = vadd.f32 %v1923_v53, %v982_v60  ;;  %v757_v63 = vpop.f32.mrf.mxu2  ;;  %v1097_v11 = vmul.f32 0.01, %v1033_v1  ;;  %vm1065_vm10 = vcmp.ge.f32.partialorder %v1033_v1, 0.0 }
  0xd8   : > { %v846_v0 = vpop.f32.mrf.mxu3 }
  0xd9   : > { %vm1050_vm9 = vcmp.ge.f32.partialorder %v1018_v62, 0.0  ;;  %v1082_v2 = vmul.f32 0.01, %v1018_v62  ;;  %v847_v3 = vadd.f32 %v846_v0, %v757_v63  ;;  %v720_v4 = vpop.f32.mrf.mxu0  ;;  %v1129_v17 = vsel %vm1065_vm10, %v1033_v1, %v1097_v11 }
  0xda   : > { %v809_v5 = vpop.f32.mrf.mxu1 }
  0xdb   : > { %v1114_v7 = vsel %vm1050_vm9, %v1018_v62, %v1082_v2  ;;  %v998_v8 = vmul.f32 %v1917_v51, %v847_v3  ;;  %v810_v9 = vadd.f32 %v809_v5, %v720_v4 }
  0xdc   : > { %v1600_v10 = vpack.c.bf16 %v1114_v7, %v1113_v6 }
  0xdd   : > { %v1034_v12 = vadd.f32 %v1923_v53, %v998_v8  ;;  %v983_v14 = vmul.f32 %v1917_v51, %v810_v9 }
  0xde   : > { %1668 = vst [vmem:[%s1934_s15 + $0x10] sm:$0xff] %v1600_v10  }
  0xdf   : > { %vm1066_vm11 = vcmp.ge.f32.partialorder %v1034_v12, 0.0  ;;  %v1098_v13 = vmul.f32 0.01, %v1034_v12  ;;  %v760_v15 = vpop.f32.mrf.mxu2  ;;  %v1019_v23 = vadd.f32 %v1923_v53, %v983_v14 }
  0xe0   : > { %v849_v16 = vpop.f32.mrf.mxu3 }
  0xe1   : > { %v1130_v18 = vsel %vm1066_vm11, %v1034_v12, %v1098_v13  ;;  %v850_v19 = vadd.f32 %v849_v16, %v760_v15  ;;  %v722_v20 = vpop.f32.mrf.mxu0  ;;  %v1083_v27 = vmul.f32 0.01, %v1019_v23  ;;  %vm1051_vm12 = vcmp.ge.f32.partialorder %v1019_v23, 0.0 }
  0xe2   : > { %v1640_v21 = vpack.c.bf16 %v1130_v18, %v1129_v17  ;;  %v811_v22 = vpop.f32.mrf.mxu1 }
  0xe3   : > { %v812_v24 = vadd.f32 %v811_v22, %v722_v20  ;;  %v999_v25 = vmul.f32 %v1917_v51, %v850_v19  ;;  %v1115_v36 = vsel %vm1051_vm12, %v1019_v23, %v1083_v27 }
  0xe4   : > { %1676 = vst [vmem:[%s1934_s15 + $0x50] sm:$0xff] %v1640_v21  }
  0xe5   : > { %v984_v26 = vmul.f32 %v1917_v51, %v812_v24  ;;  %v1035_v31 = vadd.f32 %v1923_v53, %v999_v25 }
  0xe7   : > { %v1020_v28 = vadd.f32 %v1923_v53, %v984_v26  ;;  %v762_v29 = vpop.f32.mrf.mxu2  ;;  %v1099_v41 = vmul.f32 0.01, %v1035_v31  ;;  %vm1067_vm14 = vcmp.ge.f32.partialorder %v1035_v31, 0.0 }
  0xe8   : > { %v851_v30 = vpop.f32.mrf.mxu3 }
  0xe9   : > { %vm1052_vm13 = vcmp.ge.f32.partialorder %v1020_v28, 0.0  ;;  %v1084_v32 = vmul.f32 0.01, %v1020_v28  ;;  %v852_v33 = vadd.f32 %v851_v30, %v762_v29  ;;  %v725_v34 = vpop.f32.mrf.mxu0  ;;  %v1131_v47 = vsel %vm1067_vm14, %v1035_v31, %v1099_v41 }
  0xea   : > { %v814_v35 = vpop.f32.mrf.mxu1 }
  0xeb   : > { %v1116_v37 = vsel %vm1052_vm13, %v1020_v28, %v1084_v32  ;;  %v1000_v38 = vmul.f32 %v1917_v51, %v852_v33  ;;  %v815_v39 = vadd.f32 %v814_v35, %v725_v34 }
  0xec   : > { %v1605_v40 = vpack.c.bf16 %v1116_v37, %v1115_v36 }
  0xed   : > { %v1036_v42 = vadd.f32 %v1923_v53, %v1000_v38  ;;  %v985_v44 = vmul.f32 %v1917_v51, %v815_v39 }
  0xee   : > { %1669 = vst [vmem:[%s1934_s15 + $0x18] sm:$0xff] %v1605_v40  }
  0xef   : > { %vm1068_vm15 = vcmp.ge.f32.partialorder %v1036_v42, 0.0  ;;  %v1100_v43 = vmul.f32 0.01, %v1036_v42  ;;  %v765_v45 = vpop.f32.mrf.mxu2  ;;  %v1021_v55 = vadd.f32 %v1923_v53, %v985_v44 }
  0xf0   : > { %v854_v46 = vpop.f32.mrf.mxu3 }
  0xf1   : > { %v1132_v48 = vsel %vm1068_vm15, %v1036_v42, %v1100_v43  ;;  %v855_v49 = vadd.f32 %v854_v46, %v765_v45  ;;  %v727_v50 = vpop.f32.mrf.mxu0  ;;  %v1085_v59 = vmul.f32 0.01, %v1021_v55  ;;  %vm1053_vm0 = vcmp.ge.f32.partialorder %v1021_v55, 0.0 }
  0xf2   : > { %v1645_v52 = vpack.c.bf16 %v1132_v48, %v1131_v47  ;;  %v816_v54 = vpop.f32.mrf.mxu1 }
  0xf3   : > { %v817_v56 = vadd.f32 %v816_v54, %v727_v50  ;;  %v1001_v57 = vmul.f32 %v1917_v51, %v855_v49  ;;  %v1117_v4 = vsel %vm1053_vm0, %v1021_v55, %v1085_v59 }
  0xf4   : > { %1677 = vst [vmem:[%s1934_s15 + $0x58] sm:$0xff] %v1645_v52  }
  0xf5   : > { %v986_v58 = vmul.f32 %v1917_v51, %v817_v56  ;;  %v1037_v63 = vadd.f32 %v1923_v53, %v1001_v57 }
  0xf7   : > { %v1022_v60 = vadd.f32 %v1923_v53, %v986_v58  ;;  %v767_v61 = vpop.f32.mrf.mxu2  ;;  %v1101_v9 = vmul.f32 0.01, %v1037_v63  ;;  %vm1069_vm2 = vcmp.ge.f32.partialorder %v1037_v63, 0.0 }
  0xf8   : > { %v856_v62 = vpop.f32.mrf.mxu3 }
  0xf9   : > { %vm1054_vm1 = vcmp.ge.f32.partialorder %v1022_v60, 0.0  ;;  %v1086_v0 = vmul.f32 0.01, %v1022_v60  ;;  %v857_v1 = vadd.f32 %v856_v62, %v767_v61  ;;  %v730_v2 = vpop.f32.mrf.mxu0  ;;  %v1133_v15 = vsel %vm1069_vm2, %v1037_v63, %v1101_v9 }
  0xfa   : > { %v819_v3 = vpop.f32.mrf.mxu1 }
  0xfb   : > { %v1118_v5 = vsel %vm1054_vm1, %v1022_v60, %v1086_v0  ;;  %v1002_v6 = vmul.f32 %v1917_v51, %v857_v1  ;;  %v820_v7 = vadd.f32 %v819_v3, %v730_v2 }
  0xfc   : > { %v1610_v8 = vpack.c.bf16 %v1118_v5, %v1117_v4 }
  0xfd   : > { %v1038_v10 = vadd.f32 %v1923_v53, %v1002_v6  ;;  %v987_v12 = vmul.f32 %v1917_v51, %v820_v7 }
  0xfe   : > { %1670 = vst [vmem:[%s1934_s15 + $0x20] sm:$0xff] %v1610_v8  }
  0xff   : > { %vm1070_vm3 = vcmp.ge.f32.partialorder %v1038_v10, 0.0  ;;  %v1102_v11 = vmul.f32 0.01, %v1038_v10  ;;  %v770_v13 = vpop.f32.mrf.mxu2  ;;  %v1023_v21 = vadd.f32 %v1923_v53, %v987_v12 }
 0x100   : > { %v859_v14 = vpop.f32.mrf.mxu3 }
 0x101   : > { %v1134_v16 = vsel %vm1070_vm3, %v1038_v10, %v1102_v11  ;;  %v860_v17 = vadd.f32 %v859_v14, %v770_v13  ;;  %v732_v18 = vpop.f32.mrf.mxu0  ;;  %v1087_v25 = vmul.f32 0.01, %v1023_v21  ;;  %vm1055_vm4 = vcmp.ge.f32.partialorder %v1023_v21, 0.0 }
 0x102   : > { %v1650_v19 = vpack.c.bf16 %v1134_v16, %v1133_v15  ;;  %v821_v20 = vpop.f32.mrf.mxu1 }
 0x103   : > { %v822_v22 = vadd.f32 %v821_v20, %v732_v18  ;;  %v1003_v23 = vmul.f32 %v1917_v51, %v860_v17  ;;  %v1119_v34 = vsel %vm1055_vm4, %v1023_v21, %v1087_v25 }
 0x104   : > { %1678 = vst [vmem:[%s1934_s15 + $0x60] sm:$0xff] %v1650_v19  }
 0x105   : > { %v988_v24 = vmul.f32 %v1917_v51, %v822_v22  ;;  %v1039_v29 = vadd.f32 %v1923_v53, %v1003_v23 }
 0x107   : > { %v1024_v26 = vadd.f32 %v1923_v53, %v988_v24  ;;  %v772_v27 = vpop.f32.mrf.mxu2  ;;  %v1103_v39 = vmul.f32 0.01, %v1039_v29  ;;  %vm1071_vm6 = vcmp.ge.f32.partialorder %v1039_v29, 0.0 }
 0x108   : > { %v861_v28 = vpop.f32.mrf.mxu3 }
 0x109   : > { %vm1056_vm5 = vcmp.ge.f32.partialorder %v1024_v26, 0.0  ;;  %v1088_v30 = vmul.f32 0.01, %v1024_v26  ;;  %v862_v31 = vadd.f32 %v861_v28, %v772_v27  ;;  %v735_v32 = vpop.f32.mrf.mxu0  ;;  %v1135_v45 = vsel %vm1071_vm6, %v1039_v29, %v1103_v39 }
 0x10a   : > { %v824_v33 = vpop.f32.mrf.mxu1 }
 0x10b   : > { %v1120_v35 = vsel %vm1056_vm5, %v1024_v26, %v1088_v30  ;;  %v1004_v36 = vmul.f32 %v1917_v51, %v862_v31  ;;  %v825_v37 = vadd.f32 %v824_v33, %v735_v32 }
 0x10c   : > { %v1615_v38 = vpack.c.bf16 %v1120_v35, %v1119_v34 }
 0x10d   : > { %v1040_v40 = vadd.f32 %v1923_v53, %v1004_v36  ;;  %v989_v42 = vmul.f32 %v1917_v51, %v825_v37 }
 0x10e   : > { %1671 = vst [vmem:[%s1934_s15 + $0x28] sm:$0xff] %v1615_v38  }
 0x10f   : > { %vm1072_vm7 = vcmp.ge.f32.partialorder %v1040_v40, 0.0  ;;  %v1104_v41 = vmul.f32 0.01, %v1040_v40  ;;  %v775_v43 = vpop.f32.mrf.mxu2  ;;  %v1025_v52 = vadd.f32 %v1923_v53, %v989_v42 }
 0x110   : > { %v864_v44 = vpop.f32.mrf.mxu3 }
 0x111   : > { %v1136_v46 = vsel %vm1072_vm7, %v1040_v40, %v1104_v41  ;;  %v865_v47 = vadd.f32 %v864_v44, %v775_v43  ;;  %v737_v48 = vpop.f32.mrf.mxu0  ;;  %v1089_v57 = vmul.f32 0.01, %v1025_v52  ;;  %vm1057_vm8 = vcmp.ge.f32.partialorder %v1025_v52, 0.0 }
 0x112   : > { %v1655_v49 = vpack.c.bf16 %v1136_v46, %v1135_v45  ;;  %v826_v50 = vpop.f32.mrf.mxu1 }
 0x113   : > { %v827_v54 = vadd.f32 %v826_v50, %v737_v48  ;;  %v1005_v55 = vmul.f32 %v1917_v51, %v865_v47  ;;  %v1121_v2 = vsel %vm1057_vm8, %v1025_v52, %v1089_v57 }
 0x114   : > { %1679 = vst [vmem:[%s1934_s15 + $0x68] sm:$0xff] %v1655_v49  }
 0x115   : > { %v990_v56 = vmul.f32 %v1917_v51, %v827_v54  ;;  %v1041_v61 = vadd.f32 %v1923_v53, %v1005_v55 }
 0x117   : > { %v1026_v58 = vadd.f32 %v1923_v53, %v990_v56  ;;  %v777_v59 = vpop.f32.mrf.mxu2  ;;  %v1105_v7 = vmul.f32 0.01, %v1041_v61  ;;  %vm1073_vm10 = vcmp.ge.f32.partialorder %v1041_v61, 0.0 }
 0x118   : > { %v866_v60 = vpop.f32.mrf.mxu3 }
 0x119   : > { %vm1058_vm9 = vcmp.ge.f32.partialorder %v1026_v58, 0.0  ;;  %v1090_v62 = vmul.f32 0.01, %v1026_v58  ;;  %v867_v63 = vadd.f32 %v866_v60, %v777_v59  ;;  %v740_v0 = vpop.f32.mrf.mxu0  ;;  %v1137_v13 = vsel %vm1073_vm10, %v1041_v61, %v1105_v7 }
 0x11a   : > { %v829_v1 = vpop.f32.mrf.mxu1 }
 0x11b   : > { %v1122_v3 = vsel %vm1058_vm9, %v1026_v58, %v1090_v62  ;;  %v1006_v4 = vmul.f32 %v1917_v51, %v867_v63  ;;  %v830_v5 = vadd.f32 %v829_v1, %v740_v0 }
 0x11c   : > { %v1620_v6 = vpack.c.bf16 %v1122_v3, %v1121_v2 }
 0x11d   : > { %v1042_v8 = vadd.f32 %v1923_v53, %v1006_v4  ;;  %v991_v10 = vmul.f32 %v1917_v51, %v830_v5 }
 0x11e   : > { %1672 = vst [vmem:[%s1934_s15 + $0x30] sm:$0xff] %v1620_v6  }
 0x11f   : > { %vm1074_vm11 = vcmp.ge.f32.partialorder %v1042_v8, 0.0  ;;  %v1106_v9 = vmul.f32 0.01, %v1042_v8  ;;  %v780_v11 = vpop.f32.mrf.mxu2  ;;  %v1027_v19 = vadd.f32 %v1923_v53, %v991_v10 }
 0x120   : > { %v869_v12 = vpop.f32.mrf.mxu3 }
 0x121   : > { %v1138_v14 = vsel %vm1074_vm11, %v1042_v8, %v1106_v9  ;;  %v870_v15 = vadd.f32 %v869_v12, %v780_v11  ;;  %v742_v16 = vpop.f32.mrf.mxu0  ;;  %v1091_v23 = vmul.f32 0.01, %v1027_v19  ;;  %vm1059_vm12 = vcmp.ge.f32.partialorder %v1027_v19, 0.0 }
 0x122   : > { %v1660_v17 = vpack.c.bf16 %v1138_v14, %v1137_v13  ;;  %v831_v18 = vpop.f32.mrf.mxu1 }
 0x123   : > { %v832_v20 = vadd.f32 %v831_v18, %v742_v16  ;;  %v1007_v21 = vmul.f32 %v1917_v51, %v870_v15  ;;  %v1123_v30 = vsel %vm1059_vm12, %v1027_v19, %v1091_v23 }
 0x124   : > { %1680 = vst [vmem:[%s1934_s15 + $0x70] sm:$0xff] %v1660_v17  }
 0x125   : > { %v992_v22 = vmul.f32 %v1917_v51, %v832_v20  ;;  %v1043_v27 = vadd.f32 %v1923_v53, %v1007_v21 }
 0x127   : > { %v1028_v24 = vadd.f32 %v1923_v53, %v992_v22  ;;  %v782_v25 = vpop.f32.mrf.mxu2  ;;  %v1107_v34 = vmul.f32 0.01, %v1043_v27  ;;  %vm1075_vm14 = vcmp.ge.f32.partialorder %v1043_v27, 0.0 }
 0x128   : > { %v871_v26 = vpop.f32.mrf.mxu3 }
 0x129   : > { %vm1060_vm13 = vcmp.ge.f32.partialorder %v1028_v24, 0.0  ;;  %v1092_v28 = vmul.f32 0.01, %v1028_v24  ;;  %v872_v29 = vadd.f32 %v871_v26, %v782_v25  ;;  %v1139_v37 = vsel %vm1075_vm14, %v1043_v27, %v1107_v34 }
 0x12b   : > { %v1124_v31 = vsel %vm1060_vm13, %v1028_v24, %v1092_v28  ;;  %v1008_v32 = vmul.f32 %v1917_v51, %v872_v29 }
 0x12c   : > { %v1625_v33 = vpack.c.bf16 %v1124_v31, %v1123_v30 }
 0x12d   : > { %v1044_v35 = vadd.f32 %v1923_v53, %v1008_v32 }
 0x12e   : > { %1673 = vst [vmem:[%s1934_s15 + $0x38] sm:$0xff] %v1625_v33  }
 0x12f   : > { %vm1076_vm15 = vcmp.ge.f32.partialorder %v1044_v35, 0.0  ;;  %v1108_v36 = vmul.f32 0.01, %v1044_v35 }
 0x131   : > { %v1140_v38 = vsel %vm1076_vm15, %v1044_v35, %v1108_v36 }
 0x132   : > { %v1665_v39 = vpack.c.bf16 %v1140_v38, %v1139_v37 }
 0x134   : > { %1681 = vst [vmem:[%s1934_s15 + $0x78] sm:$0xff] %v1665_v39  }
 0x135 PF: > { %s14_s17 = sadd.s32 1, %s1746_s17   ;;  %s2024_s15 = smov %s1742_s16 }
 0x136   : > { %p11_p5 = scmp.ge.s32.totalorder %s14_s17, 9   ;;  %s2025_s16 = smov %s2027_s18 }
 0x138   :  { %13 = sbr.rel (!%p11_p5) target bundleno = 2 (0x2), region = 83 }

// kernel: _lambda_.25
= control target key start
LH: loop header
LB: loop body
LE: loop exit
PB: predicated region body
PF: predicated region fallthrough
CT: control target
= control target key end

     0   :  { %s1431_s15 = smov 0   ;;  %s1433_s16 = smov 0   ;;  %s1608_s0 = inlined_call_operand.vmem [shape: bf16[2304,128], index: 0, kind: input, shape index: {}]   ;;  %s1609_s1 = inlined_call_operand.vmem [shape: bf16[128,128], index: 1, kind: input, shape index: {}]   ;;  %s1610_s2 = inlined_call_operand.vmem [shape: f32[1,128], index: 2, kind: input, shape index: {}]   ;;  %s1611_s3 = inlined_call_operand.vmem [shape: f32[1,128], index: 3, kind: input, shape index: {}]   ;;  %s1612_s4 = inlined_call_operand.vmem [shape: bf16[2304,128], index: 4, kind: output, shape index: {}]  }
   0x1   :  { %s1435_s17 = smov 0  }
   0x2 LB: > { %s33_s18 = sadd.s32 1, %s1400_s16  ;;  %p1110_p0 = scmp.ge.s32.totalorder %s1404_s17, 1  ;;  %s1404_s17 = sphi %s1435_s17, %s14_s17   ;;  %s1400_s16 = sphi %s1433_s16, %s1614_s16   ;;  %s1396_s15 = sphi %s1431_s15, %s1613_s15  }
   0x3   : > { %p35_p1 = scmp.ge.s32.totalorder %s33_s18, 9  ;;  %p221_p2 = scmp.lt.s32.totalorder %s1404_s17, 10 }
   0x5   : > { %s1616_s18 = smov (%p35_p1, %s33_s18), 0  ;;  %p222_p3 = pnand %p1110_p0, %p221_p2 }
   0x6   : > { %s1111_s27 = sshll.u32 (!%p222_p3), %s1396_s15, 5 }
   0x7   : > { %225 = sbr.rel (%p222_p3) target bundleno = 244 (0xf4), region = 36  ;;  %p268_p4 = scmp.lt.s32.totalorder (!%p222_p3), %s1111_s27, 287 }
   0xc   : > { %v1236_v0 = vld [vmem:[%s1609_s1 + $0x38] sm:$0xff]  ;;  %v1235_v1 = vld [vmem:[%s1609_s1 + $0x30] sm:$0xff]  ;;  %v1234_v2 = vld [vmem:[%s1609_s1 + $0x28] sm:$0xff]  ;;  %s1618_s27 = smov (!%p268_p4, %s1111_s27), 287 }
   0xd   : > { %560 = vmatpush.bf16.msra.mxu0 %v1236_v0  ;;  %1332 = vmatpush.bf16.msra.mxu1 %v1236_v0  ;;  %v1233_v3 = vld [vmem:[%s1609_s1 + $0x20] sm:$0xff]  ;;  %v1232_v4 = vld [vmem:[%s1609_s1 + $0x18] sm:$0xff]  ;;  %v1231_v5 = vld [vmem:[%s1609_s1 + $0x10] sm:$0xff]  ;;  %s1112_s8 = sshll.u32 %s1618_s27, 2 }
   0xe   : > { %1333 = vmatpush.bf16.msra.mxu2 %v1236_v0  ;;  %1334 = vmatpush.bf16.msra.mxu3 %v1236_v0  ;;  %v1230_v6 = vld [vmem:[%s1609_s1 + $0x8] sm:$0xff]  ;;  %v1229_v7 = vld [vmem:[%s1609_s1] sm:$0xff]  ;;  %s1484_s13 = scalar_lea.vmem %s1608_s0, %s1112_s8  ;;  %s1529_s23 = scalar_lea.vmem %s1612_s4, %s1112_s8 }
   0xf   : > { %v1213_v8 = vld [vmem:[%s1484_s13] sm:$0xff]  ;;  %v1214_v12 = vld [vmem:[%s1484_s13 + $0x8] sm:$0xff]  ;;  %v1215_v16 = vld [vmem:[%s1484_s13 + $0x10] sm:$0xff] }
  0x10   : > { %v1217_v9 = vld [vmem:[%s1484_s13 + $0x20] sm:$0xff]  ;;  %v1218_v13 = vld [vmem:[%s1484_s13 + $0x28] sm:$0xff]  ;;  %v1219_v17 = vld [vmem:[%s1484_s13 + $0x30] sm:$0xff] }
  0x11   : > { %561 = vmatpush.bf16.msra.mxu0 %v1235_v1  ;;  %1335 = vmatpush.bf16.msra.mxu1 %v1235_v1  ;;  %v1221_v10 = vld [vmem:[%s1484_s13 + $0x40] sm:$0xff]  ;;  %v1222_v14 = vld [vmem:[%s1484_s13 + $0x48] sm:$0xff]  ;;  %v1223_v18 = vld [vmem:[%s1484_s13 + $0x50] sm:$0xff] }
  0x12   : > { %1336 = vmatpush.bf16.msra.mxu2 %v1235_v1  ;;  %1337 = vmatpush.bf16.msra.mxu3 %v1235_v1  ;;  %v1225_v11 = vld [vmem:[%s1484_s13 + $0x60] sm:$0xff]  ;;  %v1226_v15 = vld [vmem:[%s1484_s13 + $0x68] sm:$0xff]  ;;  %v1227_v19 = vld [vmem:[%s1484_s13 + $0x70] sm:$0xff] }
  0x13   : > { %v1216_v20 = vld [vmem:[%s1484_s13 + $0x18] sm:$0xff]  ;;  %v1505_v24 = vld [vmem:[%s1610_s2] ss:$0 sm:$0xff] }
  0x14   : > { %v1220_v21 = vld [vmem:[%s1484_s13 + $0x38] sm:$0xff]  ;;  %v1511_v28 = vld [vmem:[%s1611_s3] ss:$0 sm:$0xff] }
  0x15   : > { %562 = vmatpush.bf16.msra.mxu0 %v1234_v2  ;;  %1338 = vmatpush.bf16.msra.mxu1 %v1234_v2  ;;  %v1224_v22 = vld [vmem:[%s1484_s13 + $0x58] sm:$0xff] }
  0x16   : > { %1339 = vmatpush.bf16.msra.mxu2 %v1234_v2  ;;  %1340 = vmatpush.bf16.msra.mxu3 %v1234_v2  ;;  %v1228_v23 = vld [vmem:[%s1484_s13 + $0x78] sm:$0xff] }
  0x19   : > { %563 = vmatpush.bf16.msra.mxu0 %v1233_v3  ;;  %1341 = vmatpush.bf16.msra.mxu1 %v1233_v3 }
  0x1a   : > { %1342 = vmatpush.bf16.msra.mxu2 %v1233_v3  ;;  %1343 = vmatpush.bf16.msra.mxu3 %v1233_v3 }
  0x1d   : > { %564 = vmatpush.bf16.msra.mxu0 %v1232_v4  ;;  %1344 = vmatpush.bf16.msra.mxu1 %v1232_v4 }
  0x1e   : > { %1345 = vmatpush.bf16.msra.mxu2 %v1232_v4  ;;  %1346 = vmatpush.bf16.msra.mxu3 %v1232_v4 }
  0x21   : > { %565 = vmatpush.bf16.msra.mxu0 %v1231_v5  ;;  %1347 = vmatpush.bf16.msra.mxu1 %v1231_v5 }
  0x22   : > { %1348 = vmatpush.bf16.msra.mxu2 %v1231_v5  ;;  %1349 = vmatpush.bf16.msra.mxu3 %v1231_v5 }
  0x25   : > { %566 = vmatpush.bf16.msra.mxu0 %v1230_v6  ;;  %1350 = vmatpush.bf16.msra.mxu1 %v1230_v6 }
  0x26   : > { %1351 = vmatpush.bf16.msra.mxu2 %v1230_v6  ;;  %1352 = vmatpush.bf16.msra.mxu3 %v1230_v6 }
  0x29   : > { %567 = vmatpush.bf16.msra.mxu0 %v1229_v7  ;;  %1353 = vmatpush.bf16.msra.mxu1 %v1229_v7 }
  0x2a   : > { %1354 = vmatpush.bf16.msra.mxu2 %v1229_v7  ;;  %1355 = vmatpush.bf16.msra.mxu3 %v1229_v7 }
  0x2c   : > { %568 = vmatmul.bf16.vlgmr.msra.gmra.mxu0 %v1213_v8  ;;  %588 = vmatmul.bf16.vlgmr.msra.gmra.mxu1 %v1217_v9 }
  0x2d   : > { %608 = vmatmul.bf16.vlgmr.msra.gmra.mxu2 %v1221_v10  ;;  %628 = vmatmul.bf16.vlgmr.msra.gmra.mxu3 %v1225_v11 }
  0x3c   : > { %573 = vmatmul.bf16.gmra.mxu0 %v1214_v12  ;;  %593 = vmatmul.bf16.gmra.mxu1 %v1218_v13 }
  0x3d   : > { %613 = vmatmul.bf16.gmra.mxu2 %v1222_v14  ;;  %633 = vmatmul.bf16.gmra.mxu3 %v1226_v15 }
  0x4c   : > { %578 = vmatmul.bf16.gmra.mxu0 %v1215_v16  ;;  %598 = vmatmul.bf16.gmra.mxu1 %v1219_v17 }
  0x4d   : > { %618 = vmatmul.bf16.gmra.mxu2 %v1223_v18  ;;  %638 = vmatmul.bf16.gmra.mxu3 %v1227_v19 }
  0x5c   : > { %583 = vmatmul.bf16.gmra.mxu0 %v1216_v20  ;;  %603 = vmatmul.bf16.gmra.mxu1 %v1220_v21 }
  0x5d   : > { %623 = vmatmul.bf16.gmra.mxu2 %v1224_v22  ;;  %643 = vmatmul.bf16.gmra.mxu3 %v1228_v23 }
  0xa9   : > { %v569_v25 = vpop.f32.mrf.mxu0  ;;  %v589_v26 = vpop.f32.mrf.mxu1 }
  0xaa   : > { %v752_v27 = vmul.f32 %v1505_v24, %v569_v25  ;;  %v760_v29 = vmul.f32 %v1505_v24, %v589_v26 }
  0xac   : > { %v788_v30 = vadd.f32 %v1511_v28, %v752_v27  ;;  %v796_v31 = vadd.f32 %v1511_v28, %v760_v29 }
  0xae   : > { %v852_v40 = vmul.f32 0.01, %v788_v30  ;;  %v860_v41 = vmul.f32 0.01, %v796_v31  ;;  %vm820_vm0 = vcmp.ge.f32.partialorder %v788_v30, 0.0  ;;  %vm828_vm1 = vcmp.ge.f32.partialorder %v796_v31, 0.0 }
  0xb0   : > { %v609_v32 = vpop.f32.mrf.mxu2  ;;  %v629_v33 = vpop.f32.mrf.mxu3  ;;  %v884_v48 = vsel %vm820_vm0, %v788_v30, %v852_v40  ;;  %v892_v49 = vsel %vm828_vm1, %v796_v31, %v860_v41 }
  0xb1   : > { %v571_v34 = vpop.f32.mrf.mxu0  ;;  %v591_v35 = vpop.f32.mrf.mxu1  ;;  %v768_v38 = vmul.f32 %v1505_v24, %v609_v32  ;;  %v776_v39 = vmul.f32 %v1505_v24, %v629_v33 }
  0xb2   : > { %v753_v36 = vmul.f32 %v1505_v24, %v571_v34  ;;  %v761_v37 = vmul.f32 %v1505_v24, %v591_v35 }
  0xb3   : > { %v804_v46 = vadd.f32 %v1511_v28, %v768_v38  ;;  %v812_v47 = vadd.f32 %v1511_v28, %v776_v39 }
  0xb4   : > { %v789_v42 = vadd.f32 %v1511_v28, %v753_v36  ;;  %v797_v43 = vadd.f32 %v1511_v28, %v761_v37 }
  0xb5   : > { %v868_v60 = vmul.f32 0.01, %v804_v46  ;;  %v876_v61 = vmul.f32 0.01, %v812_v47  ;;  %vm836_vm4 = vcmp.ge.f32.partialorder %v804_v46, 0.0  ;;  %vm844_vm5 = vcmp.ge.f32.partialorder %v812_v47, 0.0 }
  0xb6   : > { %vm821_vm2 = vcmp.ge.f32.partialorder %v789_v42, 0.0  ;;  %v853_v44 = vmul.f32 0.01, %v789_v42  ;;  %vm829_vm3 = vcmp.ge.f32.partialorder %v797_v43, 0.0  ;;  %v861_v45 = vmul.f32 0.01, %v797_v43 }
  0xb7   : > { %v900_v4 = vsel %vm836_vm4, %v804_v46, %v868_v60  ;;  %v908_v5 = vsel %vm844_vm5, %v812_v47, %v876_v61 }
  0xb8   : > { %v885_v50 = vsel %vm821_vm2, %v789_v42, %v853_v44  ;;  %v893_v51 = vsel %vm829_vm3, %v797_v43, %v861_v45  ;;  %v611_v52 = vpop.f32.mrf.mxu2  ;;  %v631_v53 = vpop.f32.mrf.mxu3 }
  0xb9   : > { %v1240_v54 = vpack.c.bf16 %v885_v50, %v884_v48  ;;  %v1260_v55 = vpack.c.bf16 %v893_v51, %v892_v49  ;;  %v769_v56 = vmul.f32 %v1505_v24, %v611_v52  ;;  %v777_v57 = vmul.f32 %v1505_v24, %v631_v53  ;;  %v574_v58 = vpop.f32.mrf.mxu0  ;;  %v594_v59 = vpop.f32.mrf.mxu1 }
  0xba   : > { %v754_v0 = vmul.f32 %v1505_v24, %v574_v58  ;;  %v762_v1 = vmul.f32 %v1505_v24, %v594_v59 }
  0xbb   : > { %1241 = vst [vmem:[%s1529_s23] sm:$0xff] %v1240_v54   ;;  %v805_v62 = vadd.f32 %v1511_v28, %v769_v56  ;;  %v813_v63 = vadd.f32 %v1511_v28, %v777_v57 }
  0xbc   : > { %1320 = vst [vmem:[%s1529_s23 + $0x20] sm:$0xff] %v1260_v55   ;;  %v790_v10 = vadd.f32 %v1511_v28, %v754_v0  ;;  %v798_v11 = vadd.f32 %v1511_v28, %v762_v1 }
  0xbd   : > { %vm837_vm6 = vcmp.ge.f32.partialorder %v805_v62, 0.0  ;;  %v869_v2 = vmul.f32 0.01, %v805_v62  ;;  %vm845_vm7 = vcmp.ge.f32.partialorder %v813_v63, 0.0  ;;  %v877_v3 = vmul.f32 0.01, %v813_v63 }
  0xbe   : > { %v854_v20 = vmul.f32 0.01, %v790_v10  ;;  %v862_v21 = vmul.f32 0.01, %v798_v11  ;;  %vm822_vm8 = vcmp.ge.f32.partialorder %v790_v10, 0.0  ;;  %vm830_vm9 = vcmp.ge.f32.partialorder %v798_v11, 0.0 }
  0xbf   : > { %v901_v6 = vsel %vm837_vm6, %v805_v62, %v869_v2  ;;  %v909_v7 = vsel %vm845_vm7, %v813_v63, %v877_v3 }
  0xc0   : > { %v1280_v8 = vpack.c.bf16 %v901_v6, %v900_v4  ;;  %v1300_v9 = vpack.c.bf16 %v909_v7, %v908_v5  ;;  %v614_v12 = vpop.f32.mrf.mxu2  ;;  %v634_v13 = vpop.f32.mrf.mxu3  ;;  %v886_v30 = vsel %vm822_vm8, %v790_v10, %v854_v20  ;;  %v894_v31 = vsel %vm830_vm9, %v798_v11, %v862_v21 }
  0xc1   : > { %v576_v14 = vpop.f32.mrf.mxu0  ;;  %v596_v15 = vpop.f32.mrf.mxu1  ;;  %v770_v18 = vmul.f32 %v1505_v24, %v614_v12  ;;  %v778_v19 = vmul.f32 %v1505_v24, %v634_v13 }
  0xc2   : > { %1324 = vst [vmem:[%s1529_s23 + $0x40] sm:$0xff] %v1280_v8   ;;  %v755_v16 = vmul.f32 %v1505_v24, %v576_v14  ;;  %v763_v17 = vmul.f32 %v1505_v24, %v596_v15 }
  0xc3   : > { %1328 = vst [vmem:[%s1529_s23 + $0x60] sm:$0xff] %v1300_v9   ;;  %v806_v27 = vadd.f32 %v1511_v28, %v770_v18  ;;  %v814_v29 = vadd.f32 %v1511_v28, %v778_v19 }
  0xc4   : > { %v791_v22 = vadd.f32 %v1511_v28, %v755_v16  ;;  %v799_v23 = vadd.f32 %v1511_v28, %v763_v17 }
  0xc5   : > { %v870_v42 = vmul.f32 0.01, %v806_v27  ;;  %v878_v43 = vmul.f32 0.01, %v814_v29  ;;  %vm838_vm12 = vcmp.ge.f32.partialorder %v806_v27, 0.0  ;;  %vm846_vm13 = vcmp.ge.f32.partialorder %v814_v29, 0.0 }
  0xc6   : > { %vm823_vm10 = vcmp.ge.f32.partialorder %v791_v22, 0.0  ;;  %v855_v25 = vmul.f32 0.01, %v791_v22  ;;  %vm831_vm11 = vcmp.ge.f32.partialorder %v799_v23, 0.0  ;;  %v863_v26 = vmul.f32 0.01, %v799_v23 }
  0xc7   : > { %v902_v50 = vsel %vm838_vm12, %v806_v27, %v870_v42  ;;  %v910_v51 = vsel %vm846_vm13, %v814_v29, %v878_v43 }
  0xc8   : > { %v887_v32 = vsel %vm823_vm10, %v791_v22, %v855_v25  ;;  %v895_v33 = vsel %vm831_vm11, %v799_v23, %v863_v26  ;;  %v616_v34 = vpop.f32.mrf.mxu2  ;;  %v636_v35 = vpop.f32.mrf.mxu3 }
  0xc9   : > { %v1245_v36 = vpack.c.bf16 %v887_v32, %v886_v30  ;;  %v1265_v37 = vpack.c.bf16 %v895_v33, %v894_v31  ;;  %v771_v38 = vmul.f32 %v1505_v24, %v616_v34  ;;  %v779_v39 = vmul.f32 %v1505_v24, %v636_v35  ;;  %v579_v40 = vpop.f32.mrf.mxu0  ;;  %v599_v41 = vpop.f32.mrf.mxu1 }
  0xca   : > { %v756_v46 = vmul.f32 %v1505_v24, %v579_v40  ;;  %v764_v47 = vmul.f32 %v1505_v24, %v599_v41 }
  0xcb   : > { %1317 = vst [vmem:[%s1529_s23 + $0x8] sm:$0xff] %v1245_v36   ;;  %v807_v44 = vadd.f32 %v1511_v28, %v771_v38  ;;  %v815_v45 = vadd.f32 %v1511_v28, %v779_v39 }
  0xcc   : > { %1321 = vst [vmem:[%s1529_s23 + $0x28] sm:$0xff] %v1265_v37   ;;  %v792_v56 = vadd.f32 %v1511_v28, %v756_v46  ;;  %v800_v57 = vadd.f32 %v1511_v28, %v764_v47 }
  0xcd   : > { %vm839_vm14 = vcmp.ge.f32.partialorder %v807_v44, 0.0  ;;  %v871_v48 = vmul.f32 0.01, %v807_v44  ;;  %vm847_vm15 = vcmp.ge.f32.partialorder %v815_v45, 0.0  ;;  %v879_v49 = vmul.f32 0.01, %v815_v45 }
  0xce   : > { %v856_v2 = vmul.f32 0.01, %v792_v56  ;;  %v864_v3 = vmul.f32 0.01, %v800_v57  ;;  %vm824_vm0 = vcmp.ge.f32.partialorder %v792_v56, 0.0  ;;  %vm832_vm1 = vcmp.ge.f32.partialorder %v800_v57, 0.0 }
  0xcf   : > { %v903_v52 = vsel %vm839_vm14, %v807_v44, %v871_v48  ;;  %v911_v53 = vsel %vm847_vm15, %v815_v45, %v879_v49 }
  0xd0   : > { %v1285_v54 = vpack.c.bf16 %v903_v52, %v902_v50  ;;  %v1305_v55 = vpack.c.bf16 %v911_v53, %v910_v51  ;;  %v619_v58 = vpop.f32.mrf.mxu2  ;;  %v639_v59 = vpop.f32.mrf.mxu3  ;;  %v888_v10 = vsel %vm824_vm0, %v792_v56, %v856_v2  ;;  %v896_v11 = vsel %vm832_vm1, %v800_v57, %v864_v3 }
  0xd1   : > { %v581_v60 = vpop.f32.mrf.mxu0  ;;  %v601_v61 = vpop.f32.mrf.mxu1  ;;  %v772_v0 = vmul.f32 %v1505_v24, %v619_v58  ;;  %v780_v1 = vmul.f32 %v1505_v24, %v639_v59 }
  0xd2   : > { %1325 = vst [vmem:[%s1529_s23 + $0x48] sm:$0xff] %v1285_v54   ;;  %v757_v62 = vmul.f32 %v1505_v24, %v581_v60  ;;  %v765_v63 = vmul.f32 %v1505_v24, %v601_v61 }
  0xd3   : > { %1329 = vst [vmem:[%s1529_s23 + $0x68] sm:$0xff] %v1305_v55   ;;  %v808_v8 = vadd.f32 %v1511_v28, %v772_v0  ;;  %v816_v9 = vadd.f32 %v1511_v28, %v780_v1 }
  0xd4   : > { %v793_v4 = vadd.f32 %v1511_v28, %v757_v62  ;;  %v801_v5 = vadd.f32 %v1511_v28, %v765_v63 }
  0xd5   : > { %v872_v22 = vmul.f32 0.01, %v808_v8  ;;  %v880_v23 = vmul.f32 0.01, %v816_v9  ;;  %vm840_vm4 = vcmp.ge.f32.partialorder %v808_v8, 0.0  ;;  %vm848_vm5 = vcmp.ge.f32.partialorder %v816_v9, 0.0 }
  0xd6   : > { %vm825_vm2 = vcmp.ge.f32.partialorder %v793_v4, 0.0  ;;  %v857_v6 = vmul.f32 0.01, %v793_v4  ;;  %vm833_vm3 = vcmp.ge.f32.partialorder %v801_v5, 0.0  ;;  %v865_v7 = vmul.f32 0.01, %v801_v5 }
  0xd7   : > { %v904_v32 = vsel %vm840_vm4, %v808_v8, %v872_v22  ;;  %v912_v33 = vsel %vm848_vm5, %v816_v9, %v880_v23 }
  0xd8   : > { %v889_v12 = vsel %vm825_vm2, %v793_v4, %v857_v6  ;;  %v897_v13 = vsel %vm833_vm3, %v801_v5, %v865_v7  ;;  %v621_v14 = vpop.f32.mrf.mxu2  ;;  %v641_v15 = vpop.f32.mrf.mxu3 }
  0xd9   : > { %v1250_v16 = vpack.c.bf16 %v889_v12, %v888_v10  ;;  %v1270_v17 = vpack.c.bf16 %v897_v13, %v896_v11  ;;  %v773_v18 = vmul.f32 %v1505_v24, %v621_v14  ;;  %v781_v19 = vmul.f32 %v1505_v24, %v641_v15  ;;  %v584_v20 = vpop.f32.mrf.mxu0  ;;  %v604_v21 = vpop.f32.mrf.mxu1 }
  0xda   : > { %v758_v27 = vmul.f32 %v1505_v24, %v584_v20  ;;  %v766_v29 = vmul.f32 %v1505_v24, %v604_v21 }
  0xdb   : > { %1318 = vst [vmem:[%s1529_s23 + $0x10] sm:$0xff] %v1250_v16   ;;  %v809_v25 = vadd.f32 %v1511_v28, %v773_v18  ;;  %v817_v26 = vadd.f32 %v1511_v28, %v781_v19 }
  0xdc   : > { %1322 = vst [vmem:[%s1529_s23 + $0x30] sm:$0xff] %v1270_v17   ;;  %v794_v38 = vadd.f32 %v1511_v28, %v758_v27  ;;  %v802_v39 = vadd.f32 %v1511_v28, %v766_v29 }
  0xdd   : > { %vm841_vm6 = vcmp.ge.f32.partialorder %v809_v25, 0.0  ;;  %v873_v30 = vmul.f32 0.01, %v809_v25  ;;  %vm849_vm7 = vcmp.ge.f32.partialorder %v817_v26, 0.0  ;;  %v881_v31 = vmul.f32 0.01, %v817_v26 }
  0xde   : > { %v858_v48 = vmul.f32 0.01, %v794_v38  ;;  %v866_v49 = vmul.f32 0.01, %v802_v39  ;;  %vm826_vm8 = vcmp.ge.f32.partialorder %v794_v38, 0.0  ;;  %vm834_vm9 = vcmp.ge.f32.partialorder %v802_v39, 0.0 }
  0xdf   : > { %v905_v34 = vsel %vm841_vm6, %v809_v25, %v873_v30  ;;  %v913_v35 = vsel %vm849_vm7, %v817_v26, %v881_v31 }
  0xe0   : > { %v1290_v36 = vpack.c.bf16 %v905_v34, %v904_v32  ;;  %v1310_v37 = vpack.c.bf16 %v913_v35, %v912_v33  ;;  %v624_v40 = vpop.f32.mrf.mxu2  ;;  %v644_v41 = vpop.f32.mrf.mxu3  ;;  %v890_v56 = vsel %vm826_vm8, %v794_v38, %v858_v48  ;;  %v898_v57 = vsel %vm834_vm9, %v802_v39, %v866_v49 }
  0xe1   : > { %v586_v42 = vpop.f32.mrf.mxu0  ;;  %v606_v43 = vpop.f32.mrf.mxu1  ;;  %v774_v46 = vmul.f32 %v1505_v24, %v624_v40  ;;  %v782_v47 = vmul.f32 %v1505_v24, %v644_v41 }
  0xe2   : > { %1326 = vst [vmem:[%s1529_s23 + $0x50] sm:$0xff] %v1290_v36   ;;  %v759_v44 = vmul.f32 %v1505_v24, %v586_v42  ;;  %v767_v45 = vmul.f32 %v1505_v24, %v606_v43 }
  0xe3   : > { %1330 = vst [vmem:[%s1529_s23 + $0x70] sm:$0xff] %v1310_v37   ;;  %v810_v54 = vadd.f32 %v1511_v28, %v774_v46  ;;  %v818_v55 = vadd.f32 %v1511_v28, %v782_v47 }
  0xe4   : > { %v795_v50 = vadd.f32 %v1511_v28, %v759_v44  ;;  %v803_v51 = vadd.f32 %v1511_v28, %v767_v45 }
  0xe5   : > { %v874_v2 = vmul.f32 0.01, %v810_v54  ;;  %v882_v3 = vmul.f32 0.01, %v818_v55  ;;  %vm842_vm12 = vcmp.ge.f32.partialorder %v810_v54, 0.0  ;;  %vm850_vm13 = vcmp.ge.f32.partialorder %v818_v55, 0.0 }
  0xe6   : > { %vm827_vm10 = vcmp.ge.f32.partialorder %v795_v50, 0.0  ;;  %v859_v52 = vmul.f32 0.01, %v795_v50  ;;  %vm835_vm11 = vcmp.ge.f32.partialorder %v803_v51, 0.0  ;;  %v867_v53 = vmul.f32 0.01, %v803_v51 }
  0xe7   : > { %v906_v8 = vsel %vm842_vm12, %v810_v54, %v874_v2  ;;  %v914_v9 = vsel %vm850_vm13, %v818_v55, %v882_v3 }
  0xe8   : > { %v891_v58 = vsel %vm827_vm10, %v795_v50, %v859_v52  ;;  %v899_v59 = vsel %vm835_vm11, %v803_v51, %v867_v53  ;;  %v626_v60 = vpop.f32.mrf.mxu2  ;;  %v646_v61 = vpop.f32.mrf.mxu3 }
  0xe9   : > { %v1255_v62 = vpack.c.bf16 %v891_v58, %v890_v56  ;;  %v1275_v63 = vpack.c.bf16 %v899_v59, %v898_v57  ;;  %v775_v0 = vmul.f32 %v1505_v24, %v626_v60  ;;  %v783_v1 = vmul.f32 %v1505_v24, %v646_v61 }
  0xeb   : > { %1319 = vst [vmem:[%s1529_s23 + $0x18] sm:$0xff] %v1255_v62   ;;  %v811_v4 = vadd.f32 %v1511_v28, %v775_v0  ;;  %v819_v5 = vadd.f32 %v1511_v28, %v783_v1 }
  0xec   : > { %1323 = vst [vmem:[%s1529_s23 + $0x38] sm:$0xff] %v1275_v63  }
  0xed   : > { %vm843_vm14 = vcmp.ge.f32.partialorder %v811_v4, 0.0  ;;  %v875_v6 = vmul.f32 0.01, %v811_v4  ;;  %vm851_vm15 = vcmp.ge.f32.partialorder %v819_v5, 0.0  ;;  %v883_v7 = vmul.f32 0.01, %v819_v5 }
  0xef   : > { %v907_v10 = vsel %vm843_vm14, %v811_v4, %v875_v6  ;;  %v915_v24 = vsel %vm851_vm15, %v819_v5, %v883_v7 }
  0xf0   : > { %v1295_v11 = vpack.c.bf16 %v907_v10, %v906_v8  ;;  %v1315_v12 = vpack.c.bf16 %v915_v24, %v914_v9 }
  0xf2   : > { %1327 = vst [vmem:[%s1529_s23 + $0x58] sm:$0xff] %v1295_v11  }
  0xf3   : > { %1331 = vst [vmem:[%s1529_s23 + $0x78] sm:$0xff] %v1315_v12  }
  0xf4 PF: > { %s14_s17 = sadd.s32 1, %s1404_s17   ;;  %s1613_s15 = smov %s1400_s16 }
  0xf5   : > { %p11_p5 = scmp.ge.s32.totalorder %s14_s17, 11   ;;  %s1614_s16 = smov %s1616_s18 }
  0xf7   :  { %13 = sbr.rel (!%p11_p5) target bundleno = 2 (0x2), region = 83 }

// kernel: _lambda_.26
= control target key start
LH: loop header
LB: loop body
LE: loop exit
PB: predicated region body
PF: predicated region fallthrough
CT: control target
= control target key end

     0   :  { %s1431_s15 = smov 0   ;;  %s1433_s16 = smov 0   ;;  %s1608_s0 = inlined_call_operand.vmem [shape: bf16[2816,128], index: 0, kind: input, shape index: {}]   ;;  %s1609_s1 = inlined_call_operand.vmem [shape: bf16[128,128], index: 1, kind: input, shape index: {}]   ;;  %s1610_s2 = inlined_call_operand.vmem [shape: f32[1,128], index: 2, kind: input, shape index: {}]   ;;  %s1611_s3 = inlined_call_operand.vmem [shape: f32[1,128], index: 3, kind: input, shape index: {}]   ;;  %s1612_s4 = inlined_call_operand.vmem [shape: bf16[2816,128], index: 4, kind: output, shape index: {}]  }
   0x1   :  { %s1435_s17 = smov 0  }
   0x2 LB: > { %s33_s18 = sadd.s32 1, %s1400_s16  ;;  %p1110_p0 = scmp.ge.s32.totalorder %s1404_s17, 1  ;;  %s1404_s17 = sphi %s1435_s17, %s14_s17   ;;  %s1400_s16 = sphi %s1433_s16, %s1614_s16   ;;  %s1396_s15 = sphi %s1431_s15, %s1613_s15  }
   0x3   : > { %p35_p1 = scmp.ge.s32.totalorder %s33_s18, 11  ;;  %p221_p2 = scmp.lt.s32.totalorder %s1404_s17, 12 }
   0x5   : > { %s1616_s18 = smov (%p35_p1, %s33_s18), 0  ;;  %p222_p3 = pnand %p1110_p0, %p221_p2 }
   0x6   : > { %s1111_s27 = sshll.u32 (!%p222_p3), %s1396_s15, 5 }
   0x7   : > { %225 = sbr.rel (%p222_p3) target bundleno = 244 (0xf4), region = 36  ;;  %p268_p4 = scmp.lt.s32.totalorder (!%p222_p3), %s1111_s27, 351 }
   0xc   : > { %v1236_v0 = vld [vmem:[%s1609_s1 + $0x38] sm:$0xff]  ;;  %v1235_v1 = vld [vmem:[%s1609_s1 + $0x30] sm:$0xff]  ;;  %v1234_v2 = vld [vmem:[%s1609_s1 + $0x28] sm:$0xff]  ;;  %s1618_s27 = smov (!%p268_p4, %s1111_s27), 351 }
   0xd   : > { %560 = vmatpush.bf16.msra.mxu0 %v1236_v0  ;;  %1332 = vmatpush.bf16.msra.mxu1 %v1236_v0  ;;  %v1233_v3 = vld [vmem:[%s1609_s1 + $0x20] sm:$0xff]  ;;  %v1232_v4 = vld [vmem:[%s1609_s1 + $0x18] sm:$0xff]  ;;  %v1231_v5 = vld [vmem:[%s1609_s1 + $0x10] sm:$0xff]  ;;  %s1112_s8 = sshll.u32 %s1618_s27, 2 }
   0xe   : > { %1333 = vmatpush.bf16.msra.mxu2 %v1236_v0  ;;  %1334 = vmatpush.bf16.msra.mxu3 %v1236_v0  ;;  %v1230_v6 = vld [vmem:[%s1609_s1 + $0x8] sm:$0xff]  ;;  %v1229_v7 = vld [vmem:[%s1609_s1] sm:$0xff]  ;;  %s1484_s13 = scalar_lea.vmem %s1608_s0, %s1112_s8  ;;  %s1529_s23 = scalar_lea.vmem %s1612_s4, %s1112_s8 }
   0xf   : > { %v1213_v8 = vld [vmem:[%s1484_s13] sm:$0xff]  ;;  %v1214_v12 = vld [vmem:[%s1484_s13 + $0x8] sm:$0xff]  ;;  %v1215_v16 = vld [vmem:[%s1484_s13 + $0x10] sm:$0xff] }
  0x10   : > { %v1217_v9 = vld [vmem:[%s1484_s13 + $0x20] sm:$0xff]  ;;  %v1218_v13 = vld [vmem:[%s1484_s13 + $0x28] sm:$0xff]  ;;  %v1219_v17 = vld [vmem:[%s1484_s13 + $0x30] sm:$0xff] }
  0x11   : > { %561 = vmatpush.bf16.msra.mxu0 %v1235_v1  ;;  %1335 = vmatpush.bf16.msra.mxu1 %v1235_v1  ;;  %v1221_v10 = vld [vmem:[%s1484_s13 + $0x40] sm:$0xff]  ;;  %v1222_v14 = vld [vmem:[%s1484_s13 + $0x48] sm:$0xff]  ;;  %v1223_v18 = vld [vmem:[%s1484_s13 + $0x50] sm:$0xff] }
  0x12   : > { %1336 = vmatpush.bf16.msra.mxu2 %v1235_v1  ;;  %1337 = vmatpush.bf16.msra.mxu3 %v1235_v1  ;;  %v1225_v11 = vld [vmem:[%s1484_s13 + $0x60] sm:$0xff]  ;;  %v1226_v15 = vld [vmem:[%s1484_s13 + $0x68] sm:$0xff]  ;;  %v1227_v19 = vld [vmem:[%s1484_s13 + $0x70] sm:$0xff] }
  0x13   : > { %v1216_v20 = vld [vmem:[%s1484_s13 + $0x18] sm:$0xff]  ;;  %v1505_v24 = vld [vmem:[%s1610_s2] ss:$0 sm:$0xff] }
  0x14   : > { %v1220_v21 = vld [vmem:[%s1484_s13 + $0x38] sm:$0xff]  ;;  %v1511_v28 = vld [vmem:[%s1611_s3] ss:$0 sm:$0xff] }
  0x15   : > { %562 = vmatpush.bf16.msra.mxu0 %v1234_v2  ;;  %1338 = vmatpush.bf16.msra.mxu1 %v1234_v2  ;;  %v1224_v22 = vld [vmem:[%s1484_s13 + $0x58] sm:$0xff] }
  0x16   : > { %1339 = vmatpush.bf16.msra.mxu2 %v1234_v2  ;;  %1340 = vmatpush.bf16.msra.mxu3 %v1234_v2  ;;  %v1228_v23 = vld [vmem:[%s1484_s13 + $0x78] sm:$0xff] }
  0x19   : > { %563 = vmatpush.bf16.msra.mxu0 %v1233_v3  ;;  %1341 = vmatpush.bf16.msra.mxu1 %v1233_v3 }
  0x1a   : > { %1342 = vmatpush.bf16.msra.mxu2 %v1233_v3  ;;  %1343 = vmatpush.bf16.msra.mxu3 %v1233_v3 }
  0x1d   : > { %564 = vmatpush.bf16.msra.mxu0 %v1232_v4  ;;  %1344 = vmatpush.bf16.msra.mxu1 %v1232_v4 }
  0x1e   : > { %1345 = vmatpush.bf16.msra.mxu2 %v1232_v4  ;;  %1346 = vmatpush.bf16.msra.mxu3 %v1232_v4 }
  0x21   : > { %565 = vmatpush.bf16.msra.mxu0 %v1231_v5  ;;  %1347 = vmatpush.bf16.msra.mxu1 %v1231_v5 }
  0x22   : > { %1348 = vmatpush.bf16.msra.mxu2 %v1231_v5  ;;  %1349 = vmatpush.bf16.msra.mxu3 %v1231_v5 }
  0x25   : > { %566 = vmatpush.bf16.msra.mxu0 %v1230_v6  ;;  %1350 = vmatpush.bf16.msra.mxu1 %v1230_v6 }
  0x26   : > { %1351 = vmatpush.bf16.msra.mxu2 %v1230_v6  ;;  %1352 = vmatpush.bf16.msra.mxu3 %v1230_v6 }
  0x29   : > { %567 = vmatpush.bf16.msra.mxu0 %v1229_v7  ;;  %1353 = vmatpush.bf16.msra.mxu1 %v1229_v7 }
  0x2a   : > { %1354 = vmatpush.bf16.msra.mxu2 %v1229_v7  ;;  %1355 = vmatpush.bf16.msra.mxu3 %v1229_v7 }
  0x2c   : > { %568 = vmatmul.bf16.vlgmr.msra.gmra.mxu0 %v1213_v8  ;;  %588 = vmatmul.bf16.vlgmr.msra.gmra.mxu1 %v1217_v9 }
  0x2d   : > { %608 = vmatmul.bf16.vlgmr.msra.gmra.mxu2 %v1221_v10  ;;  %628 = vmatmul.bf16.vlgmr.msra.gmra.mxu3 %v1225_v11 }
  0x3c   : > { %573 = vmatmul.bf16.gmra.mxu0 %v1214_v12  ;;  %593 = vmatmul.bf16.gmra.mxu1 %v1218_v13 }
  0x3d   : > { %613 = vmatmul.bf16.gmra.mxu2 %v1222_v14  ;;  %633 = vmatmul.bf16.gmra.mxu3 %v1226_v15 }
  0x4c   : > { %578 = vmatmul.bf16.gmra.mxu0 %v1215_v16  ;;  %598 = vmatmul.bf16.gmra.mxu1 %v1219_v17 }
  0x4d   : > { %618 = vmatmul.bf16.gmra.mxu2 %v1223_v18  ;;  %638 = vmatmul.bf16.gmra.mxu3 %v1227_v19 }
  0x5c   : > { %583 = vmatmul.bf16.gmra.mxu0 %v1216_v20  ;;  %603 = vmatmul.bf16.gmra.mxu1 %v1220_v21 }
  0x5d   : > { %623 = vmatmul.bf16.gmra.mxu2 %v1224_v22  ;;  %643 = vmatmul.bf16.gmra.mxu3 %v1228_v23 }
  0xa9   : > { %v569_v25 = vpop.f32.mrf.mxu0  ;;  %v589_v26 = vpop.f32.mrf.mxu1 }
  0xaa   : > { %v752_v27 = vmul.f32 %v1505_v24, %v569_v25  ;;  %v760_v29 = vmul.f32 %v1505_v24, %v589_v26 }
  0xac   : > { %v788_v30 = vadd.f32 %v1511_v28, %v752_v27  ;;  %v796_v31 = vadd.f32 %v1511_v28, %v760_v29 }
  0xae   : > { %v852_v40 = vmul.f32 0.01, %v788_v30  ;;  %v860_v41 = vmul.f32 0.01, %v796_v31  ;;  %vm820_vm0 = vcmp.ge.f32.partialorder %v788_v30, 0.0  ;;  %vm828_vm1 = vcmp.ge.f32.partialorder %v796_v31, 0.0 }
  0xb0   : > { %v609_v32 = vpop.f32.mrf.mxu2  ;;  %v629_v33 = vpop.f32.mrf.mxu3  ;;  %v884_v48 = vsel %vm820_vm0, %v788_v30, %v852_v40  ;;  %v892_v49 = vsel %vm828_vm1, %v796_v31, %v860_v41 }
  0xb1   : > { %v571_v34 = vpop.f32.mrf.mxu0  ;;  %v591_v35 = vpop.f32.mrf.mxu1  ;;  %v768_v38 = vmul.f32 %v1505_v24, %v609_v32  ;;  %v776_v39 = vmul.f32 %v1505_v24, %v629_v33 }
  0xb2   : > { %v753_v36 = vmul.f32 %v1505_v24, %v571_v34  ;;  %v761_v37 = vmul.f32 %v1505_v24, %v591_v35 }
  0xb3   : > { %v804_v46 = vadd.f32 %v1511_v28, %v768_v38  ;;  %v812_v47 = vadd.f32 %v1511_v28, %v776_v39 }
  0xb4   : > { %v789_v42 = vadd.f32 %v1511_v28, %v753_v36  ;;  %v797_v43 = vadd.f32 %v1511_v28, %v761_v37 }
  0xb5   : > { %v868_v60 = vmul.f32 0.01, %v804_v46  ;;  %v876_v61 = vmul.f32 0.01, %v812_v47  ;;  %vm836_vm4 = vcmp.ge.f32.partialorder %v804_v46, 0.0  ;;  %vm844_vm5 = vcmp.ge.f32.partialorder %v812_v47, 0.0 }
  0xb6   : > { %vm821_vm2 = vcmp.ge.f32.partialorder %v789_v42, 0.0  ;;  %v853_v44 = vmul.f32 0.01, %v789_v42  ;;  %vm829_vm3 = vcmp.ge.f32.partialorder %v797_v43, 0.0  ;;  %v861_v45 = vmul.f32 0.01, %v797_v43 }
  0xb7   : > { %v900_v4 = vsel %vm836_vm4, %v804_v46, %v868_v60  ;;  %v908_v5 = vsel %vm844_vm5, %v812_v47, %v876_v61 }
  0xb8   : > { %v885_v50 = vsel %vm821_vm2, %v789_v42, %v853_v44  ;;  %v893_v51 = vsel %vm829_vm3, %v797_v43, %v861_v45  ;;  %v611_v52 = vpop.f32.mrf.mxu2  ;;  %v631_v53 = vpop.f32.mrf.mxu3 }
  0xb9   : > { %v1240_v54 = vpack.c.bf16 %v885_v50, %v884_v48  ;;  %v1260_v55 = vpack.c.bf16 %v893_v51, %v892_v49  ;;  %v769_v56 = vmul.f32 %v1505_v24, %v611_v52  ;;  %v777_v57 = vmul.f32 %v1505_v24, %v631_v53  ;;  %v574_v58 = vpop.f32.mrf.mxu0  ;;  %v594_v59 = vpop.f32.mrf.mxu1 }
  0xba   : > { %v754_v0 = vmul.f32 %v1505_v24, %v574_v58  ;;  %v762_v1 = vmul.f32 %v1505_v24, %v594_v59 }
  0xbb   : > { %1241 = vst [vmem:[%s1529_s23] sm:$0xff] %v1240_v54   ;;  %v805_v62 = vadd.f32 %v1511_v28, %v769_v56  ;;  %v813_v63 = vadd.f32 %v1511_v28, %v777_v57 }
  0xbc   : > { %1320 = vst [vmem:[%s1529_s23 + $0x20] sm:$0xff] %v1260_v55   ;;  %v790_v10 = vadd.f32 %v1511_v28, %v754_v0  ;;  %v798_v11 = vadd.f32 %v1511_v28, %v762_v1 }
  0xbd   : > { %vm837_vm6 = vcmp.ge.f32.partialorder %v805_v62, 0.0  ;;  %v869_v2 = vmul.f32 0.01, %v805_v62  ;;  %vm845_vm7 = vcmp.ge.f32.partialorder %v813_v63, 0.0  ;;  %v877_v3 = vmul.f32 0.01, %v813_v63 }
  0xbe   : > { %v854_v20 = vmul.f32 0.01, %v790_v10  ;;  %v862_v21 = vmul.f32 0.01, %v798_v11  ;;  %vm822_vm8 = vcmp.ge.f32.partialorder %v790_v10, 0.0  ;;  %vm830_vm9 = vcmp.ge.f32.partialorder %v798_v11, 0.0 }
  0xbf   : > { %v901_v6 = vsel %vm837_vm6, %v805_v62, %v869_v2  ;;  %v909_v7 = vsel %vm845_vm7, %v813_v63, %v877_v3 }
  0xc0   : > { %v1280_v8 = vpack.c.bf16 %v901_v6, %v900_v4  ;;  %v1300_v9 = vpack.c.bf16 %v909_v7, %v908_v5  ;;  %v614_v12 = vpop.f32.mrf.mxu2  ;;  %v634_v13 = vpop.f32.mrf.mxu3  ;;  %v886_v30 = vsel %vm822_vm8, %v790_v10, %v854_v20  ;;  %v894_v31 = vsel %vm830_vm9, %v798_v11, %v862_v21 }
  0xc1   : > { %v576_v14 = vpop.f32.mrf.mxu0  ;;  %v596_v15 = vpop.f32.mrf.mxu1  ;;  %v770_v18 = vmul.f32 %v1505_v24, %v614_v12  ;;  %v778_v19 = vmul.f32 %v1505_v24, %v634_v13 }
  0xc2   : > { %1324 = vst [vmem:[%s1529_s23 + $0x40] sm:$0xff] %v1280_v8   ;;  %v755_v16 = vmul.f32 %v1505_v24, %v576_v14  ;;  %v763_v17 = vmul.f32 %v1505_v24, %v596_v15 }
  0xc3   : > { %1328 = vst [vmem:[%s1529_s23 + $0x60] sm:$0xff] %v1300_v9   ;;  %v806_v27 = vadd.f32 %v1511_v28, %v770_v18  ;;  %v814_v29 = vadd.f32 %v1511_v28, %v778_v19 }
  0xc4   : > { %v791_v22 = vadd.f32 %v1511_v28, %v755_v16  ;;  %v799_v23 = vadd.f32 %v1511_v28, %v763_v17 }
  0xc5   : > { %v870_v42 = vmul.f32 0.01, %v806_v27  ;;  %v878_v43 = vmul.f32 0.01, %v814_v29  ;;  %vm838_vm12 = vcmp.ge.f32.partialorder %v806_v27, 0.0  ;;  %vm846_vm13 = vcmp.ge.f32.partialorder %v814_v29, 0.0 }
  0xc6   : > { %vm823_vm10 = vcmp.ge.f32.partialorder %v791_v22, 0.0  ;;  %v855_v25 = vmul.f32 0.01, %v791_v22  ;;  %vm831_vm11 = vcmp.ge.f32.partialorder %v799_v23, 0.0  ;;  %v863_v26 = vmul.f32 0.01, %v799_v23 }
  0xc7   : > { %v902_v50 = vsel %vm838_vm12, %v806_v27, %v870_v42  ;;  %v910_v51 = vsel %vm846_vm13, %v814_v29, %v878_v43 }
  0xc8   : > { %v887_v32 = vsel %vm823_vm10, %v791_v22, %v855_v25  ;;  %v895_v33 = vsel %vm831_vm11, %v799_v23, %v863_v26  ;;  %v616_v34 = vpop.f32.mrf.mxu2  ;;  %v636_v35 = vpop.f32.mrf.mxu3 }
  0xc9   : > { %v1245_v36 = vpack.c.bf16 %v887_v32, %v886_v30  ;;  %v1265_v37 = vpack.c.bf16 %v895_v33, %v894_v31  ;;  %v771_v38 = vmul.f32 %v1505_v24, %v616_v34  ;;  %v779_v39 = vmul.f32 %v1505_v24, %v636_v35  ;;  %v579_v40 = vpop.f32.mrf.mxu0  ;;  %v599_v41 = vpop.f32.mrf.mxu1 }
  0xca   : > { %v756_v46 = vmul.f32 %v1505_v24, %v579_v40  ;;  %v764_v47 = vmul.f32 %v1505_v24, %v599_v41 }
  0xcb   : > { %1317 = vst [vmem:[%s1529_s23 + $0x8] sm:$0xff] %v1245_v36   ;;  %v807_v44 = vadd.f32 %v1511_v28, %v771_v38  ;;  %v815_v45 = vadd.f32 %v1511_v28, %v779_v39 }
  0xcc   : > { %1321 = vst [vmem:[%s1529_s23 + $0x28] sm:$0xff] %v1265_v37   ;;  %v792_v56 = vadd.f32 %v1511_v28, %v756_v46  ;;  %v800_v57 = vadd.f32 %v1511_v28, %v764_v47 }
  0xcd   : > { %vm839_vm14 = vcmp.ge.f32.partialorder %v807_v44, 0.0  ;;  %v871_v48 = vmul.f32 0.01, %v807_v44  ;;  %vm847_vm15 = vcmp.ge.f32.partialorder %v815_v45, 0.0  ;;  %v879_v49 = vmul.f32 0.01, %v815_v45 }
  0xce   : > { %v856_v2 = vmul.f32 0.01, %v792_v56  ;;  %v864_v3 = vmul.f32 0.01, %v800_v57  ;;  %vm824_vm0 = vcmp.ge.f32.partialorder %v792_v56, 0.0  ;;  %vm832_vm1 = vcmp.ge.f32.partialorder %v800_v57, 0.0 }
  0xcf   : > { %v903_v52 = vsel %vm839_vm14, %v807_v44, %v871_v48  ;;  %v911_v53 = vsel %vm847_vm15, %v815_v45, %v879_v49 }
  0xd0   : > { %v1285_v54 = vpack.c.bf16 %v903_v52, %v902_v50  ;;  %v1305_v55 = vpack.c.bf16 %v911_v53, %v910_v51  ;;  %v619_v58 = vpop.f32.mrf.mxu2  ;;  %v639_v59 = vpop.f32.mrf.mxu3  ;;  %v888_v10 = vsel %vm824_vm0, %v792_v56, %v856_v2  ;;  %v896_v11 = vsel %vm832_vm1, %v800_v57, %v864_v3 }
  0xd1   : > { %v581_v60 = vpop.f32.mrf.mxu0  ;;  %v601_v61 = vpop.f32.mrf.mxu1  ;;  %v772_v0 = vmul.f32 %v1505_v24, %v619_v58  ;;  %v780_v1 = vmul.f32 %v1505_v24, %v639_v59 }
  0xd2   : > { %1325 = vst [vmem:[%s1529_s23 + $0x48] sm:$0xff] %v1285_v54   ;;  %v757_v62 = vmul.f32 %v1505_v24, %v581_v60  ;;  %v765_v63 = vmul.f32 %v1505_v24, %v601_v61 }
  0xd3   : > { %1329 = vst [vmem:[%s1529_s23 + $0x68] sm:$0xff] %v1305_v55   ;;  %v808_v8 = vadd.f32 %v1511_v28, %v772_v0  ;;  %v816_v9 = vadd.f32 %v1511_v28, %v780_v1 }
  0xd4   : > { %v793_v4 = vadd.f32 %v1511_v28, %v757_v62  ;;  %v801_v5 = vadd.f32 %v1511_v28, %v765_v63 }
  0xd5   : > { %v872_v22 = vmul.f32 0.01, %v808_v8  ;;  %v880_v23 = vmul.f32 0.01, %v816_v9  ;;  %vm840_vm4 = vcmp.ge.f32.partialorder %v808_v8, 0.0  ;;  %vm848_vm5 = vcmp.ge.f32.partialorder %v816_v9, 0.0 }
  0xd6   : > { %vm825_vm2 = vcmp.ge.f32.partialorder %v793_v4, 0.0  ;;  %v857_v6 = vmul.f32 0.01, %v793_v4  ;;  %vm833_vm3 = vcmp.ge.f32.partialorder %v801_v5, 0.0  ;;  %v865_v7 = vmul.f32 0.01, %v801_v5 }
  0xd7   : > { %v904_v32 = vsel %vm840_vm4, %v808_v8, %v872_v22  ;;  %v912_v33 = vsel %vm848_vm5, %v816_v9, %v880_v23 }
  0xd8   : > { %v889_v12 = vsel %vm825_vm2, %v793_v4, %v857_v6  ;;  %v897_v13 = vsel %vm833_vm3, %v801_v5, %v865_v7  ;;  %v621_v14 = vpop.f32.mrf.mxu2  ;;  %v641_v15 = vpop.f32.mrf.mxu3 }
  0xd9   : > { %v1250_v16 = vpack.c.bf16 %v889_v12, %v888_v10  ;;  %v1270_v17 = vpack.c.bf16 %v897_v13, %v896_v11  ;;  %v773_v18 = vmul.f32 %v1505_v24, %v621_v14  ;;  %v781_v19 = vmul.f32 %v1505_v24, %v641_v15  ;;  %v584_v20 = vpop.f32.mrf.mxu0  ;;  %v604_v21 = vpop.f32.mrf.mxu1 }
  0xda   : > { %v758_v27 = vmul.f32 %v1505_v24, %v584_v20  ;;  %v766_v29 = vmul.f32 %v1505_v24, %v604_v21 }
  0xdb   : > { %1318 = vst [vmem:[%s1529_s23 + $0x10] sm:$0xff] %v1250_v16   ;;  %v809_v25 = vadd.f32 %v1511_v28, %v773_v18  ;;  %v817_v26 = vadd.f32 %v1511_v28, %v781_v19 }
  0xdc   : > { %1322 = vst [vmem:[%s1529_s23 + $0x30] sm:$0xff] %v1270_v17   ;;  %v794_v38 = vadd.f32 %v1511_v28, %v758_v27  ;;  %v802_v39 = vadd.f32 %v1511_v28, %v766_v29 }
  0xdd   : > { %vm841_vm6 = vcmp.ge.f32.partialorder %v809_v25, 0.0  ;;  %v873_v30 = vmul.f32 0.01, %v809_v25  ;;  %vm849_vm7 = vcmp.ge.f32.partialorder %v817_v26, 0.0  ;;  %v881_v31 = vmul.f32 0.01, %v817_v26 }
  0xde   : > { %v858_v48 = vmul.f32 0.01, %v794_v38  ;;  %v866_v49 = vmul.f32 0.01, %v802_v39  ;;  %vm826_vm8 = vcmp.ge.f32.partialorder %v794_v38, 0.0  ;;  %vm834_vm9 = vcmp.ge.f32.partialorder %v802_v39, 0.0 }
  0xdf   : > { %v905_v34 = vsel %vm841_vm6, %v809_v25, %v873_v30  ;;  %v913_v35 = vsel %vm849_vm7, %v817_v26, %v881_v31 }
  0xe0   : > { %v1290_v36 = vpack.c.bf16 %v905_v34, %v904_v32  ;;  %v1310_v37 = vpack.c.bf16 %v913_v35, %v912_v33  ;;  %v624_v40 = vpop.f32.mrf.mxu2  ;;  %v644_v41 = vpop.f32.mrf.mxu3  ;;  %v890_v56 = vsel %vm826_vm8, %v794_v38, %v858_v48  ;;  %v898_v57 = vsel %vm834_vm9, %v802_v39, %v866_v49 }
  0xe1   : > { %v586_v42 = vpop.f32.mrf.mxu0  ;;  %v606_v43 = vpop.f32.mrf.mxu1  ;;  %v774_v46 = vmul.f32 %v1505_v24, %v624_v40  ;;  %v782_v47 = vmul.f32 %v1505_v24, %v644_v41 }
  0xe2   : > { %1326 = vst [vmem:[%s1529_s23 + $0x50] sm:$0xff] %v1290_v36   ;;  %v759_v44 = vmul.f32 %v1505_v24, %v586_v42  ;;  %v767_v45 = vmul.f32 %v1505_v24, %v606_v43 }
  0xe3   : > { %1330 = vst [vmem:[%s1529_s23 + $0x70] sm:$0xff] %v1310_v37   ;;  %v810_v54 = vadd.f32 %v1511_v28, %v774_v46  ;;  %v818_v55 = vadd.f32 %v1511_v28, %v782_v47 }
  0xe4   : > { %v795_v50 = vadd.f32 %v1511_v28, %v759_v44  ;;  %v803_v51 = vadd.f32 %v1511_v28, %v767_v45 }
  0xe5   : > { %v874_v2 = vmul.f32 0.01, %v810_v54  ;;  %v882_v3 = vmul.f32 0.01, %v818_v55  ;;  %vm842_vm12 = vcmp.ge.f32.partialorder %v810_v54, 0.0  ;;  %vm850_vm13 = vcmp.ge.f32.partialorder %v818_v55, 0.0 }
  0xe6   : > { %vm827_vm10 = vcmp.ge.f32.partialorder %v795_v50, 0.0  ;;  %v859_v52 = vmul.f32 0.01, %v795_v50  ;;  %vm835_vm11 = vcmp.ge.f32.partialorder %v803_v51, 0.0  ;;  %v867_v53 = vmul.f32 0.01, %v803_v51 }
  0xe7   : > { %v906_v8 = vsel %vm842_vm12, %v810_v54, %v874_v2  ;;  %v914_v9 = vsel %vm850_vm13, %v818_v55, %v882_v3 }
  0xe8   : > { %v891_v58 = vsel %vm827_vm10, %v795_v50, %v859_v52  ;;  %v899_v59 = vsel %vm835_vm11, %v803_v51, %v867_v53  ;;  %v626_v60 = vpop.f32.mrf.mxu2  ;;  %v646_v61 = vpop.f32.mrf.mxu3 }
  0xe9   : > { %v1255_v62 = vpack.c.bf16 %v891_v58, %v890_v56  ;;  %v1275_v63 = vpack.c.bf16 %v899_v59, %v898_v57  ;;  %v775_v0 = vmul.f32 %v1505_v24, %v626_v60  ;;  %v783_v1 = vmul.f32 %v1505_v24, %v646_v61 }
  0xeb   : > { %1319 = vst [vmem:[%s1529_s23 + $0x18] sm:$0xff] %v1255_v62   ;;  %v811_v4 = vadd.f32 %v1511_v28, %v775_v0  ;;  %v819_v5 = vadd.f32 %v1511_v28, %v783_v1 }
  0xec   : > { %1323 = vst [vmem:[%s1529_s23 + $0x38] sm:$0xff] %v1275_v63  }
  0xed   : > { %vm843_vm14 = vcmp.ge.f32.partialorder %v811_v4, 0.0  ;;  %v875_v6 = vmul.f32 0.01, %v811_v4  ;;  %vm851_vm15 = vcmp.ge.f32.partialorder %v819_v5, 0.0  ;;  %v883_v7 = vmul.f32 0.01, %v819_v5 }
  0xef   : > { %v907_v10 = vsel %vm843_vm14, %v811_v4, %v875_v6  ;;  %v915_v24 = vsel %vm851_vm15, %v819_v5, %v883_v7 }
  0xf0   : > { %v1295_v11 = vpack.c.bf16 %v907_v10, %v906_v8  ;;  %v1315_v12 = vpack.c.bf16 %v915_v24, %v914_v9 }
  0xf2   : > { %1327 = vst [vmem:[%s1529_s23 + $0x58] sm:$0xff] %v1295_v11  }
  0xf3   : > { %1331 = vst [vmem:[%s1529_s23 + $0x78] sm:$0xff] %v1315_v12  }
  0xf4 PF: > { %s14_s17 = sadd.s32 1, %s1404_s17   ;;  %s1613_s15 = smov %s1400_s16 }
  0xf5   : > { %p11_p5 = scmp.ge.s32.totalorder %s14_s17, 13   ;;  %s1614_s16 = smov %s1616_s18 }
  0xf7   :  { %13 = sbr.rel (!%p11_p5) target bundleno = 2 (0x2), region = 83 }

// kernel: _lambda_.27
= control target key start
LH: loop header
LB: loop body
LE: loop exit
PB: predicated region body
PF: predicated region fallthrough
CT: control target
= control target key end

     0   :  { %s1335_s15 = smov 0   ;;  %s1337_s16 = smov 0   ;;  %s1512_s0 = inlined_call_operand.vmem [shape: bf16[2304,128], index: 0, kind: input, shape index: {}]   ;;  %s1513_s1 = inlined_call_operand.vmem [shape: bf16[128,128], index: 1, kind: input, shape index: {}]   ;;  %s1514_s2 = inlined_call_operand.vmem [shape: f32[1,128], index: 2, kind: input, shape index: {}]   ;;  %s1515_s3 = inlined_call_operand.vmem [shape: f32[1,128], index: 3, kind: input, shape index: {}]   ;;  %s1516_s4 = inlined_call_operand.vmem [shape: bf16[2304,128], index: 4, kind: output, shape index: {}]  }
   0x1   :  { %s1339_s17 = smov 0  }
   0x2 LB: > { %s33_s18 = sadd.s32 1, %s1304_s16  ;;  %p1014_p0 = scmp.ge.s32.totalorder %s1308_s17, 1  ;;  %s1308_s17 = sphi %s1339_s17, %s14_s17   ;;  %s1304_s16 = sphi %s1337_s16, %s1518_s16   ;;  %s1300_s15 = sphi %s1335_s15, %s1517_s15  }
   0x3   : > { %p35_p1 = scmp.ge.s32.totalorder %s33_s18, 9  ;;  %p221_p2 = scmp.lt.s32.totalorder %s1308_s17, 10 }
   0x5   : > { %s1520_s18 = smov (%p35_p1, %s33_s18), 0  ;;  %p222_p3 = pnand %p1014_p0, %p221_p2 }
   0x6   : > { %s1015_s27 = sshll.u32 (!%p222_p3), %s1300_s15, 5 }
   0x7   : > { %225 = sbr.rel (%p222_p3) target bundleno = 241 (0xf1), region = 36  ;;  %p268_p4 = scmp.lt.s32.totalorder (!%p222_p3), %s1015_s27, 287 }
   0xc   : > { %v1140_v0 = vld [vmem:[%s1513_s1 + $0x38] sm:$0xff]  ;;  %v1139_v1 = vld [vmem:[%s1513_s1 + $0x30] sm:$0xff]  ;;  %v1138_v2 = vld [vmem:[%s1513_s1 + $0x28] sm:$0xff]  ;;  %s1522_s27 = smov (!%p268_p4, %s1015_s27), 287 }
   0xd   : > { %560 = vmatpush.bf16.msra.mxu0 %v1140_v0  ;;  %1236 = vmatpush.bf16.msra.mxu1 %v1140_v0  ;;  %v1137_v3 = vld [vmem:[%s1513_s1 + $0x20] sm:$0xff]  ;;  %v1136_v4 = vld [vmem:[%s1513_s1 + $0x18] sm:$0xff]  ;;  %v1135_v5 = vld [vmem:[%s1513_s1 + $0x10] sm:$0xff]  ;;  %s1016_s8 = sshll.u32 %s1522_s27, 2 }
   0xe   : > { %1237 = vmatpush.bf16.msra.mxu2 %v1140_v0  ;;  %1238 = vmatpush.bf16.msra.mxu3 %v1140_v0  ;;  %v1134_v6 = vld [vmem:[%s1513_s1 + $0x8] sm:$0xff]  ;;  %v1133_v7 = vld [vmem:[%s1513_s1] sm:$0xff]  ;;  %s1388_s13 = scalar_lea.vmem %s1512_s0, %s1016_s8  ;;  %s1429_s23 = scalar_lea.vmem %s1516_s4, %s1016_s8 }
   0xf   : > { %v1117_v8 = vld [vmem:[%s1388_s13] sm:$0xff]  ;;  %v1118_v12 = vld [vmem:[%s1388_s13 + $0x8] sm:$0xff]  ;;  %v1119_v16 = vld [vmem:[%s1388_s13 + $0x10] sm:$0xff] }
  0x10   : > { %v1121_v9 = vld [vmem:[%s1388_s13 + $0x20] sm:$0xff]  ;;  %v1122_v13 = vld [vmem:[%s1388_s13 + $0x28] sm:$0xff]  ;;  %v1123_v17 = vld [vmem:[%s1388_s13 + $0x30] sm:$0xff] }
  0x11   : > { %561 = vmatpush.bf16.msra.mxu0 %v1139_v1  ;;  %1239 = vmatpush.bf16.msra.mxu1 %v1139_v1  ;;  %v1125_v10 = vld [vmem:[%s1388_s13 + $0x40] sm:$0xff]  ;;  %v1126_v14 = vld [vmem:[%s1388_s13 + $0x48] sm:$0xff]  ;;  %v1127_v18 = vld [vmem:[%s1388_s13 + $0x50] sm:$0xff] }
  0x12   : > { %1240 = vmatpush.bf16.msra.mxu2 %v1139_v1  ;;  %1241 = vmatpush.bf16.msra.mxu3 %v1139_v1  ;;  %v1129_v11 = vld [vmem:[%s1388_s13 + $0x60] sm:$0xff]  ;;  %v1130_v15 = vld [vmem:[%s1388_s13 + $0x68] sm:$0xff]  ;;  %v1131_v19 = vld [vmem:[%s1388_s13 + $0x70] sm:$0xff] }
  0x13   : > { %v1120_v20 = vld [vmem:[%s1388_s13 + $0x18] sm:$0xff]  ;;  %v1409_v26 = vld [vmem:[%s1514_s2] ss:$0 sm:$0xff] }
  0x14   : > { %v1124_v21 = vld [vmem:[%s1388_s13 + $0x38] sm:$0xff]  ;;  %v1415_v28 = vld [vmem:[%s1515_s3] ss:$0 sm:$0xff] }
  0x15   : > { %562 = vmatpush.bf16.msra.mxu0 %v1138_v2  ;;  %1242 = vmatpush.bf16.msra.mxu1 %v1138_v2  ;;  %v1128_v22 = vld [vmem:[%s1388_s13 + $0x58] sm:$0xff] }
  0x16   : > { %1243 = vmatpush.bf16.msra.mxu2 %v1138_v2  ;;  %1244 = vmatpush.bf16.msra.mxu3 %v1138_v2  ;;  %v1132_v23 = vld [vmem:[%s1388_s13 + $0x78] sm:$0xff] }
  0x19   : > { %563 = vmatpush.bf16.msra.mxu0 %v1137_v3  ;;  %1245 = vmatpush.bf16.msra.mxu1 %v1137_v3 }
  0x1a   : > { %1246 = vmatpush.bf16.msra.mxu2 %v1137_v3  ;;  %1247 = vmatpush.bf16.msra.mxu3 %v1137_v3 }
  0x1d   : > { %564 = vmatpush.bf16.msra.mxu0 %v1136_v4  ;;  %1248 = vmatpush.bf16.msra.mxu1 %v1136_v4 }
  0x1e   : > { %1249 = vmatpush.bf16.msra.mxu2 %v1136_v4  ;;  %1250 = vmatpush.bf16.msra.mxu3 %v1136_v4 }
  0x21   : > { %565 = vmatpush.bf16.msra.mxu0 %v1135_v5  ;;  %1251 = vmatpush.bf16.msra.mxu1 %v1135_v5 }
  0x22   : > { %1252 = vmatpush.bf16.msra.mxu2 %v1135_v5  ;;  %1253 = vmatpush.bf16.msra.mxu3 %v1135_v5 }
  0x25   : > { %566 = vmatpush.bf16.msra.mxu0 %v1134_v6  ;;  %1254 = vmatpush.bf16.msra.mxu1 %v1134_v6 }
  0x26   : > { %1255 = vmatpush.bf16.msra.mxu2 %v1134_v6  ;;  %1256 = vmatpush.bf16.msra.mxu3 %v1134_v6 }
  0x29   : > { %567 = vmatpush.bf16.msra.mxu0 %v1133_v7  ;;  %1257 = vmatpush.bf16.msra.mxu1 %v1133_v7 }
  0x2a   : > { %1258 = vmatpush.bf16.msra.mxu2 %v1133_v7  ;;  %1259 = vmatpush.bf16.msra.mxu3 %v1133_v7 }
  0x2c   : > { %568 = vmatmul.bf16.vlgmr.msra.gmra.mxu0 %v1117_v8  ;;  %588 = vmatmul.bf16.vlgmr.msra.gmra.mxu1 %v1121_v9 }
  0x2d   : > { %608 = vmatmul.bf16.vlgmr.msra.gmra.mxu2 %v1125_v10  ;;  %628 = vmatmul.bf16.vlgmr.msra.gmra.mxu3 %v1129_v11 }
  0x3c   : > { %573 = vmatmul.bf16.gmra.mxu0 %v1118_v12  ;;  %593 = vmatmul.bf16.gmra.mxu1 %v1122_v13 }
  0x3d   : > { %613 = vmatmul.bf16.gmra.mxu2 %v1126_v14  ;;  %633 = vmatmul.bf16.gmra.mxu3 %v1130_v15 }
  0x4c   : > { %578 = vmatmul.bf16.gmra.mxu0 %v1119_v16  ;;  %598 = vmatmul.bf16.gmra.mxu1 %v1123_v17 }
  0x4d   : > { %618 = vmatmul.bf16.gmra.mxu2 %v1127_v18  ;;  %638 = vmatmul.bf16.gmra.mxu3 %v1131_v19 }
  0x5c   : > { %583 = vmatmul.bf16.gmra.mxu0 %v1120_v20  ;;  %603 = vmatmul.bf16.gmra.mxu1 %v1124_v21 }
  0x5d   : > { %623 = vmatmul.bf16.gmra.mxu2 %v1128_v22  ;;  %643 = vmatmul.bf16.gmra.mxu3 %v1132_v23 }
  0xa9   : > { %v569_v24 = vpop.f32.mrf.mxu0  ;;  %v589_v25 = vpop.f32.mrf.mxu1 }
  0xaa   : > { %v752_v27 = vmul.f32 %v1409_v26, %v569_v24  ;;  %v760_v29 = vmul.f32 %v1409_v26, %v589_v25 }
  0xac   : > { %v788_v36 = vadd.f32 %v1415_v28, %v752_v27  ;;  %v796_v37 = vadd.f32 %v1415_v28, %v760_v29 }
  0xb0   : > { %v609_v30 = vpop.f32.mrf.mxu2  ;;  %v629_v31 = vpop.f32.mrf.mxu3 }
  0xb1   : > { %v571_v32 = vpop.f32.mrf.mxu0  ;;  %v591_v33 = vpop.f32.mrf.mxu1  ;;  %v768_v42 = vmul.f32 %v1409_v26, %v609_v30  ;;  %v776_v43 = vmul.f32 %v1409_v26, %v629_v31 }
  0xb2   : > { %v753_v34 = vmul.f32 %v1409_v26, %v571_v32  ;;  %v761_v35 = vmul.f32 %v1409_v26, %v591_v33 }
  0xb3   : > { %v804_v50 = vadd.f32 %v1415_v28, %v768_v42  ;;  %v812_v51 = vadd.f32 %v1415_v28, %v776_v43 }
  0xb4   : > { %v789_v38 = vadd.f32 %v1415_v28, %v753_v34  ;;  %v797_v39 = vadd.f32 %v1415_v28, %v761_v35 }
  0xb6   : > { %v1144_v40 = vpack.c.bf16 %v789_v38, %v788_v36  ;;  %v1164_v41 = vpack.c.bf16 %v797_v39, %v796_v37 }
  0xb8   : > { %1145 = vst [vmem:[%s1429_s23] sm:$0xff] %v1144_v40   ;;  %v611_v44 = vpop.f32.mrf.mxu2  ;;  %v631_v45 = vpop.f32.mrf.mxu3 }
  0xb9   : > { %1224 = vst [vmem:[%s1429_s23 + $0x20] sm:$0xff] %v1164_v41   ;;  %v769_v46 = vmul.f32 %v1409_v26, %v611_v44  ;;  %v777_v47 = vmul.f32 %v1409_v26, %v631_v45  ;;  %v574_v48 = vpop.f32.mrf.mxu0  ;;  %v594_v49 = vpop.f32.mrf.mxu1 }
  0xba   : > { %v754_v56 = vmul.f32 %v1409_v26, %v574_v48  ;;  %v762_v57 = vmul.f32 %v1409_v26, %v594_v49 }
  0xbb   : > { %v805_v52 = vadd.f32 %v1415_v28, %v769_v46  ;;  %v813_v53 = vadd.f32 %v1415_v28, %v777_v47 }
  0xbc   : > { %v790_v0 = vadd.f32 %v1415_v28, %v754_v56  ;;  %v798_v1 = vadd.f32 %v1415_v28, %v762_v57 }
  0xbd   : > { %v1184_v54 = vpack.c.bf16 %v805_v52, %v804_v50  ;;  %v1204_v55 = vpack.c.bf16 %v813_v53, %v812_v51 }
  0xbf   : > { %1228 = vst [vmem:[%s1429_s23 + $0x40] sm:$0xff] %v1184_v54  }
  0xc0   : > { %1232 = vst [vmem:[%s1429_s23 + $0x60] sm:$0xff] %v1204_v55   ;;  %v614_v58 = vpop.f32.mrf.mxu2  ;;  %v634_v59 = vpop.f32.mrf.mxu3 }
  0xc1   : > { %v576_v60 = vpop.f32.mrf.mxu0  ;;  %v596_v61 = vpop.f32.mrf.mxu1  ;;  %v770_v6 = vmul.f32 %v1409_v26, %v614_v58  ;;  %v778_v7 = vmul.f32 %v1409_v26, %v634_v59 }
  0xc2   : > { %v755_v62 = vmul.f32 %v1409_v26, %v576_v60  ;;  %v763_v63 = vmul.f32 %v1409_v26, %v596_v61 }
  0xc3   : > { %v806_v14 = vadd.f32 %v1415_v28, %v770_v6  ;;  %v814_v15 = vadd.f32 %v1415_v28, %v778_v7 }
  0xc4   : > { %v791_v2 = vadd.f32 %v1415_v28, %v755_v62  ;;  %v799_v3 = vadd.f32 %v1415_v28, %v763_v63 }
  0xc6   : > { %v1149_v4 = vpack.c.bf16 %v791_v2, %v790_v0  ;;  %v1169_v5 = vpack.c.bf16 %v799_v3, %v798_v1 }
  0xc8   : > { %1221 = vst [vmem:[%s1429_s23 + $0x8] sm:$0xff] %v1149_v4   ;;  %v616_v8 = vpop.f32.mrf.mxu2  ;;  %v636_v9 = vpop.f32.mrf.mxu3 }
  0xc9   : > { %1225 = vst [vmem:[%s1429_s23 + $0x28] sm:$0xff] %v1169_v5   ;;  %v771_v10 = vmul.f32 %v1409_v26, %v616_v8  ;;  %v779_v11 = vmul.f32 %v1409_v26, %v636_v9  ;;  %v579_v12 = vpop.f32.mrf.mxu0  ;;  %v599_v13 = vpop.f32.mrf.mxu1 }
  0xca   : > { %v756_v20 = vmul.f32 %v1409_v26, %v579_v12  ;;  %v764_v21 = vmul.f32 %v1409_v26, %v599_v13 }
  0xcb   : > { %v807_v16 = vadd.f32 %v1415_v28, %v771_v10  ;;  %v815_v17 = vadd.f32 %v1415_v28, %v779_v11 }
  0xcc   : > { %v792_v30 = vadd.f32 %v1415_v28, %v756_v20  ;;  %v800_v31 = vadd.f32 %v1415_v28, %v764_v21 }
  0xcd   : > { %v1189_v18 = vpack.c.bf16 %v807_v16, %v806_v14  ;;  %v1209_v19 = vpack.c.bf16 %v815_v17, %v814_v15 }
  0xcf   : > { %1229 = vst [vmem:[%s1429_s23 + $0x48] sm:$0xff] %v1189_v18  }
  0xd0   : > { %1233 = vst [vmem:[%s1429_s23 + $0x68] sm:$0xff] %v1209_v19   ;;  %v619_v22 = vpop.f32.mrf.mxu2  ;;  %v639_v23 = vpop.f32.mrf.mxu3 }
  0xd1   : > { %v581_v24 = vpop.f32.mrf.mxu0  ;;  %v601_v25 = vpop.f32.mrf.mxu1  ;;  %v772_v36 = vmul.f32 %v1409_v26, %v619_v22  ;;  %v780_v37 = vmul.f32 %v1409_v26, %v639_v23 }
  0xd2   : > { %v757_v27 = vmul.f32 %v1409_v26, %v581_v24  ;;  %v765_v29 = vmul.f32 %v1409_v26, %v601_v25 }
  0xd3   : > { %v808_v44 = vadd.f32 %v1415_v28, %v772_v36  ;;  %v816_v45 = vadd.f32 %v1415_v28, %v780_v37 }
  0xd4   : > { %v793_v32 = vadd.f32 %v1415_v28, %v757_v27  ;;  %v801_v33 = vadd.f32 %v1415_v28, %v765_v29 }
  0xd6   : > { %v1154_v34 = vpack.c.bf16 %v793_v32, %v792_v30  ;;  %v1174_v35 = vpack.c.bf16 %v801_v33, %v800_v31 }
  0xd8   : > { %1222 = vst [vmem:[%s1429_s23 + $0x10] sm:$0xff] %v1154_v34   ;;  %v621_v38 = vpop.f32.mrf.mxu2  ;;  %v641_v39 = vpop.f32.mrf.mxu3 }
  0xd9   : > { %1226 = vst [vmem:[%s1429_s23 + $0x30] sm:$0xff] %v1174_v35   ;;  %v773_v40 = vmul.f32 %v1409_v26, %v621_v38  ;;  %v781_v41 = vmul.f32 %v1409_v26, %v641_v39  ;;  %v584_v42 = vpop.f32.mrf.mxu0  ;;  %v604_v43 = vpop.f32.mrf.mxu1 }
  0xda   : > { %v758_v50 = vmul.f32 %v1409_v26, %v584_v42  ;;  %v766_v51 = vmul.f32 %v1409_v26, %v604_v43 }
  0xdb   : > { %v809_v46 = vadd.f32 %v1415_v28, %v773_v40  ;;  %v817_v47 = vadd.f32 %v1415_v28, %v781_v41 }
  0xdc   : > { %v794_v58 = vadd.f32 %v1415_v28, %v758_v50  ;;  %v802_v59 = vadd.f32 %v1415_v28, %v766_v51 }
  0xdd   : > { %v1194_v48 = vpack.c.bf16 %v809_v46, %v808_v44  ;;  %v1214_v49 = vpack.c.bf16 %v817_v47, %v816_v45 }
  0xdf   : > { %1230 = vst [vmem:[%s1429_s23 + $0x50] sm:$0xff] %v1194_v48  }
  0xe0   : > { %1234 = vst [vmem:[%s1429_s23 + $0x70] sm:$0xff] %v1214_v49   ;;  %v624_v52 = vpop.f32.mrf.mxu2  ;;  %v644_v53 = vpop.f32.mrf.mxu3 }
  0xe1   : > { %v586_v54 = vpop.f32.mrf.mxu0  ;;  %v606_v55 = vpop.f32.mrf.mxu1  ;;  %v774_v0 = vmul.f32 %v1409_v26, %v624_v52  ;;  %v782_v1 = vmul.f32 %v1409_v26, %v644_v53 }
  0xe2   : > { %v759_v56 = vmul.f32 %v1409_v26, %v586_v54  ;;  %v767_v57 = vmul.f32 %v1409_v26, %v606_v55 }
  0xe3   : > { %v810_v6 = vadd.f32 %v1415_v28, %v774_v0  ;;  %v818_v7 = vadd.f32 %v1415_v28, %v782_v1 }
  0xe4   : > { %v795_v60 = vadd.f32 %v1415_v28, %v759_v56  ;;  %v803_v61 = vadd.f32 %v1415_v28, %v767_v57 }
  0xe6   : > { %v1159_v62 = vpack.c.bf16 %v795_v60, %v794_v58  ;;  %v1179_v63 = vpack.c.bf16 %v803_v61, %v802_v59 }
  0xe8   : > { %1223 = vst [vmem:[%s1429_s23 + $0x18] sm:$0xff] %v1159_v62   ;;  %v626_v2 = vpop.f32.mrf.mxu2  ;;  %v646_v3 = vpop.f32.mrf.mxu3 }
  0xe9   : > { %1227 = vst [vmem:[%s1429_s23 + $0x38] sm:$0xff] %v1179_v63   ;;  %v775_v4 = vmul.f32 %v1409_v26, %v626_v2  ;;  %v783_v5 = vmul.f32 %v1409_v26, %v646_v3 }
  0xeb   : > { %v811_v8 = vadd.f32 %v1415_v28, %v775_v4  ;;  %v819_v9 = vadd.f32 %v1415_v28, %v783_v5 }
  0xed   : > { %v1199_v10 = vpack.c.bf16 %v811_v8, %v810_v6  ;;  %v1219_v11 = vpack.c.bf16 %v819_v9, %v818_v7 }
  0xef   : > { %1231 = vst [vmem:[%s1429_s23 + $0x58] sm:$0xff] %v1199_v10  }
  0xf0   : > { %1235 = vst [vmem:[%s1429_s23 + $0x78] sm:$0xff] %v1219_v11  }
  0xf1 PF: > { %s14_s17 = sadd.s32 1, %s1308_s17   ;;  %s1517_s15 = smov %s1304_s16 }
  0xf2   : > { %p11_p5 = scmp.ge.s32.totalorder %s14_s17, 11   ;;  %s1518_s16 = smov %s1520_s18 }
  0xf4   :  { %13 = sbr.rel (!%p11_p5) target bundleno = 2 (0x2), region = 83 }

</bundles_post_ra>
